<compile_context>
chip_gen: v7x
topology: tpu7x:2x2x1
jax: 0.10.0
libtpu: 0.0.40
codegen_flags: <defaults>
</compile_context>

<pallas_src>
import math

import jax
import jax.numpy as jnp
from jax.experimental import pallas as pl
from jax.experimental.pallas import tpu as pltpu

F32 = jnp.float32


# ----------------------------------------------------------------------------
# Shared helpers
# ----------------------------------------------------------------------------
def _layernorm(x, g, b, eps=1e-5):
    mu = jnp.mean(x, axis=-1, keepdims=True)
    d = x - mu
    var = jnp.mean(d * d, axis=-1, keepdims=True)
    return d * jax.lax.rsqrt(var + eps) * g + b


def _adj_apply(adj, feat):
    """out[..., n, :] = sum_m adj[n, m] * feat[..., m, :]  (pure VPU).

    adj: (N, N), feat: (B, T, N, H).  With N == 8 this is N broadcast
    multiply-adds instead of B*T tiny 8x8 MXU matmuls with full fill/drain.
    """
    N = feat.shape[2]
    out = None
    for m in range(N):
        col = adj[:, m:m + 1].reshape(1, 1, N, 1)       # lane-broadcast column
        term = col * feat[:, :, m:m + 1, :]             # sublane-broadcast row
        out = term if out is None else out + term
    return out


# ----------------------------------------------------------------------------
# Optimized forward math — traced INSIDE the Pallas kernel only
# (uses pl.reciprocal, so it must not be called outside a kernel).
# ----------------------------------------------------------------------------
def _fused_forward(x, p):
    """x: (B, T, N, H) -> (B, N, 2H)."""
    B, T, N, H = x.shape
    M = B * T * N

    adjs = p["adjs_n"]                       # (2, N, N)
    bb_W, bb_b = p["bb_W"], p["bb_b"]        # (2, Lb, H, H), (2, Lb, H)
    bb_g, bb_e = p["bb_g"], p["bb_e"]        # (2, Lb, H)
    wdiag = p["win_diag"]                    # (Wsz, N, 1) diag of each A_w
    st_W, st_b = p["st_W"], p["st_b"]        # (D, H, 2H), (D, 2H)
    st_g, st_e = p["st_g"], p["st_e"]        # (D, H)
    e_clf, e_map = p["edge_clf"], p["edge_map"]   # (H, E), (E, E)
    hy_g, hy_e = p["hy_g"], p["hy_e"]        # (1, H)
    loc_W, loc_b = p["loc_W"], p["loc_b"]    # (H, H), (1, H)
    glo_W, glo_b = p["glo_W"], p["glo_b"]    # (H, H), (1, H)

    nb = adjs.shape[0]
    Lb = bb_W.shape[1]
    Wsz = wdiag.shape[0]
    D = st_W.shape[0]
    E = e_clf.shape[1]

    # ------------------------- STBackbone -------------------------
    # TODO(synk): GNNLayer is not defined in the reference source; substituted
    # with a shape-preserving graph-conv residual block:
    #   LayerNorm(relu(adj_n @ (h W + b)) + h)
    # Layer 0 of both branches consumes the same x -> one fused (H, 2H) matmul.
    x2d = x.reshape(M, H)
    w0c = jnp.concatenate([bb_W[0, 0], bb_W[1, 0]], axis=-1)          # (H, 2H)
    b0c = jnp.concatenate([bb_b[0, 0].reshape(1, H),
                           bb_b[1, 0].reshape(1, H)], axis=-1)        # (1, 2H)
    z0_all = jnp.dot(x2d, w0c, preferred_element_type=F32) + b0c      # (M, 2H)

    branch_out = None
    for i in range(nb):
        z = z0_all[:, i * H:(i + 1) * H].reshape(B, T, N, H)
        zc = jnp.maximum(_adj_apply(adjs[i], z), 0.0)
        h = _layernorm(zc + x, bb_g[i, 0].reshape(1, H),
                       bb_e[i, 0].reshape(1, H))
        for j in range(1, Lb):                       # deeper layers (unfused)
            z = (jnp.dot(h.reshape(M, H), bb_W[i, j],
                         preferred_element_type=F32)
                 + bb_b[i, j].reshape(1, H)).reshape(B, T, N, H)
            zc = jnp.maximum(_adj_apply(adjs[i], z), 0.0)
            h = _layernorm(zc + h, bb_g[i, j].reshape(1, H),
                           bb_e[i, j].reshape(1, H))
        branch_out = h if branch_out is None else jnp.maximum(branch_out, h)
    xcur = branch_out

    # Hoisted, loop-invariant broadcasts.
    em_b = jnp.broadcast_to(e_map, (B, E, E))
    dws = [wdiag[w].reshape(1, 1, N, 1) for w in range(Wsz)]
    TPAD = Wsz - 1

    for d in range(D):
        # ---- SpatialTemporalInteractiveGCN (fused proj, diag windowed conv) --
        bias = st_b[d].reshape(1, 2 * H)
        projc = (jnp.dot(xcur.reshape(M, H), st_W[d],
                         preferred_element_type=F32) + bias
                 ).reshape(B, T, N, 2 * H)
        # Zero-padded window rows project to exactly the bias -> pad projc
        # with the bias instead of projecting dead zero rows.
        projp = jnp.concatenate(
            [jnp.broadcast_to(bias.reshape(1, 1, 1, 2 * H),
                              (B, TPAD, N, 2 * H)), projc], axis=1)
        # Each A_w is diagonal (asserted at init) => conv is a per-node-scaled
        # shifted sum; no adjacency contractions at all.
        conv = None
        for w in range(Wsz):
            term = dws[w] * projp[:, w:w + T]
            conv = term if conv is None else conv + term
        l1 = conv[..., :H]
        l2 = conv[..., H:]
        full = jnp.maximum(l1 * l2, 0.0) + l1
        out1 = _layernorm(full + xcur, st_g[d].reshape(1, H),
                          st_e[d].reshape(1, H))

        # ---- HypergraphLearning (parameters shared across depth) ----
        feat2 = xcur.reshape(B, T * N, H)
        logits = jnp.dot(xcur.reshape(M, H), e_clf,
                         preferred_element_type=F32).reshape(B, T * N, E)
        mx = jnp.max(logits, axis=-1, keepdims=True)
        ex = jnp.exp(logits - mx)
        den = jnp.sum(ex, axis=-1, keepdims=True)
        r = pl.reciprocal(den, approx=True)          # EUP slot
        r = r * (2.0 - den * r)                      # one Newton step (~f32)
        assign = ex * r                              # (B, TN, E)
        hyper_feat = jnp.einsum("ben,bnh->beh", jnp.swapaxes(assign, 1, 2),
                                feat2, preferred_element_type=F32)   # (B, E, H)
        mapped = jnp.maximum(
            jnp.einsum("bfe,beh->bfh", em_b, hyper_feat,
                       preferred_element_type=F32), 0.0)
        hyper_out = mapped + hyper_feat
        y = jnp.maximum(
            jnp.einsum("bne,beh->bnh", assign, hyper_out,
                       preferred_element_type=F32), 0.0)
        out2 = _layernorm(y.reshape(B, T, N, H) + xcur, hy_g, hy_e)

        # TODO(synk): nn.Dropout between head layers treated as eval-mode identity.
        xcur = (out1 + out2) * 0.5

    # ------------------------- fusion head -------------------------
    local = xcur[:, T - 1]                            # (B, N, H)
    glob = jnp.sum(xcur, axis=1) * (1.0 / T)          # (B, N, H)
    lf = jnp.maximum(jnp.dot(local.reshape(B * N, H), loc_W,
                             preferred_element_type=F32) + loc_b, 0.0)
    gf = jnp.maximum(jnp.dot(glob.reshape(B * N, H), glo_W,
                             preferred_element_type=F32) + glo_b, 0.0)
    return jnp.concatenate([lf.reshape(B, N, H), gf.reshape(B, N, H)], axis=-1)


# ----------------------------------------------------------------------------
# Straightforward XLA reference of the same module math (general adjacency,
# zero-pad windowing, exact softmax) — used only for the correctness check.
# ----------------------------------------------------------------------------
def _reference_forward(x, p):
    B, T, N, H = x.shape
    adjs = p["adjs_n"]
    bb_W, bb_b, bb_g, bb_e = p["bb_W"], p["bb_b"], p["bb_g"], p["bb_e"]
    A_stack = p["A_stack"]
    st_W, st_b, st_g, st_e = p["st_W"], p["st_b"], p["st_g"], p["st_e"]
    e_clf, e_map = p["edge_clf"], p["edge_map"]
    hy_g, hy_e = p["hy_g"], p["hy_e"]
    loc_W, loc_b = p["loc_W"], p["loc_b"]
    glo_W, glo_b = p["glo_W"], p["glo_b"]

    nb, Lb = bb_W.shape[0], bb_W.shape[1]
    Wsz = A_stack.shape[0]
    D = st_W.shape[0]

    branch_out = None
    for i in range(nb):
        adj_b = jnp.broadcast_to(adjs[i], (B * T, N, N))
        h = x
        for j in range(Lb):
            z = h.reshape(B * T * N, H) @ bb_W[i, j] + bb_b[i, j].reshape(1, H)
            zc = jnp.einsum("bnm,bmh->bnh", adj_b, z.reshape(B * T, N, H))
            zc = jnp.maximum(zc, 0.0).reshape(B, T, N, H)
            h = _layernorm(zc + h, bb_g[i, j].reshape(1, H),
                           bb_e[i, j].reshape(1, H))
        branch_out = h if branch_out is None else jnp.maximum(branch_out, h)
    xcur = branch_out

    TP = T + Wsz - 1
    for d in range(D):
        featp = jnp.concatenate([jnp.zeros((B, Wsz - 1, N, H), F32), xcur],
                                axis=1)
        projc = (featp.reshape(B * TP * N, H) @ st_W[d]
                 + st_b[d].reshape(1, 2 * H)).reshape(B, TP, N, 2 * H)
        conv = None
        for w in range(Wsz):
            seg = projc[:, w:w + T].reshape(B * T, N, 2 * H)
            term = jnp.einsum("nm,bmh->bnh", A_stack[w], seg)
            conv = term if conv is None else conv + term
        conv = conv.reshape(B, T, N, 2 * H)
        l1, l2 = conv[..., :H], conv[..., H:]
        full = jnp.maximum(l1 * l2, 0.0) + l1
        out1 = _layernorm(full + xcur, st_g[d].reshape(1, H),
                          st_e[d].reshape(1, H))

        feat2 = xcur.reshape(B, T * N, H)
        assign = jax.nn.softmax(feat2 @ e_clf, axis=-1)
        hyper_feat = jnp.einsum("bne,bnh->beh", assign, feat2)
        mapped = jnp.maximum(jnp.einsum("fe,beh->bfh", e_map, hyper_feat), 0.0)
        hyper_out = mapped + hyper_feat
        y = jnp.maximum(jnp.einsum("bne,beh->bnh", assign, hyper_out), 0.0)
        out2 = _layernorm(y.reshape(B, T, N, H) + xcur, hy_g, hy_e)

        xcur = (out1 + out2) * 0.5

    local = xcur[:, T - 1]
    glob = jnp.mean(xcur, axis=1)
    lf = jnp.maximum(local.reshape(B * N, H) @ loc_W + loc_b, 0.0)
    gf = jnp.maximum(glob.reshape(B * N, H) @ glo_W + glo_b, 0.0)
    return jnp.concatenate([lf, gf], axis=-1).reshape(B, N, 2 * H)


# ----------------------------------------------------------------------------
# Single fused pallas_call (no grid: everything VMEM-resident, one invocation)
# ----------------------------------------------------------------------------
_KERNEL_KEYS = ("adjs_n", "bb_W", "bb_b", "bb_g", "bb_e",
                "win_diag", "st_W", "st_b", "st_g", "st_e",
                "edge_clf", "edge_map", "hy_g", "hy_e",
                "loc_W", "loc_b", "glo_W", "glo_b")


def main_model_forward(params, x):
    B, T, N, H = x.shape
    flat = [params[k] for k in _KERNEL_KEYS]

    def kernel(x_ref, *refs):
        param_refs, o_ref = refs[:-1], refs[-1]
        p = {k: r[...] for k, r in zip(_KERNEL_KEYS, param_refs)}
        o_ref[...] = _fused_forward(x_ref[...], p)

    D = params["st_W"].shape[0]
    E = params["edge_clf"].shape[1]
    Lb = params["bb_W"].shape[1]
    M = B * T * N
    flops = (
        2 * M * H * (2 * H)                       # fused backbone layer-0 proj
        + 2 * Lb * (2 * M * H * N)                # backbone adjacency (VPU)
        + max(Lb - 1, 0) * 2 * (2 * M * H * H)    # deeper backbone layers
        + D * (2 * M * H * (2 * H)                # fused proj_1/proj_2
               + 4 * M * (2 * H)                  # windowed shifted adds
               + 2 * M * H * E                    # edge classifier
               + 4 * M * E * H                    # assign^T@feat, assign@hyper
               + 2 * B * E * E * H)               # edge_map @ hyper_feat
        + 4 * B * N * H * H                       # fusion heads
    )
    transcendentals = D * M * E                   # softmax exp
    bytes_accessed = 4 * (x.size + sum(a.size for a in flat) + B * N * 2 * H)

    vmem_spec = pl.BlockSpec(memory_space=pltpu.MemorySpace.VMEM)
    return pl.pallas_call(
        kernel,
        out_shape=jax.ShapeDtypeStruct((B, N, 2 * H), jnp.float32),
        in_specs=[vmem_spec] * (1 + len(flat)),
        out_specs=vmem_spec,
        cost_estimate=pl.CostEstimate(
            flops=int(flops),
            transcendentals=int(transcendentals),
            bytes_accessed=int(bytes_accessed)),
    )(x, *flat)


# ----------------------------------------------------------------------------
# Deterministic parameter construction
# ----------------------------------------------------------------------------
def norm_adj(a, eps=1e-6):
    # TODO(synk): norm_adj is not defined in the reference source; using row
    # normalization (D^-1 A) as a standard substitute.
    return a / (jnp.sum(a, axis=-1, keepdims=True) + eps)


def init_params(key, cfg):
    N = cfg["num_nodes"]
    H = cfg["hidden_dim"]
    E = cfg["num_hyper_edge"]
    Wsz = cfg["winsize"]
    Lb = cfg["num_backbone_layers"]
    D = cfg["num_head_layers"]

    keys = iter(jax.random.split(key, 256))

    def rnd(shape, scale):
        return jax.random.normal(next(keys), shape, jnp.float32) * scale

    def lin_t(in_dim, out_dim):
        # nn.Linear weight (out, in) pre-transposed to (in, out).
        s = 1.0 / math.sqrt(in_dim)
        return rnd((out_dim, in_dim), s).T, rnd((out_dim,), s)

    # Predefined adjacencies (args.predefined_adjs / args.predefined_adj).
    adjs_raw = [jax.random.uniform(next(keys), (N, N), jnp.float32)
                for _ in range(2)]
    adj = adjs_raw[0]
    adjs_n = jnp.stack([norm_adj(a) for a in adjs_raw])               # (2,N,N)

    # Backbone: 2 branches x Lb layers.
    bb_W, bb_b = [], []
    for _ in range(2):
        Ws, bs = [], []
        for _ in range(Lb):
            Wt, b = lin_t(H, H)
            Ws.append(Wt)
            bs.append(b)
        bb_W.append(jnp.stack(Ws))
        bb_b.append(jnp.stack(bs))
    bb_W = jnp.stack(bb_W)                                            # (2,Lb,H,H)
    bb_b = jnp.stack(bb_b)                                            # (2,Lb,H)
    bb_g = jnp.ones((2, Lb, H), jnp.float32)
    bb_e = jnp.zeros((2, Lb, H), jnp.float32)

    # Expanded adjacency — faithful to the reference construction (the adj
    # block is immediately overwritten by the tiled identity, exactly as in
    # the PyTorch source, so `adj` is dead there too).
    exp = jnp.zeros((N, N * Wsz), jnp.float32)
    exp = exp.at[:, -N:].set(adj)
    exp = exp.at[:, :].set(jnp.tile(jnp.eye(N, dtype=jnp.float32), (1, Wsz)))
    exp = norm_adj(exp)
    A_stack = jnp.stack([exp[:, w * N:(w + 1) * N] for w in range(Wsz)])  # (W,N,N)

    # Every window block is diagonal by construction; the kernel's windowed
    # conv relies on this (it becomes per-node-scaled shifted adds).
    offdiag_max = float(jnp.max(jnp.abs(
        A_stack * (1.0 - jnp.eye(N, dtype=jnp.float32)))))
    assert offdiag_max < 1e-6, offdiag_max
    win_diag = jnp.diagonal(A_stack, axis1=1, axis2=2).reshape(Wsz, N, 1)

    # STGCN head layers: proj_1 / proj_2 fused into one (H, 2H) weight.
    st_W, st_b = [], []
    for _ in range(D):
        W1, b1 = lin_t(H, H)
        W2, b2 = lin_t(H, H)
        st_W.append(jnp.concatenate([W1, W2], axis=1))
        st_b.append(jnp.concatenate([b1, b2], axis=0))
    st_W = jnp.stack(st_W)                                            # (D,H,2H)
    st_b = jnp.stack(st_b)                                            # (D,2H)
    st_g = jnp.ones((D, H), jnp.float32)
    st_e = jnp.zeros((D, H), jnp.float32)

    # Shared HypergraphLearning parameters.
    edge_clf = rnd((H, E), 1.0 / math.sqrt(E))
    edge_map = rnd((E, E), 1.0 / math.sqrt(E))
    hy_g = jnp.ones((1, H), jnp.float32)
    hy_e = jnp.zeros((1, H), jnp.float32)

    # Fusion head (n_paths = 1, main_output_dim // 2 == H).
    loc_W, loc_b = lin_t(H, H)
    glo_W, glo_b = lin_t(H, H)

    return {
        "adjs_n": adjs_n, "bb_W": bb_W, "bb_b": bb_b, "bb_g": bb_g, "bb_e": bb_e,
        "A_stack": A_stack, "win_diag": win_diag,
        "st_W": st_W, "st_b": st_b, "st_g": st_g, "st_e": st_e,
        "edge_clf": edge_clf, "edge_map": edge_map, "hy_g": hy_g, "hy_e": hy_e,
        "loc_W": loc_W, "loc_b": loc_b.reshape(1, H),
        "glo_W": glo_W, "glo_b": glo_b.reshape(1, H),
    }


# ----------------------------------------------------------------------------
if __name__ == "__main__":
    cfg = dict(
        batch=2,
        temporal_length=12,
        num_nodes=8,
        hidden_dim=32,
        num_hyper_edge=16,
        winsize=2,
        num_backbone_layers=1,
        num_head_layers=2,
    )

    key = jax.random.PRNGKey(0)
    pkey, xkey = jax.random.split(key)
    params = init_params(pkey, cfg)
    x = jax.random.normal(
        xkey,
        (cfg["batch"], cfg["temporal_length"], cfg["num_nodes"],
         cfg["hidden_dim"]),
        jnp.float32,
    )

    out = jax.block_until_ready(jax.jit(main_model_forward)(params, x))

    # Pure-XLA reference (f32 matmul precision) of the same module math.
    with jax.default_matmul_precision("float32"):
        ref = jax.block_until_ready(jax.jit(_reference_forward)(x, params))

    assert out.shape == (cfg["batch"], cfg["num_nodes"],
                         2 * cfg["hidden_dim"]), out.shape
    assert bool(jnp.all(jnp.isfinite(out)))
    max_err = float(jnp.max(jnp.abs(out - ref)))
    # Bounded by f32-via-MXU multi-pass accumulation-order differences between
    # Mosaic and XLA (50x tighter than the previous 5e-2 check).
    assert bool(jnp.allclose(out, ref, rtol=1e-3, atol=1e-3)), max_err
    print("KERNEL_OK")
</pallas_src>

<mosaic_0001>
module attributes {stable_mosaic.version = 11 : i64} {
  func.func @kernel(%arg0: memref<2x12x8x32xf32, #tpu.memory_space<vmem>>, %arg1: memref<2x8x8xf32, #tpu.memory_space<vmem>>, %arg2: memref<2x1x32x32xf32, #tpu.memory_space<vmem>>, %arg3: memref<2x1x32xf32, #tpu.memory_space<vmem>>, %arg4: memref<2x1x32xf32, #tpu.memory_space<vmem>>, %arg5: memref<2x1x32xf32, #tpu.memory_space<vmem>>, %arg6: memref<2x8x1xf32, #tpu.memory_space<vmem>>, %arg7: memref<2x32x64xf32, #tpu.memory_space<vmem>>, %arg8: memref<2x64xf32, #tpu.memory_space<vmem>>, %arg9: memref<2x32xf32, #tpu.memory_space<vmem>>, %arg10: memref<2x32xf32, #tpu.memory_space<vmem>>, %arg11: memref<32x16xf32, #tpu.memory_space<vmem>>, %arg12: memref<16x16xf32, #tpu.memory_space<vmem>>, %arg13: memref<1x32xf32, #tpu.memory_space<vmem>>, %arg14: memref<1x32xf32, #tpu.memory_space<vmem>>, %arg15: memref<32x32xf32, #tpu.memory_space<vmem>>, %arg16: memref<1x32xf32, #tpu.memory_space<vmem>>, %arg17: memref<32x32xf32, #tpu.memory_space<vmem>>, %arg18: memref<1x32xf32, #tpu.memory_space<vmem>>, %arg19: memref<2x8x64xf32, #tpu.memory_space<vmem>>) attributes {dimension_semantics = [], scalar_prefetch = 0 : i64, scratch_operands = 0 : i64, tpu.core_type = #tpu.core_type<tc>} {
    %c0 = arith.constant 0 : index
    %c0_0 = arith.constant 0 : index
    %c0_1 = arith.constant 0 : index
    %0 = vector.load %arg1[%c0, %c0_0, %c0_1] : memref<2x8x8xf32, #tpu.memory_space<vmem>>, vector<2x8x8xf32>
    %c0_2 = arith.constant 0 : index
    %c0_3 = arith.constant 0 : index
    %c0_4 = arith.constant 0 : index
    %c0_5 = arith.constant 0 : index
    %1 = vector.load %arg2[%c0_2, %c0_3, %c0_4, %c0_5] : memref<2x1x32x32xf32, #tpu.memory_space<vmem>>, vector<2x1x32x32xf32>
    %c0_6 = arith.constant 0 : index
    %c0_7 = arith.constant 0 : index
    %c0_8 = arith.constant 0 : index
    %2 = vector.load %arg3[%c0_6, %c0_7, %c0_8] : memref<2x1x32xf32, #tpu.memory_space<vmem>>, vector<2x1x32xf32>
    %c0_9 = arith.constant 0 : index
    %c0_10 = arith.constant 0 : index
    %c0_11 = arith.constant 0 : index
    %3 = vector.load %arg4[%c0_9, %c0_10, %c0_11] : memref<2x1x32xf32, #tpu.memory_space<vmem>>, vector<2x1x32xf32>
    %c0_12 = arith.constant 0 : index
    %c0_13 = arith.constant 0 : index
    %c0_14 = arith.constant 0 : index
    %4 = vector.load %arg5[%c0_12, %c0_13, %c0_14] : memref<2x1x32xf32, #tpu.memory_space<vmem>>, vector<2x1x32xf32>
    %c0_15 = arith.constant 0 : index
    %c0_16 = arith.constant 0 : index
    %c0_17 = arith.constant 0 : index
    %5 = vector.load %arg6[%c0_15, %c0_16, %c0_17] : memref<2x8x1xf32, #tpu.memory_space<vmem>>, vector<2x8x1xf32>
    %c0_18 = arith.constant 0 : index
    %c0_19 = arith.constant 0 : index
    %c0_20 = arith.constant 0 : index
    %6 = vector.load %arg7[%c0_18, %c0_19, %c0_20] : memref<2x32x64xf32, #tpu.memory_space<vmem>>, vector<2x32x64xf32>
    %c0_21 = arith.constant 0 : index
    %c0_22 = arith.constant 0 : index
    %7 = vector.load %arg8[%c0_21, %c0_22] : memref<2x64xf32, #tpu.memory_space<vmem>>, vector<2x64xf32>
    %c0_23 = arith.constant 0 : index
    %c0_24 = arith.constant 0 : index
    %8 = vector.load %arg9[%c0_23, %c0_24] : memref<2x32xf32, #tpu.memory_space<vmem>>, vector<2x32xf32>
    %c0_25 = arith.constant 0 : index
    %c0_26 = arith.constant 0 : index
    %9 = vector.load %arg10[%c0_25, %c0_26] : memref<2x32xf32, #tpu.memory_space<vmem>>, vector<2x32xf32>
    %c0_27 = arith.constant 0 : index
    %c0_28 = arith.constant 0 : index
    %10 = vector.load %arg11[%c0_27, %c0_28] : memref<32x16xf32, #tpu.memory_space<vmem>>, vector<32x16xf32>
    %c0_29 = arith.constant 0 : index
    %c0_30 = arith.constant 0 : index
    %11 = vector.load %arg12[%c0_29, %c0_30] : memref<16x16xf32, #tpu.memory_space<vmem>>, vector<16x16xf32>
    %c0_31 = arith.constant 0 : index
    %c0_32 = arith.constant 0 : index
    %12 = vector.load %arg13[%c0_31, %c0_32] : memref<1x32xf32, #tpu.memory_space<vmem>>, vector<1x32xf32>
    %c0_33 = arith.constant 0 : index
    %c0_34 = arith.constant 0 : index
    %13 = vector.load %arg14[%c0_33, %c0_34] : memref<1x32xf32, #tpu.memory_space<vmem>>, vector<1x32xf32>
    %c0_35 = arith.constant 0 : index
    %c0_36 = arith.constant 0 : index
    %14 = vector.load %arg15[%c0_35, %c0_36] : memref<32x32xf32, #tpu.memory_space<vmem>>, vector<32x32xf32>
    %c0_37 = arith.constant 0 : index
    %c0_38 = arith.constant 0 : index
    %15 = vector.load %arg16[%c0_37, %c0_38] : memref<1x32xf32, #tpu.memory_space<vmem>>, vector<1x32xf32>
    %c0_39 = arith.constant 0 : index
    %c0_40 = arith.constant 0 : index
    %16 = vector.load %arg17[%c0_39, %c0_40] : memref<32x32xf32, #tpu.memory_space<vmem>>, vector<32x32xf32>
    %c0_41 = arith.constant 0 : index
    %c0_42 = arith.constant 0 : index
    %17 = vector.load %arg18[%c0_41, %c0_42] : memref<1x32xf32, #tpu.memory_space<vmem>>, vector<1x32xf32>
    %c0_43 = arith.constant 0 : index
    %c0_44 = arith.constant 0 : index
    %c0_45 = arith.constant 0 : index
    %c0_46 = arith.constant 0 : index
    %18 = vector.load %arg0[%c0_43, %c0_44, %c0_45, %c0_46] : memref<2x12x8x32xf32, #tpu.memory_space<vmem>>, vector<2x12x8x32xf32>
    %19 = vector.shape_cast %18 : vector<2x12x8x32xf32> to vector<192x32xf32>
    %20 = vector.extract_strided_slice %1 {offsets = [0, 0, 0, 0], sizes = [1, 1, 32, 32], strides = [1, 1, 1, 1]} : vector<2x1x32x32xf32> to vector<1x1x32x32xf32>
    %21 = vector.shape_cast %20 : vector<1x1x32x32xf32> to vector<32x32xf32>
    %22 = vector.extract_strided_slice %1 {offsets = [1, 0, 0, 0], sizes = [1, 1, 32, 32], strides = [1, 1, 1, 1]} : vector<2x1x32x32xf32> to vector<1x1x32x32xf32>
    %23 = vector.shape_cast %22 : vector<1x1x32x32xf32> to vector<32x32xf32>
    %24 = tpu.concatenate %21, %23 in 1 : vector<32x32xf32>, vector<32x32xf32> -> vector<32x64xf32>
    %25 = vector.extract_strided_slice %2 {offsets = [0, 0, 0], sizes = [1, 1, 32], strides = [1, 1, 1]} : vector<2x1x32xf32> to vector<1x1x32xf32>
    %26 = vector.shape_cast %25 : vector<1x1x32xf32> to vector<32xf32>
    %27 = vector.shape_cast %26 : vector<32xf32> to vector<1x32xf32>
    %28 = vector.extract_strided_slice %2 {offsets = [1, 0, 0], sizes = [1, 1, 32], strides = [1, 1, 1]} : vector<2x1x32xf32> to vector<1x1x32xf32>
    %29 = vector.shape_cast %28 : vector<1x1x32xf32> to vector<32xf32>
    %30 = vector.shape_cast %29 : vector<32xf32> to vector<1x32xf32>
    %31 = tpu.concatenate %27, %30 in 1 : vector<1x32xf32>, vector<1x32xf32> -> vector<1x64xf32>
    %cst = arith.constant dense<0.000000e+00> : vector<192x64xf32>
    %32 = tpu.matmul %19, %24, %cst {dimension_numbers = #tpu.dot_dimension_numbers<[1], [0], [0], [1], [0, 0, 1, 1], [], []>} : vector<192x32xf32>, vector<32x64xf32>, vector<192x64xf32> -> vector<192x64xf32>
    %33 = vector.broadcast %31 : vector<1x64xf32> to vector<192x64xf32>
    %34 = arith.addf %32, %33 : vector<192x64xf32>
    %35 = vector.extract_strided_slice %34 {offsets = [0, 0], sizes = [192, 32], strides = [1, 1]} : vector<192x64xf32> to vector<192x32xf32>
    %36 = vector.shape_cast %35 : vector<192x32xf32> to vector<2x12x8x32xf32>
    %37 = vector.extract_strided_slice %0 {offsets = [0, 0, 0], sizes = [1, 8, 8], strides = [1, 1, 1]} : vector<2x8x8xf32> to vector<1x8x8xf32>
    %38 = vector.shape_cast %37 : vector<1x8x8xf32> to vector<8x8xf32>
    %39 = vector.extract_strided_slice %38 {offsets = [0, 0], sizes = [8, 1], strides = [1, 1]} : vector<8x8xf32> to vector<8x1xf32>
    %40 = vector.shape_cast %39 : vector<8x1xf32> to vector<1x1x8x1xf32>
    %41 = vector.extract_strided_slice %36 {offsets = [0, 0, 0, 0], sizes = [2, 12, 1, 32], strides = [1, 1, 1, 1]} : vector<2x12x8x32xf32> to vector<2x12x1x32xf32>
    %42 = vector.broadcast %40 : vector<1x1x8x1xf32> to vector<2x12x8x32xf32>
    %43 = vector.broadcast %41 : vector<2x12x1x32xf32> to vector<2x12x8x32xf32>
    %44 = arith.mulf %42, %43 : vector<2x12x8x32xf32>
    %45 = vector.extract_strided_slice %38 {offsets = [0, 1], sizes = [8, 1], strides = [1, 1]} : vector<8x8xf32> to vector<8x1xf32>
    %46 = vector.shape_cast %45 : vector<8x1xf32> to vector<1x1x8x1xf32>
    %47 = vector.extract_strided_slice %36 {offsets = [0, 0, 1, 0], sizes = [2, 12, 1, 32], strides = [1, 1, 1, 1]} : vector<2x12x8x32xf32> to vector<2x12x1x32xf32>
    %48 = vector.broadcast %46 : vector<1x1x8x1xf32> to vector<2x12x8x32xf32>
    %49 = vector.broadcast %47 : vector<2x12x1x32xf32> to vector<2x12x8x32xf32>
    %50 = arith.mulf %48, %49 : vector<2x12x8x32xf32>
    %51 = arith.addf %44, %50 : vector<2x12x8x32xf32>
    %52 = vector.extract_strided_slice %38 {offsets = [0, 2], sizes = [8, 1], strides = [1, 1]} : vector<8x8xf32> to vector<8x1xf32>
    %53 = vector.shape_cast %52 : vector<8x1xf32> to vector<1x1x8x1xf32>
    %54 = vector.extract_strided_slice %36 {offsets = [0, 0, 2, 0], sizes = [2, 12, 1, 32], strides = [1, 1, 1, 1]} : vector<2x12x8x32xf32> to vector<2x12x1x32xf32>
    %55 = vector.broadcast %53 : vector<1x1x8x1xf32> to vector<2x12x8x32xf32>
    %56 = vector.broadcast %54 : vector<2x12x1x32xf32> to vector<2x12x8x32xf32>
    %57 = arith.mulf %55, %56 : vector<2x12x8x32xf32>
    %58 = arith.addf %51, %57 : vector<2x12x8x32xf32>
    %59 = vector.extract_strided_slice %38 {offsets = [0, 3], sizes = [8, 1], strides = [1, 1]} : vector<8x8xf32> to vector<8x1xf32>
    %60 = vector.shape_cast %59 : vector<8x1xf32> to vector<1x1x8x1xf32>
    %61 = vector.extract_strided_slice %36 {offsets = [0, 0, 3, 0], sizes = [2, 12, 1, 32], strides = [1, 1, 1, 1]} : vector<2x12x8x32xf32> to vector<2x12x1x32xf32>
    %62 = vector.broadcast %60 : vector<1x1x8x1xf32> to vector<2x12x8x32xf32>
    %63 = vector.broadcast %61 : vector<2x12x1x32xf32> to vector<2x12x8x32xf32>
    %64 = arith.mulf %62, %63 : vector<2x12x8x32xf32>
    %65 = arith.addf %58, %64 : vector<2x12x8x32xf32>
    %66 = vector.extract_strided_slice %38 {offsets = [0, 4], sizes = [8, 1], strides = [1, 1]} : vector<8x8xf32> to vector<8x1xf32>
    %67 = vector.shape_cast %66 : vector<8x1xf32> to vector<1x1x8x1xf32>
    %68 = vector.extract_strided_slice %36 {offsets = [0, 0, 4, 0], sizes = [2, 12, 1, 32], strides = [1, 1, 1, 1]} : vector<2x12x8x32xf32> to vector<2x12x1x32xf32>
    %69 = vector.broadcast %67 : vector<1x1x8x1xf32> to vector<2x12x8x32xf32>
    %70 = vector.broadcast %68 : vector<2x12x1x32xf32> to vector<2x12x8x32xf32>
    %71 = arith.mulf %69, %70 : vector<2x12x8x32xf32>
    %72 = arith.addf %65, %71 : vector<2x12x8x32xf32>
    %73 = vector.extract_strided_slice %38 {offsets = [0, 5], sizes = [8, 1], strides = [1, 1]} : vector<8x8xf32> to vector<8x1xf32>
    %74 = vector.shape_cast %73 : vector<8x1xf32> to vector<1x1x8x1xf32>
    %75 = vector.extract_strided_slice %36 {offsets = [0, 0, 5, 0], sizes = [2, 12, 1, 32], strides = [1, 1, 1, 1]} : vector<2x12x8x32xf32> to vector<2x12x1x32xf32>
    %76 = vector.broadcast %74 : vector<1x1x8x1xf32> to vector<2x12x8x32xf32>
    %77 = vector.broadcast %75 : vector<2x12x1x32xf32> to vector<2x12x8x32xf32>
    %78 = arith.mulf %76, %77 : vector<2x12x8x32xf32>
    %79 = arith.addf %72, %78 : vector<2x12x8x32xf32>
    %80 = vector.extract_strided_slice %38 {offsets = [0, 6], sizes = [8, 1], strides = [1, 1]} : vector<8x8xf32> to vector<8x1xf32>
    %81 = vector.shape_cast %80 : vector<8x1xf32> to vector<1x1x8x1xf32>
    %82 = vector.extract_strided_slice %36 {offsets = [0, 0, 6, 0], sizes = [2, 12, 1, 32], strides = [1, 1, 1, 1]} : vector<2x12x8x32xf32> to vector<2x12x1x32xf32>
    %83 = vector.broadcast %81 : vector<1x1x8x1xf32> to vector<2x12x8x32xf32>
    %84 = vector.broadcast %82 : vector<2x12x1x32xf32> to vector<2x12x8x32xf32>
    %85 = arith.mulf %83, %84 : vector<2x12x8x32xf32>
    %86 = arith.addf %79, %85 : vector<2x12x8x32xf32>
    %87 = vector.extract_strided_slice %38 {offsets = [0, 7], sizes = [8, 1], strides = [1, 1]} : vector<8x8xf32> to vector<8x1xf32>
    %88 = vector.shape_cast %87 : vector<8x1xf32> to vector<1x1x8x1xf32>
    %89 = vector.extract_strided_slice %36 {offsets = [0, 0, 7, 0], sizes = [2, 12, 1, 32], strides = [1, 1, 1, 1]} : vector<2x12x8x32xf32> to vector<2x12x1x32xf32>
    %90 = vector.broadcast %88 : vector<1x1x8x1xf32> to vector<2x12x8x32xf32>
    %91 = vector.broadcast %89 : vector<2x12x1x32xf32> to vector<2x12x8x32xf32>
    %92 = arith.mulf %90, %91 : vector<2x12x8x32xf32>
    %93 = arith.addf %86, %92 : vector<2x12x8x32xf32>
    %cst_47 = arith.constant 0.000000e+00 : f32
    %94 = vector.broadcast %cst_47 : f32 to vector<2x12x8x32xf32>
    %95 = arith.maximumf %93, %94 : vector<2x12x8x32xf32>
    %96 = arith.addf %95, %18 : vector<2x12x8x32xf32>
    %97 = vector.extract_strided_slice %3 {offsets = [0, 0, 0], sizes = [1, 1, 32], strides = [1, 1, 1]} : vector<2x1x32xf32> to vector<1x1x32xf32>
    %98 = vector.shape_cast %97 : vector<1x1x32xf32> to vector<32xf32>
    %99 = vector.shape_cast %98 : vector<32xf32> to vector<1x32xf32>
    %100 = vector.extract_strided_slice %4 {offsets = [0, 0, 0], sizes = [1, 1, 32], strides = [1, 1, 1]} : vector<2x1x32xf32> to vector<1x1x32xf32>
    %101 = vector.shape_cast %100 : vector<1x1x32xf32> to vector<32xf32>
    %102 = vector.shape_cast %101 : vector<32xf32> to vector<1x32xf32>
    %cst_48 = arith.constant dense<0.000000e+00> : vector<2x12x8xf32>
    %103 = vector.multi_reduction <add>, %96, %cst_48 [3] : vector<2x12x8x32xf32> to vector<2x12x8xf32>
    %104 = vector.shape_cast %103 : vector<2x12x8xf32> to vector<2x12x8x1xf32>
    %cst_49 = arith.constant 3.200000e+01 : f32
    %105 = vector.broadcast %cst_49 : f32 to vector<2x12x8x1xf32>
    %106 = arith.divf %104, %105 : vector<2x12x8x1xf32>
    %107 = vector.broadcast %106 : vector<2x12x8x1xf32> to vector<2x12x8x32xf32>
    %108 = arith.subf %96, %107 : vector<2x12x8x32xf32>
    %109 = arith.mulf %108, %108 : vector<2x12x8x32xf32>
    %cst_50 = arith.constant dense<0.000000e+00> : vector<2x12x8xf32>
    %110 = vector.multi_reduction <add>, %109, %cst_50 [3] : vector<2x12x8x32xf32> to vector<2x12x8xf32>
    %111 = vector.shape_cast %110 : vector<2x12x8xf32> to vector<2x12x8x1xf32>
    %cst_51 = arith.constant 3.200000e+01 : f32
    %112 = vector.broadcast %cst_51 : f32 to vector<2x12x8x1xf32>
    %113 = arith.divf %111, %112 : vector<2x12x8x1xf32>
    %cst_52 = arith.constant 9.99999974E-6 : f32
    %114 = vector.broadcast %cst_52 : f32 to vector<2x12x8x1xf32>
    %115 = arith.addf %113, %114 : vector<2x12x8x1xf32>
    %116 = math.rsqrt %115 : vector<2x12x8x1xf32>
    %117 = vector.broadcast %116 : vector<2x12x8x1xf32> to vector<2x12x8x32xf32>
    %118 = arith.mulf %108, %117 : vector<2x12x8x32xf32>
    %119 = vector.shape_cast %99 : vector<1x32xf32> to vector<1x1x1x32xf32>
    %120 = vector.broadcast %119 : vector<1x1x1x32xf32> to vector<2x12x8x32xf32>
    %121 = arith.mulf %118, %120 : vector<2x12x8x32xf32>
    %122 = vector.shape_cast %102 : vector<1x32xf32> to vector<1x1x1x32xf32>
    %123 = vector.broadcast %122 : vector<1x1x1x32xf32> to vector<2x12x8x32xf32>
    %124 = arith.addf %121, %123 : vector<2x12x8x32xf32>
    %125 = vector.extract_strided_slice %34 {offsets = [0, 32], sizes = [192, 32], strides = [1, 1]} : vector<192x64xf32> to vector<192x32xf32>
    %126 = vector.shape_cast %125 : vector<192x32xf32> to vector<2x12x8x32xf32>
    %127 = vector.extract_strided_slice %0 {offsets = [1, 0, 0], sizes = [1, 8, 8], strides = [1, 1, 1]} : vector<2x8x8xf32> to vector<1x8x8xf32>
    %128 = vector.shape_cast %127 : vector<1x8x8xf32> to vector<8x8xf32>
    %129 = vector.extract_strided_slice %128 {offsets = [0, 0], sizes = [8, 1], strides = [1, 1]} : vector<8x8xf32> to vector<8x1xf32>
    %130 = vector.shape_cast %129 : vector<8x1xf32> to vector<1x1x8x1xf32>
    %131 = vector.extract_strided_slice %126 {offsets = [0, 0, 0, 0], sizes = [2, 12, 1, 32], strides = [1, 1, 1, 1]} : vector<2x12x8x32xf32> to vector<2x12x1x32xf32>
    %132 = vector.broadcast %130 : vector<1x1x8x1xf32> to vector<2x12x8x32xf32>
    %133 = vector.broadcast %131 : vector<2x12x1x32xf32> to vector<2x12x8x32xf32>
    %134 = arith.mulf %132, %133 : vector<2x12x8x32xf32>
    %135 = vector.extract_strided_slice %128 {offsets = [0, 1], sizes = [8, 1], strides = [1, 1]} : vector<8x8xf32> to vector<8x1xf32>
    %136 = vector.shape_cast %135 : vector<8x1xf32> to vector<1x1x8x1xf32>
    %137 = vector.extract_strided_slice %126 {offsets = [0, 0, 1, 0], sizes = [2, 12, 1, 32], strides = [1, 1, 1, 1]} : vector<2x12x8x32xf32> to vector<2x12x1x32xf32>
    %138 = vector.broadcast %136 : vector<1x1x8x1xf32> to vector<2x12x8x32xf32>
    %139 = vector.broadcast %137 : vector<2x12x1x32xf32> to vector<2x12x8x32xf32>
    %140 = arith.mulf %138, %139 : vector<2x12x8x32xf32>
    %141 = arith.addf %134, %140 : vector<2x12x8x32xf32>
    %142 = vector.extract_strided_slice %128 {offsets = [0, 2], sizes = [8, 1], strides = [1, 1]} : vector<8x8xf32> to vector<8x1xf32>
    %143 = vector.shape_cast %142 : vector<8x1xf32> to vector<1x1x8x1xf32>
    %144 = vector.extract_strided_slice %126 {offsets = [0, 0, 2, 0], sizes = [2, 12, 1, 32], strides = [1, 1, 1, 1]} : vector<2x12x8x32xf32> to vector<2x12x1x32xf32>
    %145 = vector.broadcast %143 : vector<1x1x8x1xf32> to vector<2x12x8x32xf32>
    %146 = vector.broadcast %144 : vector<2x12x1x32xf32> to vector<2x12x8x32xf32>
    %147 = arith.mulf %145, %146 : vector<2x12x8x32xf32>
    %148 = arith.addf %141, %147 : vector<2x12x8x32xf32>
    %149 = vector.extract_strided_slice %128 {offsets = [0, 3], sizes = [8, 1], strides = [1, 1]} : vector<8x8xf32> to vector<8x1xf32>
    %150 = vector.shape_cast %149 : vector<8x1xf32> to vector<1x1x8x1xf32>
    %151 = vector.extract_strided_slice %126 {offsets = [0, 0, 3, 0], sizes = [2, 12, 1, 32], strides = [1, 1, 1, 1]} : vector<2x12x8x32xf32> to vector<2x12x1x32xf32>
    %152 = vector.broadcast %150 : vector<1x1x8x1xf32> to vector<2x12x8x32xf32>
    %153 = vector.broadcast %151 : vector<2x12x1x32xf32> to vector<2x12x8x32xf32>
    %154 = arith.mulf %152, %153 : vector<2x12x8x32xf32>
    %155 = arith.addf %148, %154 : vector<2x12x8x32xf32>
    %156 = vector.extract_strided_slice %128 {offsets = [0, 4], sizes = [8, 1], strides = [1, 1]} : vector<8x8xf32> to vector<8x1xf32>
    %157 = vector.shape_cast %156 : vector<8x1xf32> to vector<1x1x8x1xf32>
    %158 = vector.extract_strided_slice %126 {offsets = [0, 0, 4, 0], sizes = [2, 12, 1, 32], strides = [1, 1, 1, 1]} : vector<2x12x8x32xf32> to vector<2x12x1x32xf32>
    %159 = vector.broadcast %157 : vector<1x1x8x1xf32> to vector<2x12x8x32xf32>
    %160 = vector.broadcast %158 : vector<2x12x1x32xf32> to vector<2x12x8x32xf32>
    %161 = arith.mulf %159, %160 : vector<2x12x8x32xf32>
    %162 = arith.addf %155, %161 : vector<2x12x8x32xf32>
    %163 = vector.extract_strided_slice %128 {offsets = [0, 5], sizes = [8, 1], strides = [1, 1]} : vector<8x8xf32> to vector<8x1xf32>
    %164 = vector.shape_cast %163 : vector<8x1xf32> to vector<1x1x8x1xf32>
    %165 = vector.extract_strided_slice %126 {offsets = [0, 0, 5, 0], sizes = [2, 12, 1, 32], strides = [1, 1, 1, 1]} : vector<2x12x8x32xf32> to vector<2x12x1x32xf32>
    %166 = vector.broadcast %164 : vector<1x1x8x1xf32> to vector<2x12x8x32xf32>
    %167 = vector.broadcast %165 : vector<2x12x1x32xf32> to vector<2x12x8x32xf32>
    %168 = arith.mulf %166, %167 : vector<2x12x8x32xf32>
    %169 = arith.addf %162, %168 : vector<2x12x8x32xf32>
    %170 = vector.extract_strided_slice %128 {offsets = [0, 6], sizes = [8, 1], strides = [1, 1]} : vector<8x8xf32> to vector<8x1xf32>
    %171 = vector.shape_cast %170 : vector<8x1xf32> to vector<1x1x8x1xf32>
    %172 = vector.extract_strided_slice %126 {offsets = [0, 0, 6, 0], sizes = [2, 12, 1, 32], strides = [1, 1, 1, 1]} : vector<2x12x8x32xf32> to vector<2x12x1x32xf32>
    %173 = vector.broadcast %171 : vector<1x1x8x1xf32> to vector<2x12x8x32xf32>
    %174 = vector.broadcast %172 : vector<2x12x1x32xf32> to vector<2x12x8x32xf32>
    %175 = arith.mulf %173, %174 : vector<2x12x8x32xf32>
    %176 = arith.addf %169, %175 : vector<2x12x8x32xf32>
    %177 = vector.extract_strided_slice %128 {offsets = [0, 7], sizes = [8, 1], strides = [1, 1]} : vector<8x8xf32> to vector<8x1xf32>
    %178 = vector.shape_cast %177 : vector<8x1xf32> to vector<1x1x8x1xf32>
    %179 = vector.extract_strided_slice %126 {offsets = [0, 0, 7, 0], sizes = [2, 12, 1, 32], strides = [1, 1, 1, 1]} : vector<2x12x8x32xf32> to vector<2x12x1x32xf32>
    %180 = vector.broadcast %178 : vector<1x1x8x1xf32> to vector<2x12x8x32xf32>
    %181 = vector.broadcast %179 : vector<2x12x1x32xf32> to vector<2x12x8x32xf32>
    %182 = arith.mulf %180, %181 : vector<2x12x8x32xf32>
    %183 = arith.addf %176, %182 : vector<2x12x8x32xf32>
    %cst_53 = arith.constant 0.000000e+00 : f32
    %184 = vector.broadcast %cst_53 : f32 to vector<2x12x8x32xf32>
    %185 = arith.maximumf %183, %184 : vector<2x12x8x32xf32>
    %186 = arith.addf %185, %18 : vector<2x12x8x32xf32>
    %187 = vector.extract_strided_slice %3 {offsets = [1, 0, 0], sizes = [1, 1, 32], strides = [1, 1, 1]} : vector<2x1x32xf32> to vector<1x1x32xf32>
    %188 = vector.shape_cast %187 : vector<1x1x32xf32> to vector<32xf32>
    %189 = vector.shape_cast %188 : vector<32xf32> to vector<1x32xf32>
    %190 = vector.extract_strided_slice %4 {offsets = [1, 0, 0], sizes = [1, 1, 32], strides = [1, 1, 1]} : vector<2x1x32xf32> to vector<1x1x32xf32>
    %191 = vector.shape_cast %190 : vector<1x1x32xf32> to vector<32xf32>
    %192 = vector.shape_cast %191 : vector<32xf32> to vector<1x32xf32>
    %cst_54 = arith.constant dense<0.000000e+00> : vector<2x12x8xf32>
    %193 = vector.multi_reduction <add>, %186, %cst_54 [3] : vector<2x12x8x32xf32> to vector<2x12x8xf32>
    %194 = vector.shape_cast %193 : vector<2x12x8xf32> to vector<2x12x8x1xf32>
    %cst_55 = arith.constant 3.200000e+01 : f32
    %195 = vector.broadcast %cst_55 : f32 to vector<2x12x8x1xf32>
    %196 = arith.divf %194, %195 : vector<2x12x8x1xf32>
    %197 = vector.broadcast %196 : vector<2x12x8x1xf32> to vector<2x12x8x32xf32>
    %198 = arith.subf %186, %197 : vector<2x12x8x32xf32>
    %199 = arith.mulf %198, %198 : vector<2x12x8x32xf32>
    %cst_56 = arith.constant dense<0.000000e+00> : vector<2x12x8xf32>
    %200 = vector.multi_reduction <add>, %199, %cst_56 [3] : vector<2x12x8x32xf32> to vector<2x12x8xf32>
    %201 = vector.shape_cast %200 : vector<2x12x8xf32> to vector<2x12x8x1xf32>
    %cst_57 = arith.constant 3.200000e+01 : f32
    %202 = vector.broadcast %cst_57 : f32 to vector<2x12x8x1xf32>
    %203 = arith.divf %201, %202 : vector<2x12x8x1xf32>
    %cst_58 = arith.constant 9.99999974E-6 : f32
    %204 = vector.broadcast %cst_58 : f32 to vector<2x12x8x1xf32>
    %205 = arith.addf %203, %204 : vector<2x12x8x1xf32>
    %206 = math.rsqrt %205 : vector<2x12x8x1xf32>
    %207 = vector.broadcast %206 : vector<2x12x8x1xf32> to vector<2x12x8x32xf32>
    %208 = arith.mulf %198, %207 : vector<2x12x8x32xf32>
    %209 = vector.shape_cast %189 : vector<1x32xf32> to vector<1x1x1x32xf32>
    %210 = vector.broadcast %209 : vector<1x1x1x32xf32> to vector<2x12x8x32xf32>
    %211 = arith.mulf %208, %210 : vector<2x12x8x32xf32>
    %212 = vector.shape_cast %192 : vector<1x32xf32> to vector<1x1x1x32xf32>
    %213 = vector.broadcast %212 : vector<1x1x1x32xf32> to vector<2x12x8x32xf32>
    %214 = arith.addf %211, %213 : vector<2x12x8x32xf32>
    %215 = arith.maximumf %124, %214 : vector<2x12x8x32xf32>
    %216 = vector.shape_cast %11 : vector<16x16xf32> to vector<1x16x16xf32>
    %217 = vector.broadcast %216 : vector<1x16x16xf32> to vector<2x16x16xf32>
    %218 = vector.extract_strided_slice %5 {offsets = [0, 0, 0], sizes = [1, 8, 1], strides = [1, 1, 1]} : vector<2x8x1xf32> to vector<1x8x1xf32>
    %219 = vector.shape_cast %218 : vector<1x8x1xf32> to vector<8x1xf32>
    %220 = vector.shape_cast %219 : vector<8x1xf32> to vector<1x1x8x1xf32>
    %221 = vector.extract_strided_slice %5 {offsets = [1, 0, 0], sizes = [1, 8, 1], strides = [1, 1, 1]} : vector<2x8x1xf32> to vector<1x8x1xf32>
    %222 = vector.shape_cast %221 : vector<1x8x1xf32> to vector<8x1xf32>
    %223 = vector.shape_cast %222 : vector<8x1xf32> to vector<1x1x8x1xf32>
    %224 = vector.extract_strided_slice %7 {offsets = [0, 0], sizes = [1, 64], strides = [1, 1]} : vector<2x64xf32> to vector<1x64xf32>
    %225 = vector.shape_cast %224 : vector<1x64xf32> to vector<64xf32>
    %226 = vector.shape_cast %225 : vector<64xf32> to vector<1x64xf32>
    %227 = vector.shape_cast %215 : vector<2x12x8x32xf32> to vector<192x32xf32>
    %228 = vector.extract_strided_slice %6 {offsets = [0, 0, 0], sizes = [1, 32, 64], strides = [1, 1, 1]} : vector<2x32x64xf32> to vector<1x32x64xf32>
    %229 = vector.shape_cast %228 : vector<1x32x64xf32> to vector<32x64xf32>
    %cst_59 = arith.constant dense<0.000000e+00> : vector<192x64xf32>
    %230 = tpu.matmul %227, %229, %cst_59 {dimension_numbers = #tpu.dot_dimension_numbers<[1], [0], [0], [1], [0, 0, 1, 1], [], []>} : vector<192x32xf32>, vector<32x64xf32>, vector<192x64xf32> -> vector<192x64xf32>
    %231 = vector.broadcast %226 : vector<1x64xf32> to vector<192x64xf32>
    %232 = arith.addf %230, %231 : vector<192x64xf32>
    %233 = vector.shape_cast %232 : vector<192x64xf32> to vector<2x12x8x64xf32>
    %234 = vector.shape_cast %226 : vector<1x64xf32> to vector<1x1x1x64xf32>
    %235 = vector.shape_cast %234 : vector<1x1x1x64xf32> to vector<1x1x1x64xf32>
    %236 = vector.broadcast %235 : vector<1x1x1x64xf32> to vector<2x1x8x64xf32>
    %237 = tpu.concatenate %236, %233 in 1 : vector<2x1x8x64xf32>, vector<2x12x8x64xf32> -> vector<2x13x8x64xf32>
    %238 = vector.extract_strided_slice %237 {offsets = [0, 0, 0, 0], sizes = [2, 12, 8, 64], strides = [1, 1, 1, 1]} : vector<2x13x8x64xf32> to vector<2x12x8x64xf32>
    %239 = vector.broadcast %220 : vector<1x1x8x1xf32> to vector<2x12x8x64xf32>
    %240 = arith.mulf %239, %238 : vector<2x12x8x64xf32>
    %241 = vector.extract_strided_slice %237 {offsets = [0, 1, 0, 0], sizes = [2, 12, 8, 64], strides = [1, 1, 1, 1]} : vector<2x13x8x64xf32> to vector<2x12x8x64xf32>
    %242 = vector.broadcast %223 : vector<1x1x8x1xf32> to vector<2x12x8x64xf32>
    %243 = arith.mulf %242, %241 : vector<2x12x8x64xf32>
    %244 = arith.addf %240, %243 : vector<2x12x8x64xf32>
    %245 = vector.extract_strided_slice %244 {offsets = [0, 0, 0, 0], sizes = [2, 12, 8, 32], strides = [1, 1, 1, 1]} : vector<2x12x8x64xf32> to vector<2x12x8x32xf32>
    %246 = vector.extract_strided_slice %244 {offsets = [0, 0, 0, 32], sizes = [2, 12, 8, 32], strides = [1, 1, 1, 1]} : vector<2x12x8x64xf32> to vector<2x12x8x32xf32>
    %247 = arith.mulf %245, %246 : vector<2x12x8x32xf32>
    %cst_60 = arith.constant 0.000000e+00 : f32
    %248 = vector.broadcast %cst_60 : f32 to vector<2x12x8x32xf32>
    %249 = arith.maximumf %247, %248 : vector<2x12x8x32xf32>
    %250 = arith.addf %249, %245 : vector<2x12x8x32xf32>
    %251 = arith.addf %250, %215 : vector<2x12x8x32xf32>
    %252 = vector.extract_strided_slice %8 {offsets = [0, 0], sizes = [1, 32], strides = [1, 1]} : vector<2x32xf32> to vector<1x32xf32>
    %253 = vector.shape_cast %252 : vector<1x32xf32> to vector<32xf32>
    %254 = vector.shape_cast %253 : vector<32xf32> to vector<1x32xf32>
    %255 = vector.extract_strided_slice %9 {offsets = [0, 0], sizes = [1, 32], strides = [1, 1]} : vector<2x32xf32> to vector<1x32xf32>
    %256 = vector.shape_cast %255 : vector<1x32xf32> to vector<32xf32>
    %257 = vector.shape_cast %256 : vector<32xf32> to vector<1x32xf32>
    %cst_61 = arith.constant dense<0.000000e+00> : vector<2x12x8xf32>
    %258 = vector.multi_reduction <add>, %251, %cst_61 [3] : vector<2x12x8x32xf32> to vector<2x12x8xf32>
    %259 = vector.shape_cast %258 : vector<2x12x8xf32> to vector<2x12x8x1xf32>
    %cst_62 = arith.constant 3.200000e+01 : f32
    %260 = vector.broadcast %cst_62 : f32 to vector<2x12x8x1xf32>
    %261 = arith.divf %259, %260 : vector<2x12x8x1xf32>
    %262 = vector.broadcast %261 : vector<2x12x8x1xf32> to vector<2x12x8x32xf32>
    %263 = arith.subf %251, %262 : vector<2x12x8x32xf32>
    %264 = arith.mulf %263, %263 : vector<2x12x8x32xf32>
    %cst_63 = arith.constant dense<0.000000e+00> : vector<2x12x8xf32>
    %265 = vector.multi_reduction <add>, %264, %cst_63 [3] : vector<2x12x8x32xf32> to vector<2x12x8xf32>
    %266 = vector.shape_cast %265 : vector<2x12x8xf32> to vector<2x12x8x1xf32>
    %cst_64 = arith.constant 3.200000e+01 : f32
    %267 = vector.broadcast %cst_64 : f32 to vector<2x12x8x1xf32>
    %268 = arith.divf %266, %267 : vector<2x12x8x1xf32>
    %cst_65 = arith.constant 9.99999974E-6 : f32
    %269 = vector.broadcast %cst_65 : f32 to vector<2x12x8x1xf32>
    %270 = arith.addf %268, %269 : vector<2x12x8x1xf32>
    %271 = math.rsqrt %270 : vector<2x12x8x1xf32>
    %272 = vector.broadcast %271 : vector<2x12x8x1xf32> to vector<2x12x8x32xf32>
    %273 = arith.mulf %263, %272 : vector<2x12x8x32xf32>
    %274 = vector.shape_cast %254 : vector<1x32xf32> to vector<1x1x1x32xf32>
    %275 = vector.broadcast %274 : vector<1x1x1x32xf32> to vector<2x12x8x32xf32>
    %276 = arith.mulf %273, %275 : vector<2x12x8x32xf32>
    %277 = vector.shape_cast %257 : vector<1x32xf32> to vector<1x1x1x32xf32>
    %278 = vector.broadcast %277 : vector<1x1x1x32xf32> to vector<2x12x8x32xf32>
    %279 = arith.addf %276, %278 : vector<2x12x8x32xf32>
    %280 = vector.shape_cast %215 : vector<2x12x8x32xf32> to vector<2x96x32xf32>
    %281 = vector.shape_cast %215 : vector<2x12x8x32xf32> to vector<192x32xf32>
    %cst_66 = arith.constant dense<0.000000e+00> : vector<192x16xf32>
    %282 = tpu.matmul %281, %10, %cst_66 {dimension_numbers = #tpu.dot_dimension_numbers<[1], [0], [0], [1], [0, 0, 1, 1], [], []>} : vector<192x32xf32>, vector<32x16xf32>, vector<192x16xf32> -> vector<192x16xf32>
    %283 = vector.shape_cast %282 : vector<192x16xf32> to vector<2x96x16xf32>
    %cst_67 = arith.constant dense<0xFF800000> : vector<2x96xf32>
    %284 = vector.multi_reduction <maximumf>, %283, %cst_67 [2] : vector<2x96x16xf32> to vector<2x96xf32>
    %285 = vector.shape_cast %284 : vector<2x96xf32> to vector<2x96x1xf32>
    %286 = vector.broadcast %285 : vector<2x96x1xf32> to vector<2x96x16xf32>
    %287 = arith.subf %283, %286 : vector<2x96x16xf32>
    %288 = math.exp %287 : vector<2x96x16xf32>
    %cst_68 = arith.constant dense<0.000000e+00> : vector<2x96xf32>
    %289 = vector.multi_reduction <add>, %288, %cst_68 [2] : vector<2x96x16xf32> to vector<2x96xf32>
    %290 = vector.shape_cast %289 : vector<2x96xf32> to vector<2x96x1xf32>
    %291 = tpu.reciprocal %290 {approx = true} : vector<2x96x1xf32> -> vector<2x96x1xf32>
    %292 = arith.mulf %290, %291 : vector<2x96x1xf32>
    %cst_69 = arith.constant 2.000000e+00 : f32
    %293 = vector.broadcast %cst_69 : f32 to vector<2x96x1xf32>
    %294 = arith.subf %293, %292 : vector<2x96x1xf32>
    %295 = arith.mulf %291, %294 : vector<2x96x1xf32>
    %296 = vector.broadcast %295 : vector<2x96x1xf32> to vector<2x96x16xf32>
    %297 = arith.mulf %288, %296 : vector<2x96x16xf32>
    %298 = tpu.transpose %297, [0, 2, 1] : vector<2x96x16xf32> -> vector<2x16x96xf32>
    "tpu.trace_start"() <{level = 10 : i32, message = "ben,bnh->beh"}> : () -> ()
    %cst_70 = arith.constant dense<0.000000e+00> : vector<2x16x32xf32>
    %299 = tpu.matmul %298, %280, %cst_70 {dimension_numbers = #tpu.dot_dimension_numbers<[2], [1], [1], [2], [0, 0, 0, 1, 1, 2], [0], [0]>} : vector<2x16x96xf32>, vector<2x96x32xf32>, vector<2x16x32xf32> -> vector<2x16x32xf32>
    "tpu.trace_stop"() : () -> ()
    "tpu.trace_start"() <{level = 10 : i32, message = "bfe,beh->bfh"}> : () -> ()
    %cst_71 = arith.constant dense<0.000000e+00> : vector<2x16x32xf32>
    %300 = tpu.matmul %217, %299, %cst_71 {dimension_numbers = #tpu.dot_dimension_numbers<[2], [1], [1], [2], [0, 0, 0, 1, 1, 2], [0], [0]>} : vector<2x16x16xf32>, vector<2x16x32xf32>, vector<2x16x32xf32> -> vector<2x16x32xf32>
    "tpu.trace_stop"() : () -> ()
    %cst_72 = arith.constant 0.000000e+00 : f32
    %301 = vector.broadcast %cst_72 : f32 to vector<2x16x32xf32>
    %302 = arith.maximumf %300, %301 : vector<2x16x32xf32>
    %303 = arith.addf %302, %299 : vector<2x16x32xf32>
    "tpu.trace_start"() <{level = 10 : i32, message = "bne,beh->bnh"}> : () -> ()
    %cst_73 = arith.constant dense<0.000000e+00> : vector<2x96x32xf32>
    %304 = tpu.matmul %297, %303, %cst_73 {dimension_numbers = #tpu.dot_dimension_numbers<[2], [1], [1], [2], [0, 0, 0, 1, 1, 2], [0], [0]>} : vector<2x96x16xf32>, vector<2x16x32xf32>, vector<2x96x32xf32> -> vector<2x96x32xf32>
    "tpu.trace_stop"() : () -> ()
    %cst_74 = arith.constant 0.000000e+00 : f32
    %305 = vector.broadcast %cst_74 : f32 to vector<2x96x32xf32>
    %306 = arith.maximumf %304, %305 : vector<2x96x32xf32>
    %307 = vector.shape_cast %306 : vector<2x96x32xf32> to vector<2x12x8x32xf32>
    %308 = arith.addf %307, %215 : vector<2x12x8x32xf32>
    %cst_75 = arith.constant dense<0.000000e+00> : vector<2x12x8xf32>
    %309 = vector.multi_reduction <add>, %308, %cst_75 [3] : vector<2x12x8x32xf32> to vector<2x12x8xf32>
    %310 = vector.shape_cast %309 : vector<2x12x8xf32> to vector<2x12x8x1xf32>
    %cst_76 = arith.constant 3.200000e+01 : f32
    %311 = vector.broadcast %cst_76 : f32 to vector<2x12x8x1xf32>
    %312 = arith.divf %310, %311 : vector<2x12x8x1xf32>
    %313 = vector.broadcast %312 : vector<2x12x8x1xf32> to vector<2x12x8x32xf32>
    %314 = arith.subf %308, %313 : vector<2x12x8x32xf32>
    %315 = arith.mulf %314, %314 : vector<2x12x8x32xf32>
    %cst_77 = arith.constant dense<0.000000e+00> : vector<2x12x8xf32>
    %316 = vector.multi_reduction <add>, %315, %cst_77 [3] : vector<2x12x8x32xf32> to vector<2x12x8xf32>
    %317 = vector.shape_cast %316 : vector<2x12x8xf32> to vector<2x12x8x1xf32>
    %cst_78 = arith.constant 3.200000e+01 : f32
    %318 = vector.broadcast %cst_78 : f32 to vector<2x12x8x1xf32>
    %319 = arith.divf %317, %318 : vector<2x12x8x1xf32>
    %cst_79 = arith.constant 9.99999974E-6 : f32
    %320 = vector.broadcast %cst_79 : f32 to vector<2x12x8x1xf32>
    %321 = arith.addf %319, %320 : vector<2x12x8x1xf32>
    %322 = math.rsqrt %321 : vector<2x12x8x1xf32>
    %323 = vector.broadcast %322 : vector<2x12x8x1xf32> to vector<2x12x8x32xf32>
    %324 = arith.mulf %314, %323 : vector<2x12x8x32xf32>
    %325 = vector.shape_cast %12 : vector<1x32xf32> to vector<1x1x1x32xf32>
    %326 = vector.broadcast %325 : vector<1x1x1x32xf32> to vector<2x12x8x32xf32>
    %327 = arith.mulf %324, %326 : vector<2x12x8x32xf32>
    %328 = vector.shape_cast %13 : vector<1x32xf32> to vector<1x1x1x32xf32>
    %329 = vector.broadcast %328 : vector<1x1x1x32xf32> to vector<2x12x8x32xf32>
    %330 = arith.addf %327, %329 : vector<2x12x8x32xf32>
    %331 = arith.addf %279, %330 : vector<2x12x8x32xf32>
    %cst_80 = arith.constant 5.000000e-01 : f32
    %332 = vector.broadcast %cst_80 : f32 to vector<2x12x8x32xf32>
    %333 = arith.mulf %331, %332 : vector<2x12x8x32xf32>
    %334 = vector.extract_strided_slice %7 {offsets = [1, 0], sizes = [1, 64], strides = [1, 1]} : vector<2x64xf32> to vector<1x64xf32>
    %335 = vector.shape_cast %334 : vector<1x64xf32> to vector<64xf32>
    %336 = vector.shape_cast %335 : vector<64xf32> to vector<1x64xf32>
    %337 = vector.shape_cast %333 : vector<2x12x8x32xf32> to vector<192x32xf32>
    %338 = vector.extract_strided_slice %6 {offsets = [1, 0, 0], sizes = [1, 32, 64], strides = [1, 1, 1]} : vector<2x32x64xf32> to vector<1x32x64xf32>
    %339 = vector.shape_cast %338 : vector<1x32x64xf32> to vector<32x64xf32>
    %cst_81 = arith.constant dense<0.000000e+00> : vector<192x64xf32>
    %340 = tpu.matmul %337, %339, %cst_81 {dimension_numbers = #tpu.dot_dimension_numbers<[1], [0], [0], [1], [0, 0, 1, 1], [], []>} : vector<192x32xf32>, vector<32x64xf32>, vector<192x64xf32> -> vector<192x64xf32>
    %341 = vector.broadcast %336 : vector<1x64xf32> to vector<192x64xf32>
    %342 = arith.addf %340, %341 : vector<192x64xf32>
    %343 = vector.shape_cast %342 : vector<192x64xf32> to vector<2x12x8x64xf32>
    %344 = vector.shape_cast %336 : vector<1x64xf32> to vector<1x1x1x64xf32>
    %345 = vector.shape_cast %344 : vector<1x1x1x64xf32> to vector<1x1x1x64xf32>
    %346 = vector.broadcast %345 : vector<1x1x1x64xf32> to vector<2x1x8x64xf32>
    %347 = tpu.concatenate %346, %343 in 1 : vector<2x1x8x64xf32>, vector<2x12x8x64xf32> -> vector<2x13x8x64xf32>
    %348 = vector.extract_strided_slice %347 {offsets = [0, 0, 0, 0], sizes = [2, 12, 8, 64], strides = [1, 1, 1, 1]} : vector<2x13x8x64xf32> to vector<2x12x8x64xf32>
    %349 = vector.broadcast %220 : vector<1x1x8x1xf32> to vector<2x12x8x64xf32>
    %350 = arith.mulf %349, %348 : vector<2x12x8x64xf32>
    %351 = vector.extract_strided_slice %347 {offsets = [0, 1, 0, 0], sizes = [2, 12, 8, 64], strides = [1, 1, 1, 1]} : vector<2x13x8x64xf32> to vector<2x12x8x64xf32>
    %352 = vector.broadcast %223 : vector<1x1x8x1xf32> to vector<2x12x8x64xf32>
    %353 = arith.mulf %352, %351 : vector<2x12x8x64xf32>
    %354 = arith.addf %350, %353 : vector<2x12x8x64xf32>
    %355 = vector.extract_strided_slice %354 {offsets = [0, 0, 0, 0], sizes = [2, 12, 8, 32], strides = [1, 1, 1, 1]} : vector<2x12x8x64xf32> to vector<2x12x8x32xf32>
    %356 = vector.extract_strided_slice %354 {offsets = [0, 0, 0, 32], sizes = [2, 12, 8, 32], strides = [1, 1, 1, 1]} : vector<2x12x8x64xf32> to vector<2x12x8x32xf32>
    %357 = arith.mulf %355, %356 : vector<2x12x8x32xf32>
    %cst_82 = arith.constant 0.000000e+00 : f32
    %358 = vector.broadcast %cst_82 : f32 to vector<2x12x8x32xf32>
    %359 = arith.maximumf %357, %358 : vector<2x12x8x32xf32>
    %360 = arith.addf %359, %355 : vector<2x12x8x32xf32>
    %361 = arith.addf %360, %333 : vector<2x12x8x32xf32>
    %362 = vector.extract_strided_slice %8 {offsets = [1, 0], sizes = [1, 32], strides = [1, 1]} : vector<2x32xf32> to vector<1x32xf32>
    %363 = vector.shape_cast %362 : vector<1x32xf32> to vector<32xf32>
    %364 = vector.shape_cast %363 : vector<32xf32> to vector<1x32xf32>
    %365 = vector.extract_strided_slice %9 {offsets = [1, 0], sizes = [1, 32], strides = [1, 1]} : vector<2x32xf32> to vector<1x32xf32>
    %366 = vector.shape_cast %365 : vector<1x32xf32> to vector<32xf32>
    %367 = vector.shape_cast %366 : vector<32xf32> to vector<1x32xf32>
    %cst_83 = arith.constant dense<0.000000e+00> : vector<2x12x8xf32>
    %368 = vector.multi_reduction <add>, %361, %cst_83 [3] : vector<2x12x8x32xf32> to vector<2x12x8xf32>
    %369 = vector.shape_cast %368 : vector<2x12x8xf32> to vector<2x12x8x1xf32>
    %cst_84 = arith.constant 3.200000e+01 : f32
    %370 = vector.broadcast %cst_84 : f32 to vector<2x12x8x1xf32>
    %371 = arith.divf %369, %370 : vector<2x12x8x1xf32>
    %372 = vector.broadcast %371 : vector<2x12x8x1xf32> to vector<2x12x8x32xf32>
    %373 = arith.subf %361, %372 : vector<2x12x8x32xf32>
    %374 = arith.mulf %373, %373 : vector<2x12x8x32xf32>
    %cst_85 = arith.constant dense<0.000000e+00> : vector<2x12x8xf32>
    %375 = vector.multi_reduction <add>, %374, %cst_85 [3] : vector<2x12x8x32xf32> to vector<2x12x8xf32>
    %376 = vector.shape_cast %375 : vector<2x12x8xf32> to vector<2x12x8x1xf32>
    %cst_86 = arith.constant 3.200000e+01 : f32
    %377 = vector.broadcast %cst_86 : f32 to vector<2x12x8x1xf32>
    %378 = arith.divf %376, %377 : vector<2x12x8x1xf32>
    %cst_87 = arith.constant 9.99999974E-6 : f32
    %379 = vector.broadcast %cst_87 : f32 to vector<2x12x8x1xf32>
    %380 = arith.addf %378, %379 : vector<2x12x8x1xf32>
    %381 = math.rsqrt %380 : vector<2x12x8x1xf32>
    %382 = vector.broadcast %381 : vector<2x12x8x1xf32> to vector<2x12x8x32xf32>
    %383 = arith.mulf %373, %382 : vector<2x12x8x32xf32>
    %384 = vector.shape_cast %364 : vector<1x32xf32> to vector<1x1x1x32xf32>
    %385 = vector.broadcast %384 : vector<1x1x1x32xf32> to vector<2x12x8x32xf32>
    %386 = arith.mulf %383, %385 : vector<2x12x8x32xf32>
    %387 = vector.shape_cast %367 : vector<1x32xf32> to vector<1x1x1x32xf32>
    %388 = vector.broadcast %387 : vector<1x1x1x32xf32> to vector<2x12x8x32xf32>
    %389 = arith.addf %386, %388 : vector<2x12x8x32xf32>
    %390 = vector.shape_cast %333 : vector<2x12x8x32xf32> to vector<2x96x32xf32>
    %391 = vector.shape_cast %333 : vector<2x12x8x32xf32> to vector<192x32xf32>
    %cst_88 = arith.constant dense<0.000000e+00> : vector<192x16xf32>
    %392 = tpu.matmul %391, %10, %cst_88 {dimension_numbers = #tpu.dot_dimension_numbers<[1], [0], [0], [1], [0, 0, 1, 1], [], []>} : vector<192x32xf32>, vector<32x16xf32>, vector<192x16xf32> -> vector<192x16xf32>
    %393 = vector.shape_cast %392 : vector<192x16xf32> to vector<2x96x16xf32>
    %cst_89 = arith.constant dense<0xFF800000> : vector<2x96xf32>
    %394 = vector.multi_reduction <maximumf>, %393, %cst_89 [2] : vector<2x96x16xf32> to vector<2x96xf32>
    %395 = vector.shape_cast %394 : vector<2x96xf32> to vector<2x96x1xf32>
    %396 = vector.broadcast %395 : vector<2x96x1xf32> to vector<2x96x16xf32>
    %397 = arith.subf %393, %396 : vector<2x96x16xf32>
    %398 = math.exp %397 : vector<2x96x16xf32>
    %cst_90 = arith.constant dense<0.000000e+00> : vector<2x96xf32>
    %399 = vector.multi_reduction <add>, %398, %cst_90 [2] : vector<2x96x16xf32> to vector<2x96xf32>
    %400 = vector.shape_cast %399 : vector<2x96xf32> to vector<2x96x1xf32>
    %401 = tpu.reciprocal %400 {approx = true} : vector<2x96x1xf32> -> vector<2x96x1xf32>
    %402 = arith.mulf %400, %401 : vector<2x96x1xf32>
    %cst_91 = arith.constant 2.000000e+00 : f32
    %403 = vector.broadcast %cst_91 : f32 to vector<2x96x1xf32>
    %404 = arith.subf %403, %402 : vector<2x96x1xf32>
    %405 = arith.mulf %401, %404 : vector<2x96x1xf32>
    %406 = vector.broadcast %405 : vector<2x96x1xf32> to vector<2x96x16xf32>
    %407 = arith.mulf %398, %406 : vector<2x96x16xf32>
    %408 = tpu.transpose %407, [0, 2, 1] : vector<2x96x16xf32> -> vector<2x16x96xf32>
    "tpu.trace_start"() <{level = 10 : i32, message = "ben,bnh->beh"}> : () -> ()
    %cst_92 = arith.constant dense<0.000000e+00> : vector<2x16x32xf32>
    %409 = tpu.matmul %408, %390, %cst_92 {dimension_numbers = #tpu.dot_dimension_numbers<[2], [1], [1], [2], [0, 0, 0, 1, 1, 2], [0], [0]>} : vector<2x16x96xf32>, vector<2x96x32xf32>, vector<2x16x32xf32> -> vector<2x16x32xf32>
    "tpu.trace_stop"() : () -> ()
    "tpu.trace_start"() <{level = 10 : i32, message = "bfe,beh->bfh"}> : () -> ()
    %cst_93 = arith.constant dense<0.000000e+00> : vector<2x16x32xf32>
    %410 = tpu.matmul %217, %409, %cst_93 {dimension_numbers = #tpu.dot_dimension_numbers<[2], [1], [1], [2], [0, 0, 0, 1, 1, 2], [0], [0]>} : vector<2x16x16xf32>, vector<2x16x32xf32>, vector<2x16x32xf32> -> vector<2x16x32xf32>
    "tpu.trace_stop"() : () -> ()
    %cst_94 = arith.constant 0.000000e+00 : f32
    %411 = vector.broadcast %cst_94 : f32 to vector<2x16x32xf32>
    %412 = arith.maximumf %410, %411 : vector<2x16x32xf32>
    %413 = arith.addf %412, %409 : vector<2x16x32xf32>
    "tpu.trace_start"() <{level = 10 : i32, message = "bne,beh->bnh"}> : () -> ()
    %cst_95 = arith.constant dense<0.000000e+00> : vector<2x96x32xf32>
    %414 = tpu.matmul %407, %413, %cst_95 {dimension_numbers = #tpu.dot_dimension_numbers<[2], [1], [1], [2], [0, 0, 0, 1, 1, 2], [0], [0]>} : vector<2x96x16xf32>, vector<2x16x32xf32>, vector<2x96x32xf32> -> vector<2x96x32xf32>
    "tpu.trace_stop"() : () -> ()
    %cst_96 = arith.constant 0.000000e+00 : f32
    %415 = vector.broadcast %cst_96 : f32 to vector<2x96x32xf32>
    %416 = arith.maximumf %414, %415 : vector<2x96x32xf32>
    %417 = vector.shape_cast %416 : vector<2x96x32xf32> to vector<2x12x8x32xf32>
    %418 = arith.addf %417, %333 : vector<2x12x8x32xf32>
    %cst_97 = arith.constant dense<0.000000e+00> : vector<2x12x8xf32>
    %419 = vector.multi_reduction <add>, %418, %cst_97 [3] : vector<2x12x8x32xf32> to vector<2x12x8xf32>
    %420 = vector.shape_cast %419 : vector<2x12x8xf32> to vector<2x12x8x1xf32>
    %cst_98 = arith.constant 3.200000e+01 : f32
    %421 = vector.broadcast %cst_98 : f32 to vector<2x12x8x1xf32>
    %422 = arith.divf %420, %421 : vector<2x12x8x1xf32>
    %423 = vector.broadcast %422 : vector<2x12x8x1xf32> to vector<2x12x8x32xf32>
    %424 = arith.subf %418, %423 : vector<2x12x8x32xf32>
    %425 = arith.mulf %424, %424 : vector<2x12x8x32xf32>
    %cst_99 = arith.constant dense<0.000000e+00> : vector<2x12x8xf32>
    %426 = vector.multi_reduction <add>, %425, %cst_99 [3] : vector<2x12x8x32xf32> to vector<2x12x8xf32>
    %427 = vector.shape_cast %426 : vector<2x12x8xf32> to vector<2x12x8x1xf32>
    %cst_100 = arith.constant 3.200000e+01 : f32
    %428 = vector.broadcast %cst_100 : f32 to vector<2x12x8x1xf32>
    %429 = arith.divf %427, %428 : vector<2x12x8x1xf32>
    %cst_101 = arith.constant 9.99999974E-6 : f32
    %430 = vector.broadcast %cst_101 : f32 to vector<2x12x8x1xf32>
    %431 = arith.addf %429, %430 : vector<2x12x8x1xf32>
    %432 = math.rsqrt %431 : vector<2x12x8x1xf32>
    %433 = vector.broadcast %432 : vector<2x12x8x1xf32> to vector<2x12x8x32xf32>
    %434 = arith.mulf %424, %433 : vector<2x12x8x32xf32>
    %435 = vector.shape_cast %12 : vector<1x32xf32> to vector<1x1x1x32xf32>
    %436 = vector.broadcast %435 : vector<1x1x1x32xf32> to vector<2x12x8x32xf32>
    %437 = arith.mulf %434, %436 : vector<2x12x8x32xf32>
    %438 = vector.shape_cast %13 : vector<1x32xf32> to vector<1x1x1x32xf32>
    %439 = vector.broadcast %438 : vector<1x1x1x32xf32> to vector<2x12x8x32xf32>
    %440 = arith.addf %437, %439 : vector<2x12x8x32xf32>
    %441 = arith.addf %389, %440 : vector<2x12x8x32xf32>
    %cst_102 = arith.constant 5.000000e-01 : f32
    %442 = vector.broadcast %cst_102 : f32 to vector<2x12x8x32xf32>
    %443 = arith.mulf %441, %442 : vector<2x12x8x32xf32>
    %444 = vector.extract_strided_slice %443 {offsets = [0, 11, 0, 0], sizes = [2, 1, 8, 32], strides = [1, 1, 1, 1]} : vector<2x12x8x32xf32> to vector<2x1x8x32xf32>
    %445 = vector.shape_cast %444 : vector<2x1x8x32xf32> to vector<2x8x32xf32>
    %cst_103 = arith.constant dense<0.000000e+00> : vector<2x8x32xf32>
    %446 = vector.multi_reduction <add>, %443, %cst_103 [1] : vector<2x12x8x32xf32> to vector<2x8x32xf32>
    %cst_104 = arith.constant 0.0833333358 : f32
    %447 = vector.broadcast %cst_104 : f32 to vector<2x8x32xf32>
    %448 = arith.mulf %446, %447 : vector<2x8x32xf32>
    %449 = vector.shape_cast %445 : vector<2x8x32xf32> to vector<16x32xf32>
    %cst_105 = arith.constant dense<0.000000e+00> : vector<16x32xf32>
    %450 = tpu.matmul %449, %14, %cst_105 {dimension_numbers = #tpu.dot_dimension_numbers<[1], [0], [0], [1], [0, 0, 1, 1], [], []>} : vector<16x32xf32>, vector<32x32xf32>, vector<16x32xf32> -> vector<16x32xf32>
    %451 = vector.broadcast %15 : vector<1x32xf32> to vector<16x32xf32>
    %452 = arith.addf %450, %451 : vector<16x32xf32>
    %cst_106 = arith.constant 0.000000e+00 : f32
    %453 = vector.broadcast %cst_106 : f32 to vector<16x32xf32>
    %454 = arith.maximumf %452, %453 : vector<16x32xf32>
    %455 = vector.shape_cast %448 : vector<2x8x32xf32> to vector<16x32xf32>
    %cst_107 = arith.constant dense<0.000000e+00> : vector<16x32xf32>
    %456 = tpu.matmul %455, %16, %cst_107 {dimension_numbers = #tpu.dot_dimension_numbers<[1], [0], [0], [1], [0, 0, 1, 1], [], []>} : vector<16x32xf32>, vector<32x32xf32>, vector<16x32xf32> -> vector<16x32xf32>
    %457 = vector.broadcast %17 : vector<1x32xf32> to vector<16x32xf32>
    %458 = arith.addf %456, %457 : vector<16x32xf32>
    %cst_108 = arith.constant 0.000000e+00 : f32
    %459 = vector.broadcast %cst_108 : f32 to vector<16x32xf32>
    %460 = arith.maximumf %458, %459 : vector<16x32xf32>
    %461 = vector.shape_cast %454 : vector<16x32xf32> to vector<2x8x32xf32>
    %462 = vector.shape_cast %460 : vector<16x32xf32> to vector<2x8x32xf32>
    %463 = tpu.concatenate %461, %462 in 2 : vector<2x8x32xf32>, vector<2x8x32xf32> -> vector<2x8x64xf32>
    %c0_109 = arith.constant 0 : index
    %c0_110 = arith.constant 0 : index
    %c0_111 = arith.constant 0 : index
    %464 = vector.load %arg19[%c0_109, %c0_110, %c0_111] : memref<2x8x64xf32, #tpu.memory_space<vmem>>, vector<2x8x64xf32>
    tpu.vector_store %arg19[%c0_109, %c0_110, %c0_111], %463 {strides = array<i32>} : memref<2x8x64xf32, #tpu.memory_space<vmem>>, vector<2x8x64xf32>,
    return
  }
}

</mosaic_0001>

<bundles_post_ra>
// kernel: main_model_forward.1
= control target key start
LH: loop header
LB: loop body
LE: loop exit
PB: predicated region body
PF: predicated region fallthrough
CT: control target
= control target key end

     0   :  { %s16649_s0 = inlined_call_operand.hbm [shape: f32[2,12,8,32], index: 0, kind: input, shape index: {}]   ;;  %s16650_s1 = inlined_call_operand.hbm [shape: f32[2,8,8], index: 1, kind: input, shape index: {}]   ;;  %s16651_s2 = inlined_call_operand.vmem [shape: f32[2,1,32,32], index: 2, kind: input, shape index: {}]   ;;  %s16652_s3 = inlined_call_operand.hbm [shape: f32[2,1,32], index: 3, kind: input, shape index: {}]   ;;  %s16653_s4 = inlined_call_operand.hbm [shape: f32[2,1,32], index: 4, kind: input, shape index: {}]   ;;  %s16654_s5 = inlined_call_operand.hbm [shape: f32[2,1,32], index: 5, kind: input, shape index: {}]   ;;  %s16655_s6 = inlined_call_operand.vmem [shape: f32[2,8,1], index: 6, kind: input, shape index: {}]   ;;  %s16656_s7 = inlined_call_operand.hbm [shape: f32[2,32,64], index: 7, kind: input, shape index: {}]   ;;  %s16657_s8 = inlined_call_operand.vmem [shape: f32[2,64], index: 8, kind: input, shape index: {}]   ;;  %s16658_s9 = inlined_call_operand.vmem [shape: f32[2,32], index: 9, kind: input, shape index: {}]   ;;  %s16659_s10 = inlined_call_operand.vmem [shape: f32[2,32], index: 10, kind: input, shape index: {}]   ;;  %s16660_s11 = inlined_call_operand.vmem [shape: f32[32,16], index: 11, kind: input, shape index: {}]   ;;  %s16661_s12 = inlined_call_operand.hbm [shape: f32[16,16], index: 12, kind: input, shape index: {}]   ;;  %s16662_s13 = inlined_call_operand.vmem [shape: f32[1,32], index: 13, kind: input, shape index: {}]   ;;  %s16663_s14 = inlined_call_operand.hbm [shape: f32[1,32], index: 14, kind: input, shape index: {}]   ;;  %s16664_s15 = inlined_call_operand.vmem [shape: f32[32,32], index: 15, kind: input, shape index: {}]   ;;  %s16665_s16 = inlined_call_operand.vmem [shape: f32[1,32], index: 16, kind: input, shape index: {}]   ;;  %s16666_s17 = inlined_call_operand.hbm [shape: f32[32,32], index: 17, kind: input, shape index: {}]   ;;  %s16667_s18 = inlined_call_operand.hbm [shape: f32[1,32], index: 18, kind: input, shape index: {}]   ;;  %s16668_s19 = inlined_call_operand.hbm [shape: f32[2,8,64], index: 19, kind: output, shape index: {}]  }
   0x1   :  { %16942 = sst [smem:[#allocation94_spill]] %s16649_s0 }
   0x2   :  { %16943 = sst [smem:[#allocation95_spill]] %s16650_s1 }
   0x3   :  { %16944 = sst [smem:[#allocation96_spill]] %s16651_s2 }
   0x4   :  { %16945 = sst [smem:[#allocation97_spill]] %s16652_s3 }
   0x5   :  { %16946 = sst [smem:[#allocation98_spill]] %s16665_s16 }
   0x6   :  { %16947 = sst [smem:[#allocation99_spill]] %s16668_s19 }
   0x7   :  { %24 = vsyncpa [#allocation3], 0 }
   0x8   :  { %25 = vsyncpa [#allocation6], 0 }
   0x9   :  { %26 = vsyncpa [#allocation9], 0 }
   0xa   :  { %27 = vsyncpa [#allocation12], 0 }
   0xb   :  { %28 = vsyncpa [#allocation15], 0 }
   0xc   :  { %29 = vsyncpa [#allocation18], 0 }
   0xd   :  { %30 = vsyncpa [#allocation4], 0  ;;  %s10722_s0 = smov [#allocation5]   ;;  %s16948_s1 = sld [smem:[#allocation95_spill]] }
   0xe   :  { %s48_s30 = sshll.u32 %s10722_s0, 4  ;;  %s49_s30 = int_to_ptr.vmem [resolvable:$true] %s48_s30 }
  0x13   :  { %s10466_s22 = scalar_lea.hbm %s16948_s1, 256 }
  0x14   :  { %p10467_p0 = scmp.ne.s32.totalorder %s16948_s1, %s10466_s22  ;;  %p10470_p1 = scmp.lt.u32.totalorder %s10466_s22, %s16948_s1 }
  0x16   :  { %p10472_p2 = pnand %p10470_p1, %p10467_p0 }
  0x18   :  { %10475 = shalt.err (!%p10472_p2)
}
  0x19   :  { %s10476_s3 = scalar_lea.vmem %s49_s30, 256  ;;  %p10481_p4 = scmp.lt.s32.totalorder %s49_s30, %s49_s30 }
  0x1a   :  { %p10477_p3 = scmp.ne.s32.totalorder %s49_s30, %s10476_s3  ;;  %p10482_p5 = scmp.lt.s32.totalorder %s10476_s3, %s10476_s3 }
  0x1c   :  { %p10483_p6 = por %p10482_p5, %p10481_p4 }
  0x1e   :  { %p10484_p7 = pnand %p10483_p6, %p10477_p3 }
  0x20   :  { %10487 = shalt.err (!%p10484_p7)
}
  0x21   :  { %s10723_s26 = smov 128   ;;  %s10724_s27 = smov 8  }
  0x22   :  { %54 = dma.hbm_to_vmem [thread:$0]  %s16948_s1, 256, %s49_s30, [#allocation6], %s10723_s26, %s10723_s26, %s10724_s27  }
  0x23   :  { %s10725_s0 = smov [#allocation8]   ;;  %s10726_s21 = smov [#allocation11]  }
  0x24   :  { %s74_s20 = sshll.u32 %s10725_s0, 4  ;;  %s100_s22 = sshll.u32 %s10726_s21, 4  ;;  %s75_s20 = int_to_ptr.vmem [resolvable:$true] %s74_s20  ;;  %s101_s22 = int_to_ptr.vmem [resolvable:$true] %s100_s22 }
  0x25   :  { %s10488_s24 = scalar_lea.hbm %s16653_s4, 32 }
  0x26   :  { %p10489_p8 = scmp.ne.s32.totalorder %s16653_s4, %s10488_s24  ;;  %p10492_p9 = scmp.lt.u32.totalorder %s10488_s24, %s16653_s4 }
  0x28   :  { %p10494_p10 = pnand %p10492_p9, %p10489_p8 }
  0x2a   :  { %10497 = shalt.err (!%p10494_p10)
}
  0x2b   :  { %s10498_s30 = scalar_lea.vmem %s75_s20, 32  ;;  %p10503_p12 = scmp.lt.s32.totalorder %s75_s20, %s75_s20 }
  0x2c   :  { %p10499_p11 = scmp.ne.s32.totalorder %s75_s20, %s10498_s30  ;;  %p10504_p13 = scmp.lt.s32.totalorder %s10498_s30, %s10498_s30 }
  0x2e   :  { %p10505_p0 = por %p10504_p13, %p10503_p12 }
  0x30   :  { %p10506_p1 = pnand %p10505_p0, %p10499_p11 }
  0x32   :  { %10509 = shalt.err (!%p10506_p1)
}
  0x33   :  { %s10727_s1 = smov 16   ;;  %s10728_s28 = smov 1  }
  0x34   :  { %80 = dma.hbm_to_vmem [thread:$0]  %s16653_s4, 32, %s75_s20, [#allocation9], %s10727_s1, %s10727_s1, %s10728_s28  }
  0x35   :  { %s10510_s21 = scalar_lea.hbm %s16656_s7, 1024 }
  0x36   :  { %p10511_p2 = scmp.ne.s32.totalorder %s16656_s7, %s10510_s21  ;;  %p10514_p3 = scmp.lt.u32.totalorder %s10510_s21, %s16656_s7 }
  0x38   :  { %p10516_p4 = pnand %p10514_p3, %p10511_p2 }
  0x3a   :  { %10519 = shalt.err (!%p10516_p4)
}
  0x3b   :  { %s10520_s3 = scalar_lea.vmem %s101_s22, 1024  ;;  %p10525_p6 = scmp.lt.s32.totalorder %s101_s22, %s101_s22 }
  0x3c   :  { %p10521_p5 = scmp.ne.s32.totalorder %s101_s22, %s10520_s3  ;;  %p10526_p7 = scmp.lt.s32.totalorder %s10520_s3, %s10520_s3 }
  0x3e   :  { %p10527_p8 = por %p10526_p7, %p10525_p6 }
  0x40   :  { %p10528_p9 = pnand %p10527_p8, %p10521_p5 }
  0x42   :  { %10531 = shalt.err (!%p10528_p9)
}
  0x43   :  { %106 = dma.hbm_to_vmem [thread:$0]  %s16656_s7, 1024, %s101_s22, [#allocation12], %s10723_s26, %s10723_s26, %s10724_s27  }
  0x44   :  { %s10729_s30 = smov [#allocation14]   ;;  %s10730_s0 = smov [#allocation2]  }
  0x45   :  { %s135_s29 = sshll.u32 %s10729_s30, 4  ;;  %s36_s16 = sshll.u32 %s10730_s0, 4  ;;  %s136_s29 = int_to_ptr.vmem [resolvable:$true] %s135_s29  ;;  %s37_s16 = int_to_ptr.vmem [resolvable:$true] %s36_s16 }
  0x46   :  { %s10532_s2 = scalar_lea.hbm %s16663_s14, 16 }
  0x47   :  { %p10533_p10 = scmp.ne.s32.totalorder %s16663_s14, %s10532_s2  ;;  %p10536_p11 = scmp.lt.u32.totalorder %s10532_s2, %s16663_s14 }
  0x49   :  { %p10538_p12 = pnand %p10536_p11, %p10533_p10 }
  0x4b   :  { %10541 = shalt.err (!%p10538_p12)
}
  0x4c   :  { %s10542_s7 = scalar_lea.vmem %s136_s29, 16  ;;  %s10546_s22 = scalar_lea.vmem %s136_s29, 32 }
  0x4d   :  { %p10543_p13 = scmp.ne.s32.totalorder %s136_s29, %s10542_s7  ;;  %p10547_p0 = scmp.lt.s32.totalorder %s136_s29, %s136_s29 }
  0x4e   :  { %p10548_p1 = scmp.lt.s32.totalorder %s10546_s22, %s10542_s7 }
  0x50   :  { %p10549_p2 = por %p10548_p1, %p10547_p0 }
  0x52   :  { %p10550_p3 = pnand %p10549_p2, %p10543_p13 }
  0x54   :  { %10553 = shalt.err (!%p10550_p3)
}
  0x55   :  { %138 = dma.hbm_to_vmem [thread:$0]  %s16663_s14, 16, %s136_s29, [#allocation15]  }
  0x56   :  { %s16949_s19 = sld [smem:[#allocation94_spill]] }
  0x5c   :  { %s10554_s21 = scalar_lea.hbm %s16949_s19, 3072 }
  0x5d   :  { %p10555_p4 = scmp.ne.s32.totalorder %s16949_s19, %s10554_s21  ;;  %p10558_p5 = scmp.lt.u32.totalorder %s10554_s21, %s16949_s19 }
  0x5f   :  { %p10560_p6 = pnand %p10558_p5, %p10555_p4 }
  0x61   :  { %10563 = shalt.err (!%p10560_p6)
}
  0x62   :  { %s10564_s3 = scalar_lea.vmem %s37_s16, 3072  ;;  %p10569_p8 = scmp.lt.s32.totalorder %s37_s16, %s37_s16 }
  0x63   :  { %p10565_p7 = scmp.ne.s32.totalorder %s37_s16, %s10564_s3  ;;  %p10570_p9 = scmp.lt.s32.totalorder %s10564_s3, %s10564_s3 }
  0x65   :  { %p10571_p10 = por %p10570_p9, %p10569_p8 }
  0x67   :  { %p10572_p11 = pnand %p10571_p10, %p10565_p7 }
  0x69   :  { %10575 = shalt.err (!%p10572_p11)
}
  0x6a   :  { %42 = dma.hbm_to_vmem [thread:$0]  %s16949_s19, 3072, %s37_s16, [#allocation3], %s10723_s26, %s10723_s26, %s10724_s27  }
  0x6b   :  { %s10731_s7 = smov [#allocation7]   ;;  %s10732_s4 = smov [#allocation10]  }
  0x6c   :  { %s62_s22 = sshll.u32 %s10731_s7, 4  ;;  %s86_s20 = sshll.u32 %s10732_s4, 4  ;;  %s63_s22 = int_to_ptr.vmem [resolvable:$true] %s62_s22  ;;  %s87_s20 = int_to_ptr.vmem [resolvable:$true] %s86_s20 }
  0x6d   :  { %s16950_s21 = sld [smem:[#allocation97_spill]] }
  0x73   :  { %s10576_s2 = scalar_lea.hbm %s16950_s21, 32 }
  0x74   :  { %p10577_p12 = scmp.ne.s32.totalorder %s16950_s21, %s10576_s2  ;;  %p10580_p13 = scmp.lt.u32.totalorder %s10576_s2, %s16950_s21 }
  0x76   :  { %p10582_p0 = pnand %p10580_p13, %p10577_p12 }
  0x78   :  { %10585 = shalt.err (!%p10582_p0)
}
  0x79   :  { %s10586_s16 = scalar_lea.vmem %s63_s22, 32  ;;  %p10591_p2 = scmp.lt.s32.totalorder %s63_s22, %s63_s22 }
  0x7a   :  { %p10587_p1 = scmp.ne.s32.totalorder %s63_s22, %s10586_s16  ;;  %p10592_p3 = scmp.lt.s32.totalorder %s10586_s16, %s10586_s16 }
  0x7c   :  { %p10593_p4 = por %p10592_p3, %p10591_p2 }
  0x7e   :  { %p10594_p5 = pnand %p10593_p4, %p10587_p1 }
  0x80   :  { %10597 = shalt.err (!%p10594_p5)
}
  0x81   :  { %68 = dma.hbm_to_vmem [thread:$0]  %s16950_s21, 32, %s63_s22, [#allocation6], %s10727_s1, %s10727_s1, %s10728_s28  }
  0x82   :  { %s10598_s4 = scalar_lea.hbm %s16654_s5, 32 }
  0x83   :  { %p10599_p6 = scmp.ne.s32.totalorder %s16654_s5, %s10598_s4  ;;  %p10602_p7 = scmp.lt.u32.totalorder %s10598_s4, %s16654_s5 }
  0x85   :  { %p10604_p8 = pnand %p10602_p7, %p10599_p6 }
  0x87   :  { %10607 = shalt.err (!%p10604_p8)
}
  0x88   :  { %s10608_s24 = scalar_lea.vmem %s87_s20, 32  ;;  %p10613_p10 = scmp.lt.s32.totalorder %s87_s20, %s87_s20 }
  0x89   :  { %p10609_p9 = scmp.ne.s32.totalorder %s87_s20, %s10608_s24  ;;  %p10614_p11 = scmp.lt.s32.totalorder %s10608_s24, %s10608_s24 }
  0x8b   :  { %p10615_p12 = por %p10614_p11, %p10613_p10 }
  0x8d   :  { %p10616_p13 = pnand %p10615_p12, %p10609_p9 }
  0x8f   :  { %10619 = shalt.err (!%p10616_p13)
}
  0x90   :  { %92 = dma.hbm_to_vmem [thread:$0]  %s16654_s5, 32, %s87_s20, [#allocation9], %s10727_s1, %s10727_s1, %s10728_s28  }
  0x91   :  { %s10733_s25 = smov [#allocation13]   ;;  %s10734_s16 = smov [#allocation16]  }
  0x92   :  { %s120_s3 = sshll.u32 %s10733_s25, 4  ;;  %s148_s19 = sshll.u32 %s10734_s16, 4  ;;  %s121_s3 = int_to_ptr.vmem [resolvable:$true] %s120_s3  ;;  %s149_s19 = int_to_ptr.vmem [resolvable:$true] %s148_s19 }
  0x93   :  { %s10620_s7 = scalar_lea.hbm %s16661_s12, 256 }
  0x94   :  { %p10621_p0 = scmp.ne.s32.totalorder %s16661_s12, %s10620_s7  ;;  %p10624_p1 = scmp.lt.u32.totalorder %s10620_s7, %s16661_s12 }
  0x96   :  { %p10626_p2 = pnand %p10624_p1, %p10621_p0 }
  0x98   :  { %10629 = shalt.err (!%p10626_p2)
}
  0x99   :  { %s10630_s5 = scalar_lea.vmem %s121_s3, 256  ;;  %p10635_p4 = scmp.lt.s32.totalorder %s121_s3, %s121_s3 }
  0x9a   :  { %p10631_p3 = scmp.ne.s32.totalorder %s121_s3, %s10630_s5  ;;  %p10636_p5 = scmp.lt.s32.totalorder %s10630_s5, %s10630_s5 }
  0x9c   :  { %p10637_p6 = por %p10636_p5, %p10635_p4 }
  0x9e   :  { %p10638_p7 = pnand %p10637_p6, %p10631_p3 }
  0xa0   :  { %10641 = shalt.err (!%p10638_p7)
}
  0xa1   :  { %126 = dma.hbm_to_vmem [thread:$0]  %s16661_s12, 256, %s121_s3, [#allocation12], %s10723_s26, %s10723_s26, %s10724_s27  }
  0xa2   :  { %s10642_s24 = scalar_lea.hbm %s16666_s17, 512 }
  0xa3   :  { %p10643_p8 = scmp.ne.s32.totalorder %s16666_s17, %s10642_s24  ;;  %p10646_p9 = scmp.lt.u32.totalorder %s10642_s24, %s16666_s17 }
  0xa5   :  { %p10648_p10 = pnand %p10646_p9, %p10643_p8 }
  0xa7   :  { %10651 = shalt.err (!%p10648_p10)
}
  0xa8   :  { %s10652_s14 = scalar_lea.vmem %s149_s19, 512  ;;  %p10657_p12 = scmp.lt.s32.totalorder %s149_s19, %s149_s19 }
  0xa9   :  { %p10653_p11 = scmp.ne.s32.totalorder %s149_s19, %s10652_s14  ;;  %p10658_p13 = scmp.lt.s32.totalorder %s10652_s14, %s10652_s14 }
  0xab   :  { %p10659_p0 = por %p10658_p13, %p10657_p12 }
  0xad   :  { %p10660_p1 = pnand %p10659_p0, %p10653_p11 }
  0xaf   :  { %10663 = shalt.err (!%p10660_p1)
}
  0xb0   :  { %154 = dma.hbm_to_vmem [thread:$0]  %s16666_s17, 512, %s149_s19, [#allocation15], %s10723_s26, %s10723_s26, %s10724_s27  }
  0xb1   :  { %s10735_s29 = smov [#allocation17]   ;;  %s10664_s0 = scalar_lea.hbm %s16667_s18, 16 }
  0xb2   :  { %s161_s7 = sshll.u32 %s10735_s29, 4  ;;  %p10665_p2 = scmp.ne.s32.totalorder %s16667_s18, %s10664_s0  ;;  %s162_s7 = int_to_ptr.vmem [resolvable:$true] %s161_s7 }
  0xb3   :  { %p10668_p3 = scmp.lt.u32.totalorder %s10664_s0, %s16667_s18 }
  0xb5   :  { %p10670_p4 = pnand %p10668_p3, %p10665_p2 }
  0xb7   :  { %10673 = shalt.err (!%p10670_p4)
}
  0xb8   :  { %s10674_s20 = scalar_lea.vmem %s162_s7, 16  ;;  %s10678_s17 = scalar_lea.vmem %s162_s7, 32 }
  0xb9   :  { %p10675_p5 = scmp.ne.s32.totalorder %s162_s7, %s10674_s20  ;;  %p10679_p6 = scmp.lt.s32.totalorder %s162_s7, %s162_s7 }
  0xba   :  { %p10680_p7 = scmp.lt.s32.totalorder %s10678_s17, %s10674_s20 }
  0xbc   :  { %p10681_p8 = por %p10680_p7, %p10679_p6 }
  0xbe   :  { %p10682_p9 = pnand %p10681_p8, %p10675_p5 }
  0xc0   :  { %10685 = shalt.err (!%p10682_p9)
}
  0xc1   :  { %164 = dma.hbm_to_vmem [thread:$0]  %s16667_s18, 16, %s162_s7, [#allocation18]  }
  0xc2   :  { %10708 = dma.done.wait [#allocation3], 3072  }
  0xc3   :  { %10709 = vsyncadd [#allocation3], 4294964224 }
  0xc4   :  { %10710 = dma.done.wait [#allocation6], 288  }
  0xc5   :  { %10711 = vsyncadd [#allocation6], 4294967008 }
  0xc6   :  { %10712 = dma.done.wait [#allocation9], 64  }
  0xc7   :  { %10713 = vsyncadd [#allocation9], 4294967232 }
  0xc8   :  { %10714 = dma.done.wait [#allocation12], 1280  }
  0xc9   :  { %10715 = vsyncadd [#allocation12], 4294966016 }
  0xca   :  { %10716 = dma.done.wait [#allocation15], 528  }
  0xcb   :  { %10717 = vsyncadd [#allocation15], 4294966768 }
  0xcc   :  { %10718 = dma.done.wait [#allocation18], 16  }
  0xcd   :  { %10719 = vsyncadd [#allocation18], 4294967280  ;;  %v10736_v0 = vmov 4   ;;  %v16674_v1 = vmov 0   ;;  %s16951_s22 = sld [smem:[#allocation96_spill]]  ;;  %s10738_s29 = smov 32  }
  0xce   :  { %9947 = vset.pattern.permute.xlu0 %v10736_v0  ;;  %9944 = vset.pattern.permute.xlu1 %v16674_v1  ;;  %v8781_v7 = vld [vmem:[#allocation7 + $0x1] ss:$0 sm:$0xff]  ;;  %vm282_vm0 = vcmask 261120   ;;  %v11007_v9 = vld [vmem:[#allocation2] sm:$0xff]  ;;  %v11011_v10 = vld [vmem:[#allocation5 + $0x8] sm:$0xff]  ;;  %v10739_v11 = vmov 2  }
  0xcf   :  { %292 = vrot.lane.b32.xlu1 %v8781_v7, %s10738_s29  ;;  %9266 = vmatprep.mubr.msk.f32.mxu0 %vm282_vm0, %v11007_v9  ;;  %v10740_v12 = vmov 1   ;;  %v10741_v13 = vmov 3   ;;  %v11021_v14 = vld [vmem:[#allocation2 + $0x10] sm:$0xff]  ;;  %v10742_v15 = vmov 5   ;;  %v11025_v16 = vld [vmem:[#allocation2 + $0x20] sm:$0xff]  ;;  %v10743_v18 = vmov 6  }
  0xd0   :  { %v11030_v17 = vld [vmem:[#allocation2 + $0x30] sm:$0xff]  ;;  %v11035_v19 = vld [vmem:[#allocation2 + $0x40] sm:$0xff]  ;;  %v11042_v20 = vld [vmem:[#allocation2 + $0x8] sm:$0xff]  ;;  %v10744_v39 = vmov 7   ;;  %s10745_s20 = smov 96   ;;  %vm4427_vm1 = vcmask 130048  }
  0xd1   :  { %v11044_v21 = vld [vmem:[#allocation2 + $0x50] sm:$0xff]  ;;  %v11050_v22 = vld [vmem:[#allocation2 + $0x18] sm:$0xff]  ;;  %v11052_v23 = vld [vmem:[#allocation2 + $0x60] sm:$0xff]  ;;  %vm4828_vm2 = vcmask 785408   ;;  %s17472_s14 = sld [smem:[#allocation98_spill]]  ;;  %s10746_s12 = smov [#allocation19]  }
  0xd2   :  { %16952 = vst [vmem:[#allocation27_spill] sm:$0xff] %v11050_v22  ;;  %v11058_v24 = vld [vmem:[#allocation2 + $0x28] sm:$0xff]  ;;  %v11060_v25 = vld [vmem:[#allocation2 + $0x70] sm:$0xff]  ;;  %v11066_v26 = vld [vmem:[#allocation2 + $0x38] sm:$0xff]  ;;  %vm8756_vm3 = vcmask 523264  }
  0xd3   :  { %v201_v2 = vld [vmem:[%s16951_s22 + $0x20] sm:$0xff]  ;;  %v202_v3 = vld [vmem:[%s16951_s22 + $0x28] sm:$0xff]  ;;  %v203_v4 = vld [vmem:[%s16951_s22 + $0x30] sm:$0xff]  ;;  %2141 = vperm.xlu1 %9944, %v11011_v10   ;;  %16953 = vst [vmem:[#allocation28_spill] sm:$0xff] %v11058_v24 }
  0xd4   :  { %v9934_v5 = vpack.i.bf16 %v202_v3, %v201_v2  ;;  %v204_v6 = vld [vmem:[%s16951_s22 + $0x38] sm:$0xff]  ;;  %v11068_v27 = vld [vmem:[#allocation2 + $0x80] sm:$0xff]  ;;  %v11074_v28 = vld [vmem:[#allocation2 + $0x48] sm:$0xff] }
  0xd5   :  { %v9939_v8 = vpack.i.bf16 %v204_v6, %v203_v4  ;;  %v11076_v29 = vld [vmem:[#allocation2 + $0x90] sm:$0xff]  ;;  %v11082_v30 = vld [vmem:[#allocation2 + $0x58] sm:$0xff]  ;;  %v11084_v31 = vld [vmem:[#allocation2 + $0xa0] sm:$0xff] }
  0xd6   :  { %9935 = vrot.lane.b32.xlu0 %v9934_v5, %s10738_s29  ;;  %v11090_v32 = vld [vmem:[#allocation2 + $0x68] sm:$0xff]  ;;  %v11092_v33 = vld [vmem:[#allocation2 + $0xb0] sm:$0xff]  ;;  %v257_v34 = vld [vmem:[#allocation2 + $0x78] sm:$0xff] }
  0xd7   :  { %9945 = vset.pattern.permute.xlu1 %v10739_v11  ;;  %v195_v35 = vld [vmem:[#allocation5] sm:$0xff]  ;;  %v259_v36 = vld [vmem:[#allocation2 + $0x88] sm:$0xff]  ;;  %v261_v37 = vld [vmem:[#allocation2 + $0x98] sm:$0xff] }
  0xd8   :  { %2221 = vperm.xlu1 %9945, %v11011_v10   ;;  %v263_v38 = vld [vmem:[#allocation2 + $0xa8] sm:$0xff]  ;;  %v265_v40 = vld [vmem:[#allocation2 + $0xb8] sm:$0xff]  ;;  %v197_v42 = vld [vmem:[%s16951_s22] sm:$0xff] }
  0xd9   :  { %v198_v43 = vld [vmem:[%s16951_s22 + $0x8] sm:$0xff]  ;;  %v199_v50 = vld [vmem:[%s16951_s22 + $0x10] sm:$0xff]  ;;  %v200_v51 = vld [vmem:[%s16951_s22 + $0x18] sm:$0xff] }
  0xda   :  { %9940 = vrot.lane.b32.xlu0 %v9939_v8, %s10738_s29 }
  0xdc   :  { %9946 = vset.pattern.permute.xlu1 %v10741_v13 }
  0xdd   :  { %2273 = vperm.xlu1 %9946, %v11011_v10  }
  0xde   :  { %2325 = vperm.xlu0 %9947, %v11011_v10  }
  0xe1   :  { %9949 = vset.pattern.permute.xlu1 %v10742_v15 }
  0xe2   :  { %9948 = vset.pattern.permute.xlu0 %v10740_v12  ;;  %2377 = vperm.xlu1 %9949, %v11011_v10  }
  0xe3   :  { %2169 = vperm.xlu0 %9948, %v11011_v10  }
  0xe6   :  { %9950 = vset.pattern.permute.xlu1 %v10743_v18 }
  0xe7   :  { %2560 = vrot.lane.b32.xlu0 %v11021_v14, %s10738_s29  ;;  %2429 = vperm.xlu1 %9950, %v11011_v10  }
  0xeb   :  { %2564 = vrot.lane.b32.xlu0 %v11025_v16, %s10738_s29  ;;  %2556 = vrot.lane.b32.xlu1 %v11007_v9, %s10738_s29 }
  0xec   :  { %9951 = vset.pattern.permute.xlu1 %v16674_v1 }
  0xef   :  { %2568 = vrot.lane.b32.xlu0 %v11030_v17, %s10738_s29  ;;  %2558 = vrot.lane.b32.xlu1 %v11042_v20, %s10738_s29 }
  0xf3   :  { %2572 = vrot.lane.b32.xlu0 %v11035_v19, %s10738_s29  ;;  %2562 = vrot.lane.b32.xlu1 %v11050_v22, %s10738_s29 }
  0xf7   :  { %2576 = vrot.lane.b32.xlu0 %v11044_v21, %s10738_s29  ;;  %2566 = vrot.lane.b32.xlu1 %v11058_v24, %s10738_s29 }
  0xfb   :  { %2580 = vrot.lane.b32.xlu0 %v11052_v23, %s10738_s29  ;;  %2570 = vrot.lane.b32.xlu1 %v11066_v26, %s10738_s29 }
  0xff   :  { %2584 = vrot.lane.b32.xlu0 %v11060_v25, %s10738_s29  ;;  %2574 = vrot.lane.b32.xlu1 %v11074_v28, %s10738_s29 }
 0x103   :  { %2588 = vrot.lane.b32.xlu0 %v11068_v27, %s10738_s29  ;;  %2578 = vrot.lane.b32.xlu1 %v11082_v30, %s10738_s29 }
 0x107   :  { %2592 = vrot.lane.b32.xlu0 %v11076_v29, %s10738_s29  ;;  %2582 = vrot.lane.b32.xlu1 %v11090_v32, %s10738_s29 }
 0x10b   :  { %2596 = vrot.lane.b32.xlu0 %v11084_v31, %s10738_s29  ;;  %2586 = vrot.lane.b32.xlu1 %v257_v34, %s10738_s29 }
 0x10f   :  { %2600 = vrot.lane.b32.xlu0 %v11092_v33, %s10738_s29  ;;  %2590 = vrot.lane.b32.xlu1 %v259_v36, %s10738_s29 }
 0x113   :  { %683 = vperm.xlu0 %9948, %v195_v35   ;;  %2594 = vrot.lane.b32.xlu1 %v261_v37, %s10738_s29 }
 0x117   :  { %9955 = vset.pattern.permute.xlu0 %v10742_v15  ;;  %2598 = vrot.lane.b32.xlu1 %v263_v38, %s10738_s29 }
 0x118   :  { %1275 = vperm.xlu0 %9955, %v195_v35  }
 0x11b   :  { %2602 = vrot.lane.b32.xlu1 %v265_v40, %s10738_s29 }
 0x11c   :  { %9956 = vset.pattern.permute.xlu0 %v10744_v39 }
 0x11d   :  { %2481 = vperm.xlu0 %9956, %v11011_v10  }
 0x11f   :  { %559 = vperm.xlu1 %9951, %v195_v35  }
 0x121   :  { %1571 = vperm.xlu0 %9956, %v195_v35  }
 0x123   :  { %9952 = vset.pattern.permute.xlu1 %v10739_v11 }
 0x124   :  { %831 = vperm.xlu1 %9952, %v195_v35  }
 0x128   :  { %9953 = vset.pattern.permute.xlu1 %v10741_v13 }
 0x129   :  { %979 = vperm.xlu1 %9953, %v195_v35  }
 0x12d   :  { %9954 = vset.pattern.permute.xlu1 %v10736_v0 }
 0x12e   :  { %1127 = vperm.xlu1 %9954, %v195_v35  }
 0x132   :  { %9957 = vset.pattern.permute.xlu1 %v10743_v18 }
 0x133   :  { %1423 = vperm.xlu1 %9957, %v195_v35  }
 0x141   :  { %v293_v57 = vpop.permute.xlu1 %292 }
 0x148   :  { %v9936_v41 = vpop.permute.xlu0 %9935 }
 0x149   :  { %v9938_v44 = vunpack.i.h.bf16 %v9936_v41  ;;  %v9937_v45 = vunpack.i.l.bf16 %v9936_v41 }
 0x14b   :  { %v283_v46 = vsel %vm282_vm0, %v197_v42, %v9937_v45  ;;  %v284_v47 = vsel %vm282_vm0, %v198_v43, %v9938_v44 }
 0x14c   :  { %v9941_v48 = vpop.permute.xlu0 %9940  ;;  %v9724_v49 = vpack.c.bf16 %v284_v47, %v283_v46 }
 0x14d   :  { %v9943_v52 = vunpack.i.h.bf16 %v9941_v48  ;;  %v9942_v53 = vunpack.i.l.bf16 %v9941_v48 }
 0x14e   :  { %9725 = vmatprep.subr.bf16.mxu0 %v9724_v49 }
 0x14f   :  { %9727 = vmatpush3.bf16.msra.mxu0 %v9724_v49  ;;  %v285_v54 = vsel %vm282_vm0, %v199_v50, %v9942_v53  ;;  %v286_v55 = vsel %vm282_vm0, %v200_v51, %v9943_v52 }
 0x150   :  { %v9728_v56 = vpack.c.bf16 %v286_v55, %v285_v54 }
 0x152   :  { %9729 = vmatprep.subr.bf16.mxu0 %v9728_v56  ;;  %v11164_v58 = vpop.permute.xlu1 %2141 }
 0x153   :  { %9731 = vmatpush3.bf16.msra.mxu0 %v9728_v56 }
 0x156   :  { %9267 = vmatmul.mubr.msk.f32.vlgmr.msra.gmra.mrb[0].mxu0 %vm282_vm0, %v11042_v20 }
 0x157   :  { %9269 = vmatprep.mubr.msk.f32.mxu0 %vm282_vm0, %v11021_v14  ;;  %v11166_v59 = vpop.permute.xlu1 %2221 }
 0x15a   :  { %9270 = vmatmul.mubr.msk.f32.gmra.mrb[2].mxu0 %vm282_vm0, %v11050_v22 }
 0x15b   :  { %9272 = vmatprep.mubr.msk.f32.mxu0 %vm282_vm0, %v11025_v16 }
 0x15c   :  { %v11168_v60 = vpop.permute.xlu1 %2273 }
 0x15d   :  { %v11172_v62 = vpop.permute.xlu0 %2325 }
 0x15e   :  { %9273 = vmatmul.mubr.msk.f32.gmra.mrb[4].mxu0 %vm282_vm0, %v11058_v24 }
 0x15f   :  { %9275 = vmatprep.mubr.msk.f32.mxu0 %vm282_vm0, %v11030_v17 }
 0x161   :  { %v11170_v61 = vpop.permute.xlu1 %2377 }
 0x162   :  { %9276 = vmatmul.mubr.msk.f32.gmra.mrb[6].mxu0 %vm282_vm0, %v11066_v26  ;;  %16954 = vst [vmem:[#allocation29_spill] sm:$0xff] %v11170_v61  ;;  %v11176_v0 = vpop.permute.xlu0 %2169 }
 0x163   :  { %9278 = vmatprep.mubr.msk.f32.mxu0 %vm282_vm0, %v11035_v19 }
 0x166   :  { %9279 = vmatmul.mubr.msk.f32.gmra.mrb[8].mxu0 %vm282_vm0, %v11074_v28  ;;  %v11174_v63 = vpop.permute.xlu1 %2429  ;;  %v11180_v3 = vpop.permute.xlu0 %2560  ;;  %v205_v28 = vld [vmem:[#allocation7] sm:$0x1] }
 0x167   :  { %9281 = vmatprep.mubr.msk.f32.mxu0 %vm282_vm0, %v11044_v21  ;;  %16955 = vst [vmem:[#allocation30_spill] sm:$0xff] %v11174_v63 }
 0x16a   :  { %9282 = vmatmul.mubr.msk.f32.gmra.mrb[10].mxu0 %vm282_vm0, %v11082_v30  ;;  %v11178_v2 = vpop.permute.xlu1 %2556  ;;  %v11184_v5 = vpop.permute.xlu0 %2564 }
 0x16b   :  { %9284 = vmatprep.mubr.msk.f32.mxu0 %vm282_vm0, %v11052_v23  ;;  %16956 = vst [vmem:[#allocation31_spill] sm:$0xff] %v11184_v5  ;;  %v296_v23 = vlaneseq }
 0x16d   :  { %v297_v26 = vshrl.u32 %v296_v23, 7 }
 0x16e   :  { %9285 = vmatmul.mubr.msk.f32.gmra.mrb[12].mxu0 %vm282_vm0, %v11090_v32  ;;  %v11182_v4 = vpop.permute.xlu1 %2558  ;;  %v11188_v7 = vpop.permute.xlu0 %2568 }
 0x16f   :  { %9287 = vmatprep.mubr.msk.f32.mxu0 %vm282_vm0, %v11060_v25  ;;  %16957 = vst [vmem:[#allocation32_spill] sm:$0xff] %v11188_v7  ;;  %v11218_v30 = vsub.s32 0, %v297_v26  ;;  %v11228_v35 = vsub.s32 2, %v297_v26  ;;  %v11235_v41 = vsub.s32 4, %v297_v26  ;;  %v11256_v50 = vsub.s32 5, %v297_v26 }
 0x170   :  { %v11264_v54 = vsub.s32 6, %v297_v26 }
 0x171   :  { %16972 = vst [vmem:[#allocation47_spill] sm:$0xff] %v11218_v30 }
 0x172   :  { %9288 = vmatmul.mubr.msk.f32.gmra.mrb[14].mxu0 %vm282_vm0, %v257_v34  ;;  %v11186_v6 = vpop.permute.xlu1 %2562  ;;  %v11192_v10 = vpop.permute.xlu0 %2572  ;;  %v11226_v34 = vsub.s32 1, %v297_v26 }
 0x173   :  { %9290 = vmatprep.mubr.msk.f32.mxu0 %vm282_vm0, %v11068_v27  ;;  %16959 = vst [vmem:[#allocation34_spill] sm:$0xff] %v11192_v10 }
 0x174   :  { %16974 = vst [vmem:[#allocation49_spill] sm:$0xff] %v11226_v34 }
 0x176   :  { %9291 = vmatmul.mubr.msk.f32.gmra.mrb[16].mxu0 %vm282_vm0, %v259_v36  ;;  %v11190_v8 = vpop.permute.xlu1 %2566  ;;  %v11196_v12 = vpop.permute.xlu0 %2576 }
 0x177   :  { %9293 = vmatprep.mubr.msk.f32.mxu0 %vm282_vm0, %v11076_v29  ;;  %16958 = vst [vmem:[#allocation33_spill] sm:$0xff] %v11190_v8  ;;  %16961 = vst [vmem:[#allocation36_spill] sm:$0xff] %v11196_v12 }
 0x17a   :  { %9294 = vmatmul.mubr.msk.f32.gmra.mrb[18].mxu0 %vm282_vm0, %v261_v37  ;;  %v11194_v11 = vpop.permute.xlu1 %2570  ;;  %v11200_v15 = vpop.permute.xlu0 %2580 }
 0x17b   :  { %9296 = vmatprep.mubr.msk.f32.mxu0 %vm282_vm0, %v11084_v31  ;;  %16960 = vst [vmem:[#allocation35_spill] sm:$0xff] %v11194_v11  ;;  %16963 = vst [vmem:[#allocation38_spill] sm:$0xff] %v11200_v15  ;;  %v295_v31 = vsel %vm282_vm0, %v205_v28, %v293_v57 }
 0x17e   :  { %9297 = vmatmul.mubr.msk.f32.gmra.mrb[20].mxu0 %vm282_vm0, %v263_v38  ;;  %v11198_v13 = vpop.permute.xlu1 %2574  ;;  %v11204_v17 = vpop.permute.xlu0 %2584 }
 0x17f   :  { %9299 = vmatprep.mubr.msk.f32.mxu0 %vm282_vm0, %v11092_v33  ;;  %16962 = vst [vmem:[#allocation37_spill] sm:$0xff] %v11198_v13  ;;  %16965 = vst [vmem:[#allocation40_spill] sm:$0xff] %v11204_v17  ;;  %v11224_v33 = vrot.slane %v295_v31, %v11218_v30  ;;  %v11272_v31 = vsub.s32 7, %v297_v26 }
 0x181   :  { %16977 = vst [vmem:[#allocation52_spill] sm:$0xff] %v11272_v31 }
 0x182   :  { %9300 = vmatmul.mubr.msk.f32.gmra.mrb[22].mxu0 %vm282_vm0, %v265_v40  ;;  %v11202_v16 = vpop.permute.xlu1 %2578  ;;  %v11208_v19 = vpop.permute.xlu0 %2588  ;;  %v11233_v40 = vsub.s32 3, %v297_v26 }
 0x183   :  { %16964 = vst [vmem:[#allocation39_spill] sm:$0xff] %v11202_v16  ;;  %16967 = vst [vmem:[#allocation42_spill] sm:$0xff] %v11208_v19 }
 0x186   :  { %v11206_v18 = vpop.permute.xlu1 %2582  ;;  %v11212_v25 = vpop.permute.xlu0 %2592 }
 0x187   :  { %16966 = vst [vmem:[#allocation41_spill] sm:$0xff] %v11206_v18  ;;  %16969 = vst [vmem:[#allocation44_spill] sm:$0xff] %v11212_v25 }
 0x18a   :  { %v11210_v21 = vpop.permute.xlu1 %2586  ;;  %v11216_v29 = vpop.permute.xlu0 %2596 }
 0x18b   :  { %16968 = vst [vmem:[#allocation43_spill] sm:$0xff] %v11210_v21  ;;  %16971 = vst [vmem:[#allocation46_spill] sm:$0xff] %v11216_v29 }
 0x18e   :  { %v11214_v27 = vpop.permute.xlu1 %2590  ;;  %v11230_v36 = vpop.permute.xlu0 %2600 }
 0x18f   :  { %16970 = vst [vmem:[#allocation45_spill] sm:$0xff] %v11214_v27  ;;  %16975 = vst [vmem:[#allocation50_spill] sm:$0xff] %v11230_v36 }
 0x192   :  { %v11221_v32 = vpop.permute.xlu1 %2594  ;;  %v11262_v53 = vpop.permute.xlu0 %683 }
 0x193   :  { %16973 = vst [vmem:[#allocation48_spill] sm:$0xff] %v11221_v32 }
 0x196   :  { %v11237_v42 = vpop.permute.xlu1 %2598 }
 0x197   :  { %16976 = vst [vmem:[#allocation51_spill] sm:$0xff] %v11237_v42  ;;  %v11288_v26 = vpop.permute.xlu0 %1275 }
 0x19a   :  { %v11278_v1 = vpop.permute.xlu1 %2602 }
 0x19b   :  { %16978 = vst [vmem:[#allocation53_spill] sm:$0xff] %v11278_v1 }
 0x229   :  { %v9268_v37 = vpop.f32.mrb[0].mxu0 }
 0x22a   :  { %v444_v38 = vadd.f32 %v9268_v37, %v11224_v33  ;;  %v438_v39 = vpop.f32.mrb[1].mxu0 }
 0x22b   :  { %v439_v43 = vadd.f32 %v438_v39, %v11224_v33 }
 0x22c   :  { %v11241_v44 = vrot.slane %v444_v38, %v11218_v30  ;;  %v11244_v45 = vrot.slane %v444_v38, %v11226_v34  ;;  %v11247_v46 = vrot.slane %v444_v38, %v11228_v35  ;;  %v11254_v49 = vrot.slane %v444_v38, %v11233_v40 }
 0x22d   :  { %v11249_v47 = vpop.f32.mrb[2].mxu0  ;;  %v11267_v55 = vrot.slane %v444_v38, %v11235_v41  ;;  %v565_v23 = vrot.slane %v439_v43, %v11218_v30  ;;  %v689_v37 = vrot.slane %v439_v43, %v11226_v34  ;;  %v11276_v39 = vrot.slane %v439_v43, %v11228_v35 }
 0x22e   :  { %v11251_v48 = vpop.f32.mrb[3].mxu0  ;;  %v2145_v51 = vmul.f32 %v11164_v58, %v11241_v44  ;;  %v2173_v52 = vmul.f32 %v11176_v0, %v11244_v45  ;;  %v2225_v57 = vmul.f32 %v11166_v59, %v11247_v46  ;;  %v2277_v25 = vmul.f32 %v11168_v60, %v11254_v49 }
 0x22f   :  { %v11294_v19 = vrot.slane %v439_v43, %v11233_v40  ;;  %v2144_v1 = vmul.f32 %v11164_v58, %v565_v23  ;;  %v11299_v32 = vrot.slane %v444_v38, %v11264_v54  ;;  %v11304_v27 = vrot.slane %v439_v43, %v11235_v41 }
 0x230   :  { %v2197_v56 = vadd.f32 %v2173_v52, %v2145_v51  ;;  %v11284_v51 = vrot.slane %v444_v38, %v11256_v50  ;;  %v2224_v15 = vmul.f32 %v11166_v59, %v11276_v39  ;;  %v11312_v18 = vrot.slane %v444_v38, %v11272_v31 }
 0x231   :  { %v9274_v28 = vpop.f32.mrb[4].mxu0  ;;  %v11320_v16 = vrot.slane %v439_v43, %v11256_v50  ;;  %v2433_v38 = vmul.f32 %v11174_v63, %v11299_v32  ;;  %v2328_v11 = vmul.f32 %v11172_v62, %v11304_v27  ;;  %v782_v5 = vmul.f32 %v689_v37, %v11262_v53 }
 0x232   :  { %v11281_v36 = vadd.f32 %v9274_v28, %v11224_v33  ;;  %v458_v29 = vpop.f32.mrb[5].mxu0  ;;  %v2249_v52 = vadd.f32 %v2225_v57, %v2197_v56  ;;  %v2172_v28 = vmul.f32 %v11176_v0, %v689_v37  ;;  %v2329_v56 = vmul.f32 %v11172_v62, %v11267_v55 }
 0x233   :  { %v11291_v42 = vadd.f32 %v458_v29, %v11224_v33 }
 0x234   :  { %v2301_v17 = vadd.f32 %v2277_v25, %v2249_v52  ;;  %v2196_v29 = vadd.f32 %v2172_v28, %v2144_v1  ;;  %v2381_v25 = vmul.f32 %v11170_v61, %v11284_v51  ;;  %v2276_v28 = vmul.f32 %v11168_v60, %v11294_v19 }
 0x235   :  { %v9277_v57 = vpop.f32.mrb[6].mxu0 }
 0x236   :  { %v11309_v21 = vadd.f32 %v9277_v57, %v11224_v33  ;;  %v468_v12 = vpop.f32.mrb[7].mxu0  ;;  %v2353_v10 = vadd.f32 %v2329_v56, %v2301_v17  ;;  %v2248_v1 = vadd.f32 %v2224_v15, %v2196_v29  ;;  %v11324_v57 = vpop.permute.xlu1 %559  ;;  %v11329_v17 = vrot.slane %v439_v43, %v11264_v54 }
 0x237   :  { %v11317_v52 = vadd.f32 %v468_v12, %v11224_v33  ;;  %v11331_v56 = vpop.permute.xlu0 %2481 }
 0x238   :  { %16979 = vst [vmem:[#allocation54_spill] sm:$0xff] %v11309_v21  ;;  %v2405_v7 = vadd.f32 %v2381_v25, %v2353_v10  ;;  %v2300_v13 = vadd.f32 %v2276_v28, %v2248_v1  ;;  %v2485_v10 = vmul.f32 %v11331_v56, %v11312_v18  ;;  %v2380_v1 = vmul.f32 %v11170_v61, %v11320_v16 }
 0x239   :  { %16980 = vst [vmem:[#allocation55_spill] sm:$0xff] %v11317_v52  ;;  %v9280_v12 = vpop.f32.mrb[8].mxu0  ;;  %v11344_v52 = vrot.slane %v439_v43, %v11272_v31  ;;  %v783_v43 = vmul.f32 %v11244_v45, %v11262_v53 }
 0x23a   :  { %v11336_v15 = vadd.f32 %v9280_v12, %v11224_v33  ;;  %v478_v29 = vpop.f32.mrb[9].mxu0  ;;  %v2457_v24 = vadd.f32 %v2433_v38, %v2405_v7  ;;  %v2352_v21 = vadd.f32 %v2328_v11, %v2300_v13  ;;  %v2432_v12 = vmul.f32 %v11174_v63, %v11329_v17  ;;  %v11356_v11 = vpop.permute.xlu1 %831 }
 0x23b   :  { %v11341_v25 = vadd.f32 %v478_v29, %v11224_v33  ;;  %v659_v29 = vmul.f32 %v11241_v44, %v11324_v57 }
 0x23c   :  { %16981 = vst [vmem:[#allocation56_spill] sm:$0xff] %v11336_v15  ;;  %v2509_v28 = vadd.f32 %v2485_v10, %v2457_v24  ;;  %v658_v15 = vmul.f32 %v565_v23, %v11324_v57  ;;  %v2404_v38 = vadd.f32 %v2380_v1, %v2352_v21  ;;  %v2484_v21 = vmul.f32 %v11331_v56, %v11344_v52 }
 0x23d   :  { %16982 = vst [vmem:[#allocation57_spill] sm:$0xff] %v11341_v25  ;;  %v9283_v7 = vpop.f32.mrb[10].mxu0  ;;  %v807_v8 = vadd.f32 %v783_v43, %v659_v29 }
 0x23e   :  { %v11359_v13 = vadd.f32 %v9283_v7, %v11224_v33  ;;  %v488_v24 = vpop.f32.mrb[11].mxu0  ;;  %v2533_v10 = vmax.f32 %v2509_v28, 0.0  ;;  %v2456_v23 = vadd.f32 %v2432_v12, %v2404_v38  ;;  %v806_v45 = vadd.f32 %v782_v5, %v658_v15  ;;  %v11381_v5 = vpop.permute.xlu1 %979 }
 0x23f   :  { %v11362_v25 = vadd.f32 %v488_v24, %v11224_v33  ;;  %v931_v38 = vmul.f32 %v11247_v46, %v11356_v11  ;;  %v1078_v46 = vmul.f32 %v11294_v19, %v11381_v5 }
 0x240   :  { %v11367_v37 = vadd.f32 %v11182_v4, %v2533_v10  ;;  %v2508_v1 = vadd.f32 %v2484_v21, %v2456_v23  ;;  %v930_v4 = vmul.f32 %v11276_v39, %v11356_v11  ;;  %v11400_v21 = vadd.f32 %v11249_v47, %v11224_v33 }
 0x241   :  { %16983 = vst [vmem:[#allocation58_spill] sm:$0xff] %v11362_v25  ;;  %v9286_v44 = vpop.f32.mrb[12].mxu0  ;;  %v955_v24 = vadd.f32 %v931_v38, %v807_v8 }
 0x242   :  { %16984 = vst [vmem:[#allocation59_spill] sm:$0xff] %v11367_v37  ;;  %v11370_v22 = vadd.f32 %v9286_v44, %v11224_v33  ;;  %v498_v7 = vpop.f32.mrb[13].mxu0  ;;  %2678 = vrot.lane.b32.xlu1 %v11367_v37, %s10745_s20  ;;  %v2532_v12 = vmax.f32 %v2508_v1, 0.0  ;;  %v954_v43 = vadd.f32 %v930_v4, %v806_v45  ;;  %v11402_v45 = vpop.permute.xlu1 %1127 }
 0x243   :  { %v11375_v28 = vadd.f32 %v498_v7, %v11224_v33  ;;  %v1226_v19 = vmul.f32 %v11304_v27, %v11402_v45 }
 0x244   :  { %16985 = vst [vmem:[#allocation60_spill] sm:$0xff] %v11370_v22  ;;  %v11384_v15 = vadd.f32 %v11178_v2, %v2532_v12  ;;  %v1079_v2 = vmul.f32 %v11254_v49, %v11381_v5  ;;  %v1102_v44 = vadd.f32 %v1078_v46, %v954_v43  ;;  %v1227_v49 = vmul.f32 %v11267_v55, %v11402_v45 }
 0x245   :  { %16986 = vst [vmem:[#allocation61_spill] sm:$0xff] %v11375_v28  ;;  %v9289_v29 = vpop.f32.mrb[14].mxu0  ;;  %v11416_v43 = vrot.slane %v11400_v21, %v11218_v30 }
 0x246   :  { %16987 = vst [vmem:[#allocation62_spill] sm:$0xff] %v11384_v15  ;;  %v11387_v10 = vadd.f32 %v9289_v29, %v11224_v33  ;;  %v508_v23 = vpop.f32.mrb[15].mxu0  ;;  %2676 = vrot.lane.b32.xlu0 %v11384_v15, %s10745_s20  ;;  %v1103_v1 = vadd.f32 %v1079_v2, %v955_v24  ;;  %v1250_v38 = vadd.f32 %v1226_v19, %v1102_v44  ;;  %v11436_v44 = vpop.permute.xlu1 %1423 }
 0x247   :  { %v11392_v39 = vadd.f32 %v508_v23, %v11224_v33  ;;  %v11420_v24 = vrot.slane %v11400_v21, %v11226_v34  ;;  %v11424_v23 = vadd.f32 %v11251_v48, %v11224_v33  ;;  %v1374_v2 = vmul.f32 %v11320_v16, %v11288_v26 }
 0x248   :  { %16988 = vst [vmem:[#allocation63_spill] sm:$0xff] %v11387_v10  ;;  %v1251_v29 = vadd.f32 %v1227_v49, %v1103_v1  ;;  %v2147_v48 = vmul.f32 %v11164_v58, %v11416_v43 }
 0x249   :  { %16989 = vst [vmem:[#allocation64_spill] sm:$0xff] %v11392_v39  ;;  %v9292_v8 = vpop.f32.mrb[16].mxu0  ;;  %v2175_v49 = vmul.f32 %v11176_v0, %v11420_v24  ;;  %v11447_v16 = vrot.slane %v11424_v23, %v11218_v30 }
 0x24a   :  { %v11405_v7 = vadd.f32 %v9292_v8, %v11224_v33  ;;  %v518_v12 = vpop.f32.mrb[17].mxu0  ;;  %v1375_v8 = vmul.f32 %v11284_v51, %v11288_v26  ;;  %v11451_v51 = vrot.slane %v11424_v23, %v11226_v34 }
 0x24b   :  { %v11408_v4 = vadd.f32 %v518_v12, %v11224_v33  ;;  %v1398_v12 = vadd.f32 %v1374_v2, %v1250_v38  ;;  %v11453_v38 = vpop.permute.xlu0 %1571  ;;  %v1522_v2 = vmul.f32 %v11329_v17, %v11436_v44  ;;  %v2146_v17 = vmul.f32 %v11164_v58, %v11447_v16 }
 0x24c   :  { %16990 = vst [vmem:[#allocation65_spill] sm:$0xff] %v11405_v7  ;;  %v1399_v19 = vadd.f32 %v1375_v8, %v1251_v29  ;;  %v1523_v8 = vmul.f32 %v11299_v32, %v11436_v44  ;;  %v2174_v32 = vmul.f32 %v11176_v0, %v11451_v51 }
 0x24d   :  { %16991 = vst [vmem:[#allocation66_spill] sm:$0xff] %v11408_v4  ;;  %v9295_v47 = vpop.f32.mrb[18].mxu0  ;;  %v1546_v37 = vadd.f32 %v1522_v2, %v1398_v12  ;;  %v1671_v12 = vmul.f32 %v11312_v18, %v11453_v38 }
 0x24e   :  { %v11427_v27 = vadd.f32 %v9295_v47, %v11224_v33  ;;  %v528_v46 = vpop.f32.mrb[19].mxu0 }
 0x24f   :  { %v11430_v55 = vadd.f32 %v528_v46, %v11224_v33 }
 0x250   :  { %16992 = vst [vmem:[#allocation67_spill] sm:$0xff] %v11427_v27 }
 0x251   :  { %16993 = vst [vmem:[#allocation68_spill] sm:$0xff] %v11430_v55  ;;  %v9298_v1 = vpop.f32.mrb[20].mxu0  ;;  %v1547_v55 = vadd.f32 %v1523_v8, %v1399_v19  ;;  %v2198_v8 = vadd.f32 %v2174_v32, %v2146_v17 }
 0x252   :  { %v11443_v47 = vadd.f32 %v9298_v1, %v11224_v33  ;;  %v538_v46 = vpop.f32.mrb[21].mxu0  ;;  %v11464_v1 = vrot.slane %v11400_v21, %v11228_v35 }
 0x253   :  { %v11456_v29 = vadd.f32 %v538_v46, %v11224_v33  ;;  %v1670_v46 = vmul.f32 %v11344_v52, %v11453_v38  ;;  %v845_v52 = vrot.slane %v11424_v23, %v11228_v35 }
 0x254   :  { %16994 = vst [vmem:[#allocation69_spill] sm:$0xff] %v11443_v47  ;;  %v2199_v47 = vadd.f32 %v2175_v49, %v2147_v48  ;;  %v2227_v19 = vmul.f32 %v11166_v59, %v11464_v1  ;;  %v1695_v49 = vadd.f32 %v1671_v12, %v1547_v55 }
 0x255   :  { %16995 = vst [vmem:[#allocation70_spill] sm:$0xff] %v11456_v29  ;;  %v9301_v15 = vpop.f32.mrb[22].mxu0  ;;  %v1694_v48 = vadd.f32 %v1670_v46, %v1546_v37  ;;  %v1293_v37 = vrot.slane %v11400_v21, %v11256_v50 }
 0x256   :  { %v11467_v4 = vadd.f32 %v9301_v15, %v11224_v33  ;;  %v548_v27 = vpop.f32.mrb[23].mxu0  ;;  %v11482_v15 = vrot.slane %v11400_v21, %v11233_v40  ;;  %v2251_v2 = vadd.f32 %v2227_v19, %v2199_v47  ;;  %v1719_v39 = vmax.f32 %v1695_v49, 0.0 }
 0x257   :  { %v11476_v29 = vadd.f32 %v548_v27, %v11224_v33  ;;  %v1145_v33 = vrot.slane %v11400_v21, %v11235_v41  ;;  %v993_v27 = vrot.slane %v11424_v23, %v11233_v40  ;;  %v1141_v47 = vrot.slane %v11424_v23, %v11235_v41 }
 0x258   :  { %16996 = vst [vmem:[#allocation71_spill] sm:$0xff] %v11467_v4  ;;  %v2279_v18 = vmul.f32 %v11168_v60, %v11482_v15  ;;  %v1718_v4 = vmax.f32 %v1694_v48, 0.0  ;;  %v11505_v32 = vadd.f32 %v1719_v39, %v11042_v20  ;;  %v2383_v48 = vmul.f32 %v11170_v61, %v1293_v37 }
 0x259   :  { %16997 = vst [vmem:[#allocation72_spill] sm:$0xff] %v11476_v29  ;;  %v2226_v29 = vmul.f32 %v11166_v59, %v845_v52  ;;  %v2331_v55 = vmul.f32 %v11172_v62, %v1145_v33  ;;  %v2278_v46 = vmul.f32 %v11168_v60, %v993_v27  ;;  %v1289_v49 = vrot.slane %v11424_v23, %v11256_v50 }
 0x25a   :  { %v2303_v7 = vadd.f32 %v2279_v18, %v2251_v2  ;;  %v11502_v17 = vadd.f32 %v1718_v4, %v11007_v9  ;;  %16999 = vst [vmem:[#allocation74_spill] sm:$0xff] %v11505_v32  ;;  %v2330_v2 = vmul.f32 %v11172_v62, %v1141_v47  ;;  %v1769_v9 = vsel %vm282_vm0, %v11505_v32, 0.0 }
 0x25b   :  { %v2250_v28 = vadd.f32 %v2226_v29, %v2198_v8  ;;  %v1441_v29 = vrot.slane %v11400_v21, %v11264_v54  ;;  %v1589_v39 = vrot.slane %v11400_v21, %v11272_v31  ;;  %v1437_v4 = vrot.slane %v11424_v23, %v11264_v54 }
 0x25c   :  { %16998 = vst [vmem:[#allocation73_spill] sm:$0xff] %v11502_v17  ;;  %v2355_v12 = vadd.f32 %v2331_v55, %v2303_v7  ;;  %v1766_v8 = vsel %vm282_vm0, %v11502_v17, 0.0  ;;  %v2382_v18 = vmul.f32 %v11170_v61, %v1289_v49 }
 0x25d   :  { %v2302_v19 = vadd.f32 %v2278_v46, %v2250_v28  ;;  %v2435_v7 = vmul.f32 %v11174_v63, %v1441_v29  ;;  %v2487_v17 = vmul.f32 %v11331_v56, %v1589_v39 }
 0x25e   :  { %v2407_v20 = vadd.f32 %v2383_v48, %v2355_v12  ;;  %v1585_v12 = vrot.slane %v11424_v23, %v11272_v31  ;;  %v2434_v48 = vmul.f32 %v11174_v63, %v1437_v4  ;;  %v785_v23 = vmul.f32 %v11420_v24, %v11262_v53 }
 0x25f   :  { %v2354_v28 = vadd.f32 %v2330_v2, %v2302_v19  ;;  %v1081_v24 = vmul.f32 %v11482_v15, %v11381_v5  ;;  %v1377_v15 = vmul.f32 %v1293_v37, %v11288_v26  ;;  %v11576_v37 = vrot.slane %v11281_v36, %v11228_v35 }
 0x260   :  { %v2459_v55 = vadd.f32 %v2435_v7, %v2407_v20  ;;  %v2486_v21 = vmul.f32 %v11331_v56, %v1585_v12  ;;  %v784_v20 = vmul.f32 %v11451_v51, %v11262_v53  ;;  %v933_v51 = vmul.f32 %v11464_v1, %v11356_v11 }
 0x261   :  { %v2406_v46 = vadd.f32 %v2382_v18, %v2354_v28  ;;  %v661_v28 = vmul.f32 %v11416_v43, %v11324_v57 }
 0x262   :  { %v2511_v19 = vadd.f32 %v2487_v17, %v2459_v55 }
 0x263   :  { %v2458_v2 = vadd.f32 %v2434_v48, %v2406_v46  ;;  %v809_v55 = vadd.f32 %v785_v23, %v661_v28  ;;  %v581_v28 = vrot.slane %v11291_v42, %v11218_v30  ;;  %v705_v23 = vrot.slane %v11291_v42, %v11226_v34 }
 0x265   :  { %1767 = vadd.xlane.f32.xlu0 %v1766_v8  ;;  %v2535_v8 = vmax.f32 %v2511_v19, 0.0  ;;  %v2510_v32 = vadd.f32 %v2486_v21, %v2458_v2  ;;  %v957_v48 = vadd.f32 %v933_v51, %v809_v55  ;;  %v1229_v2 = vmul.f32 %v1145_v33, %v11402_v45 }
 0x266   :  { %1770 = vadd.xlane.f32.xlu1 %v1769_v9  ;;  %v660_v9 = vmul.f32 %v11447_v16, %v11324_v57  ;;  %v932_v16 = vmul.f32 %v845_v52, %v11356_v11  ;;  %v1228_v52 = vmul.f32 %v1141_v47, %v11402_v45  ;;  %v2148_v51 = vmul.f32 %v11164_v58, %v581_v28 }
 0x267   :  { %v11537_v7 = vadd.f32 %v11186_v6, %v2535_v8  ;;  %v2534_v17 = vmax.f32 %v2510_v32, 0.0  ;;  %v1080_v6 = vmul.f32 %v993_v27, %v11381_v5  ;;  %v1105_v19 = vadd.f32 %v1081_v24, %v957_v48 }
 0x268   :  { %v808_v18 = vadd.f32 %v784_v20, %v660_v9  ;;  %v11560_v8 = vrot.slane %v11281_v36, %v11226_v34  ;;  %v1376_v27 = vmul.f32 %v1289_v49, %v11288_v26  ;;  %v1525_v49 = vmul.f32 %v1441_v29, %v11436_v44 }
 0x269   :  { %17000 = vst [vmem:[#allocation75_spill] sm:$0xff] %v11537_v7  ;;  %v11545_v46 = vadd.f32 %v11180_v3, %v2534_v17  ;;  %v1253_v21 = vadd.f32 %v1229_v2, %v1105_v19  ;;  %v11556_v3 = vrot.slane %v11281_v36, %v11218_v30  ;;  %v1524_v17 = vmul.f32 %v1437_v4, %v11436_v44 }
 0x26a   :  { %v956_v43 = vadd.f32 %v932_v16, %v808_v18  ;;  %v2177_v33 = vmul.f32 %v11176_v0, %v11560_v8  ;;  %v1672_v48 = vmul.f32 %v1585_v12, %v11453_v38  ;;  %v11584_v4 = vrot.slane %v11281_v36, %v11233_v40 }
 0x26b   :  { %17001 = vst [vmem:[#allocation76_spill] sm:$0xff] %v11545_v46  ;;  %v1401_v20 = vadd.f32 %v1377_v15, %v1253_v21  ;;  %v2149_v47 = vmul.f32 %v11164_v58, %v11556_v3  ;;  %v2229_v29 = vmul.f32 %v11166_v59, %v11576_v37  ;;  %v853_v24 = vrot.slane %v11291_v42, %v11228_v35 }
 0x26c   :  { %v1104_v32 = vadd.f32 %v1080_v6, %v956_v43  ;;  %v2176_v43 = vmul.f32 %v11176_v0, %v705_v23  ;;  %v1673_v6 = vmul.f32 %v1589_v39, %v11453_v38  ;;  %v2281_v39 = vmul.f32 %v11168_v60, %v11584_v4 }
 0x26d   :  { %v1549_v55 = vadd.f32 %v1525_v49, %v1401_v20  ;;  %v2201_v16 = vadd.f32 %v2177_v33, %v2149_v47  ;;  %v1001_v12 = vrot.slane %v11291_v42, %v11233_v40  ;;  %v2228_v21 = vmul.f32 %v11166_v59, %v853_v24 }
 0x26e   :  { %v1252_v1 = vadd.f32 %v1228_v52, %v1104_v32  ;;  %v2200_v2 = vadd.f32 %v2176_v43, %v2148_v51  ;;  %v1301_v47 = vrot.slane %v11281_v36, %v11256_v50 }
 0x26f   :  { %v1697_v19 = vadd.f32 %v1673_v6, %v1549_v55  ;;  %v2253_v52 = vadd.f32 %v2229_v29, %v2201_v16  ;;  %v2280_v49 = vmul.f32 %v11168_v60, %v1001_v12  ;;  %v17003_v55 = vld [vmem:[#allocation27_spill] sm:$0xff]  ;;  %v1297_v29 = vrot.slane %v11291_v42, %v11256_v50 }
 0x270   :  { %v1400_v9 = vadd.f32 %v1376_v27, %v1252_v1  ;;  %v1153_v1 = vrot.slane %v11281_v36, %v11235_v41  ;;  %v2252_v20 = vadd.f32 %v2228_v21, %v2200_v2  ;;  %v2385_v6 = vmul.f32 %v11170_v61, %v1301_v47 }
 0x271   :  { %v1721_v15 = vmax.f32 %v1697_v19, 0.0 }
 0x272   :  { %v1548_v18 = vadd.f32 %v1524_v17, %v1400_v9  ;;  %v2305_v9 = vadd.f32 %v2281_v39, %v2253_v52  ;;  %v2333_v33 = vmul.f32 %v11172_v62, %v1153_v1  ;;  %v1149_v17 = vrot.slane %v11291_v42, %v11235_v41 }
 0x273   :  { %v11607_v16 = vadd.f32 %v1721_v15, %v17003_v55  ;;  %v2304_v43 = vadd.f32 %v2280_v49, %v2252_v20  ;;  %v1597_v39 = vrot.slane %v11281_v36, %v11272_v31  ;;  %v2384_v15 = vmul.f32 %v11170_v61, %v1297_v29 }
 0x274   :  { %v1696_v32 = vadd.f32 %v1672_v48, %v1548_v18  ;;  %v2357_v51 = vadd.f32 %v2333_v33, %v2305_v9  ;;  %v1449_v48 = vrot.slane %v11281_v36, %v11264_v54  ;;  %v1593_v49 = vrot.slane %v11291_v42, %v11272_v31 }
 0x275   :  { %17004 = vst [vmem:[#allocation27_spill] sm:$0xff] %v11607_v16  ;;  %v2489_v33 = vmul.f32 %v11331_v56, %v1597_v39 }
 0x276   :  { %v1720_v27 = vmax.f32 %v1696_v32, 0.0  ;;  %v2332_v32 = vmul.f32 %v11172_v62, %v1149_v17  ;;  %v2409_v52 = vadd.f32 %v2385_v6, %v2357_v51  ;;  %v2437_v21 = vmul.f32 %v11174_v63, %v1449_v48 }
 0x277   :  { %2682 = vrot.lane.b32.xlu1 %v11537_v7, %s10745_s20  ;;  %v2488_v36 = vmul.f32 %v11331_v56, %v1593_v49 }
 0x278   :  { %v11604_v18 = vadd.f32 %v1720_v27, %v11021_v14  ;;  %v1775_v14 = vsel %vm282_vm0, %v11607_v16, 0.0  ;;  %v2356_v2 = vadd.f32 %v2332_v32, %v2304_v43  ;;  %v1445_v27 = vrot.slane %v11291_v42, %v11264_v54 }
 0x279   :  { %v2461_v9 = vadd.f32 %v2437_v21, %v2409_v52  ;;  %v662_v32 = vmul.f32 %v581_v28, %v11324_v57  ;;  %v663_v52 = vmul.f32 %v11556_v3, %v11324_v57  ;;  %v17005_v21 = vld [vmem:[#allocation33_spill] sm:$0xff]  ;;  %v934_v28 = vmul.f32 %v853_v24, %v11356_v11 }
 0x27a   :  { %17002 = vst [vmem:[#allocation77_spill] sm:$0xff] %v11604_v18  ;;  %v1772_v19 = vsel %vm282_vm0, %v11604_v18, 0.0  ;;  %v2408_v20 = vadd.f32 %v2384_v15, %v2356_v2  ;;  %v2436_v55 = vmul.f32 %v11174_v63, %v1445_v27  ;;  %v787_v2 = vmul.f32 %v11560_v8, %v11262_v53 }
 0x27b   :  { %2680 = vrot.lane.b32.xlu0 %v11545_v46, %s10745_s20  ;;  %v2513_v51 = vadd.f32 %v2489_v33, %v2461_v9  ;;  %v1082_v8 = vmul.f32 %v1001_v12, %v11381_v5  ;;  %v1230_v24 = vmul.f32 %v1149_v17, %v11402_v45 }
 0x27c   :  { %v2460_v43 = vadd.f32 %v2436_v55, %v2408_v20  ;;  %v811_v20 = vadd.f32 %v787_v2, %v663_v52  ;;  %v17007_v55 = vld [vmem:[#allocation31_spill] sm:$0xff]  ;;  %v1378_v2 = vmul.f32 %v1297_v29, %v11288_v26  ;;  %v1526_v29 = vmul.f32 %v1445_v27, %v11436_v44 }
 0x27d   :  { %v2537_v6 = vmax.f32 %v2513_v51, 0.0 }
 0x27f   :  { %v11637_v42 = vadd.f32 %v17005_v21, %v2537_v6 }
 0x281   :  { %17006 = vst [vmem:[#allocation33_spill] sm:$0xff] %v11637_v42 }
 0x29a   :  { %1773 = vadd.xlane.f32.xlu0 %v1772_v19  ;;  %v786_v19 = vmul.f32 %v705_v23, %v11262_v53  ;;  %v935_v23 = vmul.f32 %v11576_v37, %v11356_v11 }
 0x29b   :  { %1776 = vadd.xlane.f32.xlu1 %v1775_v14  ;;  %v2512_v14 = vadd.f32 %v2488_v36, %v2460_v43  ;;  %v1083_v43 = vmul.f32 %v11584_v4, %v11381_v5  ;;  %v1379_v4 = vmul.f32 %v1301_v47, %v11288_v26  ;;  %v17011_v47 = vld [vmem:[#allocation55_spill] sm:$0xff] }
 0x29c   :  { %v810_v15 = vadd.f32 %v786_v19, %v662_v32  ;;  %v959_v51 = vadd.f32 %v935_v23, %v811_v20  ;;  %v1231_v32 = vmul.f32 %v1153_v1, %v11402_v45  ;;  %v17009_v19 = vld [vmem:[#allocation54_spill] sm:$0xff]  ;;  %v11679_v23 = vrot.slane %v17011_v47, %v11218_v30 }
 0x29d   :  { %v2536_v9 = vmax.f32 %v2512_v14, 0.0  ;;  %v11656_v14 = vrot.slane %v17009_v19, %v11218_v30  ;;  %v11660_v12 = vrot.slane %v17009_v19, %v11226_v34  ;;  %v11757_v18 = vrot.slane %v17009_v19, %v11264_v54 }
 0x29e   :  { %v958_v33 = vadd.f32 %v934_v28, %v810_v15  ;;  %v1107_v6 = vadd.f32 %v1083_v43, %v959_v51  ;;  %v11688_v51 = vrot.slane %v17009_v19, %v11228_v35 }
 0x29f   :  { %v11645_v3 = vadd.f32 %v17007_v55, %v2536_v9  ;;  %v2151_v17 = vmul.f32 %v11164_v58, %v11656_v14  ;;  %v2179_v1 = vmul.f32 %v11176_v0, %v11660_v12  ;;  %v17010_v9 = vld [vmem:[#allocation56_spill] sm:$0xff]  ;;  %v1527_v55 = vmul.f32 %v1449_v48, %v11436_v44 }
 0x2a0   :  { %v1106_v36 = vadd.f32 %v1082_v8, %v958_v33  ;;  %v1255_v52 = vadd.f32 %v1231_v32, %v1107_v6  ;;  %v11670_v20 = vrot.slane %v17010_v9, %v11218_v30  ;;  %v11674_v28 = vrot.slane %v17010_v9, %v11226_v34 }
 0x2a1   :  { %17008 = vst [vmem:[#allocation31_spill] sm:$0xff] %v11645_v3  ;;  %v11683_v33 = vrot.slane %v17011_v47, %v11226_v34  ;;  %v2150_v32 = vmul.f32 %v11164_v58, %v11679_v23  ;;  %v11763_v10 = vrot.slane %v17010_v9, %v11256_v50  ;;  %v11785_v25 = vrot.slane %v17010_v9, %v11264_v54 }
 0x2a2   :  { %v1254_v37 = vadd.f32 %v1230_v24, %v1106_v36  ;;  %v1403_v15 = vadd.f32 %v1379_v4, %v1255_v52  ;;  %v2203_v36 = vadd.f32 %v2179_v1, %v2151_v17  ;;  %v2153_v27 = vmul.f32 %v11164_v58, %v11670_v20 }
 0x2a3   :  { %v2181_v6 = vmul.f32 %v11176_v0, %v11674_v28  ;;  %v1674_v24 = vmul.f32 %v1593_v49, %v11453_v38  ;;  %v2178_v48 = vmul.f32 %v11176_v0, %v11683_v33  ;;  %v11702_v52 = vrot.slane %v17009_v19, %v11233_v40 }
 0x2a4   :  { %v1402_v21 = vadd.f32 %v1378_v2, %v1254_v37  ;;  %v1551_v43 = vadd.f32 %v1527_v55, %v1403_v15  ;;  %v1675_v37 = vmul.f32 %v1597_v39, %v11453_v38  ;;  %v2231_v2 = vmul.f32 %v11166_v59, %v11688_v51 }
 0x2a5   :  { %v11708_v4 = vrot.slane %v17010_v9, %v11228_v35  ;;  %v11712_v49 = vrot.slane %v17011_v47, %v11228_v35  ;;  %v2205_v1 = vadd.f32 %v2181_v6, %v2153_v27  ;;  %v2202_v39 = vadd.f32 %v2178_v48, %v2150_v32 }
 0x2a6   :  { %v1550_v8 = vadd.f32 %v1526_v29, %v1402_v21  ;;  %v1699_v17 = vadd.f32 %v1675_v37, %v1551_v43  ;;  %v2255_v15 = vadd.f32 %v2231_v2, %v2203_v36  ;;  %v11716_v29 = vrot.slane %v17009_v19, %v11235_v41 }
 0x2a7   :  { %v2283_v55 = vmul.f32 %v11168_v60, %v11702_v52  ;;  %v2233_v46 = vmul.f32 %v11166_v59, %v11708_v4  ;;  %v2230_v43 = vmul.f32 %v11166_v59, %v11712_v49  ;;  %v11734_v48 = vrot.slane %v17009_v19, %v11256_v50 }
 0x2a8   :  { %v1698_v21 = vadd.f32 %v1674_v24, %v1550_v8  ;;  %v11728_v8 = vrot.slane %v17011_v47, %v11233_v40  ;;  %v1723_v27 = vmax.f32 %v1699_v17, 0.0  ;;  %v2335_v37 = vmul.f32 %v11172_v62, %v11716_v29  ;;  %v10440_v17 = vld [vmem:[#allocation2 + $0x20] sm:$0xff] }
 0x2a9   :  { %v2307_v6 = vadd.f32 %v2283_v55, %v2255_v15  ;;  %v2257_v24 = vadd.f32 %v2233_v46, %v2205_v1  ;;  %v2254_v32 = vadd.f32 %v2230_v43, %v2202_v39  ;;  %v11740_v2 = vrot.slane %v17010_v9, %v11235_v41  ;;  %v17013_v1 = vld [vmem:[#allocation28_spill] sm:$0xff] }
 0x2aa   :  { %v1722_v36 = vmax.f32 %v1698_v21, 0.0  ;;  %v11746_v21 = vrot.slane %v17011_v47, %v11235_v41  ;;  %v2282_v46 = vmul.f32 %v11168_v60, %v11728_v8  ;;  %v11753_v39 = vadd.f32 %v1723_v27, %v17013_v1 }
 0x2ab   :  { %v2359_v55 = vadd.f32 %v2335_v37, %v2307_v6  ;;  %v2387_v16 = vmul.f32 %v11170_v61, %v11734_v48  ;;  %v11769_v27 = vrot.slane %v17011_v47, %v11256_v50  ;;  %v2439_v1 = vmul.f32 %v11174_v63, %v11757_v18 }
 0x2ac   :  { %2686 = vrot.lane.b32.xlu1 %v11637_v42, %s10745_s20  ;;  %v11722_v42 = vrot.slane %v17010_v9, %v11233_v40  ;;  %v11750_v15 = vadd.f32 %v10440_v17, %v1722_v36  ;;  %17014 = vst [vmem:[#allocation56_spill] sm:$0xff] %v11753_v39  ;;  %v2337_v36 = vmul.f32 %v11172_v62, %v11740_v2 }
 0x2ad   :  { %v11779_v17 = vrot.slane %v17009_v19, %v11272_v31  ;;  %v665_v22 = vmul.f32 %v11656_v14, %v11324_v57  ;;  %v791_v14 = vmul.f32 %v11674_v28, %v11262_v53  ;;  %v936_v28 = vmul.f32 %v11712_v49, %v11356_v11 }
 0x2ae   :  { %v2285_v7 = vmul.f32 %v11168_v60, %v11722_v42  ;;  %17012 = vst [vmem:[#allocation54_spill] sm:$0xff] %v11750_v15  ;;  %v1778_v6 = vsel %vm282_vm0, %v11750_v15, 0.0  ;;  %v2389_v15 = vmul.f32 %v11170_v61, %v11763_v10  ;;  %v1381_v49 = vmul.f32 %v11734_v48, %v11288_v26 }
 0x2af   :  { %v1529_v48 = vmul.f32 %v11757_v18, %v11436_v44 }
 0x2b0   :  { %2684 = vrot.lane.b32.xlu0 %v11645_v3, %s10745_s20  ;;  %v2309_v43 = vadd.f32 %v2285_v7, %v2257_v24  ;;  %v2306_v3 = vadd.f32 %v2282_v46, %v2254_v32  ;;  %v2334_v7 = vmul.f32 %v11172_v62, %v11746_v21  ;;  %v1781_v24 = vsel %vm282_vm0, %v11753_v39, 0.0 }
 0x2b1   :  { %v2411_v32 = vadd.f32 %v2387_v16, %v2359_v55  ;;  %v11791_v16 = vrot.slane %v17011_v47, %v11264_v54 }
 0x2b2   :  { %v2361_v37 = vadd.f32 %v2337_v36, %v2309_v43  ;;  %v2358_v46 = vadd.f32 %v2334_v7, %v2306_v3  ;;  %v2386_v3 = vmul.f32 %v11170_v61, %v11769_v27  ;;  %v2491_v36 = vmul.f32 %v11331_v56, %v11779_v17  ;;  %v17015_v61 = vld [vmem:[#allocation35_spill] sm:$0xff] }
 0x2b3   :  { %v2463_v55 = vadd.f32 %v2439_v1, %v2411_v32  ;;  %v11799_v7 = vrot.slane %v17010_v9, %v11272_v31  ;;  %v2438_v39 = vmul.f32 %v11174_v63, %v11791_v16 }
 0x2b4   :  { %v2413_v19 = vadd.f32 %v2389_v15, %v2361_v37  ;;  %v2410_v43 = vadd.f32 %v2386_v3, %v2358_v46 }
 0x2b5   :  { %v2515_v32 = vadd.f32 %v2491_v36, %v2463_v55  ;;  %v2493_v46 = vmul.f32 %v11331_v56, %v11799_v7  ;;  %v788_v36 = vmul.f32 %v11683_v33, %v11262_v53 }
 0x2b6   :  { %v2462_v37 = vadd.f32 %v2438_v39, %v2410_v43 }
 0x2b7   :  { %v2539_v1 = vmax.f32 %v2515_v32, 0.0 }
 0x2cf   :  { %1779 = vadd.xlane.f32.xlu0 %v1778_v6  ;;  %v2441_v6 = vmul.f32 %v11174_v63, %v11785_v25  ;;  %v11818_v63 = vadd.f32 %v17015_v61, %v2539_v1  ;;  %v937_v61 = vmul.f32 %v11688_v51, %v11356_v11  ;;  %v939_v51 = vmul.f32 %v11708_v4, %v11356_v11 }
 0x2d0   :  { %1782 = vadd.xlane.f32.xlu1 %v1781_v24  ;;  %v11805_v24 = vrot.slane %v17011_v47, %v11272_v31  ;;  %v789_v47 = vmul.f32 %v11660_v12, %v11262_v53  ;;  %v1233_v1 = vmul.f32 %v11716_v29, %v11402_v45  ;;  %v1232_v4 = vmul.f32 %v11746_v21, %v11402_v45 }
 0x2d1   :  { %v2465_v15 = vadd.f32 %v2441_v6, %v2413_v19  ;;  %17016 = vst [vmem:[#allocation55_spill] sm:$0xff] %v11818_v63  ;;  %v664_v19 = vmul.f32 %v11679_v23, %v11324_v57  ;;  %v667_v6 = vmul.f32 %v11670_v20, %v11324_v57  ;;  %v1085_v20 = vmul.f32 %v11702_v52, %v11381_v5 }
 0x2d2   :  { %v2490_v9 = vmul.f32 %v11331_v56, %v11805_v24  ;;  %v813_v39 = vadd.f32 %v789_v47, %v665_v22  ;;  %v17017_v22 = vld [vmem:[#allocation37_spill] sm:$0xff]  ;;  %v1087_v52 = vmul.f32 %v11722_v42, %v11381_v5  ;;  %v11866_v42 = vrot.slane %v11359_v13, %v11226_v34 }
 0x2d3   :  { %v2517_v3 = vadd.f32 %v2493_v46, %v2465_v15  ;;  %v812_v33 = vadd.f32 %v788_v36, %v664_v19  ;;  %v815_v15 = vadd.f32 %v791_v14, %v667_v6  ;;  %v1235_v19 = vmul.f32 %v11740_v2, %v11402_v45 }
 0x2d4   :  { %v2514_v31 = vadd.f32 %v2490_v9, %v2462_v37  ;;  %v961_v23 = vadd.f32 %v937_v61, %v813_v39  ;;  %v1380_v21 = vmul.f32 %v11769_v27, %v11288_v26  ;;  %v1383_v2 = vmul.f32 %v11763_v10, %v11288_v26 }
 0x2d5   :  { %v2541_v55 = vmax.f32 %v2517_v3, 0.0  ;;  %v960_v46 = vadd.f32 %v936_v28, %v812_v33  ;;  %v963_v9 = vadd.f32 %v939_v51, %v815_v15  ;;  %v1084_v3 = vmul.f32 %v11728_v8, %v11381_v5 }
 0x2d6   :  { %v2538_v43 = vmax.f32 %v2514_v31, 0.0  ;;  %v17019_v31 = vld [vmem:[#allocation32_spill] sm:$0xff]  ;;  %v1109_v37 = vadd.f32 %v1085_v20, %v961_v23  ;;  %v11862_v8 = vrot.slane %v11359_v13, %v11218_v30  ;;  %v2183_v23 = vmul.f32 %v11176_v0, %v11866_v42 }
 0x2d7   :  { %v11833_v12 = vadd.f32 %v17017_v22, %v2541_v55  ;;  %v1108_v55 = vadd.f32 %v1084_v3, %v960_v46  ;;  %v1111_v39 = vadd.f32 %v1087_v52, %v963_v9  ;;  %v1677_v10 = vmul.f32 %v11779_v17, %v11453_v38 }
 0x2d8   :  { %v11836_v32 = vadd.f32 %v17019_v31, %v2538_v43  ;;  %v1257_v47 = vadd.f32 %v1233_v1, %v1109_v37  ;;  %v2155_v22 = vmul.f32 %v11164_v58, %v11862_v8  ;;  %v17021_v31 = vld [vmem:[#allocation57_spill] sm:$0xff]  ;;  %v1528_v27 = vmul.f32 %v11791_v16, %v11436_v44 }
 0x2d9   :  { %17018 = vst [vmem:[#allocation28_spill] sm:$0xff] %v11833_v12  ;;  %v1256_v29 = vadd.f32 %v1232_v4, %v1108_v55  ;;  %v1259_v36 = vadd.f32 %v1235_v19, %v1111_v39  ;;  %v11880_v33 = vrot.slane %v17021_v31, %v11218_v30  ;;  %v11884_v18 = vrot.slane %v17021_v31, %v11226_v34 }
 0x2da   :  { %17020 = vst [vmem:[#allocation35_spill] sm:$0xff] %v11836_v32  ;;  %v1405_v43 = vadd.f32 %v1381_v49, %v1257_v47  ;;  %v1531_v15 = vmul.f32 %v11785_v25, %v11436_v44  ;;  %v11894_v20 = vrot.slane %v11359_v13, %v11228_v35  ;;  %v2207_v46 = vadd.f32 %v2183_v23, %v2155_v22 }
 0x2db   :  { %v1404_v14 = vadd.f32 %v1380_v21, %v1256_v29  ;;  %v1407_v61 = vadd.f32 %v1383_v2, %v1259_v36  ;;  %v2152_v9 = vmul.f32 %v11164_v58, %v11880_v33  ;;  %v2180_v17 = vmul.f32 %v11176_v0, %v11884_v18  ;;  %v10441_v29 = vld [vmem:[#allocation2 + $0x38] sm:$0xff] }
 0x2dc   :  { %v1553_v6 = vadd.f32 %v1529_v48, %v1405_v43  ;;  %v1676_v16 = vmul.f32 %v11805_v24, %v11453_v38  ;;  %v1679_v25 = vmul.f32 %v11799_v7, %v11453_v38  ;;  %v11906_v1 = vrot.slane %v11359_v13, %v11233_v40 }
 0x2dd   :  { %v1552_v51 = vadd.f32 %v1528_v27, %v1404_v14  ;;  %v1555_v37 = vadd.f32 %v1531_v15, %v1407_v61  ;;  %v2235_v3 = vmul.f32 %v11166_v59, %v11894_v20  ;;  %v869_v52 = vrot.slane %v17021_v31, %v11228_v35  ;;  %v10442_v27 = vld [vmem:[#allocation2 + $0x30] sm:$0xff] }
 0x2de   :  { %v1701_v28 = vadd.f32 %v1677_v10, %v1553_v6  ;;  %v2204_v4 = vadd.f32 %v2180_v17, %v2152_v9  ;;  %v11914_v24 = vrot.slane %v11359_v13, %v11235_v41  ;;  %v2287_v7 = vmul.f32 %v11168_v60, %v11906_v1  ;;  %v17023_v17 = vld [vmem:[#allocation29_spill] sm:$0xff] }
 0x2df   :  { %v1700_v55 = vadd.f32 %v1676_v16, %v1552_v51  ;;  %v1703_v39 = vadd.f32 %v1679_v25, %v1555_v37  ;;  %v2259_v49 = vadd.f32 %v2235_v3, %v2207_v46  ;;  %v1017_v19 = vrot.slane %v17021_v31, %v11233_v40 }
 0x2e0   :  { %v1725_v47 = vmax.f32 %v1701_v28, 0.0  ;;  %v2232_v43 = vmul.f32 %v11166_v59, %v869_v52  ;;  %v1325_v14 = vrot.slane %v11359_v13, %v11256_v50  ;;  %v2339_v61 = vmul.f32 %v11172_v62, %v11914_v24  ;;  %v10443_v28 = vld [vmem:[#allocation2 + $0x48] sm:$0xff] }
 0x2e1   :  { %2690 = vrot.lane.b32.xlu1 %v11818_v63, %s10745_s20  ;;  %v1724_v48 = vmax.f32 %v1700_v55, 0.0  ;;  %v1727_v21 = vmax.f32 %v1703_v39, 0.0  ;;  %v2311_v2 = vadd.f32 %v2287_v7, %v2259_v49  ;;  %v1165_v22 = vrot.slane %v17021_v31, %v11235_v41 }
 0x2e2   :  { %v11921_v36 = vadd.f32 %v10441_v29, %v1725_v47  ;;  %v2256_v6 = vadd.f32 %v2232_v43, %v2204_v4  ;;  %v2284_v23 = vmul.f32 %v11168_v60, %v1017_v19  ;;  %v1473_v9 = vrot.slane %v11359_v13, %v11264_v54  ;;  %v17024_v4 = vld [vmem:[#allocation52_spill] sm:$0xff]  ;;  %v17025_v43 = vld [vmem:[#allocation30_spill] sm:$0xff] }
 0x2e3   :  { %v11932_v15 = vadd.f32 %v10442_v27, %v1724_v48  ;;  %v11934_v51 = vadd.f32 %v10443_v28, %v1727_v21  ;;  %v2363_v37 = vadd.f32 %v2339_v61, %v2311_v2  ;;  %v2391_v16 = vmul.f32 %v17023_v17, %v1325_v14 }
 0x2e4   :  { %v1787_v10 = vsel %vm282_vm0, %v11921_v36, 0.0  ;;  %v2308_v46 = vadd.f32 %v2284_v23, %v2256_v6  ;;  %v1313_v25 = vrot.slane %v17021_v31, %v11256_v50  ;;  %v2336_v3 = vmul.f32 %v11172_v62, %v1165_v22 }
 0x2e5   :  { %2694 = vrot.lane.b32.xlu1 %v11833_v12, %s10745_s20  ;;  %2688 = vrot.lane.b32.xlu0 %v11836_v32, %s10745_s20  ;;  %17022 = vst [vmem:[#allocation37_spill] sm:$0xff] %v11932_v15  ;;  %v1784_v47 = vsel %vm282_vm0, %v11932_v15, 0.0  ;;  %v1793_v55 = vsel %vm282_vm0, %v11934_v51, 0.0  ;;  %v2415_v39 = vadd.f32 %v2391_v16, %v2363_v37  ;;  %v1621_v7 = vrot.slane %v11359_v13, %v17024_v4 }
 0x2e6   :  { %v2360_v49 = vadd.f32 %v2336_v3, %v2308_v46  ;;  %v2443_v29 = vmul.f32 %v17025_v43, %v1473_v9  ;;  %v1461_v48 = vrot.slane %v17021_v31, %v11264_v54  ;;  %v2388_v21 = vmul.f32 %v17023_v17, %v1313_v25 }
 0x2e7   :  { %v2495_v61 = vmul.f32 %v11331_v56, %v1621_v7  ;;  %v1609_v23 = vrot.slane %v17021_v31, %v17024_v4  ;;  %v666_v46 = vmul.f32 %v11880_v33, %v11324_v57  ;;  %v790_v3 = vmul.f32 %v11884_v18, %v11262_v53 }
 0x2e8   :  { %v2467_v2 = vadd.f32 %v2443_v29, %v2415_v39  ;;  %v2412_v6 = vadd.f32 %v2388_v21, %v2360_v49  ;;  %v793_v31 = vmul.f32 %v11866_v42, %v11262_v53  ;;  %v938_v33 = vmul.f32 %v869_v52, %v11356_v11 }
 0x2e9   :  { %v2492_v13 = vmul.f32 %v11331_v56, %v1609_v23  ;;  %v814_v29 = vadd.f32 %v790_v3, %v666_v46  ;;  %v941_v18 = vmul.f32 %v11894_v20, %v11356_v11  ;;  %v1086_v42 = vmul.f32 %v1017_v19, %v11381_v5  ;;  %v17030_v46 = vld [vmem:[#allocation60_spill] sm:$0xff] }
 0x2ea   :  { %v2519_v27 = vadd.f32 %v2495_v61, %v2467_v2  ;;  %v17028_v2 = vld [vmem:[#allocation34_spill] sm:$0xff]  ;;  %v1234_v52 = vmul.f32 %v1165_v22, %v11402_v45  ;;  %v1237_v20 = vmul.f32 %v11914_v24, %v11402_v45  ;;  %v11990_v3 = vrot.slane %v17030_v46, %v11226_v34 }
 0x2eb   :  { %v1382_v19 = vmul.f32 %v1313_v25, %v11288_v26  ;;  %v1533_v25 = vmul.f32 %v1473_v9, %v11436_v44 }
 0x2ec   :  { %v2543_v37 = vmax.f32 %v2519_v27, 0.0  ;;  %v2185_v24 = vmul.f32 %v11176_v0, %v11990_v3 }
 0x304   :  { %1788 = vadd.xlane.f32.xlu0 %v1787_v10  ;;  %v2440_v10 = vmul.f32 %v17025_v43, %v1461_v48 }
 0x306   :  { %v2464_v28 = vadd.f32 %v2440_v10, %v2412_v6  ;;  %v1089_v10 = vmul.f32 %v11906_v1, %v11381_v5  ;;  %v1385_v1 = vmul.f32 %v1325_v14, %v11288_v26  ;;  %v12006_v14 = vrot.slane %v17030_v46, %v11228_v35 }
 0x308   :  { %1785 = vadd.xlane.f32.xlu0 %v1784_v47  ;;  %v2516_v16 = vadd.f32 %v2492_v13, %v2464_v28  ;;  %v669_v47 = vmul.f32 %v11862_v8, %v11324_v57  ;;  %v962_v8 = vadd.f32 %v938_v33, %v814_v29  ;;  %v2237_v9 = vmul.f32 %v11166_v59, %v12006_v14 }
 0x309   :  { %1794 = vadd.xlane.f32.xlu1 %v1793_v55  ;;  %v17026_v55 = vld [vmem:[#allocation39_spill] sm:$0xff] }
 0x30a   :  { %v11966_v39 = vadd.f32 %v17026_v55, %v2543_v37  ;;  %v2540_v49 = vmax.f32 %v2516_v16, 0.0  ;;  %v817_v21 = vadd.f32 %v793_v31, %v669_v47  ;;  %v1110_v27 = vadd.f32 %v1086_v42, %v962_v8  ;;  %v17031_v55 = vld [vmem:[#allocation58_spill] sm:$0xff] }
 0x30b   :  { %v11986_v16 = vrot.slane %v17030_v46, %v11218_v30  ;;  %v729_v29 = vrot.slane %v17031_v55, %v11226_v34  ;;  %v1678_v42 = vmul.f32 %v1609_v23, %v11453_v38  ;;  %v1025_v23 = vrot.slane %v17031_v55, %v11233_v40 }
 0x30c   :  { %17027 = vst [vmem:[#allocation32_spill] sm:$0xff] %v11966_v39  ;;  %v11974_v6 = vadd.f32 %v17028_v2, %v2540_v49  ;;  %v965_v61 = vadd.f32 %v941_v18, %v817_v21  ;;  %v1258_v13 = vadd.f32 %v1234_v52, %v1110_v27  ;;  %v605_v49 = vrot.slane %v17031_v55, %v11218_v30 }
 0x30d   :  { %v2157_v22 = vmul.f32 %v11164_v58, %v11986_v16  ;;  %v1530_v21 = vmul.f32 %v1461_v48, %v11436_v44  ;;  %v12014_v48 = vrot.slane %v17030_v46, %v11233_v40  ;;  %v877_v27 = vrot.slane %v17031_v55, %v11228_v35 }
 0x30e   :  { %17029 = vst [vmem:[#allocation57_spill] sm:$0xff] %v11974_v6  ;;  %v1113_v28 = vadd.f32 %v1089_v10, %v965_v61  ;;  %v1406_v47 = vadd.f32 %v1382_v19, %v1258_v13  ;;  %v2154_v8 = vmul.f32 %v11164_v58, %v605_v49  ;;  %v2182_v61 = vmul.f32 %v11176_v0, %v729_v29 }
 0x30f   :  { %v2209_v2 = vadd.f32 %v2185_v24, %v2157_v22  ;;  %v1681_v10 = vmul.f32 %v1621_v7, %v11453_v38  ;;  %v2289_v7 = vmul.f32 %v11168_v60, %v12014_v48  ;;  %v2234_v19 = vmul.f32 %v11166_v59, %v877_v27 }
 0x310   :  { %v1261_v37 = vadd.f32 %v1237_v20, %v1113_v28  ;;  %v1554_v33 = vadd.f32 %v1530_v21, %v1406_v47  ;;  %v2206_v13 = vadd.f32 %v2182_v61, %v2154_v8  ;;  %v1333_v24 = vrot.slane %v17030_v46, %v11256_v50  ;;  %v10445_v8 = vld [vmem:[#allocation2 + $0x58] sm:$0xff] }
 0x311   :  { %v2261_v20 = vadd.f32 %v2237_v9, %v2209_v2  ;;  %v1481_v9 = vrot.slane %v17030_v46, %v11264_v54  ;;  %v792_v12 = vmul.f32 %v729_v29, %v11262_v53  ;;  %v943_v29 = vmul.f32 %v12006_v14, %v11356_v11 }
 0x312   :  { %v1409_v31 = vadd.f32 %v1385_v1, %v1261_v37  ;;  %v1702_v28 = vadd.f32 %v1678_v42, %v1554_v33  ;;  %v1185_v37 = vrot.slane %v17030_v46, %v11235_v41  ;;  %v2258_v22 = vadd.f32 %v2234_v19, %v2206_v13 }
 0x313   :  { %v2286_v33 = vmul.f32 %v11168_v60, %v1025_v23 }
 0x314   :  { %v1557_v18 = vadd.f32 %v1533_v25, %v1409_v31  ;;  %v1726_v1 = vmax.f32 %v1702_v28, 0.0  ;;  %v2313_v31 = vadd.f32 %v2289_v7, %v2261_v20  ;;  %v2341_v21 = vmul.f32 %v11172_v62, %v1185_v37 }
 0x315   :  { %v1173_v25 = vrot.slane %v17031_v55, %v11235_v41  ;;  %v2393_v28 = vmul.f32 %v17023_v17, %v1333_v24 }
 0x316   :  { %v1705_v52 = vadd.f32 %v1681_v10, %v1557_v18  ;;  %v10444_v18 = vld [vmem:[#allocation2 + $0x40] sm:$0xff]  ;;  %v2365_v42 = vadd.f32 %v2341_v21, %v2313_v31  ;;  %v2310_v10 = vadd.f32 %v2286_v33, %v2258_v22  ;;  %v2445_v31 = vmul.f32 %v17025_v43, %v1481_v9 }
 0x317   :  { %v12033_v2 = vadd.f32 %v10444_v18, %v1726_v1  ;;  %v2338_v20 = vmul.f32 %v11172_v62, %v1173_v25  ;;  %v1469_v22 = vrot.slane %v17031_v55, %v11264_v54 }
 0x318   :  { %v1729_v47 = vmax.f32 %v1705_v52, 0.0  ;;  %v1321_v52 = vrot.slane %v17031_v55, %v11256_v50  ;;  %v2417_v19 = vadd.f32 %v2393_v28, %v2365_v42  ;;  %v1617_v42 = vrot.slane %v17031_v55, %v17024_v4 }
 0x319   :  { %17032 = vst [vmem:[#allocation29_spill] sm:$0xff] %v12033_v2  ;;  %v1790_v13 = vsel %vm282_vm0, %v12033_v2, 0.0  ;;  %v2362_v1 = vadd.f32 %v2338_v20, %v2310_v10  ;;  %v2442_v28 = vmul.f32 %v17025_v43, %v1469_v22 }
 0x31a   :  { %2698 = vrot.lane.b32.xlu1 %v11966_v39, %s10745_s20  ;;  %v12035_v61 = vadd.f32 %v10445_v8, %v1729_v47  ;;  %v1629_v47 = vrot.slane %v17030_v46, %v17024_v4  ;;  %v2390_v21 = vmul.f32 %v17023_v17, %v1321_v52  ;;  %v2469_v33 = vadd.f32 %v2445_v31, %v2417_v19  ;;  %v17034_v31 = vld [vmem:[#allocation41_spill] sm:$0xff] }
 0x31b   :  { %v2494_v46 = vmul.f32 %v11331_v56, %v1617_v42  ;;  %v671_v19 = vmul.f32 %v11986_v16, %v11324_v57 }
 0x31c   :  { %17033 = vst [vmem:[#allocation52_spill] sm:$0xff] %v12035_v61  ;;  %v1799_v7 = vsel %vm282_vm0, %v12035_v61, 0.0  ;;  %v2414_v18 = vadd.f32 %v2390_v21, %v2362_v1  ;;  %v2497_v8 = vmul.f32 %v11331_v56, %v1629_v47  ;;  %v795_v1 = vmul.f32 %v11990_v3, %v11262_v53 }
 0x31e   :  { %2692 = vrot.lane.b32.xlu0 %v11974_v6, %s10745_s20  ;;  %v2521_v10 = vadd.f32 %v2497_v8, %v2469_v33  ;;  %v2466_v20 = vadd.f32 %v2442_v28, %v2414_v18  ;;  %v819_v18 = vadd.f32 %v795_v1, %v671_v19  ;;  %v17036_v8 = vld [vmem:[#allocation36_spill] sm:$0xff] }
 0x320   :  { %v2518_v39 = vadd.f32 %v2494_v46, %v2466_v20  ;;  %v1239_v46 = vmul.f32 %v1185_v37, %v11402_v45 }
 0x322   :  { %v2542_v21 = vmax.f32 %v2518_v39, 0.0  ;;  %v1088_v39 = vmul.f32 %v1025_v23, %v11381_v5  ;;  %v1384_v23 = vmul.f32 %v1321_v52, %v11288_v26  ;;  %v1535_v52 = vmul.f32 %v1481_v9, %v11436_v44 }
 0x324   :  { %v12073_v28 = vadd.f32 %v17036_v8, %v2542_v21 }
 0x326   :  { %17037 = vst [vmem:[#allocation39_spill] sm:$0xff] %v12073_v28 }
 0x33d   :  { %1791 = vadd.xlane.f32.xlu0 %v1790_v13  ;;  %v2545_v13 = vmax.f32 %v2521_v10, 0.0  ;;  %v967_v10 = vadd.f32 %v943_v29, %v819_v18  ;;  %v1532_v29 = vmul.f32 %v1469_v22, %v11436_v44 }
 0x33e   :  { %1800 = vadd.xlane.f32.xlu1 %v1799_v7  ;;  %v668_v7 = vmul.f32 %v605_v49, %v11324_v57  ;;  %v940_v49 = vmul.f32 %v877_v27, %v11356_v11  ;;  %v1236_v27 = vmul.f32 %v1173_v25, %v11402_v45 }
 0x33f   :  { %v12065_v55 = vadd.f32 %v17034_v31, %v2545_v13 }
 0x340   :  { %v816_v33 = vadd.f32 %v792_v12, %v668_v7  ;;  %v1091_v12 = vmul.f32 %v12014_v48, %v11381_v5  ;;  %v17038_v7 = vld [vmem:[#allocation63_spill] sm:$0xff]  ;;  %v1387_v48 = vmul.f32 %v1333_v24, %v11288_v26 }
 0x341   :  { %17035 = vst [vmem:[#allocation30_spill] sm:$0xff] %v12065_v55  ;;  %v12084_v19 = vrot.slane %v17038_v7, %v11218_v30  ;;  %v12088_v1 = vrot.slane %v17038_v7, %v11226_v34  ;;  %v12104_v24 = vrot.slane %v17038_v7, %v11228_v35  ;;  %v12112_v22 = vrot.slane %v17038_v7, %v11233_v40 }
 0x342   :  { %v964_v16 = vadd.f32 %v940_v49, %v816_v33  ;;  %v1115_v20 = vadd.f32 %v1091_v12, %v967_v10  ;;  %v17039_v33 = vld [vmem:[#allocation61_spill] sm:$0xff] }
 0x343   :  { %v2159_v25 = vmul.f32 %v11164_v58, %v12084_v19  ;;  %v2187_v37 = vmul.f32 %v11176_v0, %v12088_v1  ;;  %v613_v18 = vrot.slane %v17039_v33, %v11218_v30  ;;  %v737_v49 = vrot.slane %v17039_v33, %v11226_v34 }
 0x344   :  { %v1112_v3 = vadd.f32 %v1088_v39, %v964_v16  ;;  %v1263_v13 = vadd.f32 %v1239_v46, %v1115_v20  ;;  %v1683_v20 = vmul.f32 %v1629_v47, %v11453_v38  ;;  %v2239_v9 = vmul.f32 %v11166_v59, %v12104_v24 }
 0x345   :  { %v2211_v10 = vadd.f32 %v2187_v37, %v2159_v25  ;;  %v2156_v39 = vmul.f32 %v11164_v58, %v613_v18  ;;  %v2184_v12 = vmul.f32 %v11176_v0, %v737_v49  ;;  %v2291_v47 = vmul.f32 %v11168_v60, %v12112_v22 }
 0x346   :  { %v1260_v14 = vadd.f32 %v1236_v27, %v1112_v3  ;;  %v1411_v21 = vadd.f32 %v1387_v48, %v1263_v13  ;;  %v1680_v3 = vmul.f32 %v1617_v42, %v11453_v38  ;;  %v885_v27 = vrot.slane %v17039_v33, %v11228_v35 }
 0x347   :  { %v2263_v13 = vadd.f32 %v2239_v9, %v2211_v10  ;;  %v1193_v48 = vrot.slane %v17038_v7, %v11235_v41  ;;  %v1033_v42 = vrot.slane %v17039_v33, %v11233_v40  ;;  %v794_v6 = vmul.f32 %v737_v49, %v11262_v53 }
 0x348   :  { %v1408_v31 = vadd.f32 %v1384_v23, %v1260_v14  ;;  %v1559_v16 = vadd.f32 %v1535_v52, %v1411_v21  ;;  %v2208_v23 = vadd.f32 %v2184_v12, %v2156_v39  ;;  %v1341_v52 = vrot.slane %v17038_v7, %v11256_v50  ;;  %v10446_v39 = vld [vmem:[#allocation2 + $0x50] sm:$0xff] }
 0x349   :  { %v2315_v37 = vadd.f32 %v2291_v47, %v2263_v13  ;;  %v2288_v10 = vmul.f32 %v11168_v60, %v1033_v42  ;;  %v945_v49 = vmul.f32 %v12104_v24, %v11356_v11 }
 0x34a   :  { %v1556_v8 = vadd.f32 %v1532_v29, %v1408_v31  ;;  %v1707_v14 = vadd.f32 %v1683_v20, %v1559_v16  ;;  %v2236_v31 = vmul.f32 %v11166_v59, %v885_v27  ;;  %v1181_v16 = vrot.slane %v17039_v33, %v11235_v41 }
 0x34b   :  { %v2395_v13 = vmul.f32 %v17023_v17, %v1341_v52 }
 0x34c   :  { %v1704_v46 = vadd.f32 %v1680_v3, %v1556_v8  ;;  %v1731_v25 = vmax.f32 %v1707_v14, 0.0  ;;  %v2260_v29 = vadd.f32 %v2236_v31, %v2208_v23  ;;  %v2343_v8 = vmul.f32 %v11172_v62, %v1193_v48  ;;  %v10447_v3 = vld [vmem:[#allocation2 + $0x68] sm:$0xff] }
 0x34d   :  { %v1489_v14 = vrot.slane %v17038_v7, %v11264_v54  ;;  %v1329_v23 = vrot.slane %v17039_v33, %v11256_v50  ;;  %v2340_v47 = vmul.f32 %v11172_v62, %v1181_v16 }
 0x34e   :  { %v1728_v21 = vmax.f32 %v1704_v46, 0.0  ;;  %v12133_v20 = vadd.f32 %v10447_v3, %v1731_v25  ;;  %v2367_v9 = vadd.f32 %v2343_v8, %v2315_v37  ;;  %v2312_v46 = vadd.f32 %v2288_v10, %v2260_v29 }
 0x34f   :  { %2702 = vrot.lane.b32.xlu1 %v12065_v55, %s10745_s20  ;;  %v1637_v29 = vrot.slane %v17038_v7, %v17024_v4  ;;  %v2447_v8 = vmul.f32 %v17025_v43, %v1489_v14  ;;  %v1477_v10 = vrot.slane %v17039_v33, %v11264_v54 }
 0x350   :  { %v12131_v12 = vadd.f32 %v10446_v39, %v1728_v21  ;;  %17041 = vst [vmem:[#allocation60_spill] sm:$0xff] %v12133_v20  ;;  %v1805_v21 = vsel %vm282_vm0, %v12133_v20, 0.0  ;;  %v2419_v25 = vadd.f32 %v2395_v13, %v2367_v9  ;;  %v2364_v37 = vadd.f32 %v2340_v47, %v2312_v46 }
 0x351   :  { %v2392_v39 = vmul.f32 %v17023_v17, %v1329_v23  ;;  %v2499_v63 = vmul.f32 %v11331_v56, %v1637_v29  ;;  %v1625_v9 = vrot.slane %v17039_v33, %v17024_v4  ;;  %v2444_v13 = vmul.f32 %v17025_v43, %v1477_v10 }
 0x352   :  { %17040 = vst [vmem:[#allocation34_spill] sm:$0xff] %v12131_v12  ;;  %v1796_v31 = vsel %vm282_vm0, %v12131_v12, 0.0  ;;  %v2471_v3 = vadd.f32 %v2447_v8, %v2419_v25  ;;  %v673_v25 = vmul.f32 %v12084_v19, %v11324_v57  ;;  %v17042_v8 = vld [vmem:[#allocation43_spill] sm:$0xff] }
 0x353   :  { %2696 = vrot.lane.b32.xlu0 %v12073_v28, %s10745_s20  ;;  %v2416_v55 = vadd.f32 %v2392_v39, %v2364_v37  ;;  %v2496_v7 = vmul.f32 %v11331_v56, %v1625_v9  ;;  %v797_v37 = vmul.f32 %v12088_v1, %v11262_v53 }
 0x354   :  { %v2523_v46 = vadd.f32 %v2499_v63, %v2471_v3  ;;  %v17044_v3 = vld [vmem:[#allocation38_spill] sm:$0xff] }
 0x355   :  { %v2468_v47 = vadd.f32 %v2444_v13, %v2416_v55  ;;  %v821_v55 = vadd.f32 %v797_v37, %v673_v25 }
 0x357   :  { %v2520_v28 = vadd.f32 %v2496_v7, %v2468_v47  ;;  %v1241_v7 = vmul.f32 %v1193_v48, %v11402_v45 }
 0x359   :  { %v2544_v39 = vmax.f32 %v2520_v28, 0.0  ;;  %v1090_v28 = vmul.f32 %v1033_v42, %v11381_v5  ;;  %v1386_v42 = vmul.f32 %v1329_v23, %v11288_v26  ;;  %v1537_v23 = vmul.f32 %v1489_v14, %v11436_v44 }
 0x35b   :  { %v12171_v13 = vadd.f32 %v17044_v3, %v2544_v39 }
 0x35d   :  { %17045 = vst [vmem:[#allocation41_spill] sm:$0xff] %v12171_v13 }
 0x372   :  { %1797 = vadd.xlane.f32.xlu0 %v1796_v31  ;;  %v2547_v31 = vmax.f32 %v2523_v46, 0.0  ;;  %v969_v46 = vadd.f32 %v945_v49, %v821_v55  ;;  %v1534_v49 = vmul.f32 %v1477_v10, %v11436_v44 }
 0x373   :  { %1806 = vadd.xlane.f32.xlu1 %v1805_v21  ;;  %v670_v21 = vmul.f32 %v613_v18, %v11324_v57  ;;  %v942_v18 = vmul.f32 %v885_v27, %v11356_v11  ;;  %v1238_v27 = vmul.f32 %v1181_v16, %v11402_v45 }
 0x374   :  { %v12163_v33 = vadd.f32 %v17042_v8, %v2547_v31 }
 0x375   :  { %v818_v63 = vadd.f32 %v794_v6, %v670_v21  ;;  %v1093_v6 = vmul.f32 %v12112_v22, %v11381_v5  ;;  %v17046_v21 = vld [vmem:[#allocation65_spill] sm:$0xff]  ;;  %v1389_v22 = vmul.f32 %v1341_v52, %v11288_v26 }
 0x376   :  { %17043 = vst [vmem:[#allocation58_spill] sm:$0xff] %v12163_v33  ;;  %v12182_v25 = vrot.slane %v17046_v21, %v11218_v30  ;;  %v12186_v37 = vrot.slane %v17046_v21, %v11226_v34  ;;  %v12202_v52 = vrot.slane %v17046_v21, %v11228_v35  ;;  %v12210_v10 = vrot.slane %v17046_v21, %v11233_v40 }
 0x377   :  { %v966_v19 = vadd.f32 %v942_v18, %v818_v63  ;;  %v1117_v47 = vadd.f32 %v1093_v6, %v969_v46  ;;  %v17047_v63 = vld [vmem:[#allocation64_spill] sm:$0xff] }
 0x378   :  { %v2161_v16 = vmul.f32 %v11164_v58, %v12182_v25  ;;  %v2189_v48 = vmul.f32 %v11176_v0, %v12186_v37  ;;  %v621_v55 = vrot.slane %v17047_v63, %v11218_v30  ;;  %v745_v18 = vrot.slane %v17047_v63, %v11226_v34 }
 0x379   :  { %v1114_v1 = vadd.f32 %v1090_v28, %v966_v19  ;;  %v1265_v31 = vadd.f32 %v1241_v7, %v1117_v47  ;;  %v1685_v47 = vmul.f32 %v1637_v29, %v11453_v38  ;;  %v2241_v14 = vmul.f32 %v11166_v59, %v12202_v52 }
 0x37a   :  { %v2213_v46 = vadd.f32 %v2189_v48, %v2161_v16  ;;  %v2158_v28 = vmul.f32 %v11164_v58, %v621_v55  ;;  %v2186_v6 = vmul.f32 %v11176_v0, %v745_v18  ;;  %v2293_v29 = vmul.f32 %v11168_v60, %v12210_v10 }
 0x37b   :  { %v1262_v24 = vadd.f32 %v1238_v27, %v1114_v1  ;;  %v1413_v39 = vadd.f32 %v1389_v22, %v1265_v31  ;;  %v1682_v1 = vmul.f32 %v1625_v9, %v11453_v38  ;;  %v893_v27 = vrot.slane %v17047_v63, %v11228_v35 }
 0x37c   :  { %v2265_v31 = vadd.f32 %v2241_v14, %v2213_v46  ;;  %v1201_v22 = vrot.slane %v17046_v21, %v11235_v41  ;;  %v1041_v9 = vrot.slane %v17047_v63, %v11233_v40  ;;  %v796_v32 = vmul.f32 %v745_v18, %v11262_v53 }
 0x37d   :  { %v1410_v8 = vadd.f32 %v1386_v42, %v1262_v24  ;;  %v1561_v19 = vadd.f32 %v1537_v23, %v1413_v39  ;;  %v2210_v42 = vadd.f32 %v2186_v6, %v2158_v28  ;;  %v1349_v23 = vrot.slane %v17046_v21, %v11256_v50  ;;  %v10448_v28 = vld [vmem:[#allocation2 + $0x60] sm:$0xff] }
 0x37e   :  { %v2317_v48 = vadd.f32 %v2293_v29, %v2265_v31  ;;  %v2290_v46 = vmul.f32 %v11168_v60, %v1041_v9  ;;  %v947_v18 = vmul.f32 %v12202_v52, %v11356_v11 }
 0x37f   :  { %v1558_v3 = vadd.f32 %v1534_v49, %v1410_v8  ;;  %v1709_v24 = vadd.f32 %v1685_v47, %v1561_v19  ;;  %v2238_v8 = vmul.f32 %v11166_v59, %v893_v27  ;;  %v1189_v19 = vrot.slane %v17047_v63, %v11235_v41 }
 0x380   :  { %v2397_v31 = vmul.f32 %v17023_v17, %v1349_v23 }
 0x381   :  { %v1706_v7 = vadd.f32 %v1682_v1, %v1558_v3  ;;  %v1733_v16 = vmax.f32 %v1709_v24, 0.0  ;;  %v2262_v49 = vadd.f32 %v2238_v8, %v2210_v42  ;;  %v2345_v3 = vmul.f32 %v11172_v62, %v1201_v22  ;;  %v10449_v1 = vld [vmem:[#allocation2 + $0x78] sm:$0xff] }
 0x382   :  { %v1497_v24 = vrot.slane %v17046_v21, %v11264_v54  ;;  %v1337_v42 = vrot.slane %v17047_v63, %v11256_v50  ;;  %v2342_v29 = vmul.f32 %v11172_v62, %v1189_v19 }
 0x383   :  { %v1730_v39 = vmax.f32 %v1706_v7, 0.0  ;;  %v12231_v47 = vadd.f32 %v10449_v1, %v1733_v16  ;;  %v2369_v14 = vadd.f32 %v2345_v3, %v2317_v48  ;;  %v2314_v7 = vadd.f32 %v2290_v46, %v2262_v49 }
 0x384   :  { %2706 = vrot.lane.b32.xlu1 %v12163_v33, %s10745_s20  ;;  %v1645_v49 = vrot.slane %v17046_v21, %v17024_v4  ;;  %v2449_v3 = vmul.f32 %v17025_v43, %v1497_v24  ;;  %v1485_v46 = vrot.slane %v17047_v63, %v11264_v54 }
 0x385   :  { %v12229_v6 = vadd.f32 %v10448_v28, %v1730_v39  ;;  %17049 = vst [vmem:[#allocation63_spill] sm:$0xff] %v12231_v47  ;;  %v1811_v39 = vsel %vm282_vm0, %v12231_v47, 0.0  ;;  %v2421_v16 = vadd.f32 %v2397_v31, %v2369_v14  ;;  %v2366_v48 = vadd.f32 %v2342_v29, %v2314_v7 }
 0x386   :  { %v2394_v28 = vmul.f32 %v17023_v17, %v1337_v42  ;;  %v1633_v14 = vrot.slane %v17047_v63, %v17024_v4  ;;  %v2446_v31 = vmul.f32 %v17025_v43, %v1485_v46 }
 0x387   :  { %17048 = vst [vmem:[#allocation36_spill] sm:$0xff] %v12229_v6  ;;  %v1802_v8 = vsel %vm282_vm0, %v12229_v6, 0.0  ;;  %v2473_v1 = vadd.f32 %v2449_v3, %v2421_v16  ;;  %v675_v16 = vmul.f32 %v12182_v25, %v11324_v57  ;;  %v17050_v3 = vld [vmem:[#allocation45_spill] sm:$0xff] }
 0x388   :  { %2700 = vrot.lane.b32.xlu0 %v12171_v13, %s10745_s20  ;;  %v2418_v33 = vadd.f32 %v2394_v28, %v2366_v48  ;;  %v2501_v13 = vmul.f32 %v11331_v56, %v1645_v49  ;;  %v2498_v21 = vmul.f32 %v11331_v56, %v1633_v14  ;;  %v799_v48 = vmul.f32 %v12186_v37, %v11262_v53 }
 0x389   :  { %v1092_v37 = vmul.f32 %v1041_v9, %v11381_v5  ;;  %v1388_v9 = vmul.f32 %v1337_v42, %v11288_v26  ;;  %v1539_v42 = vmul.f32 %v1497_v24, %v11436_v44 }
 0x38a   :  { %v2525_v7 = vadd.f32 %v2501_v13, %v2473_v1  ;;  %v2470_v29 = vadd.f32 %v2446_v31, %v2418_v33  ;;  %v823_v33 = vadd.f32 %v799_v48, %v675_v16  ;;  %v17052_v1 = vld [vmem:[#allocation40_spill] sm:$0xff] }
 0x38c   :  { %v2522_v47 = vadd.f32 %v2498_v21, %v2470_v29  ;;  %v1243_v21 = vmul.f32 %v1201_v22, %v11402_v45 }
 0x38e   :  { %v2546_v28 = vmax.f32 %v2522_v47, 0.0 }
 0x390   :  { %v12269_v31 = vadd.f32 %v17052_v1, %v2546_v28 }
 0x392   :  { %17053 = vst [vmem:[#allocation43_spill] sm:$0xff] %v12269_v31 }
 0x3a7   :  { %1803 = vadd.xlane.f32.xlu0 %v1802_v8  ;;  %v2549_v8 = vmax.f32 %v2525_v7, 0.0  ;;  %v971_v7 = vadd.f32 %v947_v18, %v823_v33  ;;  %v1536_v18 = vmul.f32 %v1485_v46, %v11436_v44 }
 0x3a8   :  { %1812 = vadd.xlane.f32.xlu1 %v1811_v39  ;;  %v672_v39 = vmul.f32 %v621_v55, %v11324_v57  ;;  %v944_v55 = vmul.f32 %v893_v27, %v11356_v11  ;;  %v1240_v27 = vmul.f32 %v1189_v19, %v11402_v45 }
 0x3a9   :  { %v12261_v63 = vadd.f32 %v17050_v3, %v2549_v8 }
 0x3aa   :  { %v820_v13 = vadd.f32 %v796_v32, %v672_v39  ;;  %v1095_v32 = vmul.f32 %v12210_v10, %v11381_v5  ;;  %v17054_v39 = vld [vmem:[#allocation67_spill] sm:$0xff]  ;;  %v1391_v10 = vmul.f32 %v1349_v23, %v11288_v26 }
 0x3ab   :  { %17051 = vst [vmem:[#allocation61_spill] sm:$0xff] %v12261_v63  ;;  %v12280_v16 = vrot.slane %v17054_v39, %v11218_v30  ;;  %v12284_v48 = vrot.slane %v17054_v39, %v11226_v34  ;;  %v12300_v23 = vrot.slane %v17054_v39, %v11228_v35  ;;  %v12308_v46 = vrot.slane %v17054_v39, %v11233_v40 }
 0x3ac   :  { %v968_v25 = vadd.f32 %v944_v55, %v820_v13  ;;  %v1119_v29 = vadd.f32 %v1095_v32, %v971_v7  ;;  %v17055_v13 = vld [vmem:[#allocation66_spill] sm:$0xff] }
 0x3ad   :  { %v2163_v19 = vmul.f32 %v11164_v58, %v12280_v16  ;;  %v2191_v22 = vmul.f32 %v11176_v0, %v12284_v48  ;;  %v629_v33 = vrot.slane %v17055_v13, %v11218_v30  ;;  %v753_v55 = vrot.slane %v17055_v13, %v11226_v34 }
 0x3ae   :  { %v1116_v47 = vadd.f32 %v1092_v37, %v968_v25  ;;  %v1267_v8 = vadd.f32 %v1243_v21, %v1119_v29  ;;  %v1687_v29 = vmul.f32 %v1645_v49, %v11453_v38  ;;  %v2243_v24 = vmul.f32 %v11166_v59, %v12300_v23 }
 0x3af   :  { %v2215_v7 = vadd.f32 %v2191_v22, %v2163_v19  ;;  %v2160_v37 = vmul.f32 %v11164_v58, %v629_v33  ;;  %v2188_v32 = vmul.f32 %v11176_v0, %v753_v55  ;;  %v2295_v49 = vmul.f32 %v11168_v60, %v12308_v46 }
 0x3b0   :  { %v1264_v52 = vadd.f32 %v1240_v27, %v1116_v47  ;;  %v1415_v28 = vadd.f32 %v1391_v10, %v1267_v8  ;;  %v1684_v47 = vmul.f32 %v1633_v14, %v11453_v38  ;;  %v901_v27 = vrot.slane %v17055_v13, %v11228_v35 }
 0x3b1   :  { %v2267_v8 = vadd.f32 %v2243_v24, %v2215_v7  ;;  %v1209_v10 = vrot.slane %v17054_v39, %v11235_v41  ;;  %v1049_v14 = vrot.slane %v17055_v13, %v11233_v40 }
 0x3b2   :  { %v1412_v3 = vadd.f32 %v1388_v9, %v1264_v52  ;;  %v1563_v25 = vadd.f32 %v1539_v42, %v1415_v28  ;;  %v2212_v9 = vadd.f32 %v2188_v32, %v2160_v37  ;;  %v1357_v42 = vrot.slane %v17054_v39, %v11256_v50  ;;  %v10450_v37 = vld [vmem:[#allocation2 + $0x70] sm:$0xff] }
 0x3b3   :  { %v2319_v22 = vadd.f32 %v2295_v49, %v2267_v8  ;;  %v2292_v7 = vmul.f32 %v11168_v60, %v1049_v14 }
 0x3b4   :  { %v1560_v1 = vadd.f32 %v1536_v18, %v1412_v3  ;;  %v1711_v52 = vadd.f32 %v1687_v29, %v1563_v25  ;;  %v2240_v3 = vmul.f32 %v11166_v59, %v901_v27  ;;  %v1197_v25 = vrot.slane %v17055_v13, %v11235_v41 }
 0x3b5   :  { %v2399_v8 = vmul.f32 %v17023_v17, %v1357_v42 }
 0x3b6   :  { %v1708_v21 = vadd.f32 %v1684_v47, %v1560_v1  ;;  %v1735_v19 = vmax.f32 %v1711_v52, 0.0  ;;  %v2264_v18 = vadd.f32 %v2240_v3, %v2212_v9  ;;  %v2347_v1 = vmul.f32 %v11172_v62, %v1209_v10  ;;  %v10451_v47 = vld [vmem:[#allocation2 + $0x88] sm:$0xff] }
 0x3b7   :  { %v1505_v52 = vrot.slane %v17054_v39, %v11264_v54  ;;  %v1345_v9 = vrot.slane %v17055_v13, %v11256_v50  ;;  %v2344_v49 = vmul.f32 %v11172_v62, %v1197_v25 }
 0x3b8   :  { %v1732_v28 = vmax.f32 %v1708_v21, 0.0  ;;  %v12329_v29 = vadd.f32 %v10451_v47, %v1735_v19  ;;  %v2371_v24 = vadd.f32 %v2347_v1, %v2319_v22  ;;  %v2316_v21 = vadd.f32 %v2292_v7, %v2264_v18 }
 0x3b9   :  { %2710 = vrot.lane.b32.xlu1 %v12261_v63, %s10745_s20  ;;  %v1653_v18 = vrot.slane %v17054_v39, %v17024_v4  ;;  %v2451_v1 = vmul.f32 %v17025_v43, %v1505_v52  ;;  %v1493_v7 = vrot.slane %v17055_v13, %v11264_v54 }
 0x3ba   :  { %v12327_v32 = vadd.f32 %v10450_v37, %v1732_v28  ;;  %17057 = vst [vmem:[#allocation65_spill] sm:$0xff] %v12329_v29  ;;  %v1817_v28 = vsel %vm282_vm0, %v12329_v29, 0.0  ;;  %v2423_v19 = vadd.f32 %v2399_v8, %v2371_v24  ;;  %v2368_v22 = vadd.f32 %v2344_v49, %v2316_v21 }
 0x3bb   :  { %v2396_v37 = vmul.f32 %v17023_v17, %v1345_v9  ;;  %v1641_v24 = vrot.slane %v17055_v13, %v17024_v4  ;;  %v2448_v8 = vmul.f32 %v17025_v43, %v1493_v7 }
 0x3bc   :  { %17056 = vst [vmem:[#allocation38_spill] sm:$0xff] %v12327_v32  ;;  %v1808_v3 = vsel %vm282_vm0, %v12327_v32, 0.0  ;;  %v2475_v47 = vadd.f32 %v2451_v1, %v2423_v19  ;;  %v2503_v32 = vmul.f32 %v11331_v56, %v1653_v18  ;;  %v677_v19 = vmul.f32 %v12280_v16, %v11324_v57  ;;  %v17058_v1 = vld [vmem:[#allocation48_spill] sm:$0xff] }
 0x3bd   :  { %2704 = vrot.lane.b32.xlu0 %v12269_v31, %s10745_s20  ;;  %v2420_v63 = vadd.f32 %v2396_v37, %v2368_v22  ;;  %v2500_v39 = vmul.f32 %v11331_v56, %v1641_v24  ;;  %v798_v31 = vmul.f32 %v753_v55, %v11262_v53  ;;  %v801_v22 = vmul.f32 %v12284_v48, %v11262_v53 }
 0x3be   :  { %v2527_v21 = vadd.f32 %v2503_v32, %v2475_v47  ;;  %v949_v55 = vmul.f32 %v12300_v23, %v11356_v11  ;;  %v17060_v47 = vld [vmem:[#allocation42_spill] sm:$0xff]  ;;  %v1094_v48 = vmul.f32 %v1049_v14, %v11381_v5  ;;  %v1390_v14 = vmul.f32 %v1345_v9, %v11288_v26 }
 0x3bf   :  { %v2472_v49 = vadd.f32 %v2448_v8, %v2420_v63  ;;  %v825_v63 = vadd.f32 %v801_v22, %v677_v19  ;;  %v1541_v9 = vmul.f32 %v1505_v52, %v11436_v44 }
 0x3c1   :  { %v2524_v29 = vadd.f32 %v2500_v39, %v2472_v49  ;;  %v1245_v39 = vmul.f32 %v1209_v10, %v11402_v45 }
 0x3c3   :  { %v2548_v37 = vmax.f32 %v2524_v29, 0.0 }
 0x3c5   :  { %v12367_v8 = vadd.f32 %v17060_v47, %v2548_v37 }
 0x3c7   :  { %17061 = vst [vmem:[#allocation45_spill] sm:$0xff] %v12367_v8 }
 0x3dc   :  { %1809 = vadd.xlane.f32.xlu0 %v1808_v3  ;;  %v2551_v3 = vmax.f32 %v2527_v21, 0.0  ;;  %v973_v21 = vadd.f32 %v949_v55, %v825_v63  ;;  %v1538_v55 = vmul.f32 %v1493_v7, %v11436_v44 }
 0x3dd   :  { %1818 = vadd.xlane.f32.xlu1 %v1817_v28  ;;  %v674_v28 = vmul.f32 %v629_v33, %v11324_v57  ;;  %v946_v33 = vmul.f32 %v901_v27, %v11356_v11  ;;  %v1242_v27 = vmul.f32 %v1197_v25, %v11402_v45 }
 0x3de   :  { %v12359_v13 = vadd.f32 %v17058_v1, %v2551_v3 }
 0x3df   :  { %v822_v32 = vadd.f32 %v798_v31, %v674_v28  ;;  %v1097_v31 = vmul.f32 %v12308_v46, %v11381_v5  ;;  %v17062_v28 = vld [vmem:[#allocation69_spill] sm:$0xff]  ;;  %v1393_v46 = vmul.f32 %v1357_v42, %v11288_v26 }
 0x3e0   :  { %17059 = vst [vmem:[#allocation64_spill] sm:$0xff] %v12359_v13  ;;  %v12378_v19 = vrot.slane %v17062_v28, %v11218_v30  ;;  %v12382_v22 = vrot.slane %v17062_v28, %v11226_v34  ;;  %v12398_v42 = vrot.slane %v17062_v28, %v11228_v35  ;;  %v12406_v7 = vrot.slane %v17062_v28, %v11233_v40 }
 0x3e1   :  { %v970_v16 = vadd.f32 %v946_v33, %v822_v32  ;;  %v1121_v49 = vadd.f32 %v1097_v31, %v973_v21  ;;  %v17063_v32 = vld [vmem:[#allocation68_spill] sm:$0xff] }
 0x3e2   :  { %v2165_v25 = vmul.f32 %v11164_v58, %v12378_v19  ;;  %v2193_v10 = vmul.f32 %v11176_v0, %v12382_v22  ;;  %v637_v63 = vrot.slane %v17063_v32, %v11218_v30  ;;  %v761_v33 = vrot.slane %v17063_v32, %v11226_v34 }
 0x3e3   :  { %v1118_v29 = vadd.f32 %v1094_v48, %v970_v16  ;;  %v1269_v3 = vadd.f32 %v1245_v39, %v1121_v49  ;;  %v1689_v49 = vmul.f32 %v1653_v18, %v11453_v38  ;;  %v2245_v52 = vmul.f32 %v11166_v59, %v12398_v42 }
 0x3e4   :  { %v2217_v21 = vadd.f32 %v2193_v10, %v2165_v25  ;;  %v2162_v48 = vmul.f32 %v11164_v58, %v637_v63  ;;  %v2190_v31 = vmul.f32 %v11176_v0, %v761_v33  ;;  %v2297_v18 = vmul.f32 %v11168_v60, %v12406_v7 }
 0x3e5   :  { %v1266_v23 = vadd.f32 %v1242_v27, %v1118_v29  ;;  %v1417_v37 = vadd.f32 %v1393_v46, %v1269_v3  ;;  %v1686_v29 = vmul.f32 %v1641_v24, %v11453_v38  ;;  %v909_v27 = vrot.slane %v17063_v32, %v11228_v35 }
 0x3e6   :  { %v2269_v3 = vadd.f32 %v2245_v52, %v2217_v21  ;;  %v1217_v46 = vrot.slane %v17062_v28, %v11235_v41  ;;  %v1057_v24 = vrot.slane %v17063_v32, %v11233_v40 }
 0x3e7   :  { %v1414_v1 = vadd.f32 %v1390_v14, %v1266_v23  ;;  %v1565_v16 = vadd.f32 %v1541_v9, %v1417_v37  ;;  %v2214_v14 = vadd.f32 %v2190_v31, %v2162_v48  ;;  %v1365_v9 = vrot.slane %v17062_v28, %v11256_v50  ;;  %v10452_v48 = vld [vmem:[#allocation2 + $0x80] sm:$0xff] }
 0x3e8   :  { %v2321_v10 = vadd.f32 %v2297_v18, %v2269_v3  ;;  %v2294_v21 = vmul.f32 %v11168_v60, %v1057_v24 }
 0x3e9   :  { %v1562_v47 = vadd.f32 %v1538_v55, %v1414_v1  ;;  %v1713_v23 = vadd.f32 %v1689_v49, %v1565_v16  ;;  %v2242_v1 = vmul.f32 %v11166_v59, %v909_v27  ;;  %v1205_v16 = vrot.slane %v17063_v32, %v11235_v41 }
 0x3ea   :  { %v2401_v3 = vmul.f32 %v17023_v17, %v1365_v9 }
 0x3eb   :  { %v1710_v39 = vadd.f32 %v1686_v29, %v1562_v47  ;;  %v1737_v25 = vmax.f32 %v1713_v23, 0.0  ;;  %v2266_v55 = vadd.f32 %v2242_v1, %v2214_v14  ;;  %v2349_v47 = vmul.f32 %v11172_v62, %v1217_v46  ;;  %v10453_v29 = vld [vmem:[#allocation2 + $0x98] sm:$0xff] }
 0x3ec   :  { %v1513_v23 = vrot.slane %v17062_v28, %v11264_v54  ;;  %v1353_v14 = vrot.slane %v17063_v32, %v11256_v50  ;;  %v2346_v18 = vmul.f32 %v11172_v62, %v1205_v16 }
 0x3ed   :  { %v1734_v37 = vmax.f32 %v1710_v39, 0.0  ;;  %v12427_v49 = vadd.f32 %v10453_v29, %v1737_v25  ;;  %v2373_v52 = vadd.f32 %v2349_v47, %v2321_v10  ;;  %v2318_v39 = vadd.f32 %v2294_v21, %v2266_v55 }
 0x3ee   :  { %2714 = vrot.lane.b32.xlu1 %v12359_v13, %s10745_s20  ;;  %v1661_v55 = vrot.slane %v17062_v28, %v17024_v4  ;;  %v2453_v47 = vmul.f32 %v17025_v43, %v1513_v23  ;;  %v1501_v21 = vrot.slane %v17063_v32, %v11264_v54 }
 0x3ef   :  { %v12425_v31 = vadd.f32 %v10452_v48, %v1734_v37  ;;  %17065 = vst [vmem:[#allocation67_spill] sm:$0xff] %v12427_v49  ;;  %v1823_v37 = vsel %vm282_vm0, %v12427_v49, 0.0  ;;  %v2425_v25 = vadd.f32 %v2401_v3, %v2373_v52  ;;  %v2370_v10 = vadd.f32 %v2346_v18, %v2318_v39 }
 0x3f0   :  { %v2398_v48 = vmul.f32 %v17023_v17, %v1353_v14  ;;  %v1649_v52 = vrot.slane %v17063_v32, %v17024_v4  ;;  %v2450_v3 = vmul.f32 %v17025_v43, %v1501_v21 }
 0x3f1   :  { %17064 = vst [vmem:[#allocation40_spill] sm:$0xff] %v12425_v31  ;;  %v1814_v1 = vsel %vm282_vm0, %v12425_v31, 0.0  ;;  %v2477_v29 = vadd.f32 %v2453_v47, %v2425_v25  ;;  %v2505_v31 = vmul.f32 %v11331_v56, %v1661_v55  ;;  %v679_v25 = vmul.f32 %v12378_v19, %v11324_v57  ;;  %v17066_v47 = vld [vmem:[#allocation51_spill] sm:$0xff] }
 0x3f2   :  { %2708 = vrot.lane.b32.xlu0 %v12367_v8, %s10745_s20  ;;  %v2422_v13 = vadd.f32 %v2398_v48, %v2370_v10  ;;  %v2502_v28 = vmul.f32 %v11331_v56, %v1649_v52  ;;  %v800_v8 = vmul.f32 %v761_v33, %v11262_v53  ;;  %v803_v10 = vmul.f32 %v12382_v22, %v11262_v53 }
 0x3f3   :  { %v2529_v39 = vadd.f32 %v2505_v31, %v2477_v29  ;;  %v951_v33 = vmul.f32 %v12398_v42, %v11356_v11  ;;  %v17068_v29 = vld [vmem:[#allocation44_spill] sm:$0xff]  ;;  %v1096_v22 = vmul.f32 %v1057_v24, %v11381_v5  ;;  %v1392_v24 = vmul.f32 %v1353_v14, %v11288_v26 }
 0x3f4   :  { %v2474_v18 = vadd.f32 %v2450_v3, %v2422_v13  ;;  %v827_v13 = vadd.f32 %v803_v10, %v679_v25  ;;  %v1540_v14 = vmul.f32 %v1501_v21, %v11436_v44 }
 0x3f6   :  { %v2526_v49 = vadd.f32 %v2502_v28, %v2474_v18  ;;  %v1247_v28 = vmul.f32 %v1217_v46, %v11402_v45 }
 0x3f8   :  { %v2550_v48 = vmax.f32 %v2526_v49, 0.0 }
 0x3fa   :  { %v12465_v3 = vadd.f32 %v17068_v29, %v2550_v48 }
 0x3fc   :  { %17069 = vst [vmem:[#allocation48_spill] sm:$0xff] %v12465_v3 }
 0x411   :  { %1815 = vadd.xlane.f32.xlu0 %v1814_v1  ;;  %v2553_v1 = vmax.f32 %v2529_v39, 0.0  ;;  %v975_v39 = vadd.f32 %v951_v33, %v827_v13 }
 0x412   :  { %1824 = vadd.xlane.f32.xlu1 %v1823_v37  ;;  %v676_v37 = vmul.f32 %v637_v63, %v11324_v57  ;;  %v948_v63 = vmul.f32 %v909_v27, %v11356_v11  ;;  %v1244_v27 = vmul.f32 %v1205_v16, %v11402_v45 }
 0x413   :  { %v12457_v32 = vadd.f32 %v17066_v47, %v2553_v1 }
 0x414   :  { %v824_v31 = vadd.f32 %v800_v8, %v676_v37  ;;  %v1099_v8 = vmul.f32 %v12406_v7, %v11381_v5  ;;  %v17070_v37 = vld [vmem:[#allocation71_spill] sm:$0xff]  ;;  %v1395_v7 = vmul.f32 %v1365_v9, %v11288_v26  ;;  %v1543_v9 = vmul.f32 %v1513_v23, %v11436_v44 }
 0x415   :  { %17067 = vst [vmem:[#allocation66_spill] sm:$0xff] %v12457_v32  ;;  %v12476_v25 = vrot.slane %v17070_v37, %v11218_v30  ;;  %v12480_v10 = vrot.slane %v17070_v37, %v11226_v34  ;;  %v12500_v33 = vrot.slane %v17070_v37, %v11228_v35  ;;  %v12510_v23 = vrot.slane %v17070_v37, %v11233_v40 }
 0x416   :  { %v972_v19 = vadd.f32 %v948_v63, %v824_v31  ;;  %v1123_v18 = vadd.f32 %v1099_v8, %v975_v39  ;;  %v17071_v31 = vld [vmem:[#allocation70_spill] sm:$0xff] }
 0x417   :  { %v2167_v16 = vmul.f32 %v11164_v58, %v12476_v25  ;;  %v2195_v46 = vmul.f32 %v11176_v0, %v12480_v10  ;;  %v12490_v13 = vrot.slane %v17071_v31, %v11218_v30  ;;  %v12494_v63 = vrot.slane %v17071_v31, %v11226_v34 }
 0x418   :  { %v1120_v49 = vadd.f32 %v1096_v22, %v972_v19  ;;  %v1271_v1 = vadd.f32 %v1247_v28, %v1123_v18  ;;  %v1691_v18 = vmul.f32 %v1661_v55, %v11453_v38  ;;  %v2247_v21 = vmul.f32 %v11166_v59, %v12500_v33 }
 0x419   :  { %v2219_v39 = vadd.f32 %v2195_v46, %v2167_v16  ;;  %v2164_v22 = vmul.f32 %v11164_v58, %v12490_v13  ;;  %v2192_v8 = vmul.f32 %v11176_v0, %v12494_v63  ;;  %v2299_v55 = vmul.f32 %v11168_v60, %v12510_v23 }
 0x41a   :  { %v1268_v42 = vadd.f32 %v1244_v27, %v1120_v49  ;;  %v1419_v48 = vadd.f32 %v1395_v7, %v1271_v1  ;;  %v1688_v49 = vmul.f32 %v1649_v52, %v11453_v38  ;;  %v12516_v27 = vrot.slane %v17071_v31, %v11228_v35 }
 0x41b   :  { %v2271_v1 = vadd.f32 %v2247_v21, %v2219_v39  ;;  %v12520_v52 = vrot.slane %v17070_v37, %v11235_v41  ;;  %v12526_v7 = vrot.slane %v17071_v31, %v11233_v40 }
 0x41c   :  { %v1416_v47 = vadd.f32 %v1392_v24, %v1268_v42  ;;  %v1567_v19 = vadd.f32 %v1543_v9, %v1419_v48  ;;  %v2216_v24 = vadd.f32 %v2192_v8, %v2164_v22  ;;  %v12532_v9 = vrot.slane %v17070_v37, %v11256_v50  ;;  %v12542_v22 = vpop.permute.xlu0 %2676  ;;  %v10454_v8 = vld [vmem:[#allocation2 + $0x90] sm:$0xff] }
 0x41d   :  { %v2323_v46 = vadd.f32 %v2299_v55, %v2271_v1  ;;  %v2296_v39 = vmul.f32 %v11168_v60, %v12526_v7  ;;  %v12550_v1 = vrot.slane %v17070_v37, %v11264_v54  ;;  %v12554_v55 = vpop.permute.xlu1 %2678 }
 0x41e   :  { %v1564_v29 = vadd.f32 %v1540_v14, %v1416_v47  ;;  %v1715_v42 = vadd.f32 %v1691_v18, %v1567_v19  ;;  %v2244_v47 = vmul.f32 %v11166_v59, %v12516_v27  ;;  %v12538_v19 = vrot.slane %v17071_v31, %v11235_v41  ;;  %v10455_v18 = vld [vmem:[#allocation2 + $0xa8] sm:$0xff] }
 0x420   :  { %v1712_v28 = vadd.f32 %v1688_v49, %v1564_v29  ;;  %v1739_v16 = vmax.f32 %v1715_v42, 0.0  ;;  %v2268_v14 = vadd.f32 %v2244_v47, %v2216_v24  ;;  %v2351_v29 = vmul.f32 %v11172_v62, %v12520_v52 }
 0x421   :  { %v2403_v24 = vmul.f32 %v17023_v17, %v12532_v9  ;;  %v1361_v47 = vrot.slane %v17071_v31, %v11256_v50 }
 0x422   :  { %v1736_v48 = vmax.f32 %v1712_v28, 0.0  ;;  %v12546_v21 = vadd.f32 %v10455_v18, %v1739_v16  ;;  %v2375_v28 = vadd.f32 %v2351_v29, %v2323_v46  ;;  %v2320_v42 = vadd.f32 %v2296_v39, %v2268_v14 }
 0x423   :  { %2718 = vrot.lane.b32.xlu1 %v12457_v32, %s10745_s20  ;;  %v12568_v39 = vrot.slane %v17070_v37, %v17024_v4  ;;  %v2455_v18 = vmul.f32 %v17025_v43, %v12550_v1  ;;  %v12572_v32 = vpop.xlane.xlu1 %1770  ;;  %v1657_v37 = vrot.slane %v17071_v31, %v17024_v4 }
 0x424   :  { %v12544_v49 = vadd.f32 %v10454_v8, %v1736_v48  ;;  %17073 = vst [vmem:[#allocation69_spill] sm:$0xff] %v12546_v21  ;;  %v2348_v48 = vmul.f32 %v11172_v62, %v12538_v19  ;;  %v12560_v8 = vpop.xlane.xlu0 %1767  ;;  %v1829_v46 = vsel %vm282_vm0, %v12546_v21, 0.0  ;;  %v2427_v14 = vadd.f32 %v2403_v24, %v2375_v28 }
 0x425   :  { %v2504_v2 = vmul.f32 %v11331_v56, %v1657_v37 }
 0x426   :  { %17072 = vst [vmem:[#allocation42_spill] sm:$0xff] %v12544_v49  ;;  %v1820_v16 = vsel %vm282_vm0, %v12544_v49, 0.0  ;;  %v2372_v29 = vadd.f32 %v2348_v48, %v2320_v42  ;;  %v2400_v49 = vmul.f32 %v17023_v17, %v1361_v47  ;;  %v2479_v6 = vadd.f32 %v2455_v18, %v2427_v14 }
 0x427   :  { %2712 = vrot.lane.b32.xlu0 %v12465_v3, %s10745_s20  ;;  %v1509_v3 = vrot.slane %v17071_v31, %v11264_v54  ;;  %v2507_v42 = vmul.f32 %v11331_v56, %v12568_v39  ;;  %v802_v31 = vmul.f32 %v12494_v63, %v11262_v53  ;;  %v950_v63 = vmul.f32 %v12516_v27, %v11356_v11 }
 0x428   :  { %v2424_v21 = vadd.f32 %v2400_v49, %v2372_v29  ;;  %v12577_v28 = vpop.permute.xlu0 %2680  ;;  %v678_v49 = vmul.f32 %v12490_v13, %v11324_v57  ;;  %v1101_v27 = vmul.f32 %v12510_v23, %v11381_v5  ;;  %v1397_v23 = vmul.f32 %v12532_v9, %v11288_v26 }
 0x429   :  { %v2452_v24 = vmul.f32 %v17025_v43, %v1509_v3  ;;  %v2531_v48 = vadd.f32 %v2507_v42, %v2479_v6  ;;  %v681_v6 = vmul.f32 %v12476_v25, %v11324_v57  ;;  %v953_v25 = vmul.f32 %v12500_v33, %v11356_v11 }
 0x42a   :  { %v826_v20 = vadd.f32 %v802_v31, %v678_v49  ;;  %v1098_v31 = vmul.f32 %v12526_v7, %v11381_v5  ;;  %v1394_v7 = vmul.f32 %v1361_v47, %v11288_v26 }
 0x42b   :  { %v2555_v14 = vmax.f32 %v2531_v48, 0.0 }
 0x42c   :  { %v12586_v12 = vpop.xlane.xlu0 %1773 }
 0x430   :  { %v12599_v42 = vpop.permute.xlu0 %2684 }
 0x446   :  { %1821 = vadd.xlane.f32.xlu0 %v1820_v16  ;;  %v12584_v16 = vpop.permute.xlu1 %2682 }
 0x447   :  { %1830 = vadd.xlane.f32.xlu1 %v1829_v46  ;;  %v2476_v46 = vadd.f32 %v2452_v24, %v2424_v21  ;;  %v805_v21 = vmul.f32 %v12480_v10, %v11262_v53  ;;  %v17074_v24 = vld [vmem:[#allocation53_spill] sm:$0xff]  ;;  %v12612_v10 = vpop.xlane.xlu0 %1779 }
 0x448   :  { %v12602_v15 = vadd.f32 %v17074_v24, %v2555_v14  ;;  %v974_v14 = vadd.f32 %v950_v63, %v826_v20  ;;  %v1246_v24 = vmul.f32 %v12538_v19, %v11402_v45  ;;  %v1249_v20 = vmul.f32 %v12520_v52, %v11402_v45 }
 0x449   :  { %v2528_v18 = vadd.f32 %v2504_v2, %v2476_v46  ;;  %v829_v13 = vadd.f32 %v805_v21, %v681_v6  ;;  %v17075_v46 = vld [vmem:[#allocation46_spill] sm:$0xff] }
 0x44a   :  { %v12591_v29 = vpop.xlane.xlu1 %1776  ;;  %v1122_v6 = vadd.f32 %v1098_v31, %v974_v14 }
 0x44b   :  { %v2552_v48 = vmax.f32 %v2528_v18, 0.0  ;;  %v977_v18 = vadd.f32 %v953_v25, %v829_v13  ;;  %v12625_v21 = vpop.permute.xlu0 %2688 }
 0x44c   :  { %v1270_v13 = vadd.f32 %v1246_v24, %v1122_v6  ;;  %v1545_v6 = vmul.f32 %v12550_v1, %v11436_v44 }
 0x44d   :  { %v12615_v61 = vadd.f32 %v17075_v46, %v2552_v48  ;;  %v1125_v33 = vadd.f32 %v1101_v27, %v977_v18  ;;  %v17076_v18 = vld [vmem:[#allocation72_spill] sm:$0xff]  ;;  %v1542_v27 = vmul.f32 %v1509_v3, %v11436_v44 }
 0x44e   :  { %v12606_v2 = vpop.permute.xlu1 %2686  ;;  %v1418_v46 = vadd.f32 %v1394_v7, %v1270_v13  ;;  %v653_v31 = vrot.slane %v17076_v18, %v11218_v30  ;;  %v777_v19 = vrot.slane %v17076_v18, %v11226_v34  ;;  %v1693_v7 = vmul.f32 %v12568_v39, %v11453_v38 }
 0x44f   :  { %v1273_v63 = vadd.f32 %v1249_v20, %v1125_v33  ;;  %v12633_v25 = vpop.xlane.xlu0 %1788  ;;  %v925_v3 = vrot.slane %v17076_v18, %v11228_v35  ;;  %v1221_v39 = vrot.slane %v17076_v18, %v11235_v41 }
 0x450   :  { %v1566_v47 = vadd.f32 %v1542_v27, %v1418_v46  ;;  %v2166_v9 = vmul.f32 %v11164_v58, %v653_v31  ;;  %v2194_v20 = vmul.f32 %v11176_v0, %v777_v19  ;;  %v1073_v46 = vrot.slane %v17076_v18, %v11233_v40  ;;  %v10457_v40 = vld [vmem:[#allocation2 + $0xb8] sm:$0xff] }
 0x451   :  { %v1421_v14 = vadd.f32 %v1397_v23, %v1273_v63  ;;  %v1690_v63 = vmul.f32 %v1657_v37, %v11453_v38  ;;  %v2246_v58 = vmul.f32 %v11166_v59, %v925_v3 }
 0x452   :  { %v12617_v49 = vpop.xlane.xlu1 %1782  ;;  %v2218_v30 = vadd.f32 %v2194_v20, %v2166_v9  ;;  %v2298_v35 = vmul.f32 %v11168_v60, %v1073_v46 }
 0x453   :  { %v12647_v33 = vpop.xlane.xlu0 %1785  ;;  %v1569_v24 = vadd.f32 %v1545_v6, %v1421_v14  ;;  %v1714_v23 = vadd.f32 %v1690_v63, %v1566_v47 }
 0x454   :  { %v2270_v6 = vadd.f32 %v2246_v58, %v2218_v30  ;;  %v2350_v30 = vmul.f32 %v11172_v62, %v1221_v39  ;;  %v2751_v62 = vsel %vm282_vm0, %v12554_v55, 0.0  ;;  %v2766_v55 = vsel %vm282_vm0, %v12625_v21, 0.0 }
 0x455   :  { %v1717_v1 = vadd.f32 %v1693_v7, %v1569_v24  ;;  %v1738_v14 = vmax.f32 %v1714_v23, 0.0  ;;  %v10456_v24 = vld [vmem:[#allocation2 + $0xa0] sm:$0xff]  ;;  %v1369_v7 = vrot.slane %v17076_v18, %v11256_v50 }
 0x456   :  { %v12631_v48 = vpop.permute.xlu1 %2690  ;;  %v2322_v59 = vadd.f32 %v2298_v35, %v2270_v6  ;;  %v1665_v35 = vrot.slane %v17076_v18, %v17024_v4  ;;  %v680_v4 = vmul.f32 %v653_v31, %v11324_v57 }
 0x457   :  { %v2693_v34 = vpop.permute.xlu0 %2692  ;;  %v1741_v27 = vmax.f32 %v1717_v1, 0.0  ;;  %v12670_v9 = vadd.f32 %v10456_v24, %v1738_v14  ;;  %v1517_v14 = vrot.slane %v17076_v18, %v11264_v54  ;;  %v2402_v50 = vmul.f32 %v17023_v17, %v1369_v7 }
 0x458   :  { %2722 = vrot.lane.b32.xlu1 %v12602_v15, %s10745_s20  ;;  %v2374_v23 = vadd.f32 %v2350_v30, %v2322_v59  ;;  %v2506_v17 = vmul.f32 %v11331_v56, %v1665_v35 }
 0x459   :  { %v12672_v20 = vadd.f32 %v10457_v40, %v1741_v27  ;;  %v1826_v41 = vsel %vm282_vm0, %v12670_v9, 0.0  ;;  %v2454_v24 = vmul.f32 %v17025_v43, %v1517_v14  ;;  %v2760_v40 = vsel %vm282_vm0, %v12599_v42, 0.0 }
 0x45a   :  { %v12642_v52 = vpop.permute.xlu1 %2694  ;;  %v2426_v27 = vadd.f32 %v2402_v50, %v2374_v23  ;;  %v804_v43 = vmul.f32 %v777_v19, %v11262_v53  ;;  %v2772_v42 = vsel %vm282_vm0, %v2693_v34, 0.0  ;;  %v1100_v34 = vmul.f32 %v1073_v46, %v11381_v5 }
 0x45b   :  { %v12663_v37 = vpop.xlane.xlu0 %1791  ;;  %v1835_v60 = vsel %vm282_vm0, %v12672_v20, 0.0  ;;  %v1544_v46 = vmul.f32 %v1517_v14, %v11436_v44  ;;  %v8809_v14 = vld [vmem:[#allocation10 + $0x1] ss:$0 sm:$0xff] }
 0x45c   :  { %2716 = vrot.lane.b32.xlu0 %v12615_v61, %s10745_s20  ;;  %v2478_v54 = vadd.f32 %v2454_v24, %v2426_v27  ;;  %v828_v56 = vadd.f32 %v804_v43, %v680_v4  ;;  %v17077_v27 = vld [vmem:[#allocation50_spill] sm:$0xff] }
 0x45e   :  { %v12651_v13 = vpop.xlane.xlu1 %1794 }
 0x45f   :  { %v2697_v63 = vpop.permute.xlu0 %2696 }
 0x460   :  { %v2778_v21 = vsel %vm282_vm0, %v2697_v63, 0.0 }
 0x462   :  { %v12661_v0 = vpop.permute.xlu1 %2698 }
 0x463   :  { %v12683_v58 = vpop.xlane.xlu0 %1797 }
 0x466   :  { %v12668_v47 = vpop.xlane.xlu1 %1800 }
 0x467   :  { %v2701_v59 = vpop.permute.xlu0 %2700 }
 0x468   :  { %v2784_v53 = vsel %vm282_vm0, %v2701_v59, 0.0 }
 0x46a   :  { %v12681_v1 = vpop.permute.xlu1 %2702 }
 0x46e   :  { %v12690_v6 = vpop.xlane.xlu1 %1806 }
 0x472   :  { %v12698_v30 = vpop.permute.xlu1 %2706 }
 0x476   :  { %v12706_v18 = vpop.xlane.xlu1 %1812 }
 0x47a   :  { %v2711_v57 = vpop.permute.xlu1 %2710 }
 0x47b   :  { %1827 = vadd.xlane.f32.xlu0 %v1826_v41  ;;  %v12702_v41 = vpop.xlane.xlu0 %1803 }
 0x47c   :  { %1836 = vadd.xlane.f32.xlu1 %v1835_v60  ;;  %v2530_v60 = vadd.f32 %v2506_v17, %v2478_v54 }
 0x47e   :  { %v2554_v23 = vmax.f32 %v2530_v60, 0.0 }
 0x47f   :  { %v2705_v50 = vpop.permute.xlu0 %2704 }
 0x480   :  { %2752 = vadd.xlane.f32.xlu1 %v2751_v62  ;;  %v952_v62 = vmul.f32 %v925_v3, %v11356_v11  ;;  %v12712_v24 = vadd.f32 %v17077_v27, %v2554_v23  ;;  %v12720_v11 = vpop.xlane.xlu1 %1818  ;;  %v1248_v3 = vmul.f32 %v1221_v39, %v11402_v45  ;;  %v2790_v63 = vsel %vm282_vm0, %v2705_v50, 0.0 }
 0x481   :  { %v1692_v39 = vmul.f32 %v1665_v35, %v11453_v38  ;;  %v2757_v38 = vsel %vm282_vm0, %v12584_v16, 0.0  ;;  %v2754_v35 = vsel %vm282_vm0, %v12577_v28, 0.0  ;;  %v2769_v27 = vsel %vm282_vm0, %v12631_v48, 0.0 }
 0x482   :  { %v2781_v16 = vsel %vm282_vm0, %v12661_v0, 0.0  ;;  %v2787_v28 = vsel %vm282_vm0, %v12681_v1, 0.0  ;;  %v1842_v48 = vmul.f32 0.03125, %v12591_v29 }
 0x483   :  { %v12714_v31 = vpop.xlane.xlu0 %1809 }
 0x484   :  { %2761 = vadd.xlane.f32.xlu1 %v2760_v40  ;;  %v976_v40 = vadd.f32 %v952_v62, %v828_v56  ;;  %v2715_v60 = vpop.permute.xlu1 %2714  ;;  %v2748_v62 = vsel %vm282_vm0, %v12542_v22, 0.0  ;;  %v2775_v22 = vsel %vm282_vm0, %v12642_v52, 0.0  ;;  %v2793_v52 = vsel %vm282_vm0, %v12698_v30, 0.0 }
 0x485   :  { %v2805_v43 = vsel %vm282_vm0, %v2715_v60, 0.0 }
 0x486   :  { %v1124_v19 = vadd.f32 %v1100_v34, %v976_v40  ;;  %v1840_v40 = vmul.f32 0.03125, %v12572_v32  ;;  %v1844_v32 = vmul.f32 0.03125, %v12617_v49 }
 0x487   :  { %v2709_v54 = vpop.permute.xlu0 %2708 }
 0x488   :  { %2767 = vadd.xlane.f32.xlu1 %v2766_v55  ;;  %v1272_v17 = vadd.f32 %v1248_v3, %v1124_v19  ;;  %v1396_v55 = vmul.f32 %v1369_v7, %v11288_v26  ;;  %v2796_v4 = vsel %vm282_vm0, %v2709_v54, 0.0  ;;  %v10458_v7 = vld [vmem:[#allocation2 + $0xb0] sm:$0xff]  ;;  %v17080_v3 = vld [vmem:[#allocation27_spill] sm:$0xff]  ;;  %v2799_v54 = vsel %vm282_vm0, %v2711_v57, 0.0 }
 0x489   :  { %v12763_v0 = vsub.f32 %v17080_v3, %v1842_v48  ;;  %v17094_v3 = vld [vmem:[#allocation60_spill] sm:$0xff] }
 0x48a   :  { %v1420_v5 = vadd.f32 %v1396_v55, %v1272_v17  ;;  %v17082_v17 = vld [vmem:[#allocation56_spill] sm:$0xff] }
 0x48b   :  { %17081 = vst [vmem:[#allocation51_spill] sm:$0xff] %v12763_v0  ;;  %v12772_v29 = vsub.f32 %v17082_v17, %v1844_v32  ;;  %v1890_v30 = vmul.f32 %v12763_v0, %v12763_v0 }
 0x48c   :  { %2773 = vadd.xlane.f32.xlu1 %v2772_v42  ;;  %v1568_v45 = vadd.f32 %v1544_v46, %v1420_v5 }
 0x48d   :  { %17083 = vst [vmem:[#allocation44_spill] sm:$0xff] %v12772_v29  ;;  %v1920_v5 = vsel %vm282_vm0, %v1890_v30, 0.0  ;;  %v1892_v57 = vmul.f32 %v12772_v29, %v12772_v29 }
 0x48e   :  { %v1716_v56 = vadd.f32 %v1692_v39, %v1568_v45 }
 0x490   :  { %2779 = vadd.xlane.f32.xlu1 %v2778_v21  ;;  %v1740_v26 = vmax.f32 %v1716_v56, 0.0  ;;  %v2763_v21 = vsel %vm282_vm0, %v12606_v2, 0.0  ;;  %v17078_v2 = vld [vmem:[#allocation74_spill] sm:$0xff]  ;;  %v1839_v56 = vmul.f32 0.03125, %v12560_v8 }
 0x491   :  { %2720 = vrot.lane.b32.xlu0 %v12712_v24, %s10745_s20 }
 0x492   :  { %v12732_v50 = vadd.f32 %v10458_v7, %v1740_v26 }
 0x494   :  { %2785 = vadd.xlane.f32.xlu1 %v2784_v53  ;;  %v1832_v44 = vsel %vm282_vm0, %v12732_v50, 0.0  ;;  %v12757_v53 = vsub.f32 %v17078_v2, %v1840_v40  ;;  %v17092_v2 = vld [vmem:[#allocation54_spill] sm:$0xff] }
 0x496   :  { %17079 = vst [vmem:[#allocation68_spill] sm:$0xff] %v12757_v53 }
 0x498   :  { %2791 = vadd.xlane.f32.xlu1 %v2790_v63  ;;  %v1888_v63 = vmul.f32 %v12757_v53, %v12757_v53  ;;  %v17129_v53 = vld [vmem:[#allocation65_spill] sm:$0xff] }
 0x49a   :  { %v1914_v55 = vsel %vm282_vm0, %v1888_v63, 0.0 }
 0x49c   :  { %2797 = vadd.xlane.f32.xlu1 %v2796_v4 }
 0x49e   :  { %v12752_v34 = vpop.xlane.xlu0 %1815 }
 0x49f   :  { %v12727_v59 = vpop.xlane.xlu1 %1824 }
 0x4a0   :  { %2806 = vadd.xlane.f32.xlu1 %v2805_v43  ;;  %v1926_v43 = vsel %vm282_vm0, %v1892_v57, 0.0 }
 0x4a2   :  { %v2713_v19 = vpop.permute.xlu0 %2712 }
 0x4a3   :  { %v2719_v42 = vpop.permute.xlu1 %2718  ;;  %v2802_v49 = vsel %vm282_vm0, %v2713_v19, 0.0  ;;  %v1845_v19 = vmul.f32 0.03125, %v12647_v33  ;;  %v1847_v33 = vmul.f32 0.03125, %v12663_v37 }
 0x4a4   :  { %v2811_v23 = vsel %vm282_vm0, %v2719_v42, 0.0  ;;  %v8808_v42 = vld [vmem:[#allocation8 + $0x1] ss:$0 sm:$0xff] }
 0x4a5   :  { %2812 = vadd.xlane.f32.xlu1 %v2811_v23  ;;  %v1846_v23 = vmul.f32 0.03125, %v12633_v25  ;;  %v1850_v25 = vmul.f32 0.03125, %v12668_v47 }
 0x4a7   :  { %v12792_v7 = vsub.f32 %v11921_v36, %v1846_v23  ;;  %v17088_v36 = vld [vmem:[#allocation77_spill] sm:$0xff] }
 0x4a9   :  { %17084 = vst [vmem:[#allocation71_spill] sm:$0xff] %v12792_v7 }
 0x4b0   :  { %1833 = vadd.xlane.f32.xlu0 %v1832_v44  ;;  %v1848_v44 = vmul.f32 0.03125, %v12651_v13  ;;  %v1843_v13 = vmul.f32 0.03125, %v12612_v10 }
 0x4b2   :  { %v12820_v48 = vsub.f32 %v17092_v2, %v1843_v13  ;;  %v17104_v13 = vld [vmem:[#allocation59_spill] sm:$0xff] }
 0x4b4   :  { %2749 = vadd.xlane.f32.xlu0 %v2748_v62  ;;  %17093 = vst [vmem:[#allocation50_spill] sm:$0xff] %v12820_v48  ;;  %v1891_v30 = vmul.f32 %v12820_v48, %v12820_v48 }
 0x4b6   :  { %3193 = vrot.lane.b32.xlu1 %v8809_v14, %s10738_s29  ;;  %v17085_v14 = vld [vmem:[#allocation73_spill] sm:$0xff]  ;;  %v1923_v37 = vsel %vm282_vm0, %v1891_v30, 0.0 }
 0x4b7   :  { %v12796_v62 = vsub.f32 %v17085_v14, %v1839_v56  ;;  %v1851_v56 = vmul.f32 0.03125, %v12702_v41 }
 0x4b8   :  { %2758 = vadd.xlane.f32.xlu0 %v2757_v38  ;;  %v1841_v38 = vmul.f32 0.03125, %v12586_v12 }
 0x4b9   :  { %17086 = vst [vmem:[#allocation70_spill] sm:$0xff] %v12796_v62  ;;  %v1887_v12 = vmul.f32 %v12796_v62, %v12796_v62 }
 0x4bb   :  { %v1911_v10 = vsel %vm282_vm0, %v1887_v12, 0.0 }
 0x4bc   :  { %2755 = vadd.xlane.f32.xlu0 %v2754_v35 }
 0x4c0   :  { %2764 = vadd.xlane.f32.xlu0 %v2763_v21  ;;  %v12800_v21 = vsub.f32 %v11934_v51, %v1848_v44  ;;  %v1852_v51 = vmul.f32 0.03125, %v12690_v6 }
 0x4c2   :  { %17087 = vst [vmem:[#allocation53_spill] sm:$0xff] %v12800_v21  ;;  %v12827_v32 = vsub.f32 %v17094_v3, %v1852_v51 }
 0x4c4   :  { %2770 = vadd.xlane.f32.xlu0 %v2769_v27  ;;  %v1894_v27 = vmul.f32 %v12792_v7, %v12792_v7  ;;  %17095 = vst [vmem:[#allocation74_spill] sm:$0xff] %v12827_v32 }
 0x4c6   :  { %v1932_v47 = vsel %vm282_vm0, %v1894_v27, 0.0 }
 0x4c8   :  { %2776 = vadd.xlane.f32.xlu0 %v2775_v22  ;;  %v12807_v22 = vsub.f32 %v17088_v36, %v1841_v38  ;;  %v17102_v38 = vld [vmem:[#allocation36_spill] sm:$0xff] }
 0x4ca   :  { %17089 = vst [vmem:[#allocation46_spill] sm:$0xff] %v12807_v22 }
 0x4cc   :  { %2782 = vadd.xlane.f32.xlu0 %v2781_v16  ;;  %v17090_v16 = vld [vmem:[#allocation52_spill] sm:$0xff] }
 0x4cd   :  { %v12813_v40 = vsub.f32 %v17090_v16, %v1850_v25 }
 0x4cf   :  { %17091 = vst [vmem:[#allocation72_spill] sm:$0xff] %v12813_v40  ;;  %v1898_v63 = vmul.f32 %v12813_v40, %v12813_v40 }
 0x4d0   :  { %2788 = vadd.xlane.f32.xlu0 %v2787_v28  ;;  %v1896_v28 = vmul.f32 %v12800_v21, %v12800_v21 }
 0x4d2   :  { %v1938_v6 = vsel %vm282_vm0, %v1896_v28, 0.0 }
 0x4d3   :  { %v12768_v1 = vpop.xlane.xlu0 %1821 }
 0x4d4   :  { %2794 = vadd.xlane.f32.xlu0 %v2793_v52  ;;  %v12777_v60 = vpop.xlane.xlu1 %1830  ;;  %v1889_v52 = vmul.f32 %v12807_v22, %v12807_v22 }
 0x4d7   :  { %v2717_v4 = vpop.permute.xlu0 %2716 }
 0x4d8   :  { %2800 = vadd.xlane.f32.xlu0 %v2799_v54  ;;  %v2808_v46 = vsel %vm282_vm0, %v2717_v4, 0.0  ;;  %v2723_v45 = vpop.permute.xlu1 %2722  ;;  %v17096_v54 = vld [vmem:[#allocation37_spill] sm:$0xff]  ;;  %v1900_v4 = vmul.f32 %v12827_v32, %v12827_v32 }
 0x4d9   :  { %v2817_v39 = vsel %vm282_vm0, %v2723_v45, 0.0  ;;  %v12833_v17 = vsub.f32 %v17096_v54, %v1845_v19 }
 0x4da   :  { %1915 = vadd.xlane.f32.xlu1 %v1914_v55  ;;  %v1917_v55 = vsel %vm282_vm0, %v1889_v52, 0.0  ;;  %v17105_v52 = vld [vmem:[#allocation31_spill] sm:$0xff] }
 0x4db   :  { %17097 = vst [vmem:[#allocation27_spill] sm:$0xff] %v12833_v17  ;;  %v1893_v45 = vmul.f32 %v12833_v17, %v12833_v17 }
 0x4dc   :  { %2803 = vadd.xlane.f32.xlu0 %v2802_v49  ;;  %v1944_v49 = vsel %vm282_vm0, %v1898_v63, 0.0 }
 0x4dd   :  { %v1929_v44 = vsel %vm282_vm0, %v1893_v45, 0.0 }
 0x4de   :  { %1921 = vadd.xlane.f32.xlu1 %v1920_v5  ;;  %v17098_v5 = vld [vmem:[#allocation29_spill] sm:$0xff] }
 0x4df   :  { %v12843_v57 = vsub.f32 %v17098_v5, %v1847_v33  ;;  %v17106_v33 = vld [vmem:[#allocation35_spill] sm:$0xff] }
 0x4e0   :  { %2809 = vadd.xlane.f32.xlu0 %v2808_v46  ;;  %v1849_v46 = vmul.f32 0.03125, %v12683_v58 }
 0x4e1   :  { %17099 = vst [vmem:[#allocation56_spill] sm:$0xff] %v12843_v57  ;;  %v1895_v58 = vmul.f32 %v12843_v57, %v12843_v57 }
 0x4e2   :  { %1927 = vadd.xlane.f32.xlu1 %v1926_v43 }
 0x4e3   :  { %v1935_v25 = vsel %vm282_vm0, %v1895_v58, 0.0 }
 0x4e6   :  { %2818 = vadd.xlane.f32.xlu1 %v2817_v39  ;;  %v1950_v39 = vsel %vm282_vm0, %v1900_v4, 0.0 }
 0x4f6   :  { %3161 = vrot.lane.b32.xlu0 %v8808_v42, %s10738_s29  ;;  %v17100_v42 = vld [vmem:[#allocation34_spill] sm:$0xff] }
 0x4f7   :  { %v12853_v23 = vsub.f32 %v17100_v42, %v1849_v46  ;;  %v17107_v46 = vld [vmem:[#allocation62_spill] sm:$0xff] }
 0x4f9   :  { %17101 = vst [vmem:[#allocation73_spill] sm:$0xff] %v12853_v23 }
 0x508   :  { %v12789_v26 = vpop.xlane.xlu0 %1827 }
 0x509   :  { %v12846_v43 = vpop.xlane.xlu1 %1836 }
 0x50c   :  { %v2721_v35 = vpop.permute.xlu0 %2720 }
 0x50d   :  { %v2814_v8 = vsel %vm282_vm0, %v2721_v35, 0.0  ;;  %v2753_v14 = vpop.xlane.xlu1 %2752  ;;  %v12860_v35 = vsub.f32 %v17102_v38, %v1851_v56 }
 0x50e   :  { %2815 = vadd.xlane.f32.xlu1 %v2814_v8  ;;  %v1897_v8 = vmul.f32 %v12853_v23, %v12853_v23  ;;  %v2821_v27 = vmul.f32 0.03125, %v2753_v14 }
 0x50f   :  { %17103 = vst [vmem:[#allocation77_spill] sm:$0xff] %v12860_v35  ;;  %v1899_v41 = vmul.f32 %v12860_v35, %v12860_v35 }
 0x510   :  { %v1941_v36 = vsel %vm282_vm0, %v1897_v8, 0.0  ;;  %v12869_v12 = vsub.f32 %v17104_v13, %v2821_v27 }
 0x511   :  { %v2762_v16 = vpop.xlane.xlu1 %2761  ;;  %v1947_v51 = vsel %vm282_vm0, %v1899_v41, 0.0 }
 0x512   :  { %1933 = vadd.xlane.f32.xlu1 %v1932_v47  ;;  %v2869_v47 = vmul.f32 %v12869_v12, %v12869_v12  ;;  %v2824_v19 = vmul.f32 0.03125, %v2762_v16 }
 0x514   :  { %v12876_v3 = vsub.f32 %v17105_v52, %v2824_v19 }
 0x515   :  { %1912 = vadd.xlane.f32.xlu0 %v1911_v10  ;;  %v2768_v28 = vpop.xlane.xlu1 %2767 }
 0x516   :  { %1939 = vadd.xlane.f32.xlu1 %v1938_v6  ;;  %v2826_v6 = vmul.f32 0.03125, %v2768_v28  ;;  %v2872_v54 = vmul.f32 %v12876_v3, %v12876_v3  ;;  %v17111_v28 = vld [vmem:[#allocation76_spill] sm:$0xff] }
 0x519   :  { %1918 = vadd.xlane.f32.xlu0 %v1917_v55  ;;  %v2774_v2 = vpop.xlane.xlu1 %2773  ;;  %v12883_v55 = vsub.f32 %v17106_v33, %v2826_v6 }
 0x51a   :  { %1945 = vadd.xlane.f32.xlu1 %v1944_v49  ;;  %v2828_v30 = vmul.f32 0.03125, %v2774_v2 }
 0x51b   :  { %v2874_v45 = vmul.f32 %v12883_v55, %v12883_v55 }
 0x51d   :  { %1924 = vadd.xlane.f32.xlu0 %v1923_v37  ;;  %v2780_v10 = vpop.xlane.xlu1 %2779 }
 0x51e   :  { %1951 = vadd.xlane.f32.xlu1 %v1950_v39  ;;  %v17108_v39 = vld [vmem:[#allocation57_spill] sm:$0xff]  ;;  %v2830_v56 = vmul.f32 0.03125, %v2780_v10 }
 0x51f   :  { %v12892_v42 = vsub.f32 %v17108_v39, %v2828_v30  ;;  %v17112_v10 = vld [vmem:[#allocation41_spill] sm:$0xff] }
 0x521   :  { %1930 = vadd.xlane.f32.xlu0 %v1929_v44  ;;  %v2786_v4 = vpop.xlane.xlu1 %2785  ;;  %v2876_v27 = vmul.f32 %v12892_v42, %v12892_v42 }
 0x522   :  { %v2832_v13 = vmul.f32 0.03125, %v2786_v4  ;;  %v17113_v4 = vld [vmem:[#allocation33_spill] sm:$0xff] }
 0x524   :  { %v12916_v52 = vsub.f32 %v17112_v10, %v2832_v13 }
 0x525   :  { %1936 = vadd.xlane.f32.xlu0 %v1935_v25  ;;  %v2792_v38 = vpop.xlane.xlu1 %2791  ;;  %v17109_v25 = vld [vmem:[#allocation75_spill] sm:$0xff] }
 0x526   :  { %v2834_v6 = vmul.f32 0.03125, %v2792_v38  ;;  %v17115_v38 = vld [vmem:[#allocation55_spill] sm:$0xff] }
 0x529   :  { %1942 = vadd.xlane.f32.xlu0 %v1941_v36  ;;  %v17110_v36 = vld [vmem:[#allocation39_spill] sm:$0xff]  ;;  %v2798_v33 = vpop.xlane.xlu1 %2797 }
 0x52a   :  { %v12904_v41 = vsub.f32 %v17110_v36, %v2830_v56  ;;  %v2836_v56 = vmul.f32 0.03125, %v2798_v33  ;;  %v17116_v36 = vld [vmem:[#allocation45_spill] sm:$0xff] }
 0x52c   :  { %v2878_v19 = vmul.f32 %v12904_v41, %v12904_v41  ;;  %v12940_v13 = vsub.f32 %v17116_v36, %v2836_v56 }
 0x52d   :  { %1948 = vadd.xlane.f32.xlu0 %v1947_v51 }
 0x52f   :  { %2918 = vrot.lane.b32.xlu1 %v2869_v47, %s10745_s20 }
 0x53d   :  { %v12878_v63 = vpop.xlane.xlu0 %1833 }
 0x541   :  { %v2750_v49 = vpop.xlane.xlu0 %2749 }
 0x542   :  { %v2820_v5 = vmul.f32 0.03125, %v2750_v49 }
 0x543   :  { %2924 = vrot.lane.b32.xlu0 %v2872_v54, %s10745_s20 }
 0x544   :  { %v12887_v37 = vsub.f32 %v17107_v46, %v2820_v5  ;;  %v2880_v46 = vmul.f32 %v12916_v52, %v12916_v52 }
 0x545   :  { %v2759_v44 = vpop.xlane.xlu0 %2758 }
 0x546   :  { %v2868_v58 = vmul.f32 %v12887_v37, %v12887_v37  ;;  %v2823_v14 = vmul.f32 0.03125, %v2759_v44 }
 0x547   :  { %2928 = vrot.lane.b32.xlu0 %v2874_v45, %s10745_s20  ;;  %v17114_v45 = vld [vmem:[#allocation43_spill] sm:$0xff] }
 0x548   :  { %v12898_v8 = vsub.f32 %v17109_v25, %v2823_v14  ;;  %2916 = vrot.lane.b32.xlu1 %v2868_v58, %s10745_s20  ;;  %v12928_v39 = vsub.f32 %v17114_v45, %v2834_v6  ;;  %v2884_v6 = vmul.f32 %v12940_v13, %v12940_v13 }
 0x549   :  { %v2756_v16 = vpop.xlane.xlu0 %2755 }
 0x54a   :  { %v2871_v51 = vmul.f32 %v12898_v8, %v12898_v8  ;;  %v2822_v47 = vmul.f32 0.03125, %v2756_v16 }
 0x54b   :  { %2932 = vrot.lane.b32.xlu0 %v2876_v27, %s10745_s20  ;;  %v2882_v27 = vmul.f32 %v12928_v39, %v12928_v39 }
 0x54c   :  { %v12910_v2 = vsub.f32 %v17111_v28, %v2822_v47  ;;  %2922 = vrot.lane.b32.xlu1 %v2871_v51, %s10745_s20  ;;  %v2807_v28 = vpop.xlane.xlu1 %2806 }
 0x54d   :  { %v2765_v54 = vpop.xlane.xlu0 %2764 }
 0x54e   :  { %v2870_v30 = vmul.f32 %v12910_v2, %v12910_v2  ;;  %v2825_v49 = vmul.f32 0.03125, %v2765_v54 }
 0x54f   :  { %2936 = vrot.lane.b32.xlu0 %v2878_v19, %s10745_s20  ;;  %v17117_v19 = vld [vmem:[#allocation28_spill] sm:$0xff] }
 0x550   :  { %v12922_v5 = vsub.f32 %v17113_v4, %v2825_v49  ;;  %2920 = vrot.lane.b32.xlu1 %v2870_v30, %s10745_s20  ;;  %v17118_v49 = vld [vmem:[#allocation32_spill] sm:$0xff]  ;;  %v2813_v45 = vpop.xlane.xlu1 %2812 }
 0x551   :  { %v2771_v44 = vpop.xlane.xlu0 %2770 }
 0x552   :  { %v2873_v58 = vmul.f32 %v12922_v5, %v12922_v5  ;;  %v2827_v14 = vmul.f32 0.03125, %v2771_v44 }
 0x553   :  { %2940 = vrot.lane.b32.xlu0 %v2880_v46, %s10745_s20 }
 0x554   :  { %v12934_v25 = vsub.f32 %v17115_v38, %v2827_v14  ;;  %2926 = vrot.lane.b32.xlu1 %v2873_v58, %s10745_s20  ;;  %v17119_v58 = vld [vmem:[#allocation30_spill] sm:$0xff] }
 0x555   :  { %v2777_v16 = vpop.xlane.xlu0 %2776 }
 0x556   :  { %v2875_v51 = vmul.f32 %v12934_v25, %v12934_v25  ;;  %v2829_v47 = vmul.f32 0.03125, %v2777_v16 }
 0x557   :  { %2944 = vrot.lane.b32.xlu0 %v2882_v27, %s10745_s20  ;;  %v12964_v27 = vpop.permute.xlu1 %3193 }
 0x558   :  { %v12946_v10 = vsub.f32 %v17117_v19, %v2829_v47  ;;  %2930 = vrot.lane.b32.xlu1 %v2875_v51, %s10745_s20  ;;  %v17120_v51 = vld [vmem:[#allocation58_spill] sm:$0xff] }
 0x559   :  { %v2783_v54 = vpop.xlane.xlu0 %2782 }
 0x55a   :  { %v2877_v33 = vmul.f32 %v12946_v10, %v12946_v10  ;;  %v2831_v30 = vmul.f32 0.03125, %v2783_v54 }
 0x55b   :  { %2948 = vrot.lane.b32.xlu0 %v2884_v6, %s10745_s20  ;;  %v2839_v6 = vmul.f32 0.03125, %v2807_v28 }
 0x55c   :  { %v12955_v4 = vsub.f32 %v17118_v49, %v2831_v30  ;;  %2934 = vrot.lane.b32.xlu1 %v2877_v33, %s10745_s20  ;;  %v17121_v49 = vld [vmem:[#allocation61_spill] sm:$0xff] }
 0x55d   :  { %v2789_v46 = vpop.xlane.xlu0 %2788 }
 0x55e   :  { %v2879_v56 = vmul.f32 %v12955_v4, %v12955_v4  ;;  %v2833_v44 = vmul.f32 0.03125, %v2789_v46 }
 0x560   :  { %v12961_v14 = vsub.f32 %v17119_v58, %v2833_v44  ;;  %2938 = vrot.lane.b32.xlu1 %v2879_v56, %s10745_s20  ;;  %v17122_v44 = vld [vmem:[#allocation64_spill] sm:$0xff] }
 0x561   :  { %v2795_v38 = vpop.xlane.xlu0 %2794  ;;  %v12981_v58 = vsub.f32 %v17122_v44, %v2839_v6 }
 0x562   :  { %v2881_v36 = vmul.f32 %v12961_v14, %v12961_v14  ;;  %v2835_v16 = vmul.f32 0.03125, %v2795_v38  ;;  %v2841_v38 = vmul.f32 0.03125, %v2813_v45 }
 0x564   :  { %v12969_v47 = vsub.f32 %v17120_v51, %v2835_v16  ;;  %2942 = vrot.lane.b32.xlu1 %v2881_v36, %s10745_s20  ;;  %v17123_v51 = vld [vmem:[#allocation48_spill] sm:$0xff] }
 0x565   :  { %v2801_v19 = vpop.xlane.xlu0 %2800 }
 0x566   :  { %v2883_v54 = vmul.f32 %v12969_v47, %v12969_v47  ;;  %v2837_v33 = vmul.f32 0.03125, %v2801_v19 }
 0x567   :  { %v12974_v30 = vpop.xlane.xlu1 %1915 }
 0x568   :  { %v12977_v46 = vsub.f32 %v17121_v49, %v2837_v33  ;;  %2946 = vrot.lane.b32.xlu1 %v2883_v54, %s10745_s20  ;;  %v2887_v54 = vmul.f32 %v12981_v58, %v12981_v58  ;;  %v17124_v49 = vld [vmem:[#allocation66_spill] sm:$0xff] }
 0x569   :  { %v2804_v56 = vpop.xlane.xlu0 %2803  ;;  %v12994_v32 = vsub.f32 %v17124_v49, %v2841_v38 }
 0x56a   :  { %v2885_v36 = vmul.f32 %v12977_v46, %v12977_v46  ;;  %v2838_v28 = vmul.f32 0.03125, %v2804_v56 }
 0x56b   :  { %v12985_v16 = vpop.xlane.xlu1 %1921 }
 0x56c   :  { %v12988_v19 = vsub.f32 %v17123_v51, %v2838_v28  ;;  %2950 = vrot.lane.b32.xlu1 %v2885_v36, %s10745_s20  ;;  %v2889_v36 = vmul.f32 %v12994_v32, %v12994_v32 }
 0x56d   :  { %v2810_v33 = vpop.xlane.xlu0 %2809 }
 0x56e   :  { %v2886_v45 = vmul.f32 %v12988_v19, %v12988_v19  ;;  %v2840_v6 = vmul.f32 0.03125, %v2810_v33 }
 0x56f   :  { %v12998_v44 = vpop.xlane.xlu1 %1927 }
 0x570   :  { %v13001_v56 = vsub.f32 %v12615_v61, %v2840_v6  ;;  %2952 = vrot.lane.b32.xlu0 %v2886_v45, %s10745_s20  ;;  %2954 = vrot.lane.b32.xlu1 %v2887_v54, %s10745_s20 }
 0x571   :  { %v13017_v45 = vpop.permute.xlu0 %3161 }
 0x572   :  { %v2888_v38 = vmul.f32 %v13001_v56, %v13001_v56 }
 0x573   :  { %v2819_v28 = vpop.xlane.xlu1 %2818 }
 0x574   :  { %v2843_v51 = vmul.f32 0.03125, %v2819_v28  ;;  %2956 = vrot.lane.b32.xlu0 %v2888_v38, %s10745_s20  ;;  %2958 = vrot.lane.b32.xlu1 %v2889_v36, %s10745_s20 }
 0x576   :  { %v13012_v33 = vsub.f32 %v12602_v15, %v2843_v51 }
 0x578   :  { %v2891_v61 = vmul.f32 %v13012_v33, %v13012_v33 }
 0x57a   :  { %2962 = vrot.lane.b32.xlu1 %v2891_v61, %s10745_s20 }
 0x59b   :  { %v2816_v54 = vpop.xlane.xlu1 %2815 }
 0x59c   :  { %v2842_v49 = vmul.f32 0.03125, %v2816_v54 }
 0x59e   :  { %v13020_v6 = vsub.f32 %v12712_v24, %v2842_v49 }
 0x59f   :  { %v13022_v28 = vpop.xlane.xlu1 %1933 }
 0x5a0   :  { %v2890_v36 = vmul.f32 %v13020_v6, %v13020_v6 }
 0x5a2   :  { %v13026_v38 = vpop.xlane.xlu0 %1912  ;;  %2960 = vrot.lane.b32.xlu0 %v2890_v36, %s10745_s20 }
 0x5a3   :  { %v13029_v15 = vpop.xlane.xlu1 %1939 }
 0x5a6   :  { %v13031_v51 = vpop.xlane.xlu0 %1918 }
 0x5a7   :  { %v13033_v61 = vpop.xlane.xlu1 %1945 }
 0x5a8   :  { %17125 = vst [vmem:[#allocation52_spill] sm:$0xff] %v13033_v61 }
 0x5aa   :  { %v13035_v54 = vpop.xlane.xlu0 %1924 }
 0x5ab   :  { %v13037_v35 = vpop.xlane.xlu1 %1951 }
 0x5ac   :  { %17126 = vst [vmem:[#allocation54_spill] sm:$0xff] %v13037_v35 }
 0x5ae   :  { %v13039_v24 = vpop.xlane.xlu0 %1930 }
 0x5af   :  { %v2919_v49 = vpop.permute.xlu1 %2918 }
 0x5b0   :  { %v2991_v40 = vsel %vm282_vm0, %v2919_v49, 0.0 }
 0x5b1   :  { %2992 = vadd.xlane.f32.xlu1 %v2991_v40 }
 0x5b2   :  { %v13042_v23 = vpop.xlane.xlu0 %1936 }
 0x5b6   :  { %v13044_v21 = vpop.xlane.xlu0 %1942 }
 0x5ba   :  { %v13046_v36 = vpop.xlane.xlu0 %1948  ;;  %v2917_v57 = vpop.permute.xlu1 %2916 }
 0x5bb   :  { %17127 = vst [vmem:[#allocation60_spill] sm:$0xff] %v13046_v36  ;;  %v2988_v48 = vsel %vm282_vm0, %v2917_v57, 0.0 }
 0x5be   :  { %v2925_v17 = vpop.permute.xlu0 %2924  ;;  %v2923_v7 = vpop.permute.xlu1 %2922 }
 0x5bf   :  { %v2997_v29 = vsel %vm282_vm0, %v2923_v7, 0.0  ;;  %v3000_v36 = vsel %vm282_vm0, %v2925_v17, 0.0 }
 0x5c0   :  { %2998 = vadd.xlane.f32.xlu1 %v2997_v29 }
 0x5c1   :  { %2989 = vadd.xlane.f32.xlu0 %v2988_v48 }
 0x5c2   :  { %v2929_v22 = vpop.permute.xlu0 %2928  ;;  %v2921_v0 = vpop.permute.xlu1 %2920 }
 0x5c3   :  { %v2994_v49 = vsel %vm282_vm0, %v2921_v0, 0.0  ;;  %v3006_v48 = vsel %vm282_vm0, %v2929_v22, 0.0 }
 0x5c5   :  { %2995 = vadd.xlane.f32.xlu0 %v2994_v49 }
 0x5c6   :  { %v2933_v40 = vpop.permute.xlu0 %2932  ;;  %v2927_v35 = vpop.permute.xlu1 %2926 }
 0x5c7   :  { %v3003_v61 = vsel %vm282_vm0, %v2927_v35, 0.0  ;;  %v3012_v49 = vsel %vm282_vm0, %v2933_v40, 0.0 }
 0x5c8   :  { %3004 = vadd.xlane.f32.xlu1 %v3003_v61 }
 0x5c9   :  { %3001 = vadd.xlane.f32.xlu0 %v3000_v36 }
 0x5ca   :  { %v2931_v62 = vpop.permute.xlu1 %2930  ;;  %v2937_v29 = vpop.permute.xlu0 %2936 }
 0x5cb   :  { %v3009_v7 = vsel %vm282_vm0, %v2931_v62, 0.0  ;;  %v3018_v36 = vsel %vm282_vm0, %v2937_v29, 0.0 }
 0x5cc   :  { %3010 = vadd.xlane.f32.xlu1 %v3009_v7 }
 0x5cd   :  { %3007 = vadd.xlane.f32.xlu0 %v3006_v48 }
 0x5ce   :  { %v2935_v57 = vpop.permute.xlu1 %2934  ;;  %v2941_v35 = vpop.permute.xlu0 %2940 }
 0x5cf   :  { %v3015_v0 = vsel %vm282_vm0, %v2935_v57, 0.0  ;;  %v3024_v48 = vsel %vm282_vm0, %v2941_v35, 0.0  ;;  %v1854_v35 = vmul.f32 0.03125, %v12706_v18 }
 0x5d0   :  { %3016 = vadd.xlane.f32.xlu1 %v3015_v0 }
 0x5d1   :  { %3013 = vadd.xlane.f32.xlu0 %v3012_v49 }
 0x5d2   :  { %v2939_v61 = vpop.permute.xlu1 %2938  ;;  %v2945_v22 = vpop.permute.xlu0 %2944 }
 0x5d3   :  { %v3021_v17 = vsel %vm282_vm0, %v2939_v61, 0.0  ;;  %v3030_v0 = vsel %vm282_vm0, %v2945_v22, 0.0 }
 0x5d4   :  { %3022 = vadd.xlane.f32.xlu1 %v3021_v17 }
 0x5d5   :  { %3019 = vadd.xlane.f32.xlu0 %v3018_v36 }
 0x5d6   :  { %v2943_v62 = vpop.permute.xlu1 %2942  ;;  %v2949_v49 = vpop.permute.xlu0 %2948 }
 0x5d7   :  { %v3027_v7 = vsel %vm282_vm0, %v2943_v62, 0.0 }
 0x5d8   :  { %3028 = vadd.xlane.f32.xlu1 %v3027_v7  ;;  %v3036_v7 = vsel %vm282_vm0, %v2949_v49, 0.0 }
 0x5d9   :  { %3025 = vadd.xlane.f32.xlu0 %v3024_v48 }
 0x5da   :  { %v2947_v57 = vpop.permute.xlu1 %2946 }
 0x5db   :  { %v3033_v40 = vsel %vm282_vm0, %v2947_v57, 0.0 }
 0x5dc   :  { %3034 = vadd.xlane.f32.xlu1 %v3033_v40  ;;  %v17128_v40 = vld [vmem:[#allocation63_spill] sm:$0xff] }
 0x5dd   :  { %3031 = vadd.xlane.f32.xlu0 %v3030_v0  ;;  %v13070_v0 = vsub.f32 %v17128_v40, %v1854_v35  ;;  %v17130_v35 = vld [vmem:[#allocation42_spill] sm:$0xff]  ;;  %v1860_v40 = vmul.f32 0.03125, %v12777_v60 }
 0x5de   :  { %v2951_v61 = vpop.permute.xlu1 %2950 }
 0x5df   :  { %v3039_v29 = vsel %vm282_vm0, %v2951_v61, 0.0  ;;  %v1856_v61 = vmul.f32 0.03125, %v12720_v11  ;;  %v1858_v11 = vmul.f32 0.03125, %v12727_v59  ;;  %v17132_v59 = vld [vmem:[#allocation69_spill] sm:$0xff] }
 0x5e0   :  { %3040 = vadd.xlane.f32.xlu1 %v3039_v29 }
 0x5e1   :  { %v13075_v18 = vsub.f32 %v17129_v53, %v1856_v61 }
 0x5e2   :  { %v2953_v17 = vpop.permute.xlu0 %2952  ;;  %v2955_v36 = vpop.permute.xlu1 %2954 }
 0x5e3   :  { %v3042_v62 = vsel %vm282_vm0, %v2953_v17, 0.0  ;;  %v3045_v57 = vsel %vm282_vm0, %v2955_v36, 0.0  ;;  %v1904_v53 = vmul.f32 %v13075_v18, %v13075_v18 }
 0x5e4   :  { %3043 = vadd.xlane.f32.xlu0 %v3042_v62  ;;  %3037 = vadd.xlane.f32.xlu1 %v3036_v7  ;;  %v1857_v62 = vmul.f32 0.03125, %v12768_v1  ;;  %v1902_v7 = vmul.f32 %v13070_v0, %v13070_v0 }
 0x5e5   :  { %v1962_v61 = vsel %vm282_vm0, %v1904_v53, 0.0  ;;  %v1853_v53 = vmul.f32 0.03125, %v12714_v31  ;;  %v1862_v31 = vmul.f32 0.03125, %v12846_v43 }
 0x5e6   :  { %v2959_v48 = vpop.permute.xlu1 %2958  ;;  %v2957_v29 = vpop.permute.xlu0 %2956 }
 0x5e7   :  { %v3051_v22 = vsel %vm282_vm0, %v2959_v48, 0.0  ;;  %v3048_v17 = vsel %vm282_vm0, %v2957_v29, 0.0  ;;  %v13083_v48 = vsub.f32 %v17130_v35, %v1857_v62 }
 0x5e8   :  { %3046 = vadd.xlane.f32.xlu1 %v3045_v57  ;;  %3052 = vadd.xlane.f32.xlu0 %v3051_v22  ;;  %v1956_v57 = vsel %vm282_vm0, %v1902_v7, 0.0  ;;  %v17131_v22 = vld [vmem:[#allocation67_spill] sm:$0xff] }
 0x5e9   :  { %v13089_v1 = vsub.f32 %v17131_v22, %v1858_v11  ;;  %v1905_v29 = vmul.f32 %v13083_v48, %v13083_v48  ;;  %v17133_v22 = vld [vmem:[#allocation38_spill] sm:$0xff] }
 0x5eb   :  { %v1965_v62 = vsel %vm282_vm0, %v1905_v29, 0.0  ;;  %v17134_v29 = vld [vmem:[#allocation40_spill] sm:$0xff] }
 0x5ec   :  { %v2963_v49 = vpop.permute.xlu1 %2962  ;;  %3049 = vadd.xlane.f32.xlu0 %v3048_v17  ;;  %v13096_v17 = vsub.f32 %v17132_v59, %v1860_v40  ;;  %v1855_v40 = vmul.f32 0.03125, %v12752_v34 }
 0x5ed   :  { %v3057_v36 = vsel %vm282_vm0, %v2963_v49, 0.0  ;;  %v1861_v49 = vmul.f32 0.03125, %v12878_v63 }
 0x5ee   :  { %3058 = vadd.xlane.f32.xlu1 %v3057_v36  ;;  %v1906_v36 = vmul.f32 %v13089_v1, %v13089_v1  ;;  %v1908_v11 = vmul.f32 %v13096_v17, %v13096_v17  ;;  %v13118_v59 = vsub.f32 %v17134_v29, %v1855_v40  ;;  %v224_v29 = vld [vmem:[%s16660_s11] sm:$0xff] }
 0x5ef   :  { %v13103_v7 = vsub.f32 %v12732_v50, %v1861_v49  ;;  %v13114_v50 = vsub.f32 %v17133_v22, %v1853_v53  ;;  %v1859_v49 = vmul.f32 0.03125, %v12789_v26 }
 0x5f0   :  { %v1968_v60 = vsel %vm282_vm0, %v1906_v36, 0.0  ;;  %v1974_v35 = vsel %vm282_vm0, %v1908_v11, 0.0  ;;  %v1903_v34 = vmul.f32 %v13118_v59, %v13118_v59 }
 0x5f1   :  { %v1909_v63 = vmul.f32 %v13103_v7, %v13103_v7  ;;  %v1901_v36 = vmul.f32 %v13114_v50, %v13114_v50 }
 0x5f2   :  { %1957 = vadd.xlane.f32.xlu1 %v1956_v57  ;;  %v1959_v26 = vsel %vm282_vm0, %v1903_v34, 0.0 }
 0x5f3   :  { %v1977_v57 = vsel %vm282_vm0, %v1909_v63, 0.0  ;;  %v1953_v11 = vsel %vm282_vm0, %v1901_v36, 0.0  ;;  %v215_v36 = vld [vmem:[#allocation11 + $0x10] sm:$0xff] }
 0x5f6   :  { %1963 = vadd.xlane.f32.xlu1 %v1962_v61 }
 0x5fa   :  { %1966 = vadd.xlane.f32.xlu1 %v1965_v62 }
 0x5fe   :  { %1969 = vadd.xlane.f32.xlu1 %v1968_v60  ;;  %v13125_v60 = vsub.f32 %v12670_v9, %v1859_v49 }
 0x600   :  { %v1907_v63 = vmul.f32 %v13125_v60, %v13125_v60 }
 0x602   :  { %1975 = vadd.xlane.f32.xlu1 %v1974_v35  ;;  %v13132_v35 = vsub.f32 %v12672_v20, %v1862_v31  ;;  %v1971_v9 = vsel %vm282_vm0, %v1907_v63, 0.0  ;;  %v213_v20 = vld [vmem:[#allocation11] sm:$0xff]  ;;  %v216_v31 = vld [vmem:[#allocation11 + $0x18] sm:$0xff] }
 0x603   :  { %v9736_v34 = vpack.c.bf16 %v216_v31, %v215_v36  ;;  %v227_v63 = vld [vmem:[%s16660_s11 + $0x18] sm:$0xff] }
 0x604   :  { %v1910_v43 = vmul.f32 %v13132_v35, %v13132_v35 }
 0x606   :  { %1978 = vadd.xlane.f32.xlu1 %v1977_v57  ;;  %v1980_v57 = vsel %vm282_vm0, %v1910_v43, 0.0 }
 0x614   :  { %v2961_v61 = vpop.permute.xlu0 %2960 }
 0x615   :  { %v3054_v62 = vsel %vm282_vm0, %v2961_v61, 0.0  ;;  %v214_v61 = vld [vmem:[#allocation11 + $0x8] sm:$0xff] }
 0x616   :  { %3055 = vadd.xlane.f32.xlu0 %v3054_v62  ;;  %v9732_v49 = vpack.c.bf16 %v214_v61, %v213_v20  ;;  %v225_v62 = vld [vmem:[%s16660_s11 + $0x8] sm:$0xff] }
 0x618   :  { %9733 = vmatprep.subr.bf16.mxu1 %v9732_v49 }
 0x619   :  { %9735 = vmatpush3.bf16.msra.mxu1 %v9732_v49 }
 0x61a   :  { %1954 = vadd.xlane.f32.xlu0 %v1953_v11  ;;  %v13147_v11 = vpack.c.bf16 %v225_v62, %v224_v29  ;;  %9737 = vmatprep.subr.bf16.mxu1 %v9736_v34 }
 0x61c   :  { %17135 = vst [vmem:[#allocation37_spill] sm:$0xff] %v13147_v11  ;;  %9741 = vmatprep.subr.bf16.mxu0 %v13147_v11 }
 0x61d   :  { %9743 = vmatpush3.bf16.msra.mxu0 %v13147_v11  ;;  %9739 = vmatpush3.bf16.msra.mxu1 %v9736_v34 }
 0x61e   :  { %1960 = vadd.xlane.f32.xlu0 %v1959_v26  ;;  %v226_v26 = vld [vmem:[%s16660_s11 + $0x10] sm:$0xff] }
 0x622   :  { %1972 = vadd.xlane.f32.xlu0 %v1971_v9  ;;  %v13155_v9 = vpack.c.bf16 %v227_v63, %v226_v26 }
 0x624   :  { %17136 = vst [vmem:[#allocation29_spill] sm:$0xff] %v13155_v9  ;;  %9745 = vmatprep.subr.bf16.mxu0 %v13155_v9 }
 0x625   :  { %9747 = vmatpush3.bf16.msra.mxu0 %v13155_v9 }
 0x626   :  { %1981 = vadd.xlane.f32.xlu0 %v1980_v57 }
 0x63e   :  { %v2993_v53 = vpop.xlane.xlu1 %2992 }
 0x63f   :  { %v3061_v22 = vmul.f32 0.03125, %v2993_v53 }
 0x641   :  { %v3085_v40 = vadd.f32 1e-05, %v3061_v22 }
 0x643   :  { %9960 = vrsqrt.f32 %v3085_v40 }
 0x64d   :  { %v9961_v43 = vpop.eup %9960  ;;  %v2999_v57 = vpop.xlane.xlu1 %2998 }
 0x64e   :  { %v3063_v53 = vmul.f32 0.03125, %v2999_v57  ;;  %v2990_v22 = vpop.xlane.xlu0 %2989  ;;  %v3133_v40 = vmul.f32 %v9961_v43, %v12869_v12 }
 0x64f   :  { %v3060_v20 = vmul.f32 0.03125, %v2990_v22 }
 0x650   :  { %v3087_v61 = vadd.f32 1e-05, %v3063_v53  ;;  %v3165_v29 = vmul.f32 %v13017_v45, %v3133_v40 }
 0x651   :  { %v3084_v62 = vadd.f32 1e-05, %v3060_v20 }
 0x652   :  { %9962 = vrsqrt.f32 %v3087_v61  ;;  %v2996_v49 = vpop.xlane.xlu0 %2995  ;;  %v3197_v36 = vadd.f32 %v12964_v27, %v3165_v29 }
 0x653   :  { %9964 = vrsqrt.f32 %v3084_v62  ;;  %v3062_v31 = vmul.f32 0.03125, %v2996_v49 }
 0x654   :  { %3246 = vrot.lane.b32.xlu1 %v3197_v36, %s10745_s20 }
 0x655   :  { %v3086_v26 = vadd.f32 1e-05, %v3062_v31  ;;  %v3005_v63 = vpop.xlane.xlu1 %3004 }
 0x656   :  { %v3065_v57 = vmul.f32 0.03125, %v3005_v63  ;;  %v3002_v12 = vpop.xlane.xlu0 %3001 }
 0x657   :  { %9966 = vrsqrt.f32 %v3086_v26  ;;  %v3064_v34 = vmul.f32 0.03125, %v3002_v12 }
 0x658   :  { %v3089_v43 = vadd.f32 1e-05, %v3065_v57 }
 0x659   :  { %v3088_v53 = vadd.f32 1e-05, %v3064_v34  ;;  %v3011_v22 = vpop.xlane.xlu1 %3010 }
 0x65a   :  { %9968 = vrsqrt.f32 %v3089_v43  ;;  %v3067_v40 = vmul.f32 0.03125, %v3011_v22  ;;  %v3008_v20 = vpop.xlane.xlu0 %3007 }
 0x65b   :  { %9970 = vrsqrt.f32 %v3088_v53  ;;  %v3066_v61 = vmul.f32 0.03125, %v3008_v20 }
 0x65c   :  { %v9963_v9 = vpop.eup %9962  ;;  %v3091_v29 = vadd.f32 1e-05, %v3067_v40 }
 0x65d   :  { %v9965_v62 = vpop.eup %9964  ;;  %v3090_v49 = vadd.f32 1e-05, %v3066_v61  ;;  %v3017_v11 = vpop.xlane.xlu1 %3016  ;;  %v3135_v36 = vmul.f32 %v9963_v9, %v12898_v8 }
 0x65e   :  { %9972 = vrsqrt.f32 %v3091_v29  ;;  %v3069_v31 = vmul.f32 0.03125, %v3017_v11  ;;  %v3014_v63 = vpop.xlane.xlu0 %3013  ;;  %v3132_v26 = vmul.f32 %v9965_v62, %v12887_v37 }
 0x65f   :  { %9974 = vrsqrt.f32 %v3090_v49  ;;  %v3068_v57 = vmul.f32 0.03125, %v3014_v63  ;;  %v3167_v40 = vmul.f32 %v13017_v45, %v3135_v36 }
 0x660   :  { %v3093_v12 = vadd.f32 1e-05, %v3069_v31  ;;  %v3164_v34 = vmul.f32 %v13017_v45, %v3132_v26 }
 0x661   :  { %v9967_v43 = vpop.eup %9966  ;;  %v3092_v53 = vadd.f32 1e-05, %v3068_v57  ;;  %v3023_v22 = vpop.xlane.xlu1 %3022 }
 0x662   :  { %9976 = vrsqrt.f32 %v3093_v12  ;;  %v3071_v20 = vmul.f32 0.03125, %v3023_v22  ;;  %v3020_v61 = vpop.xlane.xlu0 %3019  ;;  %v3196_v8 = vadd.f32 %v12964_v27, %v3164_v34  ;;  %v3134_v11 = vmul.f32 %v9967_v43, %v12910_v2 }
 0x663   :  { %9978 = vrsqrt.f32 %v3092_v53  ;;  %v3070_v9 = vmul.f32 0.03125, %v3020_v61  ;;  %v3199_v12 = vadd.f32 %v12964_v27, %v3167_v40 }
 0x664   :  { %v9969_v37 = vpop.eup %9968  ;;  %v3095_v29 = vadd.f32 1e-05, %v3071_v20  ;;  %3244 = vrot.lane.b32.xlu0 %v3196_v8, %s10745_s20  ;;  %v3166_v63 = vmul.f32 %v13017_v45, %v3134_v11 }
 0x665   :  { %v9971_v62 = vpop.eup %9970  ;;  %v3094_v49 = vadd.f32 1e-05, %v3070_v9  ;;  %v3029_v31 = vpop.xlane.xlu1 %3028  ;;  %v3137_v36 = vmul.f32 %v9969_v37, %v12922_v5 }
 0x666   :  { %9980 = vrsqrt.f32 %v3095_v29  ;;  %v3073_v26 = vmul.f32 0.03125, %v3029_v31  ;;  %v3026_v57 = vpop.xlane.xlu0 %3025  ;;  %v3136_v2 = vmul.f32 %v9971_v62, %v12876_v3  ;;  %v3198_v5 = vadd.f32 %v12964_v27, %v3166_v63 }
 0x667   :  { %9982 = vrsqrt.f32 %v3094_v49  ;;  %v3072_v34 = vmul.f32 0.03125, %v3026_v57  ;;  %v3169_v11 = vmul.f32 %v13017_v45, %v3137_v36 }
 0x668   :  { %v9973_v43 = vpop.eup %9972  ;;  %v3097_v53 = vadd.f32 1e-05, %v3073_v26  ;;  %3250 = vrot.lane.b32.xlu0 %v3199_v12, %s10745_s20  ;;  %v3168_v22 = vmul.f32 %v13017_v45, %v3136_v2 }
 0x669   :  { %v9975_v20 = vpop.eup %9974  ;;  %v3096_v61 = vadd.f32 1e-05, %v3072_v34  ;;  %v3035_v8 = vpop.xlane.xlu1 %3034  ;;  %v3139_v9 = vmul.f32 %v9973_v43, %v12934_v25  ;;  %v3201_v34 = vadd.f32 %v12964_v27, %v3169_v11 }
 0x66a   :  { %9984 = vrsqrt.f32 %v3097_v53  ;;  %v3075_v40 = vmul.f32 0.03125, %v3035_v8  ;;  %v3032_v3 = vpop.xlane.xlu0 %3031  ;;  %v3200_v37 = vadd.f32 %v12964_v27, %v3168_v22  ;;  %v3138_v29 = vmul.f32 %v9975_v20, %v12883_v55 }
 0x66b   :  { %9986 = vrsqrt.f32 %v3096_v61  ;;  %v3074_v62 = vmul.f32 0.03125, %v3032_v3  ;;  %v3171_v49 = vmul.f32 %v13017_v45, %v3139_v9 }
 0x66c   :  { %v9977_v31 = vpop.eup %9976  ;;  %v3099_v26 = vadd.f32 1e-05, %v3075_v40  ;;  %3252 = vrot.lane.b32.xlu1 %v3200_v37, %s10745_s20  ;;  %3248 = vrot.lane.b32.xlu0 %v3198_v5, %s10745_s20  ;;  %v3170_v12 = vmul.f32 %v13017_v45, %v3138_v29 }
 0x66d   :  { %v9979_v63 = vpop.eup %9978  ;;  %v3098_v36 = vadd.f32 1e-05, %v3074_v62  ;;  %v3041_v25 = vpop.xlane.xlu1 %3040  ;;  %v3203_v57 = vadd.f32 %v12964_v27, %v3171_v49  ;;  %v3141_v2 = vmul.f32 %v9977_v31, %v12946_v10 }
 0x66e   :  { %9988 = vrsqrt.f32 %v3099_v26  ;;  %v3077_v55 = vmul.f32 0.03125, %v3041_v25  ;;  %v3140_v43 = vmul.f32 %v9979_v63, %v12892_v42  ;;  %v3202_v10 = vadd.f32 %v12964_v27, %v3170_v12 }
 0x66f   :  { %9990 = vrsqrt.f32 %v3098_v36  ;;  %v3173_v9 = vmul.f32 %v13017_v45, %v3141_v2 }
 0x670   :  { %v9981_v53 = vpop.eup %9980  ;;  %v3101_v22 = vadd.f32 1e-05, %v3077_v55  ;;  %3254 = vrot.lane.b32.xlu0 %v3201_v34, %s10745_s20  ;;  %3258 = vrot.lane.b32.xlu1 %v3203_v57, %s10745_s20  ;;  %v3172_v20 = vmul.f32 %v13017_v45, %v3140_v43 }
 0x671   :  { %v9983_v61 = vpop.eup %9982  ;;  %v3044_v8 = vpop.xlane.xlu0 %3043  ;;  %v3143_v11 = vmul.f32 %v9981_v53, %v12955_v4  ;;  %v3205_v4 = vadd.f32 %v12964_v27, %v3173_v9 }
 0x672   :  { %v3038_v5 = vpop.xlane.xlu1 %3037  ;;  %9992 = vrsqrt.f32 %v3101_v22  ;;  %v3078_v42 = vmul.f32 0.03125, %v3044_v8  ;;  %v3204_v3 = vadd.f32 %v12964_v27, %v3172_v20  ;;  %v3142_v37 = vmul.f32 %v9983_v61, %v12904_v41 }
 0x673   :  { %v3076_v40 = vmul.f32 0.03125, %v3038_v5  ;;  %v3175_v25 = vmul.f32 %v13017_v45, %v3143_v11 }
 0x674   :  { %v9985_v29 = vpop.eup %9984  ;;  %v3102_v62 = vadd.f32 1e-05, %v3078_v42  ;;  %3256 = vrot.lane.b32.xlu0 %v3202_v10, %s10745_s20  ;;  %3260 = vrot.lane.b32.xlu1 %v3204_v3, %s10745_s20  ;;  %v3174_v36 = vmul.f32 %v13017_v45, %v3142_v37 }
 0x675   :  { %v3100_v49 = vadd.f32 1e-05, %v3076_v40  ;;  %v9987_v31 = vpop.eup %9986  ;;  %v3053_v26 = vpop.xlane.xlu0 %3052  ;;  %v3145_v57 = vmul.f32 %v9985_v29, %v12961_v14  ;;  %v3207_v14 = vadd.f32 %v12964_v27, %v3175_v25 }
 0x676   :  { %v3047_v63 = vpop.xlane.xlu1 %3046  ;;  %9994 = vrsqrt.f32 %v3102_v62  ;;  %v3081_v41 = vmul.f32 0.03125, %v3053_v26  ;;  %v3144_v2 = vmul.f32 %v9987_v31, %v12916_v52  ;;  %v3206_v55 = vadd.f32 %v12964_v27, %v3174_v36 }
 0x677   :  { %v3079_v12 = vmul.f32 0.03125, %v3047_v63  ;;  %9996 = vrsqrt.f32 %v3100_v49  ;;  %v3177_v8 = vmul.f32 %v13017_v45, %v3145_v57 }
 0x678   :  { %v9989_v34 = vpop.eup %9988  ;;  %v3105_v43 = vadd.f32 1e-05, %v3081_v41  ;;  %3262 = vrot.lane.b32.xlu1 %v3205_v4, %s10745_s20  ;;  %v3176_v22 = vmul.f32 %v13017_v45, %v3144_v2  ;;  %3264 = vrot.lane.b32.xlu0 %v3206_v55, %s10745_s20 }
 0x679   :  { %v3103_v53 = vadd.f32 1e-05, %v3079_v12  ;;  %v9991_v20 = vpop.eup %9990  ;;  %v3050_v61 = vpop.xlane.xlu0 %3049  ;;  %v3147_v52 = vmul.f32 %v9989_v34, %v12969_v47  ;;  %v3209_v49 = vadd.f32 %v12964_v27, %v3177_v8 }
 0x67a   :  { %9998 = vrsqrt.f32 %v3105_v43  ;;  %v3080_v5 = vmul.f32 0.03125, %v3050_v61  ;;  %v3208_v10 = vadd.f32 %v12964_v27, %v3176_v22  ;;  %v3146_v11 = vmul.f32 %v9991_v20, %v12928_v39 }
 0x67b   :  { %v3059_v9 = vpop.xlane.xlu1 %3058  ;;  %10000 = vrsqrt.f32 %v3103_v53  ;;  %v3179_v39 = vmul.f32 %v13017_v45, %v3147_v52 }
 0x67c   :  { %v3083_v42 = vmul.f32 0.03125, %v3059_v9  ;;  %v9993_v40 = vpop.eup %9992  ;;  %v3104_v3 = vadd.f32 1e-05, %v3080_v5  ;;  %3266 = vrot.lane.b32.xlu1 %v3207_v14, %s10745_s20  ;;  %v3178_v37 = vmul.f32 %v13017_v45, %v3146_v11  ;;  %3268 = vrot.lane.b32.xlu0 %v3208_v10, %s10745_s20 }
 0x67d   :  { %v3149_v47 = vmul.f32 %v9993_v40, %v12977_v46  ;;  %v3211_v36 = vadd.f32 %v12964_v27, %v3179_v39 }
 0x67e   :  { %v3107_v29 = vadd.f32 1e-05, %v3083_v42  ;;  %10002 = vrsqrt.f32 %v3104_v3  ;;  %v3210_v62 = vadd.f32 %v12964_v27, %v3178_v37  ;;  %v1984_v37 = vmul.f32 0.03125, %v12974_v30 }
 0x67f   :  { %v3181_v63 = vmul.f32 %v13017_v45, %v3149_v47  ;;  %v13253_v42 = vpop.xlane.xlu1 %1957  ;;  %v1983_v47 = vmul.f32 0.03125, %v13026_v38  ;;  %v1987_v30 = vmul.f32 0.03125, %v13035_v54  ;;  %v1988_v38 = vmul.f32 0.03125, %v12998_v44 }
 0x680   :  { %10004 = vrsqrt.f32 %v3107_v29  ;;  %v9995_v31 = vpop.eup %9994  ;;  %3270 = vrot.lane.b32.xlu1 %v3209_v49, %s10745_s20  ;;  %3272 = vrot.lane.b32.xlu0 %v3210_v62, %s10745_s20  ;;  %v2008_v49 = vadd.f32 1e-05, %v1984_v37  ;;  %v1991_v54 = vmul.f32 0.03125, %v13042_v23  ;;  %v17139_v23 = vld [vmem:[#allocation52_spill] sm:$0xff] }
 0x681   :  { %v9997_v26 = vpop.eup %9996  ;;  %v3150_v4 = vmul.f32 %v9995_v31, %v12988_v19  ;;  %v3213_v12 = vadd.f32 %v12964_v27, %v3181_v63  ;;  %v2007_v39 = vadd.f32 1e-05, %v1983_v47 }
 0x682   :  { %v3148_v46 = vmul.f32 %v9997_v26, %v12940_v13  ;;  %v1986_v26 = vmul.f32 0.03125, %v12985_v16  ;;  %v1992_v16 = vmul.f32 0.03125, %v13029_v15 }
 0x683   :  { %v3182_v55 = vmul.f32 %v13017_v45, %v3150_v4  ;;  %v13260_v62 = vpop.xlane.xlu1 %1963  ;;  %v1990_v4 = vmul.f32 0.03125, %v13022_v28 }
 0x684   :  { %v9999_v25 = vpop.eup %9998  ;;  %3274 = vrot.lane.b32.xlu1 %v3211_v36, %s10745_s20  ;;  %v3180_v57 = vmul.f32 %v13017_v45, %v3148_v46  ;;  %v2011_v46 = vadd.f32 1e-05, %v1987_v30  ;;  %v17143_v30 = vld [vmem:[#allocation46_spill] sm:$0xff] }
 0x685   :  { %v10001_v41 = vpop.eup %10000  ;;  %v3153_v43 = vmul.f32 %v9999_v25, %v12994_v32  ;;  %v3214_v20 = vadd.f32 %v12964_v27, %v3182_v55  ;;  %v2016_v55 = vadd.f32 1e-05, %v1992_v16 }
 0x686   :  { %v3212_v2 = vadd.f32 %v12964_v27, %v3180_v57  ;;  %v3151_v34 = vmul.f32 %v10001_v41, %v12981_v58  ;;  %v2012_v57 = vadd.f32 1e-05, %v1988_v38 }
 0x687   :  { %v3185_v14 = vmul.f32 %v13017_v45, %v3153_v43  ;;  %v13263_v31 = vpop.xlane.xlu1 %1966 }
 0x688   :  { %v10003_v53 = vpop.eup %10002  ;;  %3276 = vrot.lane.b32.xlu0 %v3212_v2, %s10745_s20  ;;  %3278 = vrot.lane.b32.xlu1 %v3213_v12, %s10745_s20  ;;  %v3183_v13 = vmul.f32 %v13017_v45, %v3151_v34  ;;  %v2014_v12 = vadd.f32 1e-05, %v1990_v4  ;;  %v1993_v34 = vmul.f32 0.03125, %v13044_v21 }
 0x689   :  { %v3152_v22 = vmul.f32 %v10003_v53, %v13001_v56  ;;  %v3217_v56 = vadd.f32 %v12964_v27, %v3185_v14  ;;  %v17137_v53 = vld [vmem:[#allocation68_spill] sm:$0xff] }
 0x68a   :  { %v10005_v19 = vpop.eup %10004  ;;  %v3215_v61 = vadd.f32 %v12964_v27, %v3183_v13  ;;  %v2015_v13 = vadd.f32 1e-05, %v1991_v54  ;;  %v17140_v14 = vld [vmem:[#allocation60_spill] sm:$0xff] }
 0x68b   :  { %v3155_v58 = vmul.f32 %v10005_v19, %v13012_v33  ;;  %v3184_v32 = vmul.f32 %v13017_v45, %v3152_v22  ;;  %v13269_v36 = vpop.xlane.xlu1 %1969  ;;  %v13283_v19 = vld [vmem:[#allocation8] ss:$0 sm:$0xff]  ;;  %v17147_v54 = vld [vmem:[#allocation44_spill] sm:$0xff] }
 0x68c   :  { %3280 = vrot.lane.b32.xlu0 %v3214_v20, %s10745_s20  ;;  %3282 = vrot.lane.b32.xlu1 %v3215_v61, %s10745_s20  ;;  %v1994_v20 = vmul.f32 0.03125, %v17139_v23  ;;  %v2017_v61 = vadd.f32 1e-05, %v1993_v34 }
 0x68d   :  { %v3187_v8 = vmul.f32 %v13017_v45, %v3155_v58  ;;  %v3216_v52 = vadd.f32 %v12964_v27, %v3184_v32  ;;  %v1995_v58 = vmul.f32 0.03125, %v17140_v14 }
 0x68f   :  { %v3219_v5 = vadd.f32 %v12964_v27, %v3187_v8  ;;  %v13277_v2 = vpop.xlane.xlu1 %1975 }
 0x690   :  { %3284 = vrot.lane.b32.xlu0 %v3216_v52, %s10745_s20  ;;  %3286 = vrot.lane.b32.xlu1 %v3217_v56, %s10745_s20  ;;  %v13291_v52 = vld [vmem:[#allocation10] ss:$0 sm:$0xff] }
 0x693   :  { %v13288_v32 = vpop.xlane.xlu1 %1978 }
 0x694   :  { %3290 = vrot.lane.b32.xlu1 %v3219_v5, %s10745_s20 }
 0x6a3   :  { %v3056_v33 = vpop.xlane.xlu0 %3055 }
 0x6a4   :  { %v3082_v10 = vmul.f32 0.03125, %v3056_v33 }
 0x6a6   :  { %v3106_v9 = vadd.f32 1e-05, %v3082_v10 }
 0x6a8   :  { %10006 = vrsqrt.f32 %v3106_v9  ;;  %v2018_v9 = vadd.f32 1e-05, %v1994_v20 }
 0x6a9   :  { %10008 = vrsqrt.f32 %v2008_v49  ;;  %v1998_v49 = vmul.f32 0.03125, %v13253_v42 }
 0x6aa   :  { %10010 = vrsqrt.f32 %v2007_v39 }
 0x6b2   :  { %v10007_v11 = vpop.eup %10006 }
 0x6b3   :  { %v3154_v40 = vmul.f32 %v10007_v11, %v13020_v6  ;;  %v1955_v6 = vpop.xlane.xlu0 %1954  ;;  %v10009_v41 = vpop.eup %10008  ;;  %v17141_v11 = vld [vmem:[#allocation54_spill] sm:$0xff] }
 0x6b4   :  { %v10011_v44 = vpop.eup %10010  ;;  %v2056_v15 = vmul.f32 %v10009_v41, %v17137_v53  ;;  %v1997_v38 = vmul.f32 0.03125, %v1955_v6 }
 0x6b5   :  { %v3186_v3 = vmul.f32 %v13017_v45, %v3154_v40  ;;  %v1985_v45 = vmul.f32 0.03125, %v13031_v51  ;;  %v1989_v51 = vmul.f32 0.03125, %v13039_v24  ;;  %v17138_v24 = vld [vmem:[#allocation70_spill] sm:$0xff]  ;;  %v1996_v40 = vmul.f32 0.03125, %v17141_v11  ;;  %v17150_v11 = vld [vmem:[#allocation56_spill] sm:$0xff] }
 0x6b6   :  { %v2055_v22 = vmul.f32 %v10011_v44, %v17138_v24  ;;  %v2086_v21 = vmul.f32 %v13283_v19, %v2056_v15  ;;  %v2021_v53 = vadd.f32 1e-05, %v1997_v38 }
 0x6b7   :  { %v3218_v29 = vadd.f32 %v12964_v27, %v3186_v3  ;;  %v2010_v27 = vadd.f32 1e-05, %v1986_v26  ;;  %v2009_v63 = vadd.f32 1e-05, %v1985_v45  ;;  %v13272_v25 = vpop.xlane.xlu0 %1960  ;;  %v2013_v28 = vadd.f32 1e-05, %v1989_v51 }
 0x6b8   :  { %v2085_v56 = vmul.f32 %v13283_v19, %v2055_v22  ;;  %v2019_v3 = vadd.f32 1e-05, %v1995_v58  ;;  %v2116_v37 = vadd.f32 %v13291_v52, %v2086_v21  ;;  %v17142_v26 = vld [vmem:[#allocation51_spill] sm:$0xff]  ;;  %v2020_v41 = vadd.f32 1e-05, %v1996_v40  ;;  %v17151_v40 = vld [vmem:[#allocation53_spill] sm:$0xff] }
 0x6b9   :  { %3288 = vrot.lane.b32.xlu0 %v3218_v29, %s10745_s20  ;;  %10012 = vrsqrt.f32 %v2010_v27  ;;  %v2000_v22 = vmul.f32 0.03125, %v13260_v62  ;;  %v1999_v23 = vmul.f32 0.03125, %v13272_v25 }
 0x6ba   :  { %10014 = vrsqrt.f32 %v2009_v63  ;;  %v2115_v39 = vadd.f32 %v13291_v52, %v2085_v56 }
 0x6bb   :  { %10016 = vrsqrt.f32 %v2011_v46  ;;  %v13280_v43 = vpop.xlane.xlu0 %1972  ;;  %v17144_v46 = vld [vmem:[#allocation50_spill] sm:$0xff] }
 0x6bc   :  { %10018 = vrsqrt.f32 %v2012_v57 }
 0x6bd   :  { %10020 = vrsqrt.f32 %v2014_v12  ;;  %v2022_v12 = vadd.f32 1e-05, %v1998_v49 }
 0x6be   :  { %10022 = vrsqrt.f32 %v2016_v55 }
 0x6bf   :  { %10024 = vrsqrt.f32 %v2013_v28  ;;  %v13294_v33 = vpop.xlane.xlu0 %1981 }
 0x6c0   :  { %10026 = vrsqrt.f32 %v2015_v13 }
 0x6c1   :  { %10028 = vrsqrt.f32 %v2017_v61  ;;  %v17148_v61 = vld [vmem:[#allocation71_spill] sm:$0xff] }
 0x6c2   :  { %10030 = vrsqrt.f32 %v2018_v9 }
 0x6c3   :  { %v10013_v8 = vpop.eup %10012  ;;  %10032 = vrsqrt.f32 %v2019_v3 }
 0x6c4   :  { %v10015_v5 = vpop.eup %10014  ;;  %v2058_v45 = vmul.f32 %v10013_v8, %v17142_v26  ;;  %10034 = vrsqrt.f32 %v2020_v41  ;;  %v17149_v8 = vld [vmem:[#allocation27_spill] sm:$0xff]  ;;  %v2023_v26 = vadd.f32 1e-05, %v1999_v23  ;;  %v17155_v41 = vld [vmem:[#allocation73_spill] sm:$0xff] }
 0x6c5   :  { %v10017_v10 = vpop.eup %10016  ;;  %v2057_v27 = vmul.f32 %v10015_v5, %v17143_v30  ;;  %10036 = vrsqrt.f32 %v2022_v12  ;;  %v2004_v12 = vmul.f32 0.03125, %v13277_v2 }
 0x6c6   :  { %v3247_v29 = vpop.permute.xlu1 %3246  ;;  %v10019_v47 = vpop.eup %10018  ;;  %v2059_v4 = vmul.f32 %v10017_v10, %v17144_v46  ;;  %v2088_v6 = vmul.f32 %v13283_v19, %v2058_v45  ;;  %10038 = vrsqrt.f32 %v2021_v53 }
 0x6c7   :  { %v13303_v57 = vmax.f32 %v2116_v37, %v3247_v29  ;;  %v10021_v51 = vpop.eup %10020  ;;  %v2060_v42 = vmul.f32 %v10019_v47, %v17147_v54  ;;  %v2087_v28 = vmul.f32 %v13283_v19, %v2057_v27  ;;  %v2024_v37 = vadd.f32 1e-05, %v2000_v22 }
 0x6c8   :  { %v10023_v44 = vpop.eup %10022  ;;  %v2089_v13 = vmul.f32 %v13283_v19, %v2059_v4  ;;  %v2062_v14 = vmul.f32 %v10021_v51, %v17148_v61  ;;  %v2118_v58 = vadd.f32 %v13291_v52, %v2088_v6  ;;  %v2001_v29 = vmul.f32 0.03125, %v13263_v31  ;;  %v17158_v61 = vld [vmem:[#allocation77_spill] sm:$0xff] }
 0x6c9   :  { %17145 = vst [vmem:[#allocation34_spill] sm:$0xff] %v13303_v57  ;;  %v10025_v34 = vpop.eup %10024  ;;  %v2090_v20 = vmul.f32 %v13283_v19, %v2060_v42  ;;  %v2117_v21 = vadd.f32 %v13291_v52, %v2087_v28  ;;  %v2064_v3 = vmul.f32 %v10023_v44, %v17151_v40  ;;  %10040 = vrsqrt.f32 %v2024_v37  ;;  %v17162_v40 = vld [vmem:[#allocation74_spill] sm:$0xff] }
 0x6ca   :  { %v10027_v24 = vpop.eup %10026  ;;  %v2061_v56 = vmul.f32 %v10025_v34, %v17149_v8  ;;  %v2119_v62 = vadd.f32 %v13291_v52, %v2089_v13  ;;  %v2092_v30 = vmul.f32 %v13283_v19, %v2062_v14  ;;  %v2025_v44 = vadd.f32 1e-05, %v2001_v29  ;;  %v17157_v34 = vld [vmem:[#allocation72_spill] sm:$0xff] }
 0x6cb   :  { %v10029_v5 = vpop.eup %10028  ;;  %v2063_v25 = vmul.f32 %v10027_v24, %v17150_v11  ;;  %v2120_v45 = vadd.f32 %v13291_v52, %v2090_v20  ;;  %v2094_v42 = vmul.f32 %v13283_v19, %v2064_v3  ;;  %10042 = vrsqrt.f32 %v2023_v26 }
 0x6cc   :  { %v10031_v27 = vpop.eup %10030  ;;  %v2065_v54 = vmul.f32 %v10029_v5, %v17155_v41  ;;  %v2003_v28 = vmul.f32 0.03125, %v13280_v43  ;;  %10044 = vrsqrt.f32 %v2025_v44 }
 0x6cd   :  { %v2093_v51 = vmul.f32 %v13283_v19, %v2063_v25  ;;  %v2066_v53 = vmul.f32 %v10031_v27, %v17157_v34 }
 0x6ce   :  { %v2095_v20 = vmul.f32 %v13283_v19, %v2065_v54 }
 0x6cf   :  { %v2123_v43 = vadd.f32 %v13291_v52, %v2093_v51 }
 0x6d0   :  { %v2125_v37 = vadd.f32 %v13291_v52, %v2095_v20 }
 0x6d6   :  { %v3245_v63 = vpop.permute.xlu0 %3244 }
 0x6d7   :  { %v13305_v16 = vmax.f32 %v2115_v39, %v3245_v63  ;;  %v2002_v39 = vmul.f32 0.03125, %v13269_v36  ;;  %v2091_v63 = vmul.f32 %v13283_v19, %v2061_v56  ;;  %v10033_v36 = vpop.eup %10032 }
 0x6d8   :  { %v10035_v24 = vpop.eup %10034  ;;  %v2067_v14 = vmul.f32 %v10033_v36, %v17158_v61 }
 0x6d9   :  { %17146 = vst [vmem:[#allocation36_spill] sm:$0xff] %v13305_v16  ;;  %9310 = vmatprep.mubr.msk.f32.mxu1 %vm282_vm0, %v13305_v16  ;;  %9354 = vmatprep.mubr.msk.f32.mxu0 %vm282_vm0, %v13305_v16  ;;  %v9748_v55 = vpack.c.bf16 %v13303_v57, %v13305_v16  ;;  %v2121_v2 = vadd.f32 %v13291_v52, %v2091_v63 }
 0x6da   :  { %v3251_v15 = vpop.permute.xlu0 %3250  ;;  %9311 = vmatmul.mubr.msk.f32.vlgmr.msra.gmra.mrb[0].mxu1 %vm282_vm0, %v13303_v57  ;;  %9355 = vmatmul.mubr.msk.f32.vlgmr.msra.gmra.mrb[24].mxu0 %vm282_vm0, %v13303_v57  ;;  %v2068_v3 = vmul.f32 %v10035_v24, %v17162_v40 }
 0x6db   :  { %9749 = vmatprep.subr.bf16.mxu1 %v9748_v55  ;;  %v13332_v47 = vmax.f32 %v2118_v58, %v3251_v15  ;;  %v2122_v15 = vadd.f32 %v13291_v52, %v2092_v30  ;;  %v10037_v58 = vpop.eup %10036 }
 0x6dc   :  { %9751 = vmatpush3.bf16.msra.mxu1 %v9748_v55  ;;  %v2026_v55 = vadd.f32 1e-05, %v2002_v39  ;;  %v10039_v5 = vpop.eup %10038  ;;  %v2070_v27 = vmul.f32 %v10037_v58, %v13070_v0 }
 0x6dd   :  { %17152 = vst [vmem:[#allocation59_spill] sm:$0xff] %v13332_v47  ;;  %v2069_v30 = vmul.f32 %v10039_v5, %v13114_v50 }
 0x6de   :  { %v3249_v10 = vpop.permute.xlu0 %3248  ;;  %v3253_v9 = vpop.permute.xlu1 %3252  ;;  %10046 = vrsqrt.f32 %v2026_v55  ;;  %v2100_v44 = vmul.f32 %v13283_v19, %v2070_v27 }
 0x6df   :  { %v13334_v49 = vmax.f32 %v2117_v21, %v3249_v10  ;;  %v13339_v38 = vmax.f32 %v2119_v62, %v3253_v9  ;;  %v2028_v21 = vadd.f32 1e-05, %v2004_v12  ;;  %v2027_v10 = vadd.f32 1e-05, %v2003_v28 }
 0x6e0   :  { %v2124_v62 = vadd.f32 %v13291_v52, %v2094_v42  ;;  %v2096_v9 = vmul.f32 %v13283_v19, %v2066_v53  ;;  %v2099_v42 = vmul.f32 %v13283_v19, %v2069_v30 }
 0x6e1   :  { %17153 = vst [vmem:[#allocation31_spill] sm:$0xff] %v13334_v49  ;;  %17154 = vst [vmem:[#allocation35_spill] sm:$0xff] %v13339_v38  ;;  %9313 = vmatprep.mubr.msk.f32.mxu1 %vm282_vm0, %v13334_v49  ;;  %9357 = vmatprep.mubr.msk.f32.mxu0 %vm282_vm0, %v13334_v49  ;;  %v9752_v31 = vpack.c.bf16 %v13332_v47, %v13334_v49  ;;  %10048 = vrsqrt.f32 %v2028_v21 }
 0x6e2   :  { %v3255_v46 = vpop.permute.xlu0 %3254  ;;  %9314 = vmatmul.mubr.msk.f32.gmra.mrb[2].mxu1 %vm282_vm0, %v13332_v47  ;;  %9358 = vmatmul.mubr.msk.f32.gmra.mrb[26].mxu0 %vm282_vm0, %v13332_v47  ;;  %v3259_v4 = vpop.permute.xlu1 %3258  ;;  %10050 = vrsqrt.f32 %v2027_v10  ;;  %v2126_v36 = vadd.f32 %v13291_v52, %v2096_v9  ;;  %v2129_v24 = vadd.f32 %v13291_v52, %v2099_v42 }
 0x6e3   :  { %v13356_v6 = vmax.f32 %v2120_v45, %v3255_v46  ;;  %9316 = vmatprep.mubr.msk.f32.mxu1 %vm282_vm0, %v13339_v38  ;;  %9360 = vmatprep.mubr.msk.f32.mxu0 %vm282_vm0, %v13339_v38  ;;  %v13375_v8 = vmax.f32 %v2122_v15, %v3259_v4  ;;  %v2097_v45 = vmul.f32 %v13283_v19, %v2067_v14 }
 0x6e4   :  { %9753 = vmatprep.subr.bf16.mxu1 %v9752_v31  ;;  %v2098_v4 = vmul.f32 %v13283_v19, %v2068_v3 }
 0x6e5   :  { %17156 = vst [vmem:[#allocation62_spill] sm:$0xff] %v13356_v6  ;;  %9755 = vmatpush3.bf16.msra.mxu1 %v9752_v31  ;;  %v9756_v13 = vpack.c.bf16 %v13356_v6, %v13339_v38  ;;  %17159 = vst [vmem:[#allocation57_spill] sm:$0xff] %v13375_v8  ;;  %v10041_v31 = vpop.eup %10040  ;;  %v2127_v41 = vadd.f32 %v13291_v52, %v2097_v45 }
 0x6e6   :  { %v3257_v22 = vpop.permute.xlu0 %3256  ;;  %9317 = vmatmul.mubr.msk.f32.gmra.mrb[4].mxu1 %vm282_vm0, %v13356_v6  ;;  %9361 = vmatmul.mubr.msk.f32.gmra.mrb[28].mxu0 %vm282_vm0, %v13356_v6  ;;  %v3261_v23 = vpop.permute.xlu1 %3260  ;;  %v2072_v12 = vmul.f32 %v10041_v31, %v13075_v18  ;;  %v2128_v34 = vadd.f32 %v13291_v52, %v2098_v4 }
 0x6e7   :  { %v13377_v56 = vmax.f32 %v2121_v2, %v3257_v22  ;;  %9757 = vmatprep.subr.bf16.mxu1 %v9756_v13  ;;  %v13381_v11 = vmax.f32 %v2123_v43, %v3261_v23  ;;  %v10043_v51 = vpop.eup %10042 }
 0x6e8   :  { %v10045_v55 = vpop.eup %10044  ;;  %v2071_v15 = vmul.f32 %v10043_v51, %v13118_v59  ;;  %v2130_v59 = vadd.f32 %v13291_v52, %v2100_v44  ;;  %v2102_v43 = vmul.f32 %v13283_v19, %v2072_v12  ;;  %v2005_v12 = vmul.f32 0.03125, %v13288_v32 }
 0x6e9   :  { %17160 = vst [vmem:[#allocation75_spill] sm:$0xff] %v13377_v56  ;;  %17161 = vst [vmem:[#allocation39_spill] sm:$0xff] %v13381_v11  ;;  %9759 = vmatpush3.bf16.msra.mxu1 %v9756_v13  ;;  %9319 = vmatprep.mubr.msk.f32.mxu1 %vm282_vm0, %v13377_v56  ;;  %v9760_v25 = vpack.c.bf16 %v13375_v8, %v13377_v56  ;;  %v10047_v2 = vpop.eup %10046  ;;  %v2073_v23 = vmul.f32 %v10045_v55, %v13083_v48  ;;  %v2006_v55 = vmul.f32 0.03125, %v13294_v33 }
 0x6ea   :  { %9363 = vmatprep.mubr.msk.f32.mxu0 %vm282_vm0, %v13377_v56  ;;  %9320 = vmatmul.mubr.msk.f32.gmra.mrb[6].mxu1 %vm282_vm0, %v13375_v8  ;;  %v3263_v29 = vpop.permute.xlu1 %3262  ;;  %v3265_v39 = vpop.permute.xlu0 %3264  ;;  %v2101_v58 = vmul.f32 %v13283_v19, %v2071_v15  ;;  %v2074_v21 = vmul.f32 %v10047_v2, %v13089_v1  ;;  %v2132_v1 = vadd.f32 %v13291_v52, %v2102_v43 }
 0x6eb   :  { %9364 = vmatmul.mubr.msk.f32.gmra.mrb[30].mxu0 %vm282_vm0, %v13375_v8  ;;  %v13395_v26 = vmax.f32 %v2124_v62, %v3263_v29  ;;  %9322 = vmatprep.mubr.msk.f32.mxu1 %vm282_vm0, %v13381_v11  ;;  %v13404_v63 = vmax.f32 %v2125_v37, %v3265_v39  ;;  %v10049_v20 = vpop.eup %10048  ;;  %v2103_v62 = vmul.f32 %v13283_v19, %v2073_v23 }
 0x6ec   :  { %9366 = vmatprep.mubr.msk.f32.mxu0 %vm282_vm0, %v13381_v11  ;;  %9761 = vmatprep.subr.bf16.mxu1 %v9760_v25  ;;  %v10051_v5 = vpop.eup %10050  ;;  %v2131_v9 = vadd.f32 %v13291_v52, %v2101_v58  ;;  %v2076_v3 = vmul.f32 %v10049_v20, %v13096_v17 }
 0x6ed   :  { %17163 = vst [vmem:[#allocation76_spill] sm:$0xff] %v13395_v26  ;;  %17164 = vst [vmem:[#allocation41_spill] sm:$0xff] %v13404_v63  ;;  %9763 = vmatpush3.bf16.msra.mxu1 %v9760_v25  ;;  %v9764_v46 = vpack.c.bf16 %v13395_v26, %v13381_v11  ;;  %v2104_v25 = vmul.f32 %v13283_v19, %v2074_v21  ;;  %v2075_v40 = vmul.f32 %v10051_v5, %v13125_v60 }
 0x6ee   :  { %9323 = vmatmul.mubr.msk.f32.gmra.mrb[8].mxu1 %vm282_vm0, %v13395_v26  ;;  %v3267_v50 = vpop.permute.xlu1 %3266  ;;  %v3269_v54 = vpop.permute.xlu0 %3268  ;;  %v2133_v30 = vadd.f32 %v13291_v52, %v2103_v62  ;;  %v2106_v27 = vmul.f32 %v13283_v19, %v2076_v3 }
 0x6ef   :  { %9367 = vmatmul.mubr.msk.f32.gmra.mrb[32].mxu0 %vm282_vm0, %v13395_v26  ;;  %v13415_v0 = vmax.f32 %v2126_v36, %v3267_v50  ;;  %9325 = vmatprep.mubr.msk.f32.mxu1 %vm282_vm0, %v13404_v63  ;;  %v13424_v28 = vmax.f32 %v2127_v41, %v3269_v54  ;;  %v2134_v17 = vadd.f32 %v13291_v52, %v2104_v25 }
 0x6f0   :  { %9369 = vmatprep.mubr.msk.f32.mxu0 %vm282_vm0, %v13404_v63  ;;  %9765 = vmatprep.subr.bf16.mxu1 %v9764_v46  ;;  %v2105_v60 = vmul.f32 %v13283_v19, %v2075_v40  ;;  %v2136_v50 = vadd.f32 %v13291_v52, %v2106_v27 }
 0x6f1   :  { %17165 = vst [vmem:[#allocation33_spill] sm:$0xff] %v13415_v0  ;;  %17166 = vst [vmem:[#allocation43_spill] sm:$0xff] %v13424_v28  ;;  %9767 = vmatpush3.bf16.msra.mxu1 %v9764_v46  ;;  %v9768_v53 = vpack.c.bf16 %v13415_v0, %v13404_v63 }
 0x6f2   :  { %9326 = vmatmul.mubr.msk.f32.gmra.mrb[10].mxu1 %vm282_vm0, %v13415_v0  ;;  %v3271_v13 = vpop.permute.xlu1 %3270  ;;  %v3273_v22 = vpop.permute.xlu0 %3272  ;;  %v2135_v51 = vadd.f32 %v13291_v52, %v2105_v60 }
 0x6f3   :  { %9370 = vmatmul.mubr.msk.f32.gmra.mrb[34].mxu0 %vm282_vm0, %v13415_v0  ;;  %v13435_v18 = vmax.f32 %v2128_v34, %v3271_v13  ;;  %9328 = vmatprep.mubr.msk.f32.mxu1 %vm282_vm0, %v13424_v28  ;;  %v13444_v61 = vmax.f32 %v2129_v24, %v3273_v22  ;;  %v2029_v34 = vadd.f32 1e-05, %v2005_v12 }
 0x6f4   :  { %9372 = vmatprep.mubr.msk.f32.mxu0 %vm282_vm0, %v13424_v28  ;;  %9769 = vmatprep.subr.bf16.mxu1 %v9768_v53 }
 0x6f5   :  { %17167 = vst [vmem:[#allocation55_spill] sm:$0xff] %v13435_v18  ;;  %9771 = vmatpush3.bf16.msra.mxu1 %v9768_v53  ;;  %v13448_v14 = vpack.c.bf16 %v13435_v18, %v13424_v28  ;;  %v2030_v53 = vadd.f32 1e-05, %v2006_v55  ;;  %10052 = vrsqrt.f32 %v2029_v34 }
 0x6f6   :  { %9329 = vmatmul.mubr.msk.f32.gmra.mrb[12].mxu1 %vm282_vm0, %v13435_v18  ;;  %v3275_v10 = vpop.permute.xlu1 %3274 }
 0x6f7   :  { %9373 = vmatmul.mubr.msk.f32.gmra.mrb[36].mxu0 %vm282_vm0, %v13435_v18  ;;  %v13456_v48 = vmax.f32 %v2130_v59, %v3275_v10  ;;  %9331 = vmatprep.mubr.msk.f32.mxu1 %vm282_vm0, %v13444_v61  ;;  %10054 = vrsqrt.f32 %v2030_v53 }
 0x6f8   :  { %9375 = vmatprep.mubr.msk.f32.mxu0 %vm282_vm0, %v13444_v61  ;;  %9773 = vmatprep.subr.bf16.mxu1 %v13448_v14 }
 0x6fa   :  { %v3277_v37 = vpop.permute.xlu0 %3276  ;;  %9332 = vmatmul.mubr.msk.f32.gmra.mrb[14].mxu1 %vm282_vm0, %v13456_v48  ;;  %v3279_v29 = vpop.permute.xlu1 %3278 }
 0x6fb   :  { %v13471_v39 = vmax.f32 %v2131_v9, %v3277_v37  ;;  %9376 = vmatmul.mubr.msk.f32.gmra.mrb[38].mxu0 %vm282_vm0, %v13456_v48  ;;  %v13475_v45 = vmax.f32 %v2132_v1, %v3279_v29 }
 0x6fd   :  { %17168 = vst [vmem:[#allocation45_spill] sm:$0xff] %v13475_v45  ;;  %9334 = vmatprep.mubr.msk.f32.mxu1 %vm282_vm0, %v13471_v39  ;;  %9378 = vmatprep.mubr.msk.f32.mxu0 %vm282_vm0, %v13471_v39 }
 0x6fe   :  { %v3281_v31 = vpop.permute.xlu0 %3280  ;;  %9335 = vmatmul.mubr.msk.f32.gmra.mrb[16].mxu1 %vm282_vm0, %v13475_v45  ;;  %v3283_v36 = vpop.permute.xlu1 %3282 }
 0x6ff   :  { %v13487_v46 = vmax.f32 %v2133_v30, %v3281_v31  ;;  %9379 = vmatmul.mubr.msk.f32.gmra.mrb[40].mxu0 %vm282_vm0, %v13475_v45  ;;  %v13491_v4 = vmax.f32 %v2134_v17, %v3283_v36  ;;  %v10053_v15 = vpop.eup %10052 }
 0x700   :  { %v2077_v13 = vmul.f32 %v10053_v15, %v13103_v7 }
 0x701   :  { %17169 = vst [vmem:[#allocation28_spill] sm:$0xff] %v13487_v46  ;;  %17170 = vst [vmem:[#allocation32_spill] sm:$0xff] %v13491_v4  ;;  %9337 = vmatprep.mubr.msk.f32.mxu1 %vm282_vm0, %v13487_v46  ;;  %9381 = vmatprep.mubr.msk.f32.mxu0 %vm282_vm0, %v13487_v46  ;;  %v10055_v2 = vpop.eup %10054 }
 0x702   :  { %v3285_v41 = vpop.permute.xlu0 %3284  ;;  %9338 = vmatmul.mubr.msk.f32.gmra.mrb[18].mxu1 %vm282_vm0, %v13491_v4  ;;  %v3287_v54 = vpop.permute.xlu1 %3286  ;;  %v2078_v24 = vmul.f32 %v10055_v2, %v13132_v35  ;;  %v2107_v22 = vmul.f32 %v13283_v19, %v2077_v13 }
 0x703   :  { %v13501_v42 = vmax.f32 %v2135_v51, %v3285_v41  ;;  %9382 = vmatmul.mubr.msk.f32.gmra.mrb[42].mxu0 %vm282_vm0, %v13491_v4  ;;  %v13505_v44 = vmax.f32 %v2136_v50, %v3287_v54 }
 0x704   :  { %v2108_v59 = vmul.f32 %v13283_v19, %v2078_v24  ;;  %v2137_v23 = vadd.f32 %v13291_v52, %v2107_v22 }
 0x705   :  { %17171 = vst [vmem:[#allocation30_spill] sm:$0xff] %v13501_v42  ;;  %17172 = vst [vmem:[#allocation58_spill] sm:$0xff] %v13505_v44  ;;  %9340 = vmatprep.mubr.msk.f32.mxu1 %vm282_vm0, %v13501_v42  ;;  %9384 = vmatprep.mubr.msk.f32.mxu0 %vm282_vm0, %v13501_v42 }
 0x706   :  { %9341 = vmatmul.mubr.msk.f32.gmra.mrb[20].mxu1 %vm282_vm0, %v13505_v44  ;;  %v3291_v43 = vpop.permute.xlu1 %3290  ;;  %v2138_v32 = vadd.f32 %v13291_v52, %v2108_v59 }
 0x707   :  { %9385 = vmatmul.mubr.msk.f32.gmra.mrb[44].mxu0 %vm282_vm0, %v13505_v44 }
 0x708   :  { %v13525_v58 = vmax.f32 %v2138_v32, %v3291_v43 }
 0x70a   :  { %17174 = vst [vmem:[#allocation64_spill] sm:$0xff] %v13525_v58 }
 0x72b   :  { %v3289_v33 = vpop.permute.xlu0 %3288 }
 0x72c   :  { %v13523_v20 = vmax.f32 %v2137_v23, %v3289_v33 }
 0x72e   :  { %17173 = vst [vmem:[#allocation61_spill] sm:$0xff] %v13523_v20  ;;  %9343 = vmatprep.mubr.msk.f32.mxu1 %vm282_vm0, %v13523_v20  ;;  %9387 = vmatprep.mubr.msk.f32.mxu0 %vm282_vm0, %v13523_v20 }
 0x72f   :  { %9344 = vmatmul.mubr.msk.f32.gmra.mrb[22].mxu1 %vm282_vm0, %v13525_v58  ;;  %9388 = vmatmul.mubr.msk.f32.gmra.mrb[46].mxu0 %vm282_vm0, %v13525_v58 }
 0x7ad   :  { %v13535_v7 = vpop.f32.mrb[0].mxu1  ;;  %v13537_v35 = vpop.f32.mrb[24].mxu0 }
 0x7ae   :  { %v13539_v19 = vpop.f32.mrb[1].mxu1  ;;  %v13541_v52 = vpop.f32.mrb[25].mxu0  ;;  %v4431_v21 = vsel %vm4427_vm1, %v13537_v35, -inf }
 0x7af   :  { %4432 = vmax.xlane.f32.xlu1 %v4431_v21  ;;  %v4428_v5 = vsel %vm4427_vm1, %v13541_v52, -inf }
 0x7b0   :  { %4429 = vmax.xlane.f32.xlu0 %v4428_v5 }
 0x7b5   :  { %v13547_v10 = vpop.f32.mrb[2].mxu1  ;;  %v13549_v1 = vpop.f32.mrb[26].mxu0 }
 0x7b6   :  { %17175 = vst [vmem:[#allocation48_spill] sm:$0xff] %v13547_v10  ;;  %v13551_v62 = vpop.f32.mrb[3].mxu1  ;;  %v13553_v9 = vpop.f32.mrb[27].mxu0  ;;  %v4437_v25 = vsel %vm4427_vm1, %v13549_v1, -inf }
 0x7b7   :  { %17176 = vst [vmem:[#allocation66_spill] sm:$0xff] %v13551_v62  ;;  %4438 = vmax.xlane.f32.xlu0 %v4437_v25  ;;  %v4434_v30 = vsel %vm4427_vm1, %v13553_v9, -inf }
 0x7b9   :  { %v13557_v40 = vpop.f32.mrb[4].mxu1  ;;  %v13559_v3 = vpop.f32.mrb[28].mxu0 }
 0x7ba   :  { %17177 = vst [vmem:[#allocation63_spill] sm:$0xff] %v13557_v40  ;;  %v13561_v37 = vpop.f32.mrb[5].mxu1  ;;  %v13563_v29 = vpop.f32.mrb[29].mxu0  ;;  %v4443_v17 = vsel %vm4427_vm1, %v13559_v3, -inf }
 0x7bb   :  { %17178 = vst [vmem:[#allocation65_spill] sm:$0xff] %v13561_v37  ;;  %4435 = vmax.xlane.f32.xlu0 %v4434_v30  ;;  %4444 = vmax.xlane.f32.xlu1 %v4443_v17  ;;  %v4440_v36 = vsel %vm4427_vm1, %v13563_v29, -inf }
 0x7bd   :  { %v13569_v60 = vpop.f32.mrb[6].mxu1 }
 0x7be   :  { %17179 = vst [vmem:[#allocation42_spill] sm:$0xff] %v13569_v60  ;;  %v13571_v27 = vpop.f32.mrb[30].mxu0  ;;  %v13573_v31 = vpop.f32.mrb[7].mxu1 }
 0x7bf   :  { %17180 = vst [vmem:[#allocation67_spill] sm:$0xff] %v13573_v31  ;;  %v13577_v51 = vpop.f32.mrb[31].mxu0  ;;  %4441 = vmax.xlane.f32.xlu0 %v4440_v36  ;;  %v4449_v50 = vsel %vm4427_vm1, %v13571_v27, -inf }
 0x7c0   :  { %4450 = vmax.xlane.f32.xlu1 %v4449_v50  ;;  %v4446_v55 = vsel %vm4427_vm1, %v13577_v51, -inf }
 0x7c1   :  { %v13581_v41 = vpop.f32.mrb[8].mxu1 }
 0x7c2   :  { %17181 = vst [vmem:[#allocation69_spill] sm:$0xff] %v13581_v41  ;;  %v13583_v54 = vpop.f32.mrb[32].mxu0  ;;  %v13585_v12 = vpop.f32.mrb[9].mxu1 }
 0x7c3   :  { %17182 = vst [vmem:[#allocation38_spill] sm:$0xff] %v13585_v12  ;;  %v13589_v34 = vpop.f32.mrb[33].mxu0  ;;  %4447 = vmax.xlane.f32.xlu0 %v4446_v55  ;;  %v4455_v53 = vsel %vm4427_vm1, %v13583_v54, -inf }
 0x7c4   :  { %4456 = vmax.xlane.f32.xlu1 %v4455_v53  ;;  %v4452_v24 = vsel %vm4427_vm1, %v13589_v34, -inf }
 0x7c5   :  { %v13593_v15 = vpop.f32.mrb[10].mxu1 }
 0x7c6   :  { %17183 = vst [vmem:[#allocation40_spill] sm:$0xff] %v13593_v15  ;;  %v13595_v2 = vpop.f32.mrb[34].mxu0  ;;  %v13597_v13 = vpop.f32.mrb[11].mxu1 }
 0x7c7   :  { %17184 = vst [vmem:[#allocation68_spill] sm:$0xff] %v13597_v13  ;;  %v13601_v22 = vpop.f32.mrb[35].mxu0  ;;  %4453 = vmax.xlane.f32.xlu0 %v4452_v24  ;;  %v4461_v59 = vsel %vm4427_vm1, %v13595_v2, -inf }
 0x7c8   :  { %4462 = vmax.xlane.f32.xlu1 %v4461_v59  ;;  %v4458_v33 = vsel %vm4427_vm1, %v13601_v22, -inf }
 0x7c9   :  { %v13605_v43 = vpop.f32.mrb[12].mxu1 }
 0x7ca   :  { %17185 = vst [vmem:[#allocation70_spill] sm:$0xff] %v13605_v43  ;;  %v13607_v23 = vpop.f32.mrb[36].mxu0  ;;  %v13609_v32 = vpop.f32.mrb[13].mxu1 }
 0x7cb   :  { %17186 = vst [vmem:[#allocation52_spill] sm:$0xff] %v13609_v32  ;;  %v13613_v21 = vpop.f32.mrb[37].mxu0  ;;  %4459 = vmax.xlane.f32.xlu0 %v4458_v33  ;;  %v4467_v5 = vsel %vm4427_vm1, %v13607_v23, -inf }
 0x7cc   :  { %4468 = vmax.xlane.f32.xlu1 %v4467_v5  ;;  %v4464_v36 = vsel %vm4427_vm1, %v13613_v21, -inf }
 0x7cd   :  { %v13617_v25 = vpop.f32.mrb[14].mxu1 }
 0x7ce   :  { %17187 = vst [vmem:[#allocation60_spill] sm:$0xff] %v13617_v25  ;;  %v13619_v30 = vpop.f32.mrb[38].mxu0  ;;  %v13621_v17 = vpop.f32.mrb[15].mxu1 }
 0x7cf   :  { %17188 = vst [vmem:[#allocation54_spill] sm:$0xff] %v13621_v17  ;;  %v13625_v50 = vpop.f32.mrb[39].mxu0  ;;  %4465 = vmax.xlane.f32.xlu0 %v4464_v36  ;;  %v4473_v55 = vsel %vm4427_vm1, %v13619_v30, -inf }
 0x7d0   :  { %4474 = vmax.xlane.f32.xlu1 %v4473_v55  ;;  %v4470_v33 = vsel %vm4427_vm1, %v13625_v50, -inf }
 0x7d1   :  { %v13629_v53 = vpop.f32.mrb[16].mxu1 }
 0x7d2   :  { %17189 = vst [vmem:[#allocation51_spill] sm:$0xff] %v13629_v53  ;;  %v13631_v24 = vpop.f32.mrb[40].mxu0  ;;  %v13633_v59 = vpop.f32.mrb[17].mxu1 }
 0x7d3   :  { %17190 = vst [vmem:[#allocation46_spill] sm:$0xff] %v13633_v59  ;;  %v13637_v5 = vpop.f32.mrb[41].mxu0  ;;  %4471 = vmax.xlane.f32.xlu0 %v4470_v33  ;;  %v4479_v18 = vsel %vm4427_vm1, %v13631_v24, -inf }
 0x7d4   :  { %4480 = vmax.xlane.f32.xlu1 %v4479_v18  ;;  %v4476_v0 = vsel %vm4427_vm1, %v13637_v5, -inf }
 0x7d5   :  { %v13641_v36 = vpop.f32.mrb[18].mxu1 }
 0x7d6   :  { %17191 = vst [vmem:[#allocation50_spill] sm:$0xff] %v13641_v36  ;;  %v13643_v28 = vpop.f32.mrb[42].mxu0  ;;  %v13645_v55 = vpop.f32.mrb[19].mxu1 }
 0x7d7   :  { %17192 = vst [vmem:[#allocation44_spill] sm:$0xff] %v13645_v55  ;;  %v13649_v63 = vpop.f32.mrb[43].mxu0  ;;  %4477 = vmax.xlane.f32.xlu0 %v4476_v0  ;;  %v4485_v26 = vsel %vm4427_vm1, %v13643_v28, -inf }
 0x7d8   :  { %4486 = vmax.xlane.f32.xlu1 %v4485_v26  ;;  %v4482_v8 = vsel %vm4427_vm1, %v13649_v63, -inf }
 0x7d9   :  { %v13653_v33 = vpop.f32.mrb[20].mxu1 }
 0x7da   :  { %17193 = vst [vmem:[#allocation71_spill] sm:$0xff] %v13653_v33  ;;  %v13655_v11 = vpop.f32.mrb[44].mxu0  ;;  %v13657_v18 = vpop.f32.mrb[21].mxu1 }
 0x7db   :  { %17194 = vst [vmem:[#allocation27_spill] sm:$0xff] %v13657_v18  ;;  %v13661_v56 = vpop.f32.mrb[45].mxu0  ;;  %4483 = vmax.xlane.f32.xlu0 %v4482_v8  ;;  %v4491_v6 = vsel %vm4427_vm1, %v13655_v11, -inf }
 0x7dc   :  { %4492 = vmax.xlane.f32.xlu1 %v4491_v6  ;;  %v4488_v0 = vsel %vm4427_vm1, %v13661_v56, -inf }
 0x7df   :  { %4489 = vmax.xlane.f32.xlu0 %v4488_v0 }
 0x802   :  { %v13667_v26 = vpop.f32.mrb[22].mxu1  ;;  %v13669_v38 = vpop.f32.mrb[46].mxu0 }
 0x803   :  { %17195 = vst [vmem:[#allocation56_spill] sm:$0xff] %v13667_v26  ;;  %v13671_v47 = vpop.f32.mrb[23].mxu1  ;;  %v13673_v49 = vpop.f32.mrb[47].mxu0  ;;  %v4497_v57 = vsel %vm4427_vm1, %v13669_v38, -inf }
 0x804   :  { %17196 = vst [vmem:[#allocation53_spill] sm:$0xff] %v13671_v47  ;;  %4498 = vmax.xlane.f32.xlu1 %v4497_v57  ;;  %v4494_v8 = vsel %vm4427_vm1, %v13673_v49, -inf }
 0x805   :  { %4495 = vmax.xlane.f32.xlu0 %v4494_v8 }
 0x83c   :  { %v4433_v6 = vpop.xlane.xlu1 %4432 }
 0x83d   :  { %v4501_v16 = vsub.f32 %v13537_v35, %v4433_v6  ;;  %v4430_v0 = vpop.xlane.xlu0 %4429 }
 0x83e   :  { %v4500_v26 = vsub.f32 %v13541_v52, %v4430_v0 }
 0x83f   :  { %v4526_v18 = vmul.f32 1.442695, %v4501_v16 }
 0x840   :  { %v4524_v33 = vmul.f32 1.442695, %v4500_v26 }
 0x841   :  { %10056 = vpow2.f32 %v4526_v18 }
 0x842   :  { %10058 = vpow2.f32 %v4524_v33 }
 0x844   :  { %v4439_v47 = vpop.xlane.xlu0 %4438 }
 0x845   :  { %v4503_v55 = vsub.f32 %v13549_v1, %v4439_v47 }
 0x847   :  { %v4530_v36 = vmul.f32 1.442695, %v4503_v55 }
 0x848   :  { %v4436_v59 = vpop.xlane.xlu0 %4435  ;;  %v4445_v57 = vpop.xlane.xlu1 %4444 }
 0x849   :  { %10060 = vpow2.f32 %v4530_v36  ;;  %v4502_v53 = vsub.f32 %v13553_v9, %v4436_v59  ;;  %v4505_v8 = vsub.f32 %v13559_v3, %v4445_v57 }
 0x84b   :  { %v13684_v17 = vpop.eup %10056  ;;  %v4528_v35 = vmul.f32 1.442695, %v4502_v53  ;;  %v4534_v6 = vmul.f32 1.442695, %v4505_v8 }
 0x84c   :  { %v13686_v52 = vpop.eup %10058  ;;  %v4442_v16 = vpop.xlane.xlu0 %4441  ;;  %v4575_v33 = vsel %vm4427_vm1, %v13684_v17, 0.0 }
 0x84d   :  { %10062 = vpow2.f32 %v4528_v35  ;;  %v4504_v47 = vsub.f32 %v13563_v29, %v4442_v16  ;;  %v4451_v1 = vpop.xlane.xlu1 %4450  ;;  %4576 = vadd.xlane.f32.xlu1 %v4575_v33  ;;  %v4572_v9 = vsel %vm4427_vm1, %v13686_v52, 0.0 }
 0x84e   :  { %10064 = vpow2.f32 %v4534_v6  ;;  %v4507_v3 = vsub.f32 %v13571_v27, %v4451_v1  ;;  %4573 = vadd.xlane.f32.xlu0 %v4572_v9 }
 0x84f   :  { %v4532_v53 = vmul.f32 1.442695, %v4504_v47 }
 0x850   :  { %v4538_v59 = vmul.f32 1.442695, %v4507_v3  ;;  %v4448_v36 = vpop.xlane.xlu0 %4447 }
 0x851   :  { %10066 = vpow2.f32 %v4532_v53  ;;  %v4506_v55 = vsub.f32 %v13577_v51, %v4448_v36  ;;  %v4457_v18 = vpop.xlane.xlu1 %4456 }
 0x852   :  { %10068 = vpow2.f32 %v4538_v59  ;;  %v4509_v26 = vsub.f32 %v13583_v54, %v4457_v18 }
 0x853   :  { %v13696_v29 = vpop.eup %10060  ;;  %v4536_v0 = vmul.f32 1.442695, %v4506_v55 }
 0x854   :  { %v4542_v57 = vmul.f32 1.442695, %v4509_v26  ;;  %v4454_v8 = vpop.xlane.xlu0 %4453  ;;  %v4581_v35 = vsel %vm4427_vm1, %v13696_v29, 0.0 }
 0x855   :  { %10070 = vpow2.f32 %v4536_v0  ;;  %v4508_v27 = vsub.f32 %v13589_v34, %v4454_v8  ;;  %v4463_v6 = vpop.xlane.xlu1 %4462  ;;  %4582 = vadd.xlane.f32.xlu1 %v4581_v35 }
 0x856   :  { %10072 = vpow2.f32 %v4542_v57  ;;  %v4511_v51 = vsub.f32 %v13595_v2, %v4463_v6 }
 0x857   :  { %v13702_v16 = vpop.eup %10062  ;;  %v4540_v33 = vmul.f32 1.442695, %v4508_v27 }
 0x858   :  { %v13704_v54 = vpop.eup %10064  ;;  %v4546_v47 = vmul.f32 1.442695, %v4511_v51  ;;  %v4460_v1 = vpop.xlane.xlu0 %4459  ;;  %v4578_v9 = vsel %vm4427_vm1, %v13702_v16, 0.0 }
 0x859   :  { %10074 = vpow2.f32 %v4540_v33  ;;  %v4510_v3 = vsub.f32 %v13601_v22, %v4460_v1  ;;  %v4469_v53 = vpop.xlane.xlu1 %4468  ;;  %4579 = vadd.xlane.f32.xlu0 %v4578_v9  ;;  %v4587_v34 = vsel %vm4427_vm1, %v13704_v54, 0.0 }
 0x85a   :  { %10076 = vpow2.f32 %v4546_v47  ;;  %v4513_v2 = vsub.f32 %v13607_v23, %v4469_v53  ;;  %4588 = vadd.xlane.f32.xlu1 %v4587_v34 }
 0x85b   :  { %v13712_v59 = vpop.eup %10066  ;;  %v4544_v36 = vmul.f32 1.442695, %v4510_v3 }
 0x85c   :  { %v13714_v55 = vpop.eup %10068  ;;  %v4550_v18 = vmul.f32 1.442695, %v4513_v2  ;;  %v4466_v26 = vpop.xlane.xlu0 %4465  ;;  %v4584_v0 = vsel %vm4427_vm1, %v13712_v59, 0.0 }
 0x85d   :  { %10078 = vpow2.f32 %v4544_v36  ;;  %v4512_v22 = vsub.f32 %v13613_v21, %v4466_v26  ;;  %v4475_v57 = vpop.xlane.xlu1 %4474  ;;  %4585 = vadd.xlane.f32.xlu0 %v4584_v0  ;;  %v4593_v8 = vsel %vm4427_vm1, %v13714_v55, 0.0 }
 0x85e   :  { %10080 = vpow2.f32 %v4550_v18  ;;  %v4515_v23 = vsub.f32 %v13619_v30, %v4475_v57  ;;  %4594 = vadd.xlane.f32.xlu1 %v4593_v8 }
 0x85f   :  { %v13722_v35 = vpop.eup %10070  ;;  %v4548_v27 = vmul.f32 1.442695, %v4512_v22 }
 0x860   :  { %v13724_v6 = vpop.eup %10072  ;;  %v4554_v51 = vmul.f32 1.442695, %v4515_v23  ;;  %v4472_v33 = vpop.xlane.xlu0 %4471  ;;  %v4590_v47 = vsel %vm4427_vm1, %v13722_v35, 0.0 }
 0x861   :  { %10082 = vpow2.f32 %v4548_v27  ;;  %v4514_v21 = vsub.f32 %v13625_v50, %v4472_v33  ;;  %v4481_v1 = vpop.xlane.xlu1 %4480  ;;  %4591 = vadd.xlane.f32.xlu0 %v4590_v47  ;;  %v4599_v9 = vsel %vm4427_vm1, %v13724_v6, 0.0 }
 0x862   :  { %10084 = vpow2.f32 %v4554_v51  ;;  %v4517_v30 = vsub.f32 %v13631_v24, %v4481_v1  ;;  %4600 = vadd.xlane.f32.xlu1 %v4599_v9 }
 0x863   :  { %v13732_v3 = vpop.eup %10074  ;;  %v4552_v53 = vmul.f32 1.442695, %v4514_v21 }
 0x864   :  { %v13734_v34 = vpop.eup %10076  ;;  %v4558_v2 = vmul.f32 1.442695, %v4517_v30  ;;  %v4478_v36 = vpop.xlane.xlu0 %4477  ;;  %v4596_v18 = vsel %vm4427_vm1, %v13732_v3, 0.0 }
 0x865   :  { %10086 = vpow2.f32 %v4552_v53  ;;  %v4516_v50 = vsub.f32 %v13637_v5, %v4478_v36  ;;  %v4487_v26 = vpop.xlane.xlu1 %4486  ;;  %4597 = vadd.xlane.f32.xlu0 %v4596_v18  ;;  %v4605_v0 = vsel %vm4427_vm1, %v13734_v34, 0.0 }
 0x866   :  { %10088 = vpow2.f32 %v4558_v2  ;;  %v4519_v24 = vsub.f32 %v13643_v28, %v4487_v26  ;;  %4606 = vadd.xlane.f32.xlu1 %v4605_v0 }
 0x867   :  { %v13742_v22 = vpop.eup %10078  ;;  %v4556_v57 = vmul.f32 1.442695, %v4516_v50 }
 0x868   :  { %v13744_v8 = vpop.eup %10080  ;;  %v4562_v23 = vmul.f32 1.442695, %v4519_v24  ;;  %v4484_v27 = vpop.xlane.xlu0 %4483  ;;  %v4602_v51 = vsel %vm4427_vm1, %v13742_v22, 0.0 }
 0x869   :  { %10090 = vpow2.f32 %v4556_v57  ;;  %v4518_v5 = vsub.f32 %v13649_v63, %v4484_v27  ;;  %v4493_v33 = vpop.xlane.xlu1 %4492  ;;  %4603 = vadd.xlane.f32.xlu0 %v4602_v51  ;;  %v4611_v47 = vsel %vm4427_vm1, %v13744_v8, 0.0 }
 0x86a   :  { %10092 = vpow2.f32 %v4562_v23  ;;  %v4521_v28 = vsub.f32 %v13655_v11, %v4493_v33  ;;  %4612 = vadd.xlane.f32.xlu1 %v4611_v47 }
 0x86b   :  { %v13752_v21 = vpop.eup %10082  ;;  %v4560_v1 = vmul.f32 1.442695, %v4518_v5 }
 0x86c   :  { %v13754_v9 = vpop.eup %10084  ;;  %v4566_v30 = vmul.f32 1.442695, %v4521_v28  ;;  %v4490_v53 = vpop.xlane.xlu0 %4489  ;;  %v4608_v2 = vsel %vm4427_vm1, %v13752_v21, 0.0 }
 0x86d   :  { %10094 = vpow2.f32 %v4560_v1  ;;  %v4520_v63 = vsub.f32 %v13661_v56, %v4490_v53  ;;  %4609 = vadd.xlane.f32.xlu0 %v4608_v2  ;;  %v4617_v36 = vsel %vm4427_vm1, %v13754_v9, 0.0 }
 0x86e   :  { %10096 = vpow2.f32 %v4566_v30  ;;  %4618 = vadd.xlane.f32.xlu1 %v4617_v36 }
 0x86f   :  { %v13761_v11 = vpop.eup %10086  ;;  %v4564_v18 = vmul.f32 1.442695, %v4520_v63 }
 0x870   :  { %v13763_v50 = vpop.eup %10088  ;;  %v4614_v26 = vsel %vm4427_vm1, %v13761_v11, 0.0 }
 0x871   :  { %10098 = vpow2.f32 %v4564_v18  ;;  %4615 = vadd.xlane.f32.xlu0 %v4614_v26  ;;  %v4623_v0 = vsel %vm4427_vm1, %v13763_v50, 0.0 }
 0x872   :  { %4624 = vadd.xlane.f32.xlu1 %v4623_v0 }
 0x873   :  { %v13769_v56 = vpop.eup %10090 }
 0x874   :  { %v13771_v24 = vpop.eup %10092  ;;  %v4620_v57 = vsel %vm4427_vm1, %v13769_v56, 0.0 }
 0x875   :  { %4621 = vadd.xlane.f32.xlu0 %v4620_v57  ;;  %v4629_v23 = vsel %vm4427_vm1, %v13771_v24, 0.0 }
 0x876   :  { %4630 = vadd.xlane.f32.xlu1 %v4629_v23 }
 0x877   :  { %v13777_v27 = vpop.eup %10094 }
 0x878   :  { %v13779_v51 = vpop.eup %10096  ;;  %v4626_v5 = vsel %vm4427_vm1, %v13777_v27, 0.0 }
 0x879   :  { %4627 = vadd.xlane.f32.xlu0 %v4626_v5  ;;  %v4635_v33 = vsel %vm4427_vm1, %v13779_v51, 0.0 }
 0x87a   :  { %4636 = vadd.xlane.f32.xlu1 %v4635_v33 }
 0x87b   :  { %v13785_v47 = vpop.eup %10098 }
 0x87c   :  { %v4632_v28 = vsel %vm4427_vm1, %v13785_v47, 0.0 }
 0x87d   :  { %4633 = vadd.xlane.f32.xlu0 %v4632_v28 }
 0x891   :  { %v4499_v1 = vpop.xlane.xlu1 %4498 }
 0x892   :  { %v4523_v30 = vsub.f32 %v13669_v38, %v4499_v1  ;;  %v4496_v53 = vpop.xlane.xlu0 %4495 }
 0x893   :  { %v4522_v2 = vsub.f32 %v13673_v49, %v4496_v53 }
 0x894   :  { %v4570_v63 = vmul.f32 1.442695, %v4523_v30 }
 0x895   :  { %v4568_v36 = vmul.f32 1.442695, %v4522_v2 }
 0x896   :  { %10100 = vpow2.f32 %v4570_v63 }
 0x897   :  { %10102 = vpow2.f32 %v4568_v36 }
 0x8a0   :  { %v13791_v18 = vpop.eup %10100 }
 0x8a1   :  { %v13793_v26 = vpop.eup %10102  ;;  %v4641_v0 = vsel %vm4427_vm1, %v13791_v18, 0.0 }
 0x8a2   :  { %4642 = vadd.xlane.f32.xlu1 %v4641_v0  ;;  %v4638_v57 = vsel %vm4427_vm1, %v13793_v26, 0.0 }
 0x8a3   :  { %4639 = vadd.xlane.f32.xlu0 %v4638_v57 }
 0x8da   :  { %v4577_v38 = vpop.xlane.xlu1 %4576 }
 0x8db   :  { %10104 = vrcp.f32 %v4577_v38  ;;  %v4574_v23 = vpop.xlane.xlu0 %4573 }
 0x8dc   :  { %10106 = vrcp.f32 %v4574_v23 }
 0x8e2   :  { %v4583_v49 = vpop.xlane.xlu1 %4582 }
 0x8e3   :  { %10108 = vrcp.f32 %v4583_v49 }
 0x8e5   :  { %v10105_v5 = vpop.eup %10104 }
 0x8e6   :  { %v10107_v33 = vpop.eup %10106  ;;  %v4669_v28 = vmul.f32 %v10105_v5, %v4577_v38  ;;  %v4580_v1 = vpop.xlane.xlu0 %4579 }
 0x8e7   :  { %v4668_v30 = vmul.f32 %v10107_v33, %v4574_v23  ;;  %10110 = vrcp.f32 %v4580_v1  ;;  %v4589_v53 = vpop.xlane.xlu1 %4588 }
 0x8e8   :  { %v4693_v2 = vsub.f32 2.0, %v4669_v28  ;;  %10112 = vrcp.f32 %v4589_v53 }
 0x8e9   :  { %v4692_v63 = vsub.f32 2.0, %v4668_v30 }
 0x8ea   :  { %v4586_v36 = vpop.xlane.xlu0 %4585  ;;  %v4717_v32 = vmul.f32 %v10105_v5, %v4693_v2 }
 0x8eb   :  { %v4716_v0 = vmul.f32 %v10107_v33, %v4692_v63  ;;  %10114 = vrcp.f32 %v4586_v36  ;;  %v4595_v57 = vpop.xlane.xlu1 %4594 }
 0x8ec   :  { %v13806_v28 = vmul.f32 %v13684_v17, %v4717_v32 }
 0x8ed   :  { %v10109_v25 = vpop.eup %10108  ;;  %v13800_v43 = vmul.f32 %v13686_v52, %v4716_v0 }
 0x8ee   :  { %v4592_v13 = vpop.xlane.xlu0 %4591  ;;  %v4671_v15 = vmul.f32 %v10109_v25, %v4583_v49  ;;  %17198 = vst [vmem:[#allocation72_spill] sm:$0xff] %v13806_v28 }
 0x8ef   :  { %17197 = vst [vmem:[#allocation73_spill] sm:$0xff] %v13800_v43  ;;  %10116 = vrcp.f32 %v4592_v13  ;;  %v13802_v38 = vpop.xlane.xlu1 %4600  ;;  %4764 = vxpose.xlu0.b32.start [1/12] (short) (narrow) %v13800_v43, 16 }
 0x8f0   :  { %v4695_v63 = vsub.f32 2.0, %v4671_v15  ;;  %10118 = vrcp.f32 %v4595_v57 }
 0x8f1   :  { %v10111_v23 = vpop.eup %10110 }
 0x8f2   :  { %v4670_v30 = vmul.f32 %v10111_v23, %v4580_v1  ;;  %v4598_v33 = vpop.xlane.xlu0 %4597  ;;  %v10113_v52 = vpop.eup %10112  ;;  %v4719_v43 = vmul.f32 %v10109_v25, %v4695_v63 }
 0x8f3   :  { %v13808_v12 = vpop.xlane.xlu1 %4606  ;;  %4765 = vxpose.xlu0.b32.cont [2/12] (short) (narrow) %v13806_v28, 16  ;;  %10120 = vrcp.f32 %v4598_v33  ;;  %v4673_v32 = vmul.f32 %v10113_v52, %v4589_v53 }
 0x8f4   :  { %v4694_v5 = vsub.f32 2.0, %v4670_v30  ;;  %v13819_v25 = vmul.f32 %v13696_v29, %v4719_v43 }
 0x8f5   :  { %v10115_v49 = vpop.eup %10114 }
 0x8f6   :  { %v4718_v2 = vmul.f32 %v10111_v23, %v4694_v5  ;;  %v4672_v0 = vmul.f32 %v10115_v49, %v4586_v36  ;;  %v13811_v41 = vpop.xlane.xlu0 %4603  ;;  %v4697_v36 = vsub.f32 2.0, %v4673_v32  ;;  %17200 = vst [vmem:[#allocation74_spill] sm:$0xff] %v13819_v25 }
 0x8f7   :  { %v4613_v31 = vpop.xlane.xlu1 %4612 }
 0x8f8   :  { %v4696_v17 = vsub.f32 2.0, %v4672_v0  ;;  %10122 = vrcp.f32 %v4613_v31  ;;  %v13814_v15 = vmul.f32 %v13702_v16, %v4718_v2  ;;  %v4721_v16 = vmul.f32 %v10113_v52, %v4697_v36 }
 0x8f9   :  { %v10117_v1 = vpop.eup %10116  ;;  %10124 = vrcp.f32 %v13802_v38 }
 0x8fa   :  { %17199 = vst [vmem:[#allocation77_spill] sm:$0xff] %v13814_v15  ;;  %v4610_v28 = vpop.xlane.xlu0 %4609  ;;  %4766 = vxpose.xlu0.b32.cont [3/12] (short) (narrow) %v13814_v15, 16  ;;  %v4720_v30 = vmul.f32 %v10115_v49, %v4696_v17  ;;  %v4674_v5 = vmul.f32 %v10117_v1, %v4592_v13  ;;  %v10119_v53 = vpop.eup %10118  ;;  %v13829_v52 = vmul.f32 %v13704_v54, %v4721_v16 }
 0x8fb   :  { %10126 = vrcp.f32 %v4610_v28  ;;  %v4619_v23 = vpop.xlane.xlu1 %4618  ;;  %v4675_v32 = vmul.f32 %v10119_v53, %v4595_v57 }
 0x8fc   :  { %10128 = vrcp.f32 %v4619_v23  ;;  %v4698_v2 = vsub.f32 2.0, %v4674_v5  ;;  %v13824_v0 = vmul.f32 %v13712_v59, %v4720_v30  ;;  %17202 = vst [vmem:[#allocation79_spill] sm:$0xff] %v13829_v52 }
 0x8fd   :  { %v10121_v15 = vpop.eup %10120  ;;  %v4699_v5 = vsub.f32 2.0, %v4675_v32 }
 0x8fe   :  { %v4616_v63 = vpop.xlane.xlu0 %4615  ;;  %4767 = vxpose.xlu0.b32.cont [4/12] (short) (narrow) %v13819_v25, 16  ;;  %17201 = vst [vmem:[#allocation78_spill] sm:$0xff] %v13824_v0  ;;  %v4722_v29 = vmul.f32 %v10117_v1, %v4698_v2  ;;  %v4676_v59 = vmul.f32 %v10121_v15, %v4598_v33 }
 0x8ff   :  { %10130 = vrcp.f32 %v4616_v63  ;;  %v4625_v25 = vpop.xlane.xlu1 %4624 }
 0x900   :  { %10132 = vrcp.f32 %v13811_v41  ;;  %v13833_v1 = vmul.f32 %v13722_v35, %v4722_v29  ;;  %v4700_v54 = vsub.f32 2.0, %v4676_v59 }
 0x902   :  { %v10123_v49 = vpop.eup %10122  ;;  %v4622_v13 = vpop.xlane.xlu0 %4621  ;;  %4768 = vxpose.xlu0.b32.cont [5/12] (short) (narrow) %v13824_v0, 16  ;;  %v4724_v29 = vmul.f32 %v10121_v15, %v4700_v54 }
 0x903   :  { %10134 = vrcp.f32 %v4622_v13  ;;  %v10125_v43 = vpop.eup %10124  ;;  %v4681_v17 = vmul.f32 %v10123_v49, %v4613_v31  ;;  %v4723_v31 = vmul.f32 %v10119_v53, %v4699_v5 }
 0x904   :  { %10136 = vrcp.f32 %v13808_v12  ;;  %v4677_v40 = vmul.f32 %v10125_v43, %v13802_v38  ;;  %v13849_v15 = vmul.f32 %v13732_v3, %v4724_v29 }
 0x905   :  { %v10127_v36 = vpop.eup %10126  ;;  %10138 = vrcp.f32 %v4625_v25  ;;  %v4705_v60 = vsub.f32 2.0, %v4681_v17  ;;  %v4631_v17 = vpop.xlane.xlu1 %4630  ;;  %v13840_v38 = vmul.f32 %v13714_v55, %v4723_v31 }
 0x906   :  { %v4680_v30 = vmul.f32 %v10127_v36, %v4610_v28  ;;  %4769 = vxpose.xlu0.b32.cont [6/12] (short) (narrow) %v13829_v52, 16  ;;  %v10129_v57 = vpop.eup %10128  ;;  %v4628_v37 = vpop.xlane.xlu0 %4627  ;;  %v4701_v35 = vsub.f32 2.0, %v4677_v40 }
 0x907   :  { %10140 = vrcp.f32 %v4628_v37  ;;  %v4729_v28 = vmul.f32 %v10123_v49, %v4705_v60  ;;  %v4683_v33 = vmul.f32 %v10129_v57, %v4619_v23 }
 0x908   :  { %v4704_v0 = vsub.f32 2.0, %v4680_v30  ;;  %10142 = vrcp.f32 %v4631_v17 }
 0x909   :  { %v10131_v2 = vpop.eup %10130  ;;  %v4707_v60 = vsub.f32 2.0, %v4683_v33 }
 0x90a   :  { %v10133_v16 = vpop.eup %10132  ;;  %v4728_v62 = vmul.f32 %v10127_v36, %v4704_v0  ;;  %v4682_v32 = vmul.f32 %v10131_v2, %v4616_v63  ;;  %4770 = vxpose.xlu0.b32.cont [7/12] (short) (narrow) %v13833_v1, 16  ;;  %v4634_v0 = vpop.xlane.xlu0 %4633 }
 0x90b   :  { %v4678_v53 = vmul.f32 %v10133_v16, %v13811_v41  ;;  %10144 = vrcp.f32 %v4634_v0  ;;  %v4731_v49 = vmul.f32 %v10129_v57, %v4707_v60  ;;  %v4637_v36 = vpop.xlane.xlu1 %4636 }
 0x90c   :  { %v4706_v52 = vsub.f32 2.0, %v4682_v32  ;;  %v4752_v30 = vmul.f32 %v13752_v21, %v4728_v62  ;;  %v13845_v62 = vmul.f32 %v13744_v8, %v4729_v28  ;;  %v4725_v21 = vmul.f32 %v10125_v43, %v4701_v35 }
 0x90d   :  { %v10135_v10 = vpop.eup %10134  ;;  %v4702_v55 = vsub.f32 2.0, %v4678_v53  ;;  %10146 = vrcp.f32 %v4637_v36 }
 0x90e   :  { %v10137_v5 = vpop.eup %10136  ;;  %9484 = vmatprep.mubr.msk.f32.mxu0 %vm4427_vm1, %v4752_v30  ;;  %4796 = vxpose.xlu1.b32.start [1/12] (short) (narrow) %v4752_v30, 16  ;;  %v4730_v23 = vmul.f32 %v10131_v2, %v4706_v52  ;;  %v4684_v63 = vmul.f32 %v10135_v10, %v4622_v13  ;;  %17203 = vst [vmem:[#allocation80_spill] sm:$0xff] %v13845_v62 }
 0x90f   :  { %4771 = vxpose.xlu0.b32.cont [8/12] (short) (narrow) %v13840_v38, 16  ;;  %v10139_v40 = vpop.eup %10138  ;;  %v4679_v41 = vmul.f32 %v10137_v5, %v13808_v12  ;;  %v4726_v2 = vmul.f32 %v10133_v16, %v4702_v55  ;;  %v13857_v12 = vmul.f32 %v13724_v6, %v4725_v21 }
 0x910   :  { %v4685_v52 = vmul.f32 %v10139_v40, %v4625_v25  ;;  %v4708_v13 = vsub.f32 2.0, %v4684_v63  ;;  %v13854_v8 = vmul.f32 %v13761_v11, %v4730_v23  ;;  %v13862_v25 = vmul.f32 %v13754_v9, %v4731_v49 }
 0x911   :  { %v10141_v59 = vpop.eup %10140  ;;  %v4703_v43 = vsub.f32 2.0, %v4679_v41  ;;  %17205 = vst [vmem:[#allocation82_spill] sm:$0xff] %v13857_v12  ;;  %v13865_v32 = vmul.f32 %v13742_v22, %v4726_v2  ;;  %v212_v2 = vld [vmem:[%s16655_s6 + $0x8] sm:$0xff] }
 0x912   :  { %4797 = vxpose.xlu1.b32.cont [2/12] (short) (narrow) %v13845_v62, 16  ;;  %17204 = vst [vmem:[#allocation81_spill] sm:$0xff] %v13854_v8  ;;  %v4709_v3 = vsub.f32 2.0, %v4685_v52  ;;  %v4732_v31 = vmul.f32 %v10135_v10, %v4708_v13  ;;  %v4686_v57 = vmul.f32 %v10141_v59, %v4628_v37  ;;  %17206 = vst [vmem:[#allocation83_spill] sm:$0xff] %v13862_v25  ;;  %v10143_v54 = vpop.eup %10142 }
 0x913   :  { %4772 = vxpose.xlu0.b32.cont [9/12] (short) (narrow) %v13849_v15, 16  ;;  %v4727_v11 = vmul.f32 %v10137_v5, %v4703_v43  ;;  %17207 = vst [vmem:[#allocation84_spill] sm:$0xff] %v13865_v32  ;;  %v4687_v16 = vmul.f32 %v10143_v54, %v4631_v17  ;;  %v17217_v43 = vmov 0  }
 0x914   :  { %v4733_v6 = vmul.f32 %v10139_v40, %v4709_v3  ;;  %v4710_v28 = vsub.f32 2.0, %v4686_v57  ;;  %v13870_v33 = vmul.f32 %v13769_v56, %v4732_v31  ;;  %v9780_v31 = vpack.c.bf16 %v13475_v45, %v13471_v39 }
 0x915   :  { %v10145_v10 = vpop.eup %10144  ;;  %v13873_v37 = vmul.f32 %v13734_v34, %v4727_v11  ;;  %v4711_v22 = vsub.f32 2.0, %v4687_v16  ;;  %v9784_v57 = vpack.c.bf16 %v13491_v4, %v13487_v46  ;;  %v9792_v11 = vpack.c.bf16 %v13525_v58, %v13523_v20  ;;  %v13928_v16 = vld [vmem:[#allocation13] sm:$0xff] }
 0x916   :  { %4798 = vxpose.xlu1.b32.cont [3/12] (short) (narrow) %v13854_v8, 16  ;;  %17208 = vst [vmem:[#allocation85_spill] sm:$0xff] %v13870_v33  ;;  %v4734_v9 = vmul.f32 %v10141_v59, %v4710_v28  ;;  %v4688_v30 = vmul.f32 %v10145_v10, %v4634_v0  ;;  %v13878_v35 = vmul.f32 %v13763_v50, %v4733_v6  ;;  %v221_v28 = vld [vmem:[%s16657_s8] sm:$0x3] }
 0x917   :  { %4773 = vxpose.xlu0.b32.cont [10/12] (short) (narrow) %v13857_v12, 16  ;;  %17209 = vst [vmem:[#allocation86_spill] sm:$0xff] %v13873_v37  ;;  %v10147_v29 = vpop.eup %10146  ;;  %v4735_v17 = vmul.f32 %v10143_v54, %v4711_v22  ;;  %v9788_v54 = vpack.c.bf16 %v13505_v44, %v13501_v42 }
 0x918   :  { %17210 = vst [vmem:[#allocation87_spill] sm:$0xff] %v13878_v35  ;;  %v4689_v56 = vmul.f32 %v10147_v29, %v4637_v36  ;;  %v4712_v53 = vsub.f32 2.0, %v4688_v30  ;;  %v13882_v5 = vmul.f32 %v13777_v27, %v4734_v9 }
 0x919   :  { %v13886_v23 = vmul.f32 %v13771_v24, %v4735_v17 }
 0x91a   :  { %4799 = vxpose.xlu1.b32.cont [4/12] (short) (narrow) %v13862_v25, 16  ;;  %17211 = vst [vmem:[#allocation88_spill] sm:$0xff] %v13882_v5  ;;  %v4713_v34 = vsub.f32 2.0, %v4689_v56  ;;  %v4736_v60 = vmul.f32 %v10145_v10, %v4712_v53  ;;  %v17218_v10 = vld [vmem:[#allocation47_spill] sm:$0xff]  ;;  %v17220_v56 = vld [vmem:[#allocation66_spill] sm:$0xff] }
 0x91b   :  { %4774 = vxpose.xlu0.b32.cont [11/12] (short) (narrow) %v13865_v32, 16  ;;  %17212 = vst [vmem:[#allocation89_spill] sm:$0xff] %v13886_v23  ;;  %v3343_v22 = vrot.slane %v221_v28, %v17218_v10  ;;  %v17235_v28 = vld [vmem:[#allocation46_spill] sm:$0xff] }
 0x91c   :  { %v4737_v50 = vmul.f32 %v10147_v29, %v4713_v34  ;;  %v13890_v63 = vmul.f32 %v13785_v47, %v4736_v60  ;;  %v17219_v29 = vld [vmem:[#allocation48_spill] sm:$0xff]  ;;  %v17221_v34 = vld [vmem:[#allocation63_spill] sm:$0xff] }
 0x91d   :  { %v3488_v9 = vadd.f32 %v13535_v7, %v3343_v22  ;;  %v3483_v30 = vadd.f32 %v13539_v19, %v3343_v22  ;;  %v3498_v17 = vadd.f32 %v17219_v29, %v3343_v22  ;;  %v3493_v53 = vadd.f32 %v17220_v56, %v3343_v22  ;;  %v17236_v56 = vld [vmem:[#allocation50_spill] sm:$0xff] }
 0x91e   :  { %4800 = vxpose.xlu1.b32.cont [5/12] (short) (narrow) %v13870_v33, 16  ;;  %17213 = vst [vmem:[#allocation90_spill] sm:$0xff] %v13890_v63  ;;  %v13894_v27 = vmul.f32 %v13779_v51, %v4737_v50  ;;  %v211_v51 = vld [vmem:[%s16655_s6] sm:$0xff]  ;;  %v3508_v60 = vadd.f32 %v17221_v34, %v3343_v22  ;;  %v17222_v50 = vld [vmem:[#allocation65_spill] sm:$0xff]  ;;  %v3563_v29 = vadd.f32 %v17235_v28, %v3343_v22  ;;  %s8764_s6 = sshll.u32 %s10746_s12, 4  ;;  %s8765_s6 = int_to_ptr.vmem [resolvable:$true] %s8764_s6 }
 0x91f   :  { %4775 = vxpose.xlu0.b32.end [12/12] (short) (narrow) %v13873_v37, 16  ;;  %v13963_v34 = vadd.f32 %v17236_v56, %v3343_v22  ;;  %p10691_p11 = scmp.lt.s32.totalorder %s8765_s6, %s8765_s6 }
 0x920   :  { %17214 = vst [vmem:[#allocation91_spill] sm:$0xff] %v13894_v27 }
 0x922   :  { %4801 = vxpose.xlu1.b32.cont [6/12] (short) (narrow) %v13878_v35, 16 }
 0x926   :  { %4802 = vxpose.xlu1.b32.cont [7/12] (short) (narrow) %v13882_v5, 16 }
 0x92a   :  { %4803 = vxpose.xlu1.b32.cont [8/12] (short) (narrow) %v13886_v23, 16 }
 0x92e   :  { %4804 = vxpose.xlu1.b32.cont [9/12] (short) (narrow) %v13890_v63, 16 }
 0x92f   :  { %v4643_v0 = vpop.xlane.xlu1 %4642 }
 0x930   :  { %10148 = vrcp.f32 %v4643_v0  ;;  %v4640_v40 = vpop.xlane.xlu0 %4639 }
 0x931   :  { %10150 = vrcp.f32 %v4640_v40 }
 0x932   :  { %4805 = vxpose.xlu1.b32.cont [10/12] (short) (narrow) %v13894_v27, 16 }
 0x93a   :  { %v10149_v21 = vpop.eup %10148 }
 0x93b   :  { %v10151_v24 = vpop.eup %10150  ;;  %v4691_v41 = vmul.f32 %v10149_v21, %v4643_v0  ;;  %v3503_v0 = vadd.f32 %v17222_v50, %v3343_v22  ;;  %v17237_v50 = vld [vmem:[#allocation44_spill] sm:$0xff] }
 0x93c   :  { %v4690_v55 = vmul.f32 %v10151_v24, %v4640_v40  ;;  %v17223_v40 = vld [vmem:[#allocation42_spill] sm:$0xff] }
 0x93d   :  { %v4715_v49 = vsub.f32 2.0, %v4691_v41 }
 0x93e   :  { %v4714_v52 = vsub.f32 2.0, %v4690_v55  ;;  %v17225_v55 = vld [vmem:[#allocation69_spill] sm:$0xff] }
 0x93f   :  { %v4739_v47 = vmul.f32 %v10149_v21, %v4715_v49  ;;  %v3518_v21 = vadd.f32 %v17223_v40, %v3343_v22  ;;  %v3528_v49 = vadd.f32 %v17225_v55, %v3343_v22  ;;  %v13966_v40 = vadd.f32 %v17237_v50, %v3343_v22 }
 0x940   :  { %v4738_v13 = vmul.f32 %v10151_v24, %v4714_v52  ;;  %v17224_v24 = vld [vmem:[#allocation67_spill] sm:$0xff]  ;;  %v17226_v52 = vld [vmem:[#allocation38_spill] sm:$0xff] }
 0x941   :  { %v13905_v59 = vmul.f32 %v13791_v18, %v4739_v47  ;;  %v9776_v18 = vpack.c.bf16 %v13456_v48, %v13444_v61  ;;  %v3513_v41 = vadd.f32 %v17224_v24, %v3343_v22  ;;  %v17227_v47 = vld [vmem:[#allocation40_spill] sm:$0xff]  ;;  %v17238_v24 = vld [vmem:[#allocation71_spill] sm:$0xff] }
 0x942   :  { %v13898_v36 = vmul.f32 %v13793_v26, %v4738_v13  ;;  %v3523_v13 = vadd.f32 %v17226_v52, %v3343_v22  ;;  %v3538_v7 = vadd.f32 %v17227_v47, %v3343_v22  ;;  %v13969_v55 = vadd.f32 %v17238_v24, %v3343_v22  ;;  %v17239_v52 = vld [vmem:[#allocation27_spill] sm:$0xff] }
 0x943   :  { %17216 = vst [vmem:[#allocation93_spill] sm:$0xff] %v13905_v59  ;;  %v13972_v47 = vadd.f32 %v17239_v52, %v3343_v22 }
 0x944   :  { %17215 = vst [vmem:[#allocation92_spill] sm:$0xff] %v13898_v36  ;;  %4806 = vxpose.xlu1.b32.cont [11/12] (short) (narrow) %v13898_v36, 16 }
 0x948   :  { %9958 = vset.pattern.permute.xlu0 %v17217_v43  ;;  %4807 = vxpose.xlu1.b32.end [12/12] (short) (narrow) %v13905_v59, 16 }
 0x949   :  { %3603 = vperm.xlu0 %9958, %v211_v51   ;;  %v17228_v51 = vld [vmem:[#allocation68_spill] sm:$0xff] }
 0x94a   :  { %v3533_v19 = vadd.f32 %v17228_v51, %v3343_v22  ;;  %v17240_v51 = vld [vmem:[#allocation56_spill] sm:$0xff] }
 0x966   :  { %9959 = vset.pattern.permute.xlu1 %v17217_v43  ;;  %v17229_v43 = vld [vmem:[#allocation70_spill] sm:$0xff] }
 0x967   :  { %3631 = vperm.xlu1 %9959, %v212_v2   ;;  %v3548_v2 = vadd.f32 %v17229_v43, %v3343_v22  ;;  %v13975_v43 = vadd.f32 %v17240_v51, %v3343_v22 }
 0x973   :  { %v4780_v26 = vpop.trf.xlu0 }
 0x974   :  { %9414 = vmatprep.mubr.msk.f32.mxu1 %vm4828_vm2, %v4780_v26 }
 0x977   :  { %v4781_v3 = vpop.trf.xlu0 }
 0x978   :  { %9415 = vmatmul.mubr.msk.f32.vlgmr.msra.gmra.mrb[24].mxu1 %vm4828_vm2, %v4781_v3  ;;  %v17231_v3 = vld [vmem:[#allocation52_spill] sm:$0xff] }
 0x979   :  { %9775 = vmatpush3.bf16.msra.mxu1 %v13448_v14 }
 0x97a   :  { %9777 = vmatprep.subr.bf16.mxu1 %v9776_v18 }
 0x97d   :  { %9779 = vmatpush3.bf16.msra.mxu1 %v9776_v18  ;;  %v13952_v18 = vadd.f32 %v17231_v3, %v3343_v22  ;;  %v17241_v3 = vld [vmem:[#allocation53_spill] sm:$0xff] }
 0x97e   :  { %9781 = vmatprep.subr.bf16.mxu1 %v9780_v31 }
 0x981   :  { %9783 = vmatpush3.bf16.msra.mxu1 %v9780_v31  ;;  %v17232_v31 = vld [vmem:[#allocation60_spill] sm:$0xff] }
 0x982   :  { %9785 = vmatprep.subr.bf16.mxu1 %v9784_v57 }
 0x985   :  { %9787 = vmatpush3.bf16.msra.mxu1 %v9784_v57  ;;  %v13955_v57 = vadd.f32 %v17232_v31, %v3343_v22  ;;  %v13978_v31 = vadd.f32 %v17241_v3, %v3343_v22 }
 0x986   :  { %9789 = vmatprep.subr.bf16.mxu1 %v9788_v54 }
 0x989   :  { %9791 = vmatpush3.bf16.msra.mxu1 %v9788_v54  ;;  %v17233_v54 = vld [vmem:[#allocation54_spill] sm:$0xff] }
 0x98a   :  { %9793 = vmatprep.subr.bf16.mxu1 %v9792_v11 }
 0x98d   :  { %9795 = vmatpush3.bf16.msra.mxu1 %v9792_v11  ;;  %v3553_v11 = vadd.f32 %v17233_v54, %v3343_v22 }
 0x99c   :  { %v4812_v14 = vpop.trf.xlu1 }
 0x99d   :  { %9441 = vmatprep.mubr.msk.f32.mxu1 %vm4828_vm2, %v4812_v14  ;;  %v17234_v14 = vld [vmem:[#allocation51_spill] sm:$0xff] }
 0x9a0   :  { %v4813_v6 = vpop.trf.xlu1 }
 0x9a1   :  { %9442 = vmatmul.mubr.msk.f32.vlgmr.msra.gmra.mrb[26].mxu1 %vm4828_vm2, %v4813_v6  ;;  %v13959_v6 = vadd.f32 %v17234_v14, %v3343_v22 }
 0x9a2   :  { %9448 = vmatprep.mubr.msk.f32.mxu1 %vm4427_vm1, %v13928_v16 }
 0x9c8   :  { %v13949_v26 = vpop.permute.xlu0 %3603 }
 0x9c9   :  { %17230 = vst [vmem:[#allocation48_spill] sm:$0xff] %v13949_v26  ;;  %v3608_v54 = vmul.f32 %v13949_v26, %v3488_v9  ;;  %v13982_v14 = vmul.f32 %v13949_v26, %v3343_v22  ;;  %v3610_v28 = vmul.f32 %v13949_v26, %v3498_v17  ;;  %v3607_v56 = vmul.f32 %v13949_v26, %v3483_v30 }
 0x9ca   :  { %v3612_v50 = vmul.f32 %v13949_v26, %v3508_v60  ;;  %v3609_v24 = vmul.f32 %v13949_v26, %v3493_v53  ;;  %v3614_v52 = vmul.f32 %v13949_v26, %v3518_v21  ;;  %v3611_v51 = vmul.f32 %v13949_v26, %v3503_v0 }
 0x9cb   :  { %v3616_v3 = vmul.f32 %v13949_v26, %v3528_v49  ;;  %v3613_v10 = vmul.f32 %v13949_v26, %v3513_v41  ;;  %v3615_v58 = vmul.f32 %v13949_v26, %v3523_v13  ;;  %v3619_v22 = vmul.f32 %v13949_v26, %v3548_v2 }
 0x9cc   :  { %v3617_v20 = vmul.f32 %v13949_v26, %v3533_v19  ;;  %v3621_v44 = vmul.f32 %v13949_v26, %v13955_v57  ;;  %v3618_v42 = vmul.f32 %v13949_v26, %v13952_v18  ;;  %v3623_v4 = vmul.f32 %v13949_v26, %v13959_v6 }
 0x9cd   :  { %v3620_v46 = vmul.f32 %v13949_v26, %v3553_v11  ;;  %v3625_v59 = vmul.f32 %v13949_v26, %v13963_v34  ;;  %v3622_v36 = vmul.f32 %v13949_v26, %v3563_v29  ;;  %v3627_v27 = vmul.f32 %v13949_v26, %v13969_v55 }
 0x9ce   :  { %v3624_v63 = vmul.f32 %v13949_v26, %v13966_v40 }
 0x9e6   :  { %v14002_v45 = vpop.permute.xlu1 %3631 }
 0x9e7   :  { %17242 = vst [vmem:[#allocation66_spill] sm:$0xff] %v14002_v45  ;;  %v3636_v23 = vmul.f32 %v14002_v45, %v3493_v53  ;;  %v3634_v5 = vmul.f32 %v14002_v45, %v3483_v30  ;;  %v3638_v35 = vmul.f32 %v14002_v45, %v3503_v0  ;;  %v3635_v33 = vmul.f32 %v14002_v45, %v3488_v9 }
 0x9e8   :  { %v3640_v25 = vmul.f32 %v14002_v45, %v3513_v41  ;;  %v3637_v8 = vmul.f32 %v14002_v45, %v3498_v17  ;;  %v3642_v62 = vmul.f32 %v14002_v45, %v3523_v13  ;;  %v3639_v37 = vmul.f32 %v14002_v45, %v3508_v60 }
 0x9e9   :  { %v14019_v32 = vadd.f32 %v3636_v23, %v3608_v54  ;;  %v14022_v12 = vadd.f32 %v3634_v5, %v13982_v14  ;;  %v14024_v53 = vadd.f32 %v3638_v35, %v3610_v28  ;;  %v14026_v30 = vadd.f32 %v3635_v33, %v3607_v56 }
 0x9ea   :  { %v14028_v0 = vadd.f32 %v3640_v25, %v3612_v50  ;;  %v14030_v9 = vadd.f32 %v3637_v8, %v3609_v24  ;;  %v14032_v41 = vadd.f32 %v3642_v62, %v3614_v52  ;;  %v14034_v17 = vadd.f32 %v3639_v37, %v3611_v51 }
 0x9eb   :  { %3710 = vrot.lane.b32.xlu0 %v14019_v32, %s10745_s20  ;;  %3706 = vrot.lane.b32.xlu1 %v14022_v12, %s10745_s20  ;;  %v3644_v5 = vmul.f32 %v14002_v45, %v3533_v19  ;;  %v3641_v35 = vmul.f32 %v14002_v45, %v3518_v21  ;;  %v3626_v25 = vmul.f32 %v13949_v26, %v13972_v47 }
 0x9ec   :  { %v3643_v8 = vmul.f32 %v14002_v45, %v3528_v49  ;;  %v3648_v62 = vmul.f32 %v14002_v45, %v3553_v11  ;;  %v3645_v33 = vmul.f32 %v14002_v45, %v3538_v7  ;;  %v3650_v37 = vmul.f32 %v14002_v45, %v3563_v29 }
 0x9ed   :  { %v14048_v23 = vadd.f32 %v3644_v5, %v3616_v3  ;;  %v14050_v60 = vadd.f32 %v3641_v35, %v3613_v10  ;;  %v3647_v13 = vmul.f32 %v14002_v45, %v3548_v2  ;;  %v3628_v21 = vmul.f32 %v13949_v26, %v13978_v31 }
 0x9ee   :  { %v14055_v19 = vadd.f32 %v3643_v8, %v3615_v58  ;;  %v14057_v54 = vadd.f32 %v3648_v62, %v3619_v22  ;;  %v14059_v49 = vadd.f32 %v3645_v33, %v3617_v20  ;;  %v14061_v11 = vadd.f32 %v3650_v37, %v3621_v44 }
 0x9ef   :  { %3714 = vrot.lane.b32.xlu0 %v14024_v53, %s10745_s20  ;;  %3708 = vrot.lane.b32.xlu1 %v14026_v30, %s10745_s20  ;;  %v14067_v10 = vadd.f32 %v3647_v13, %v3618_v42  ;;  %v3652_v7 = vmul.f32 %v14002_v45, %v13966_v40  ;;  %v3649_v58 = vmul.f32 %v14002_v45, %v13955_v57 }
 0x9f0   :  { %v3654_v20 = vmul.f32 %v14002_v45, %v13972_v47  ;;  %v3651_v44 = vmul.f32 %v14002_v45, %v13959_v6  ;;  %v3656_v2 = vmul.f32 %v14002_v45, %v13978_v31  ;;  %v3653_v29 = vmul.f32 %v14002_v45, %v13963_v34  ;;  %v14152_v34 = vld [vmem:[#allocation13 + $0x8] sm:$0xff] }
 0x9f1   :  { %v14081_v42 = vadd.f32 %v3652_v7, %v3623_v4  ;;  %v14083_v28 = vadd.f32 %v3649_v58, %v3620_v46  ;;  %v3655_v40 = vmul.f32 %v14002_v45, %v13969_v55  ;;  %v3657_v57 = vmul.f32 %v14002_v45, %v13975_v43  ;;  %v17244_v7 = vld [vmem:[#allocation34_spill] sm:$0xff] }
 0x9f2   :  { %v14089_v47 = vadd.f32 %v3654_v20, %v3625_v59  ;;  %v14091_v56 = vadd.f32 %v3651_v44, %v3622_v36  ;;  %v14093_v6 = vadd.f32 %v3656_v2, %v3627_v27  ;;  %v14095_v31 = vadd.f32 %v3653_v29, %v3624_v63 }
 0x9f3   :  { %3718 = vrot.lane.b32.xlu0 %v14028_v0, %s10745_s20  ;;  %3712 = vrot.lane.b32.xlu1 %v14030_v9, %s10745_s20  ;;  %v14101_v46 = vadd.f32 %v3655_v40, %v3626_v25  ;;  %v14103_v4 = vadd.f32 %v3657_v57, %v3628_v21  ;;  %v3646_v63 = vmul.f32 %v14002_v45, %v13952_v18  ;;  %v17243_v25 = vld [vmem:[#allocation36_spill] sm:$0xff]  ;;  %v17245_v57 = vld [vmem:[#allocation31_spill] sm:$0xff] }
 0x9f5   :  { %v14116_v27 = vadd.f32 %v3646_v63, %v13982_v14 }
 0x9f7   :  { %3722 = vrot.lane.b32.xlu0 %v14032_v41, %s10745_s20  ;;  %3716 = vrot.lane.b32.xlu1 %v14034_v17, %s10745_s20 }
 0x9fb   :  { %3726 = vrot.lane.b32.xlu0 %v14048_v23, %s10745_s20  ;;  %3720 = vrot.lane.b32.xlu1 %v14050_v60, %s10745_s20 }
 0x9ff   :  { %3730 = vrot.lane.b32.xlu0 %v14116_v27, %s10745_s20  ;;  %3724 = vrot.lane.b32.xlu1 %v14055_v19, %s10745_s20 }
 0xa03   :  { %3734 = vrot.lane.b32.xlu0 %v14057_v54, %s10745_s20  ;;  %3728 = vrot.lane.b32.xlu1 %v14059_v49, %s10745_s20 }
 0xa07   :  { %3738 = vrot.lane.b32.xlu0 %v14061_v11, %s10745_s20  ;;  %3732 = vrot.lane.b32.xlu1 %v14067_v10, %s10745_s20 }
 0xa0b   :  { %3742 = vrot.lane.b32.xlu0 %v14081_v42, %s10745_s20  ;;  %3736 = vrot.lane.b32.xlu1 %v14083_v28, %s10745_s20 }
 0xa0f   :  { %3746 = vrot.lane.b32.xlu0 %v14089_v47, %s10745_s20  ;;  %3740 = vrot.lane.b32.xlu1 %v14091_v56, %s10745_s20 }
 0xa13   :  { %3750 = vrot.lane.b32.xlu0 %v14093_v6, %s10745_s20  ;;  %3744 = vrot.lane.b32.xlu1 %v14095_v31, %s10745_s20 }
 0xa17   :  { %3748 = vrot.lane.b32.xlu1 %v14101_v46, %s10745_s20 }
 0xa1b   :  { %3752 = vrot.lane.b32.xlu1 %v14103_v4, %s10745_s20 }
 0xa4b   :  { %v14146_v36 = vpop.f32.mrb[24].mxu1 }
 0xa4c   :  { %v14148_v59 = vpop.f32.mrb[25].mxu1 }
 0xa4d   :  { %v9796_v18 = vpack.c.bf16 %v14146_v36, %v14148_v59 }
 0xa4f   :  { %9797 = vmatprep.subr.bf16.mxu1 %v9796_v18 }
 0xa50   :  { %9799 = vmatpush3.bf16.msra.mxu1 %v9796_v18 }
 0xa53   :  { %9449 = vmatmul.mubr.msk.f32.vlgmr.msra.gmra.mrb[28].mxu1 %vm4427_vm1, %v14152_v34 }
 0xa54   :  { %9455 = vmatprep.mubr.msk.f32.mxu1 %vm4427_vm1, %v13928_v16 }
 0xa5d   :  { %v3711_v55 = vpop.permute.xlu0 %3710  ;;  %v3707_v43 = vpop.permute.xlu1 %3706 }
 0xa5e   :  { %v3778_v14 = vmul.f32 %v3707_v43, %v14022_v12  ;;  %v3780_v50 = vmul.f32 %v3711_v55, %v14019_v32 }
 0xa60   :  { %v3802_v24 = vmax.f32 %v3778_v14, 0.0  ;;  %v3804_v22 = vmax.f32 %v3780_v50, 0.0  ;;  %v17246_v14 = vld [vmem:[#allocation59_spill] sm:$0xff] }
 0xa61   :  { %v3709_v52 = vpop.permute.xlu1 %3708  ;;  %v3715_v5 = vpop.permute.xlu0 %3714 }
 0xa62   :  { %v3826_v51 = vadd.f32 %v3802_v24, %v14022_v12  ;;  %v3779_v3 = vmul.f32 %v3709_v52, %v14026_v30  ;;  %v3782_v16 = vmul.f32 %v3715_v5, %v14024_v53  ;;  %v3828_v13 = vadd.f32 %v3804_v22, %v14019_v32  ;;  %v17247_v5 = vld [vmem:[#allocation35_spill] sm:$0xff] }
 0xa64   :  { %v3803_v35 = vmax.f32 %v3779_v3, 0.0  ;;  %v14163_v8 = vadd.f32 %v3826_v51, %v17243_v25  ;;  %v3806_v44 = vmax.f32 %v3782_v16, 0.0  ;;  %v14179_v32 = vadd.f32 %v3828_v13, %v17245_v57 }
 0xa65   :  { %v3713_v62 = vpop.permute.xlu1 %3712  ;;  %v3719_v2 = vpop.permute.xlu0 %3718 }
 0xa66   :  { %v3827_v33 = vadd.f32 %v3803_v35, %v14026_v30  ;;  %v3781_v37 = vmul.f32 %v3713_v62, %v14030_v9  ;;  %v3874_v12 = vsel %vm282_vm0, %v14163_v8, 0.0  ;;  %v3784_v63 = vmul.f32 %v3719_v2, %v14028_v0 }
 0xa67   :  { %3875 = vadd.xlane.f32.xlu0 %v3874_v12  ;;  %v3830_v18 = vadd.f32 %v3806_v44, %v14024_v53  ;;  %v3880_v43 = vsel %vm282_vm0, %v14179_v32, 0.0  ;;  %v17248_v12 = vld [vmem:[#allocation62_spill] sm:$0xff] }
 0xa68   :  { %v3805_v21 = vmax.f32 %v3781_v37, 0.0  ;;  %v14172_v58 = vadd.f32 %v3827_v33, %v17244_v7  ;;  %v3808_v24 = vmax.f32 %v3784_v63, 0.0 }
 0xa69   :  { %v3717_v20 = vpop.permute.xlu1 %3716  ;;  %v3723_v52 = vpop.permute.xlu0 %3722  ;;  %v14193_v53 = vadd.f32 %v3830_v18, %v17247_v5  ;;  %v17250_v18 = vld [vmem:[#allocation73_spill] sm:$0xff] }
 0xa6a   :  { %v3829_v29 = vadd.f32 %v3805_v21, %v14030_v9  ;;  %v3783_v40 = vmul.f32 %v3717_v20, %v14034_v17  ;;  %v3877_v30 = vsel %vm282_vm0, %v14172_v58, 0.0  ;;  %v3786_v16 = vmul.f32 %v3723_v52, %v14032_v41 }
 0xa6b   :  { %3878 = vadd.xlane.f32.xlu0 %v3877_v30  ;;  %v3886_v13 = vsel %vm282_vm0, %v14193_v53, 0.0  ;;  %v17249_v30 = vld [vmem:[#allocation75_spill] sm:$0xff] }
 0xa6c   :  { %v3807_v55 = vmax.f32 %v3783_v40, 0.0  ;;  %v14186_v50 = vadd.f32 %v3829_v29, %v17246_v14  ;;  %v3810_v44 = vmax.f32 %v3786_v16, 0.0 }
 0xa6d   :  { %v3721_v9 = vpop.permute.xlu1 %3720  ;;  %v3727_v2 = vpop.permute.xlu0 %3726 }
 0xa6e   :  { %v3831_v51 = vadd.f32 %v3807_v55, %v14034_v17  ;;  %v3785_v3 = vmul.f32 %v3721_v9, %v14050_v60  ;;  %v3883_v22 = vsel %vm282_vm0, %v14186_v50, 0.0  ;;  %v3832_v17 = vadd.f32 %v3808_v24, %v14028_v0  ;;  %v17251_v24 = vld [vmem:[#allocation57_spill] sm:$0xff] }
 0xa6f   :  { %3881 = vadd.xlane.f32.xlu0 %v3880_v43  ;;  %v3788_v55 = vmul.f32 %v3727_v2, %v14048_v23  ;;  %v3834_v43 = vadd.f32 %v3810_v44, %v14032_v41  ;;  %v17253_v2 = vld [vmem:[#allocation76_spill] sm:$0xff] }
 0xa70   :  { %v3809_v37 = vmax.f32 %v3785_v3, 0.0  ;;  %v14206_v21 = vadd.f32 %v3831_v51, %v17248_v12  ;;  %v14213_v63 = vadd.f32 %v3832_v17, %v17249_v30  ;;  %v17252_v17 = vld [vmem:[#allocation39_spill] sm:$0xff] }
 0xa71   :  { %v3725_v20 = vpop.permute.xlu1 %3724  ;;  %v3812_v3 = vmax.f32 %v3788_v55, 0.0  ;;  %v14231_v41 = vadd.f32 %v3834_v43, %v17252_v17 }
 0xa72   :  { %v3833_v29 = vadd.f32 %v3809_v37, %v14050_v60  ;;  %v3787_v40 = vmul.f32 %v3725_v20, %v14055_v19  ;;  %v3889_v0 = vsel %vm282_vm0, %v14206_v21, 0.0  ;;  %v3892_v9 = vsel %vm282_vm0, %v14213_v63, 0.0 }
 0xa73   :  { %3884 = vadd.xlane.f32.xlu0 %v3883_v22  ;;  %v3731_v22 = vpop.permute.xlu0 %3730  ;;  %v3898_v44 = vsel %vm282_vm0, %v14231_v41, 0.0 }
 0xa74   :  { %v14195_v35 = vpop.f32.mrb[26].mxu1  ;;  %v3811_v60 = vmax.f32 %v3787_v40, 0.0  ;;  %v14224_v52 = vadd.f32 %v3833_v29, %v17251_v24  ;;  %v3790_v37 = vmul.f32 %v3731_v22, %v14116_v27 }
 0xa75   :  { %v14197_v62 = vpop.f32.mrb[27].mxu1  ;;  %v3729_v51 = vpop.permute.xlu1 %3728 }
 0xa76   :  { %v9800_v33 = vpack.c.bf16 %v14195_v35, %v14197_v62  ;;  %v3789_v16 = vmul.f32 %v3729_v51, %v14059_v49  ;;  %v3814_v40 = vmax.f32 %v3790_v37, 0.0 }
 0xa77   :  { %3887 = vadd.xlane.f32.xlu0 %v3886_v13  ;;  %v3836_v13 = vadd.f32 %v3812_v3, %v14048_v23 }
 0xa78   :  { %9801 = vmatprep.subr.bf16.mxu1 %v9800_v33  ;;  %v3813_v20 = vmax.f32 %v3789_v16, 0.0  ;;  %v3838_v51 = vadd.f32 %v3814_v40, %v14116_v27 }
 0xa79   :  { %9803 = vmatpush3.bf16.msra.mxu1 %v9800_v33  ;;  %v3895_v33 = vsel %vm282_vm0, %v14224_v52, 0.0 }
 0xa7b   :  { %3890 = vadd.xlane.f32.xlu0 %v3889_v0  ;;  %v3735_v0 = vpop.permute.xlu0 %3734 }
 0xa7c   :  { %9456 = vmatmul.mubr.msk.f32.vlgmr.msra.gmra.mrb[30].mxu1 %vm4427_vm1, %v14152_v34  ;;  %v3835_v34 = vadd.f32 %v3811_v60, %v14055_v19  ;;  %v3733_v19 = vpop.permute.xlu1 %3732  ;;  %v17254_v60 = vld [vmem:[#allocation41_spill] sm:$0xff] }
 0xa7d   :  { %9462 = vmatprep.mubr.msk.f32.mxu1 %vm4427_vm1, %v17250_v18  ;;  %v3837_v18 = vadd.f32 %v3813_v20, %v14059_v49  ;;  %v3791_v55 = vmul.f32 %v3733_v19, %v14067_v10  ;;  %v14245_v23 = vadd.f32 %v3836_v13, %v17254_v60 }
 0xa7e   :  { %v14238_v29 = vadd.f32 %v3835_v34, %v17253_v2  ;;  %v17255_v34 = vld [vmem:[#allocation33_spill] sm:$0xff] }
 0xa7f   :  { %3893 = vadd.xlane.f32.xlu0 %v3892_v9  ;;  %v3792_v9 = vmul.f32 %v3735_v0, %v14057_v54  ;;  %v3815_v3 = vmax.f32 %v3791_v55, 0.0  ;;  %v3904_v22 = vsel %vm282_vm0, %v14245_v23, 0.0  ;;  %v14252_v16 = vadd.f32 %v3837_v18, %v17255_v34  ;;  %v3739_v27 = vpop.permute.xlu0 %3738 }
 0xa80   :  { %v3901_v43 = vsel %vm282_vm0, %v14238_v29, 0.0  ;;  %v3737_v49 = vpop.permute.xlu1 %3736  ;;  %v3794_v0 = vmul.f32 %v3739_v27, %v14061_v11 }
 0xa81   :  { %v3839_v37 = vadd.f32 %v3815_v3, %v14067_v10  ;;  %v3793_v13 = vmul.f32 %v3737_v49, %v14083_v28  ;;  %v3907_v20 = vsel %vm282_vm0, %v14252_v16, 0.0 }
 0xa83   :  { %3896 = vadd.xlane.f32.xlu0 %v3895_v33  ;;  %v3816_v33 = vmax.f32 %v3792_v9, 0.0  ;;  %v3817_v18 = vmax.f32 %v3793_v13, 0.0  ;;  %v3818_v9 = vmax.f32 %v3794_v0, 0.0 }
 0xa85   :  { %v3840_v40 = vadd.f32 %v3816_v33, %v14057_v54  ;;  %v3841_v3 = vadd.f32 %v3817_v18, %v14083_v28  ;;  %v3842_v54 = vadd.f32 %v3818_v9, %v14061_v11  ;;  %v17258_v9 = vld [vmem:[#allocation72_spill] sm:$0xff] }
 0xa87   :  { %3899 = vadd.xlane.f32.xlu0 %v3898_v44  ;;  %v17256_v44 = vld [vmem:[#allocation43_spill] sm:$0xff]  ;;  %v14278_v33 = vadd.f32 %v3841_v3, %v13456_v48  ;;  %v14283_v28 = vadd.f32 %v3842_v54, %v13471_v39  ;;  %v17259_v3 = vld [vmem:[#allocation77_spill] sm:$0xff]  ;;  %v17261_v54 = vld [vmem:[#allocation78_spill] sm:$0xff] }
 0xa88   :  { %v14259_v19 = vadd.f32 %v3838_v51, %v17256_v44 }
 0xa89   :  { %v3922_v13 = vsel %vm282_vm0, %v14283_v28, 0.0 }
 0xa8a   :  { %v3910_v55 = vsel %vm282_vm0, %v14259_v19, 0.0 }
 0xa8b   :  { %3902 = vadd.xlane.f32.xlu0 %v3901_v43  ;;  %v17257_v43 = vld [vmem:[#allocation55_spill] sm:$0xff] }
 0xa8c   :  { %v14266_v10 = vadd.f32 %v3839_v37, %v17257_v43  ;;  %v3919_v37 = vsel %vm282_vm0, %v14278_v33, 0.0 }
 0xa8e   :  { %v3913_v51 = vsel %vm282_vm0, %v14266_v10, 0.0 }
 0xa8f   :  { %3905 = vadd.xlane.f32.xlu0 %v3904_v22  ;;  %v14272_v22 = vadd.f32 %v3840_v40, %v13444_v61 }
 0xa91   :  { %v3916_v49 = vsel %vm282_vm0, %v14272_v22, 0.0 }
 0xa93   :  { %3908 = vadd.xlane.f32.xlu0 %v3907_v20 }
 0xa97   :  { %3911 = vadd.xlane.f32.xlu0 %v3910_v55 }
 0xa9b   :  { %3914 = vadd.xlane.f32.xlu0 %v3913_v51  ;;  %v17260_v51 = vld [vmem:[#allocation74_spill] sm:$0xff] }
 0xa9f   :  { %3917 = vadd.xlane.f32.xlu0 %v3916_v49  ;;  %v17262_v49 = vld [vmem:[#allocation79_spill] sm:$0xff] }
 0xaa3   :  { %3920 = vadd.xlane.f32.xlu0 %v3919_v37  ;;  %v17265_v37 = vld [vmem:[#allocation86_spill] sm:$0xff] }
 0xaa7   :  { %3923 = vadd.xlane.f32.xlu0 %v3922_v13 }
 0xb26   :  { %v9450_v20 = vpop.f32.mrb[28].mxu1 }
 0xb27   :  { %v5148_v11 = vmax.f32 %v9450_v20, 0.0  ;;  %v5063_v27 = vpop.f32.mrb[29].mxu1 }
 0xb28   :  { %v5147_v40 = vmax.f32 %v5063_v27, 0.0 }
 0xb29   :  { %v5152_v0 = vadd.f32 %v14146_v36, %v5148_v11  ;;  %v17263_v36 = vld [vmem:[#allocation82_spill] sm:$0xff] }
 0xb2a   :  { %v5151_v18 = vadd.f32 %v5147_v40, %v14148_v59  ;;  %v17264_v59 = vld [vmem:[#allocation84_spill] sm:$0xff] }
 0xb2c   :  { %v9804_v55 = vpack.c.bf16 %v5152_v0, %v5151_v18  ;;  %v17267_v0 = vld [vmem:[#allocation80_spill] sm:$0xff]  ;;  %v17268_v18 = vld [vmem:[#allocation81_spill] sm:$0xff] }
 0xb2e   :  { %9805 = vmatprep.subr.bf16.mxu1 %v9804_v55 }
 0xb2f   :  { %9807 = vmatpush3.bf16.msra.mxu1 %v9804_v55  ;;  %v17269_v55 = vld [vmem:[#allocation29_spill] sm:$0xff] }
 0xb32   :  { %9463 = vmatmul.mubr.msk.f32.vlgmr.msra.gmra.mrb[32].mxu1 %vm4427_vm1, %v17258_v9  ;;  %v17270_v9 = vld [vmem:[#allocation83_spill] sm:$0xff] }
 0xb33   :  { %9465 = vmatprep.mubr.msk.f32.mxu1 %vm4427_vm1, %v17259_v3  ;;  %v17273_v3 = vld [vmem:[#allocation88_spill] sm:$0xff] }
 0xb36   :  { %9466 = vmatmul.mubr.msk.f32.gmra.mrb[34].mxu1 %vm4427_vm1, %v17260_v51  ;;  %v17274_v51 = vld [vmem:[#allocation89_spill] sm:$0xff] }
 0xb37   :  { %9468 = vmatprep.mubr.msk.f32.mxu1 %vm4427_vm1, %v17261_v54  ;;  %v17275_v54 = vld [vmem:[#allocation90_spill] sm:$0xff] }
 0xb3a   :  { %9469 = vmatmul.mubr.msk.f32.gmra.mrb[36].mxu1 %vm4427_vm1, %v17262_v49  ;;  %v17276_v49 = vld [vmem:[#allocation91_spill] sm:$0xff] }
 0xb3b   :  { %9471 = vmatprep.mubr.msk.f32.mxu1 %vm4427_vm1, %v13833_v1 }
 0xb3e   :  { %9472 = vmatmul.mubr.msk.f32.gmra.mrb[38].mxu1 %vm4427_vm1, %v13840_v38 }
 0xb3f   :  { %9474 = vmatprep.mubr.msk.f32.mxu1 %vm4427_vm1, %v13849_v15  ;;  %v17266_v15 = vld [vmem:[#allocation37_spill] sm:$0xff] }
 0xb42   :  { %9475 = vmatmul.mubr.msk.f32.gmra.mrb[40].mxu1 %vm4427_vm1, %v17263_v36  ;;  %v17277_v36 = vld [vmem:[#allocation92_spill] sm:$0xff] }
 0xb43   :  { %9477 = vmatprep.mubr.msk.f32.mxu1 %vm4427_vm1, %v17264_v59  ;;  %v17278_v59 = vld [vmem:[#allocation93_spill] sm:$0xff] }
 0xb46   :  { %9478 = vmatmul.mubr.msk.f32.gmra.mrb[42].mxu1 %vm4427_vm1, %v17265_v37  ;;  %v3743_v37 = vpop.permute.xlu0 %3742 }
 0xb4f   :  { %v9457_v13 = vpop.f32.mrb[30].mxu1 }
 0xb50   :  { %v5150_v20 = vmax.f32 %v9457_v13, 0.0  ;;  %v5138_v11 = vpop.f32.mrb[31].mxu1  ;;  %v3747_v13 = vpop.permute.xlu0 %3746 }
 0xb51   :  { %v5149_v27 = vmax.f32 %v5138_v11, 0.0  ;;  %v3741_v11 = vpop.permute.xlu1 %3740 }
 0xb52   :  { %v5154_v1 = vadd.f32 %v14195_v35, %v5150_v20  ;;  %v17271_v35 = vld [vmem:[#allocation85_spill] sm:$0xff] }
 0xb53   :  { %v5153_v38 = vadd.f32 %v5149_v27, %v14197_v62  ;;  %v17272_v62 = vld [vmem:[#allocation87_spill] sm:$0xff] }
 0xb54   :  { %v3751_v20 = vpop.permute.xlu0 %3750 }
 0xb55   :  { %v9808_v40 = vpack.c.bf16 %v5154_v1, %v5153_v38  ;;  %v3795_v1 = vmul.f32 %v3741_v11, %v14091_v56 }
 0xb57   :  { %9809 = vmatprep.subr.bf16.mxu0 %v9808_v40 }
 0xb58   :  { %9811 = vmatpush3.bf16.msra.mxu0 %v9808_v40  ;;  %v14339_v27 = vpop.xlane.xlu0 %3875  ;;  %v3796_v40 = vmul.f32 %v3743_v37, %v14081_v42 }
 0xb59   :  { %9821 = vmatprep.subr.bf16.mxu0 %v17266_v15 }
 0xb5b   :  { %9485 = vmatmul.mubr.msk.f32.vlgmr.msra.gmra.mrb[48].mxu0 %vm4427_vm1, %v17267_v0  ;;  %v3745_v0 = vpop.permute.xlu1 %3744 }
 0xb5c   :  { %9487 = vmatprep.mubr.msk.f32.mxu0 %vm4427_vm1, %v17268_v18  ;;  %9823 = vmatpush3.bf16.msra.mxu0 %v17266_v15  ;;  %v14342_v38 = vpop.xlane.xlu0 %3878  ;;  %v3819_v15 = vmax.f32 %v3795_v1, 0.0  ;;  %v3797_v18 = vmul.f32 %v3745_v0, %v14095_v31 }
 0xb5d   :  { %9825 = vmatprep.subr.bf16.mxu0 %v17269_v55 }
 0xb5f   :  { %9488 = vmatmul.mubr.msk.f32.gmra.mrb[50].mxu0 %vm4427_vm1, %v17270_v9  ;;  %v3820_v9 = vmax.f32 %v3796_v40, 0.0 }
 0xb60   :  { %9490 = vmatprep.mubr.msk.f32.mxu0 %vm4427_vm1, %v17271_v35  ;;  %9827 = vmatpush3.bf16.msra.mxu0 %v17269_v55  ;;  %v3843_v35 = vadd.f32 %v3819_v15, %v14091_v56  ;;  %v17280_v15 = vld [vmem:[#allocation45_spill] sm:$0xff] }
 0xb61   :  { %v3844_v1 = vadd.f32 %v3820_v9, %v14081_v42 }
 0xb63   :  { %9491 = vmatmul.mubr.msk.f32.gmra.mrb[52].mxu0 %vm4427_vm1, %v17272_v62 }
 0xb64   :  { %9493 = vmatprep.mubr.msk.f32.mxu0 %vm4427_vm1, %v17273_v3 }
 0xb67   :  { %9494 = vmatmul.mubr.msk.f32.gmra.mrb[54].mxu0 %vm4427_vm1, %v17274_v51  ;;  %v14347_v51 = vpop.xlane.xlu0 %3881 }
 0xb68   :  { %9496 = vmatprep.mubr.msk.f32.mxu0 %vm4427_vm1, %v17275_v54 }
 0xb6b   :  { %9497 = vmatmul.mubr.msk.f32.gmra.mrb[56].mxu0 %vm4427_vm1, %v17276_v49  ;;  %v14368_v9 = vpop.xlane.xlu0 %3884 }
 0xb6c   :  { %9499 = vmatprep.mubr.msk.f32.mxu0 %vm4427_vm1, %v17277_v36  ;;  %v3798_v36 = vmul.f32 %v3747_v13, %v14089_v47 }
 0xb6f   :  { %9500 = vmatmul.mubr.msk.f32.gmra.mrb[58].mxu0 %vm4427_vm1, %v17278_v59  ;;  %v3821_v59 = vmax.f32 %v3797_v18, 0.0  ;;  %v3822_v18 = vmax.f32 %v3798_v36, 0.0 }
 0xb71   :  { %v3845_v42 = vadd.f32 %v3821_v59, %v14095_v31  ;;  %v3800_v31 = vmul.f32 %v3751_v20, %v14093_v6 }
 0xc05   :  { %v9464_v55 = vpop.f32.mrb[32].mxu1 }
 0xc06   :  { %v5478_v62 = vmax.f32 %v9464_v55, 0.0  ;;  %v5257_v3 = vpop.f32.mrb[33].mxu1  ;;  %v14360_v55 = vadd.f32 %v3843_v35, %v17280_v15 }
 0xc07   :  { %v5477_v54 = vmax.f32 %v5257_v3, 0.0  ;;  %v3749_v3 = vpop.permute.xlu1 %3748 }
 0xc08   :  { %v14350_v49 = vadd.f32 %v5478_v62, %v17244_v7  ;;  %17281 = vst [vmem:[#allocation65_spill] sm:$0xff] %v14360_v55 }
 0xc09   :  { %v14354_v37 = vadd.f32 %v5477_v54, %v17243_v25  ;;  %v9467_v11 = vpop.f32.mrb[34].mxu1  ;;  %v3799_v54 = vmul.f32 %v3749_v3, %v14101_v46 }
 0xc0a   :  { %v5480_v40 = vmax.f32 %v9467_v11, 0.0  ;;  %v5267_v0 = vpop.f32.mrb[35].mxu1  ;;  %v5528_v56 = vsel %vm282_vm0, %v14350_v49, 0.0  ;;  %v3925_v11 = vsel %vm282_vm0, %v14360_v55, 0.0 }
 0xc0b   :  { %17279 = vst [vmem:[#allocation63_spill] sm:$0xff] %v14354_v37  ;;  %v5479_v7 = vmax.f32 %v5267_v0, 0.0  ;;  %5529 = vadd.xlane.f32.xlu0 %v5528_v56  ;;  %v5525_v13 = vsel %vm282_vm0, %v14354_v37, 0.0  ;;  %v17283_v56 = vld [vmem:[#allocation28_spill] sm:$0xff]  ;;  %v3823_v3 = vmax.f32 %v3799_v54, 0.0  ;;  %v14388_v37 = vpop.xlane.xlu0 %3887 }
 0xc0c   :  { %v14365_v25 = vadd.f32 %v5480_v40, %v17246_v14  ;;  %5526 = vadd.xlane.f32.xlu1 %v5525_v13  ;;  %v14376_v26 = vadd.f32 %v3844_v1, %v17283_v56  ;;  %v3846_v40 = vadd.f32 %v3822_v18, %v14089_v47  ;;  %v3753_v1 = vpop.permute.xlu1 %3752  ;;  %v3824_v47 = vmax.f32 %v3800_v31, 0.0 }
 0xc0d   :  { %v9470_v62 = vpop.f32.mrb[36].mxu1  ;;  %v14379_v14 = vadd.f32 %v5479_v7, %v17245_v57  ;;  %v3801_v54 = vmul.f32 %v3753_v1, %v14103_v4 }
 0xc0e   :  { %17282 = vst [vmem:[#allocation42_spill] sm:$0xff] %v14365_v25  ;;  %v5277_v35 = vpop.f32.mrb[37].mxu1  ;;  %v5534_v0 = vsel %vm282_vm0, %v14365_v25, 0.0  ;;  %17284 = vst [vmem:[#allocation67_spill] sm:$0xff] %v14376_v26  ;;  %v5482_v36 = vmax.f32 %v9470_v62, 0.0  ;;  %v3928_v45 = vsel %vm282_vm0, %v14376_v26, 0.0  ;;  %v3847_v62 = vadd.f32 %v3823_v3, %v14101_v46 }
 0xc0f   :  { %3926 = vadd.xlane.f32.xlu0 %v3925_v11  ;;  %v17285_v25 = vld [vmem:[#allocation32_spill] sm:$0xff]  ;;  %v5481_v7 = vmax.f32 %v5277_v35, 0.0  ;;  %v5531_v20 = vsel %vm282_vm0, %v14379_v14, 0.0  ;;  %v3848_v31 = vadd.f32 %v3824_v47, %v14093_v6  ;;  %v3825_v3 = vmax.f32 %v3801_v54, 0.0  ;;  %v17289_v54 = vld [vmem:[#allocation61_spill] sm:$0xff] }
 0xc10   :  { %5535 = vadd.xlane.f32.xlu1 %v5534_v0  ;;  %v14386_v55 = vadd.f32 %v3845_v42, %v17285_v25  ;;  %v14391_v57 = vadd.f32 %v5482_v36, %v17248_v12  ;;  %v17287_v0 = vld [vmem:[#allocation30_spill] sm:$0xff]  ;;  %v14407_v36 = vpop.xlane.xlu0 %3890  ;;  %v3946_v6 = vmul.f32 0.03125, %v14339_v27  ;;  %v3947_v27 = vmul.f32 0.03125, %v14342_v38 }
 0xc11   :  { %v9473_v59 = vpop.f32.mrb[38].mxu1  ;;  %v14400_v26 = vadd.f32 %v3846_v40, %v17287_v0  ;;  %v14403_v12 = vadd.f32 %v5481_v7, %v17247_v5  ;;  %v3948_v38 = vmul.f32 0.03125, %v14347_v51  ;;  %v3949_v51 = vmul.f32 0.03125, %v14368_v9 }
 0xc12   :  { %v5287_v13 = vpop.f32.mrb[39].mxu1  ;;  %17286 = vst [vmem:[#allocation69_spill] sm:$0xff] %v14386_v55  ;;  %v3931_v11 = vsel %vm282_vm0, %v14386_v55, 0.0  ;;  %v5540_v35 = vsel %vm282_vm0, %v14391_v57, 0.0  ;;  %v3950_v9 = vmul.f32 0.03125, %v14388_v37  ;;  %v3951_v37 = vmul.f32 0.03125, %v14407_v36 }
 0xc13   :  { %3929 = vadd.xlane.f32.xlu0 %v3928_v45  ;;  %v5484_v45 = vmax.f32 %v9473_v59, 0.0  ;;  %v3934_v40 = vsel %vm282_vm0, %v14400_v26, 0.0  ;;  %v5483_v59 = vmax.f32 %v5287_v13, 0.0  ;;  %v5537_v7 = vsel %vm282_vm0, %v14403_v12, 0.0 }
 0xc14   :  { %5532 = vadd.xlane.f32.xlu1 %v5531_v20  ;;  %v17288_v20 = vld [vmem:[#allocation58_spill] sm:$0xff] }
 0xc15   :  { %v9476_v18 = vpop.f32.mrb[40].mxu1  ;;  %v14413_v55 = vadd.f32 %v3847_v62, %v17288_v20  ;;  %v14416_v5 = vadd.f32 %v5484_v45, %v17251_v24  ;;  %v3894_v62 = vpop.xlane.xlu0 %3893  ;;  %v14428_v24 = vadd.f32 %v5483_v59, %v17249_v30 }
 0xc16   :  { %v5297_v42 = vpop.f32.mrb[41].mxu1  ;;  %v5486_v13 = vmax.f32 %v9476_v18, 0.0  ;;  %v3952_v36 = vmul.f32 0.03125, %v3894_v62 }
 0xc17   :  { %3932 = vadd.xlane.f32.xlu0 %v3931_v11  ;;  %v3849_v11 = vadd.f32 %v3825_v3, %v14103_v4  ;;  %v3937_v47 = vsel %vm282_vm0, %v14413_v55, 0.0  ;;  %v5546_v45 = vsel %vm282_vm0, %v14416_v5, 0.0  ;;  %v14433_v4 = vsub.f32 %v14163_v8, %v3946_v6 }
 0xc18   :  { %5541 = vadd.xlane.f32.xlu1 %v5540_v35  ;;  %v14425_v35 = vadd.f32 %v3848_v31, %v17289_v54  ;;  %v17290_v31 = vld [vmem:[#allocation64_spill] sm:$0xff]  ;;  %v14442_v30 = vadd.f32 %v5486_v13, %v17253_v2  ;;  %v5485_v18 = vmax.f32 %v5297_v42, 0.0  ;;  %v5543_v59 = vsel %vm282_vm0, %v14428_v24, 0.0 }
 0xc19   :  { %v9479_v46 = vpop.f32.mrb[42].mxu1  ;;  %v14447_v8 = vsub.f32 %v14172_v58, %v3947_v27  ;;  %v14460_v58 = vsub.f32 %v14179_v32, %v3948_v38  ;;  %v14472_v32 = vsub.f32 %v14186_v50, %v3949_v51 }
 0xc1a   :  { %v5307_v1 = vpop.f32.mrb[43].mxu1  ;;  %v3940_v3 = vsel %vm282_vm0, %v14425_v35, 0.0  ;;  %v14455_v2 = vadd.f32 %v5485_v18, %v17252_v17  ;;  %v5488_v42 = vmax.f32 %v9479_v46, 0.0 }
 0xc1b   :  { %3935 = vadd.xlane.f32.xlu0 %v3934_v40  ;;  %v14439_v40 = vadd.f32 %v3849_v11, %v17290_v31  ;;  %v3994_v11 = vmul.f32 %v14433_v4, %v14433_v4  ;;  %v5487_v46 = vmax.f32 %v5307_v1, 0.0  ;;  %v3996_v38 = vmul.f32 %v14460_v58, %v14460_v58 }
 0xc1c   :  { %5538 = vadd.xlane.f32.xlu1 %v5537_v7  ;;  %v3897_v7 = vpop.xlane.xlu0 %3896  ;;  %v14467_v17 = vadd.f32 %v5488_v42, %v17255_v34  ;;  %v14484_v42 = vsub.f32 %v14193_v53, %v3950_v9  ;;  %v14496_v53 = vsub.f32 %v14206_v21, %v3951_v37  ;;  %v14507_v21 = vsub.f32 %v14213_v63, %v3952_v36 }
 0xc1d   :  { %v3943_v6 = vsel %vm282_vm0, %v14439_v40, 0.0  ;;  %v4018_v13 = vsel %vm282_vm0, %v3994_v11, 0.0  ;;  %v14479_v34 = vadd.f32 %v5487_v46, %v17254_v60  ;;  %v4024_v51 = vsel %vm282_vm0, %v3996_v38, 0.0 }
 0xc1e   :  { %v5558_v11 = vsel %vm282_vm0, %v14467_v17, 0.0  ;;  %v3997_v60 = vmul.f32 %v14472_v32, %v14472_v32  ;;  %v3953_v62 = vmul.f32 0.03125, %v3897_v7 }
 0xc1f   :  { %3938 = vadd.xlane.f32.xlu0 %v3937_v47  ;;  %v5552_v47 = vsel %vm282_vm0, %v14442_v30, 0.0 }
 0xc20   :  { %5547 = vadd.xlane.f32.xlu1 %v5546_v45  ;;  %v3995_v45 = vmul.f32 %v14447_v8, %v14447_v8  ;;  %v3900_v27 = vpop.xlane.xlu0 %3899  ;;  %v14518_v63 = vsub.f32 %v14224_v52, %v3953_v62 }
 0xc21   :  { %v3954_v7 = vmul.f32 0.03125, %v3900_v27 }
 0xc23   :  { %3941 = vadd.xlane.f32.xlu0 %v3940_v3  ;;  %v5549_v3 = vsel %vm282_vm0, %v14455_v2, 0.0  ;;  %v14529_v52 = vsub.f32 %v14231_v41, %v3954_v7 }
 0xc24   :  { %5544 = vadd.xlane.f32.xlu1 %v5543_v59  ;;  %v4021_v59 = vsel %vm282_vm0, %v3995_v45, 0.0  ;;  %v3903_v50 = vpop.xlane.xlu0 %3902 }
 0xc25   :  { %v3955_v27 = vmul.f32 0.03125, %v3903_v50 }
 0xc27   :  { %3944 = vadd.xlane.f32.xlu0 %v3943_v6  ;;  %v14544_v50 = vsub.f32 %v14238_v29, %v3955_v27 }
 0xc28   :  { %5553 = vadd.xlane.f32.xlu1 %v5552_v47  ;;  %v3906_v38 = vpop.xlane.xlu0 %3905 }
 0xc29   :  { %v3956_v7 = vmul.f32 0.03125, %v3906_v38  ;;  %v4003_v27 = vmul.f32 %v14544_v50, %v14544_v50 }
 0xc2b   :  { %4019 = vadd.xlane.f32.xlu0 %v4018_v13 }
 0xc2c   :  { %5550 = vadd.xlane.f32.xlu1 %v5549_v3  ;;  %v5555_v3 = vsel %vm282_vm0, %v14479_v34, 0.0 }
 0xc2e   :  { %v9486_v18 = vpop.f32.mrb[48].mxu0 }
 0xc2f   :  { %v5490_v1 = vmax.f32 %v9486_v18, 0.0  ;;  %4022 = vadd.xlane.f32.xlu0 %v4021_v59  ;;  %v5418_v6 = vpop.f32.mrb[49].mxu0  ;;  %v4027_v18 = vsel %vm282_vm0, %v3997_v60, 0.0  ;;  %v3998_v59 = vmul.f32 %v14484_v42, %v14484_v42  ;;  %v3999_v60 = vmul.f32 %v14496_v53, %v14496_v53 }
 0xc30   :  { %5559 = vadd.xlane.f32.xlu1 %v5558_v11  ;;  %v5489_v45 = vmax.f32 %v5418_v6, 0.0 }
 0xc31   :  { %v14491_v13 = vadd.f32 %v5490_v1, %v17257_v43 }
 0xc32   :  { %v9489_v47 = vpop.f32.mrb[50].mxu0  ;;  %v14502_v43 = vadd.f32 %v5489_v45, %v17256_v44 }
 0xc33   :  { %4025 = vadd.xlane.f32.xlu0 %v4024_v51  ;;  %v5428_v46 = vpop.f32.mrb[51].mxu0  ;;  %v5492_v1 = vmax.f32 %v9489_v47, 0.0  ;;  %v5564_v11 = vsel %vm282_vm0, %v14491_v13, 0.0  ;;  %v4030_v51 = vsel %vm282_vm0, %v3998_v59, 0.0  ;;  %v4033_v59 = vsel %vm282_vm0, %v3999_v60, 0.0 }
 0xc34   :  { %5556 = vadd.xlane.f32.xlu1 %v5555_v3  ;;  %v5491_v47 = vmax.f32 %v5428_v46, 0.0  ;;  %v5561_v3 = vsel %vm282_vm0, %v14502_v43, 0.0 }
 0xc35   :  { %v14513_v44 = vadd.f32 %v5492_v1, %v13456_v48 }
 0xc36   :  { %v9492_v9 = vpop.f32.mrb[52].mxu0  ;;  %v14524_v48 = vadd.f32 %v5491_v47, %v13444_v61 }
 0xc37   :  { %4028 = vadd.xlane.f32.xlu0 %v4027_v18  ;;  %v5438_v6 = vpop.f32.mrb[53].mxu0  ;;  %v3909_v18 = vpop.xlane.xlu0 %3908  ;;  %v5494_v46 = vmax.f32 %v9492_v9, 0.0 }
 0xc38   :  { %5565 = vadd.xlane.f32.xlu1 %v5564_v11  ;;  %v4000_v11 = vmul.f32 %v14507_v21, %v14507_v21  ;;  %v5493_v47 = vmax.f32 %v5438_v6, 0.0  ;;  %v5567_v41 = vsel %vm282_vm0, %v14524_v48, 0.0  ;;  %v3957_v29 = vmul.f32 0.03125, %v3909_v18 }
 0xc39   :  { %v14537_v9 = vadd.f32 %v5494_v46, %v17280_v15  ;;  %v4045_v18 = vsel %vm282_vm0, %v4003_v27, 0.0 }
 0xc3a   :  { %v9495_v37 = vpop.f32.mrb[54].mxu0  ;;  %v4036_v60 = vsel %vm282_vm0, %v4000_v11, 0.0  ;;  %v14550_v15 = vadd.f32 %v5493_v47, %v13471_v39  ;;  %v14566_v47 = vsub.f32 %v14252_v16, %v3957_v29 }
 0xc3b   :  { %4031 = vadd.xlane.f32.xlu0 %v4030_v51  ;;  %v5448_v45 = vpop.f32.mrb[55].mxu0  ;;  %v5570_v51 = vsel %vm282_vm0, %v14513_v44, 0.0  ;;  %v3912_v61 = vpop.xlane.xlu0 %3911  ;;  %v5496_v6 = vmax.f32 %v9495_v37, 0.0  ;;  %v5576_v46 = vsel %vm282_vm0, %v14537_v9, 0.0 }
 0xc3c   :  { %5562 = vadd.xlane.f32.xlu1 %v5561_v3  ;;  %v4001_v3 = vmul.f32 %v14518_v63, %v14518_v63  ;;  %v5495_v39 = vmax.f32 %v5448_v45, 0.0  ;;  %v5573_v37 = vsel %vm282_vm0, %v14550_v15, 0.0 }
 0xc3e   :  { %v9498_v36 = vpop.f32.mrb[56].mxu0  ;;  %v4039_v11 = vsel %vm282_vm0, %v4001_v3, 0.0  ;;  %v14561_v3 = vadd.f32 %v5496_v6, %v17285_v25 }
 0xc3f   :  { %4034 = vadd.xlane.f32.xlu0 %v4033_v59  ;;  %v5458_v1 = vpop.f32.mrb[57].mxu0  ;;  %v5498_v25 = vmax.f32 %v9498_v36, 0.0 }
 0xc40   :  { %5571 = vadd.xlane.f32.xlu1 %v5570_v51  ;;  %v4002_v51 = vmul.f32 %v14529_v52, %v14529_v52  ;;  %v5582_v45 = vsel %vm282_vm0, %v14561_v3, 0.0 }
 0xc41   :  { %v14583_v29 = vadd.f32 %v5498_v25, %v17288_v20 }
 0xc42   :  { %v14531_v62 = vpop.f32.mrb[58].mxu0  ;;  %v4042_v38 = vsel %vm282_vm0, %v4002_v51, 0.0  ;;  %v14572_v51 = vadd.f32 %v5495_v39, %v17283_v56  ;;  %v5497_v56 = vmax.f32 %v5458_v1, 0.0 }
 0xc43   :  { %4037 = vadd.xlane.f32.xlu0 %v4036_v60  ;;  %v14539_v59 = vpop.f32.mrb[59].mxu0  ;;  %v3915_v60 = vpop.xlane.xlu0 %3914  ;;  %v5500_v20 = vmax.f32 %v14531_v62, 0.0  ;;  %v5588_v1 = vsel %vm282_vm0, %v14583_v29, 0.0 }
 0xc44   :  { %5568 = vadd.xlane.f32.xlu1 %v5567_v41  ;;  %v14555_v41 = vsub.f32 %v14245_v23, %v3956_v7  ;;  %v3958_v23 = vmul.f32 0.03125, %v3912_v61  ;;  %v3959_v16 = vmul.f32 0.03125, %v3915_v60  ;;  %v5579_v36 = vsel %vm282_vm0, %v14572_v51, 0.0 }
 0xc45   :  { %v5499_v62 = vmax.f32 %v14539_v59, 0.0 }
 0xc46   :  { %v4004_v7 = vmul.f32 %v14555_v41, %v14555_v41  ;;  %v14577_v6 = vsub.f32 %v14259_v19, %v3958_v23  ;;  %v14588_v27 = vsub.f32 %v14266_v10, %v3959_v16 }
 0xc47   :  { %4040 = vadd.xlane.f32.xlu0 %v4039_v11  ;;  %v3918_v11 = vpop.xlane.xlu0 %3917 }
 0xc48   :  { %5577 = vadd.xlane.f32.xlu1 %v5576_v46  ;;  %v4048_v61 = vsel %vm282_vm0, %v4004_v7, 0.0  ;;  %v4005_v46 = vmul.f32 %v14566_v47, %v14566_v47  ;;  %v3960_v19 = vmul.f32 0.03125, %v3918_v11  ;;  %v4006_v39 = vmul.f32 %v14577_v6, %v14577_v6 }
 0xc49   :  { %v4007_v7 = vmul.f32 %v14588_v27, %v14588_v27 }
 0xc4a   :  { %v4051_v60 = vsel %vm282_vm0, %v4005_v46, 0.0  ;;  %v14600_v23 = vsub.f32 %v14272_v22, %v3960_v19  ;;  %v14618_v46 = vadd.f32 %v5499_v62, %v17289_v54 }
 0xc4b   :  { %4043 = vadd.xlane.f32.xlu0 %v4042_v38  ;;  %v3921_v38 = vpop.xlane.xlu0 %3920  ;;  %v4057_v16 = vsel %vm282_vm0, %v4007_v7, 0.0 }
 0xc4c   :  { %5574 = vadd.xlane.f32.xlu1 %v5573_v37  ;;  %v14594_v37 = vadd.f32 %v5497_v56, %v17287_v0  ;;  %v3961_v10 = vmul.f32 0.03125, %v3921_v38  ;;  %v14606_v0 = vadd.f32 %v5500_v20, %v17290_v31 }
 0xc4e   :  { %v5585_v25 = vsel %vm282_vm0, %v14594_v37, 0.0  ;;  %v14612_v22 = vsub.f32 %v14278_v33, %v3961_v10  ;;  %v5594_v31 = vsel %vm282_vm0, %v14606_v0, 0.0  ;;  %v17291_v10 = vld [vmem:[#allocation63_spill] sm:$0xff] }
 0xc4f   :  { %4046 = vadd.xlane.f32.xlu0 %v4045_v18  ;;  %v4054_v18 = vsel %vm282_vm0, %v4006_v39, 0.0  ;;  %v3924_v11 = vpop.xlane.xlu0 %3923 }
 0xc50   :  { %5583 = vadd.xlane.f32.xlu1 %v5582_v45  ;;  %v3962_v45 = vmul.f32 0.03125, %v3924_v11  ;;  %v4009_v56 = vmul.f32 %v14612_v22, %v14612_v22 }
 0xc52   :  { %v14623_v59 = vsub.f32 %v14283_v28, %v3962_v45  ;;  %v4063_v54 = vsel %vm282_vm0, %v4009_v56, 0.0 }
 0xc53   :  { %4049 = vadd.xlane.f32.xlu0 %v4048_v61  ;;  %v4008_v61 = vmul.f32 %v14600_v23, %v14600_v23 }
 0xc54   :  { %5580 = vadd.xlane.f32.xlu1 %v5579_v36  ;;  %v5591_v36 = vsel %vm282_vm0, %v14618_v46, 0.0  ;;  %v4010_v38 = vmul.f32 %v14623_v59, %v14623_v59 }
 0xc55   :  { %v4060_v33 = vsel %vm282_vm0, %v4008_v61, 0.0 }
 0xc56   :  { %v4066_v19 = vsel %vm282_vm0, %v4010_v38, 0.0 }
 0xc57   :  { %4052 = vadd.xlane.f32.xlu0 %v4051_v60 }
 0xc58   :  { %5589 = vadd.xlane.f32.xlu1 %v5588_v1 }
 0xc5b   :  { %4055 = vadd.xlane.f32.xlu0 %v4054_v18 }
 0xc5c   :  { %5586 = vadd.xlane.f32.xlu1 %v5585_v25 }
 0xc5f   :  { %4058 = vadd.xlane.f32.xlu0 %v4057_v16  ;;  %v17292_v16 = vld [vmem:[#allocation65_spill] sm:$0xff] }
 0xc60   :  { %5595 = vadd.xlane.f32.xlu1 %v5594_v31 }
 0xc63   :  { %4061 = vadd.xlane.f32.xlu0 %v4060_v33 }
 0xc64   :  { %5592 = vadd.xlane.f32.xlu1 %v5591_v36 }
 0xc67   :  { %4064 = vadd.xlane.f32.xlu0 %v4063_v54 }
 0xc6b   :  { %4067 = vadd.xlane.f32.xlu0 %v4066_v19 }
 0xc98   :  { %v5530_v28 = vpop.xlane.xlu0 %5529 }
 0xc99   :  { %v5598_v60 = vmul.f32 0.03125, %v5530_v28  ;;  %v5527_v39 = vpop.xlane.xlu1 %5526 }
 0xc9a   :  { %v5597_v20 = vmul.f32 0.03125, %v5527_v39 }
 0xc9b   :  { %v14635_v1 = vsub.f32 %v14350_v49, %v5598_v60  ;;  %v17293_v49 = vld [vmem:[#allocation42_spill] sm:$0xff]  ;;  %v17294_v60 = vld [vmem:[#allocation67_spill] sm:$0xff] }
 0xc9c   :  { %v14638_v18 = vsub.f32 %v17291_v10, %v5597_v20  ;;  %v3927_v7 = vpop.xlane.xlu0 %3926 }
 0xc9d   :  { %v3963_v11 = vmul.f32 0.03125, %v3927_v7  ;;  %v5536_v62 = vpop.xlane.xlu1 %5535  ;;  %v5646_v25 = vmul.f32 %v14635_v1, %v14635_v1 }
 0xc9e   :  { %v5600_v45 = vmul.f32 0.03125, %v5536_v62  ;;  %v5645_v33 = vmul.f32 %v14638_v18, %v14638_v18 }
 0xc9f   :  { %v14643_v61 = vsub.f32 %v17292_v16, %v3963_v11  ;;  %v5672_v31 = vsel %vm282_vm0, %v5646_v25, 0.0 }
 0xca0   :  { %v14649_v56 = vsub.f32 %v17293_v49, %v5600_v45  ;;  %5673 = vadd.xlane.f32.xlu1 %v5672_v31  ;;  %v3930_v36 = vpop.xlane.xlu0 %3929  ;;  %v5669_v10 = vsel %vm282_vm0, %v5645_v33, 0.0  ;;  %v17296_v49 = vld [vmem:[#allocation69_spill] sm:$0xff] }
 0xca1   :  { %v3964_v54 = vmul.f32 0.03125, %v3930_v36  ;;  %v5533_v38 = vpop.xlane.xlu1 %5532  ;;  %v4011_v19 = vmul.f32 %v14643_v61, %v14643_v61 }
 0xca2   :  { %v5599_v28 = vmul.f32 0.03125, %v5533_v38  ;;  %v5648_v7 = vmul.f32 %v14649_v56, %v14649_v56 }
 0xca3   :  { %v14654_v39 = vsub.f32 %v17294_v60, %v3964_v54  ;;  %v4069_v20 = vsel %vm282_vm0, %v4011_v19, 0.0 }
 0xca4   :  { %v14661_v11 = vsub.f32 %v14379_v14, %v5599_v28  ;;  %v3933_v62 = vpop.xlane.xlu0 %3932  ;;  %4070 = vadd.xlane.f32.xlu0 %v4069_v20  ;;  %5670 = vadd.xlane.f32.xlu1 %v5669_v10  ;;  %v5678_v54 = vsel %vm282_vm0, %v5648_v7, 0.0 }
 0xca5   :  { %17295 = vst [vmem:[#allocation38_spill] sm:$0xff] %v14654_v39  ;;  %v3965_v25 = vmul.f32 0.03125, %v3933_v62  ;;  %v5542_v45 = vpop.xlane.xlu1 %5541  ;;  %v4012_v16 = vmul.f32 %v14654_v39, %v14654_v39 }
 0xca6   :  { %v5602_v31 = vmul.f32 0.03125, %v5542_v45  ;;  %v5647_v14 = vmul.f32 %v14661_v11, %v14661_v11 }
 0xca7   :  { %v14666_v36 = vsub.f32 %v17296_v49, %v3965_v25  ;;  %v4072_v33 = vsel %vm282_vm0, %v4012_v16, 0.0 }
 0xca8   :  { %v14673_v38 = vsub.f32 %v14391_v57, %v5602_v31  ;;  %v3936_v19 = vpop.xlane.xlu0 %3935  ;;  %4073 = vadd.xlane.f32.xlu0 %v4072_v33  ;;  %5679 = vadd.xlane.f32.xlu1 %v5678_v54  ;;  %v5675_v25 = vsel %vm282_vm0, %v5647_v14, 0.0 }
 0xca9   :  { %17297 = vst [vmem:[#allocation40_spill] sm:$0xff] %v14666_v36  ;;  %v3966_v28 = vmul.f32 0.03125, %v3936_v19  ;;  %v5539_v60 = vpop.xlane.xlu1 %5538  ;;  %v4013_v20 = vmul.f32 %v14666_v36, %v14666_v36 }
 0xcaa   :  { %v5601_v10 = vmul.f32 0.03125, %v5539_v60  ;;  %v5650_v57 = vmul.f32 %v14673_v38, %v14673_v38 }
 0xcab   :  { %v14678_v62 = vsub.f32 %v14400_v26, %v3966_v28  ;;  %v4075_v7 = vsel %vm282_vm0, %v4013_v20, 0.0 }
 0xcac   :  { %v14685_v45 = vsub.f32 %v14403_v12, %v5601_v10  ;;  %v3939_v16 = vpop.xlane.xlu0 %3938  ;;  %4076 = vadd.xlane.f32.xlu0 %v4075_v7  ;;  %5676 = vadd.xlane.f32.xlu1 %v5675_v25  ;;  %v5684_v19 = vsel %vm282_vm0, %v5650_v57, 0.0 }
 0xcad   :  { %17298 = vst [vmem:[#allocation68_spill] sm:$0xff] %v14678_v62  ;;  %v3967_v31 = vmul.f32 0.03125, %v3939_v16  ;;  %v5548_v49 = vpop.xlane.xlu1 %5547  ;;  %v4014_v33 = vmul.f32 %v14678_v62, %v14678_v62 }
 0xcae   :  { %v5604_v26 = vmul.f32 0.03125, %v5548_v49  ;;  %v5649_v12 = vmul.f32 %v14685_v45, %v14685_v45 }
 0xcaf   :  { %v14690_v54 = vsub.f32 %v14413_v55, %v3967_v31  ;;  %v4078_v14 = vsel %vm282_vm0, %v4014_v33, 0.0 }
 0xcb0   :  { %v14697_v28 = vsub.f32 %v14416_v5, %v5604_v26  ;;  %v3942_v60 = vpop.xlane.xlu0 %3941  ;;  %4079 = vadd.xlane.f32.xlu0 %v4078_v14  ;;  %5685 = vadd.xlane.f32.xlu1 %v5684_v19  ;;  %v5681_v16 = vsel %vm282_vm0, %v5649_v12, 0.0 }
 0xcb1   :  { %17299 = vst [vmem:[#allocation70_spill] sm:$0xff] %v14690_v54  ;;  %v3968_v20 = vmul.f32 0.03125, %v3942_v60  ;;  %v5545_v10 = vpop.xlane.xlu1 %5544  ;;  %v4015_v7 = vmul.f32 %v14690_v54, %v14690_v54 }
 0xcb2   :  { %v5603_v55 = vmul.f32 0.03125, %v5545_v10  ;;  %v5652_v5 = vmul.f32 %v14697_v28, %v14697_v28 }
 0xcb3   :  { %v14702_v25 = vsub.f32 %v14425_v35, %v3968_v20  ;;  %v4081_v57 = vsel %vm282_vm0, %v4015_v7, 0.0 }
 0xcb4   :  { %v14709_v31 = vsub.f32 %v14428_v24, %v5603_v55  ;;  %4082 = vadd.xlane.f32.xlu0 %v4081_v57  ;;  %v3945_v49 = vpop.xlane.xlu0 %3944  ;;  %5682 = vadd.xlane.f32.xlu1 %v5681_v16  ;;  %v5690_v60 = vsel %vm282_vm0, %v5652_v5, 0.0 }
 0xcb5   :  { %17300 = vst [vmem:[#allocation52_spill] sm:$0xff] %v14702_v25  ;;  %v3969_v33 = vmul.f32 0.03125, %v3945_v49  ;;  %v5554_v26 = vpop.xlane.xlu1 %5553  ;;  %v4016_v14 = vmul.f32 %v14702_v25, %v14702_v25 }
 0xcb6   :  { %v5606_v35 = vmul.f32 0.03125, %v5554_v26  ;;  %v5651_v24 = vmul.f32 %v14709_v31, %v14709_v31 }
 0xcb7   :  { %v14714_v19 = vsub.f32 %v14439_v40, %v3969_v33  ;;  %v4084_v12 = vsel %vm282_vm0, %v4016_v14, 0.0 }
 0xcb8   :  { %v14721_v20 = vsub.f32 %v14442_v30, %v5606_v35  ;;  %4085 = vadd.xlane.f32.xlu0 %v4084_v12  ;;  %5691 = vadd.xlane.f32.xlu1 %v5690_v60  ;;  %v5687_v57 = vsel %vm282_vm0, %v5651_v24, 0.0 }
 0xcb9   :  { %17301 = vst [vmem:[#allocation60_spill] sm:$0xff] %v14714_v19  ;;  %v5551_v10 = vpop.xlane.xlu1 %5550  ;;  %v4017_v7 = vmul.f32 %v14714_v19, %v14714_v19 }
 0xcba   :  { %v5605_v55 = vmul.f32 0.03125, %v5551_v10  ;;  %v5654_v16 = vmul.f32 %v14721_v20, %v14721_v20 }
 0xcbb   :  { %v4087_v40 = vsel %vm282_vm0, %v4017_v7, 0.0 }
 0xcbc   :  { %v14730_v5 = vsub.f32 %v14455_v2, %v5605_v55  ;;  %4088 = vadd.xlane.f32.xlu0 %v4087_v40  ;;  %5688 = vadd.xlane.f32.xlu1 %v5687_v57  ;;  %v5696_v33 = vsel %vm282_vm0, %v5654_v16, 0.0 }
 0xcbd   :  { %v5560_v30 = vpop.xlane.xlu1 %5559 }
 0xcbe   :  { %v5608_v49 = vmul.f32 0.03125, %v5560_v30  ;;  %v5653_v26 = vmul.f32 %v14730_v5, %v14730_v5 }
 0xcc0   :  { %v14736_v14 = vsub.f32 %v14467_v17, %v5608_v49  ;;  %5697 = vadd.xlane.f32.xlu1 %v5696_v33  ;;  %v5693_v60 = vsel %vm282_vm0, %v5653_v26, 0.0 }
 0xcc1   :  { %v5557_v35 = vpop.xlane.xlu1 %5556 }
 0xcc2   :  { %v5607_v12 = vmul.f32 0.03125, %v5557_v35  ;;  %v5656_v2 = vmul.f32 %v14736_v14, %v14736_v14 }
 0xcc4   :  { %v14742_v24 = vsub.f32 %v14479_v34, %v5607_v12  ;;  %5694 = vadd.xlane.f32.xlu1 %v5693_v60  ;;  %v5702_v55 = vsel %vm282_vm0, %v5656_v2, 0.0 }
 0xcc5   :  { %v5566_v10 = vpop.xlane.xlu1 %5565 }
 0xcc6   :  { %v5610_v7 = vmul.f32 0.03125, %v5566_v10  ;;  %v5655_v17 = vmul.f32 %v14742_v24, %v14742_v24 }
 0xcc8   :  { %v14748_v40 = vsub.f32 %v14491_v13, %v5610_v7  ;;  %5703 = vadd.xlane.f32.xlu1 %v5702_v55  ;;  %v5699_v30 = vsel %vm282_vm0, %v5655_v17, 0.0  ;;  %v217_v55 = vld [vmem:[#allocation11 + $0x20] sm:$0xff]  ;;  %v218_v17 = vld [vmem:[#allocation11 + $0x28] sm:$0xff] }
 0xcc9   :  { %v5563_v57 = vpop.xlane.xlu1 %5562 }
 0xcca   :  { %v5609_v16 = vmul.f32 0.03125, %v5563_v57  ;;  %v5658_v34 = vmul.f32 %v14748_v40, %v14748_v40 }
 0xccc   :  { %v14754_v49 = vsub.f32 %v14502_v43, %v5609_v16  ;;  %5700 = vadd.xlane.f32.xlu1 %v5699_v30  ;;  %v5708_v35 = vsel %vm282_vm0, %v5658_v34, 0.0  ;;  %v9812_v16 = vpack.c.bf16 %v218_v17, %v217_v55 }
 0xccd   :  { %v5572_v33 = vpop.xlane.xlu1 %5571 }
 0xcce   :  { %v5612_v26 = vmul.f32 0.03125, %v5572_v33  ;;  %v5657_v13 = vmul.f32 %v14754_v49, %v14754_v49  ;;  %9813 = vmatprep.subr.bf16.mxu1 %v9812_v16 }
 0xccf   :  { %9815 = vmatpush3.bf16.msra.mxu1 %v9812_v16 }
 0xcd0   :  { %v14760_v12 = vsub.f32 %v14513_v44, %v5612_v26  ;;  %5709 = vadd.xlane.f32.xlu1 %v5708_v35  ;;  %v5705_v10 = vsel %vm282_vm0, %v5657_v13, 0.0  ;;  %v219_v26 = vld [vmem:[#allocation11 + $0x30] sm:$0xff] }
 0xcd1   :  { %v5569_v60 = vpop.xlane.xlu1 %5568 }
 0xcd2   :  { %v5611_v2 = vmul.f32 0.03125, %v5569_v60  ;;  %v5660_v43 = vmul.f32 %v14760_v12, %v14760_v12 }
 0xcd4   :  { %v14766_v7 = vsub.f32 %v14524_v48, %v5611_v2  ;;  %5706 = vadd.xlane.f32.xlu1 %v5705_v10  ;;  %v5714_v44 = vsel %vm282_vm0, %v5660_v43, 0.0  ;;  %v220_v48 = vld [vmem:[#allocation11 + $0x38] sm:$0xff] }
 0xcd5   :  { %v5578_v57 = vpop.xlane.xlu1 %5577  ;;  %v9816_v13 = vpack.c.bf16 %v220_v48, %v219_v26 }
 0xcd6   :  { %v5614_v30 = vmul.f32 0.03125, %v5578_v57  ;;  %v5659_v34 = vmul.f32 %v14766_v7, %v14766_v7 }
 0xcd7   :  { %9817 = vmatprep.subr.bf16.mxu1 %v9816_v13 }
 0xcd8   :  { %v14772_v33 = vsub.f32 %v14537_v9, %v5614_v30  ;;  %5715 = vadd.xlane.f32.xlu1 %v5714_v44  ;;  %v5711_v2 = vsel %vm282_vm0, %v5659_v34, 0.0  ;;  %9819 = vmatpush3.bf16.msra.mxu1 %v9816_v13 }
 0xcd9   :  { %v5575_v35 = vpop.xlane.xlu1 %5574 }
 0xcda   :  { %v5613_v60 = vmul.f32 0.03125, %v5575_v35  ;;  %v5662_v10 = vmul.f32 %v14772_v33, %v14772_v33 }
 0xcdc   :  { %v14778_v43 = vsub.f32 %v14550_v15, %v5613_v60  ;;  %5712 = vadd.xlane.f32.xlu1 %v5711_v2  ;;  %v5720_v17 = vsel %vm282_vm0, %v5662_v10, 0.0 }
 0xcdd   :  { %v5584_v9 = vpop.xlane.xlu1 %5583 }
 0xcde   :  { %v5616_v55 = vmul.f32 0.03125, %v5584_v9  ;;  %v5661_v57 = vmul.f32 %v14778_v43, %v14778_v43 }
 0xce0   :  { %v14784_v16 = vsub.f32 %v14561_v3, %v5616_v55  ;;  %5721 = vadd.xlane.f32.xlu1 %v5720_v17  ;;  %v5717_v34 = vsel %vm282_vm0, %v5661_v57, 0.0 }
 0xce1   :  { %v5581_v30 = vpop.xlane.xlu1 %5580 }
 0xce2   :  { %17302 = vst [vmem:[#allocation54_spill] sm:$0xff] %v14784_v16  ;;  %v5615_v44 = vmul.f32 0.03125, %v5581_v30  ;;  %v5664_v15 = vmul.f32 %v14784_v16, %v14784_v16 }
 0xce4   :  { %v14790_v26 = vsub.f32 %v14572_v51, %v5615_v44  ;;  %5718 = vadd.xlane.f32.xlu1 %v5717_v34  ;;  %v5726_v13 = vsel %vm282_vm0, %v5664_v15, 0.0 }
 0xce5   :  { %v5590_v48 = vpop.xlane.xlu1 %5589 }
 0xce6   :  { %17303 = vst [vmem:[#allocation51_spill] sm:$0xff] %v14790_v26  ;;  %v5618_v35 = vmul.f32 0.03125, %v5590_v48  ;;  %v5663_v3 = vmul.f32 %v14790_v26, %v14790_v26 }
 0xce8   :  { %v14796_v60 = vsub.f32 %v14583_v29, %v5618_v35  ;;  %5727 = vadd.xlane.f32.xlu1 %v5726_v13  ;;  %v5723_v9 = vsel %vm282_vm0, %v5663_v3, 0.0 }
 0xce9   :  { %v5587_v2 = vpop.xlane.xlu1 %5586 }
 0xcea   :  { %17304 = vst [vmem:[#allocation46_spill] sm:$0xff] %v14796_v60  ;;  %v5617_v10 = vmul.f32 0.03125, %v5587_v2  ;;  %v5666_v51 = vmul.f32 %v14796_v60, %v14796_v60 }
 0xcec   :  { %v14802_v55 = vsub.f32 %v14594_v37, %v5617_v10  ;;  %5724 = vadd.xlane.f32.xlu1 %v5723_v9  ;;  %v5732_v57 = vsel %vm282_vm0, %v5666_v51, 0.0  ;;  %v4020_v37 = vpop.xlane.xlu0 %4019 }
 0xced   :  { %v5596_v17 = vpop.xlane.xlu1 %5595 }
 0xcee   :  { %17305 = vst [vmem:[#allocation50_spill] sm:$0xff] %v14802_v55  ;;  %v5665_v30 = vmul.f32 %v14802_v55, %v14802_v55  ;;  %v5620_v29 = vmul.f32 0.03125, %v5596_v17 }
 0xcf0   :  { %5733 = vadd.xlane.f32.xlu1 %v5732_v57  ;;  %v5729_v15 = vsel %vm282_vm0, %v5665_v30, 0.0  ;;  %v14809_v48 = vsub.f32 %v14606_v0, %v5620_v29  ;;  %v4023_v10 = vpop.xlane.xlu0 %4022 }
 0xcf1   :  { %v5593_v44 = vpop.xlane.xlu1 %5592 }
 0xcf2   :  { %v5619_v34 = vmul.f32 0.03125, %v5593_v44  ;;  %17306 = vst [vmem:[#allocation44_spill] sm:$0xff] %v14809_v48  ;;  %v5668_v2 = vmul.f32 %v14809_v48, %v14809_v48  ;;  %v4091_v44 = vmul.f32 0.03125, %v4023_v10 }
 0xcf4   :  { %v14812_v35 = vsub.f32 %v14618_v46, %v5619_v34  ;;  %5730 = vadd.xlane.f32.xlu1 %v5729_v15  ;;  %v5738_v9 = vsel %vm282_vm0, %v5668_v2, 0.0  ;;  %v4026_v0 = vpop.xlane.xlu0 %4025  ;;  %v4090_v34 = vmul.f32 0.03125, %v4020_v37 }
 0xcf5   :  { %v4092_v2 = vmul.f32 0.03125, %v4026_v0 }
 0xcf6   :  { %17307 = vst [vmem:[#allocation71_spill] sm:$0xff] %v14812_v35  ;;  %v5667_v13 = vmul.f32 %v14812_v35, %v14812_v35  ;;  %v4114_v35 = vadd.f32 1e-05, %v4090_v34 }
 0xcf7   :  { %v4116_v54 = vadd.f32 1e-05, %v4092_v2 }
 0xcf8   :  { %v5735_v3 = vsel %vm282_vm0, %v5667_v13, 0.0  ;;  %v4029_v51 = vpop.xlane.xlu0 %4028  ;;  %v4115_v13 = vadd.f32 1e-05, %v4091_v44 }
 0xcf9   :  { %5736 = vadd.xlane.f32.xlu1 %v5735_v3  ;;  %v4093_v48 = vmul.f32 0.03125, %v4029_v51 }
 0xcfa   :  { %10152 = vrsqrt.f32 %v4115_v13 }
 0xcfb   :  { %10154 = vrsqrt.f32 %v4114_v35  ;;  %v4117_v25 = vadd.f32 1e-05, %v4093_v48 }
 0xcfc   :  { %v4032_v17 = vpop.xlane.xlu0 %4031 }
 0xcfd   :  { %5739 = vadd.xlane.f32.xlu1 %v5738_v9  ;;  %v4094_v44 = vmul.f32 0.03125, %v4032_v17 }
 0xcff   :  { %v4118_v13 = vadd.f32 1e-05, %v4094_v44 }
 0xd00   :  { %v4035_v46 = vpop.xlane.xlu0 %4034 }
 0xd01   :  { %v4095_v10 = vmul.f32 0.03125, %v4035_v46 }
 0xd03   :  { %v4119_v0 = vadd.f32 1e-05, %v4095_v10 }
 0xd04   :  { %v4038_v57 = vpop.xlane.xlu0 %4037  ;;  %v10153_v48 = vpop.eup %10152 }
 0xd05   :  { %v10155_v16 = vpop.eup %10154  ;;  %v4163_v17 = vmul.f32 %v10153_v48, %v14447_v8  ;;  %v14848_v48 = vld [vmem:[#allocation14] ss:$0 sm:$0xff] }
 0xd08   :  { %v4041_v30 = vpop.xlane.xlu0 %4040 }
 0xd09   :  { %v4097_v10 = vmul.f32 0.03125, %v4041_v30 }
 0xd0c   :  { %v14820_v29 = vpop.xlane.xlu0 %4043 }
 0xd10   :  { %v14822_v15 = vpop.xlane.xlu0 %4046 }
 0xd14   :  { %v14824_v55 = vpop.xlane.xlu0 %4049 }
 0xd18   :  { %v14826_v51 = vpop.xlane.xlu0 %4052 }
 0xd1c   :  { %v14837_v46 = vpop.xlane.xlu0 %4055 }
 0xd2d   :  { %v5674_v3 = vpop.xlane.xlu1 %5673 }
 0xd2e   :  { %v5742_v19 = vmul.f32 0.03125, %v5674_v3 }
 0xd30   :  { %v5766_v9 = vadd.f32 1e-05, %v5742_v19 }
 0xd31   :  { %v5671_v60 = vpop.xlane.xlu1 %5670 }
 0xd32   :  { %10156 = vrsqrt.f32 %v5766_v9  ;;  %v5741_v62 = vmul.f32 0.03125, %v5671_v60  ;;  %v222_v60 = vld [vmem:[%s16658_s9] sm:$0x3] }
 0xd33   :  { %10158 = vrsqrt.f32 %v4117_v25  ;;  %v4096_v25 = vmul.f32 0.03125, %v4038_v57  ;;  %v4162_v57 = vmul.f32 %v10155_v16, %v14433_v4 }
 0xd34   :  { %v5765_v37 = vadd.f32 1e-05, %v5741_v62 }
 0xd35   :  { %v5680_v26 = vpop.xlane.xlu1 %5679 }
 0xd36   :  { %v5744_v34 = vmul.f32 0.03125, %v5680_v26  ;;  %10160 = vrsqrt.f32 %v5765_v37  ;;  %v14834_v26 = vld [vmem:[%s16662_s13] ss:$0 sm:$0xff] }
 0xd37   :  { %10162 = vrsqrt.f32 %v4116_v54 }
 0xd38   :  { %v5768_v19 = vadd.f32 1e-05, %v5744_v34  ;;  %v17308_v34 = vld [vmem:[#allocation47_spill] sm:$0xff] }
 0xd39   :  { %v5677_v35 = vpop.xlane.xlu1 %5676 }
 0xd3a   :  { %v5743_v3 = vmul.f32 0.03125, %v5677_v35  ;;  %10164 = vrsqrt.f32 %v5768_v19  ;;  %v223_v19 = vld [vmem:[%s16659_s10] sm:$0x3]  ;;  %v4120_v35 = vadd.f32 1e-05, %v4096_v25  ;;  %v14857_v25 = vpop.xlane.xlu0 %4058 }
 0xd3b   :  { %10166 = vrsqrt.f32 %v4119_v0  ;;  %v14841_v0 = vrot.slane %v222_v60, %v17308_v34 }
 0xd3c   :  { %v10157_v62 = vpop.eup %10156  ;;  %v5767_v54 = vadd.f32 1e-05, %v5743_v3  ;;  %10168 = vrsqrt.f32 %v4118_v13 }
 0xd3d   :  { %v5814_v2 = vmul.f32 %v10157_v62, %v14635_v1  ;;  %v5686_v9 = vpop.xlane.xlu1 %5685  ;;  %v10159_v44 = vpop.eup %10158  ;;  %v4191_v30 = vmul.f32 %v14841_v0, %v4163_v17  ;;  %v4190_v39 = vmul.f32 %v14841_v0, %v4162_v57  ;;  %v4098_v17 = vmul.f32 0.03125, %v14820_v29 }
 0xd3e   :  { %v5746_v37 = vmul.f32 0.03125, %v5686_v9  ;;  %10170 = vrsqrt.f32 %v5767_v54  ;;  %v4165_v60 = vmul.f32 %v10159_v44, %v14472_v32  ;;  %v4121_v9 = vadd.f32 1e-05, %v4097_v10  ;;  %v14872_v36 = vpop.xlane.xlu0 %4061 }
 0xd3f   :  { %v5844_v8 = vmul.f32 %v14834_v26, %v5814_v2  ;;  %v14855_v2 = vrot.slane %v223_v19, %v17308_v34  ;;  %v4099_v57 = vmul.f32 0.03125, %v14822_v15 }
 0xd40   :  { %v5770_v1 = vadd.f32 1e-05, %v5746_v37  ;;  %v10161_v13 = vpop.eup %10160 }
 0xd41   :  { %v5683_v3 = vpop.xlane.xlu1 %5682  ;;  %v10163_v62 = vpop.eup %10162  ;;  %v5813_v4 = vmul.f32 %v10161_v13, %v14638_v18  ;;  %v5874_v54 = vadd.f32 %v14848_v48, %v5844_v8  ;;  %v4219_v18 = vadd.f32 %v14855_v2, %v4191_v30  ;;  %v4193_v13 = vmul.f32 %v14841_v0, %v4165_v60 }
 0xd42   :  { %v5745_v16 = vmul.f32 0.03125, %v5683_v3  ;;  %10172 = vrsqrt.f32 %v5770_v1  ;;  %v4164_v44 = vmul.f32 %v10163_v62, %v14460_v58  ;;  %v4218_v29 = vadd.f32 %v14855_v2, %v4190_v39 }
 0xd43   :  { %10174 = vrsqrt.f32 %v4120_v35  ;;  %v5843_v37 = vmul.f32 %v14834_v26, %v5813_v4  ;;  %v5898_v3 = vadd.f32 %v5874_v54, %v4219_v18  ;;  %v4122_v30 = vadd.f32 1e-05, %v4098_v17 }
 0xd44   :  { %v5769_v32 = vadd.f32 1e-05, %v5745_v16  ;;  %v10165_v10 = vpop.eup %10164  ;;  %10176 = vrsqrt.f32 %v4121_v9  ;;  %v4192_v16 = vmul.f32 %v14841_v0, %v4164_v44  ;;  %v4123_v9 = vadd.f32 1e-05, %v4099_v57 }
 0xd45   :  { %v5692_v34 = vpop.xlane.xlu1 %5691  ;;  %v10167_v19 = vpop.eup %10166  ;;  %v5816_v8 = vmul.f32 %v10165_v10, %v14649_v56  ;;  %v5873_v1 = vadd.f32 %v14848_v48, %v5843_v37  ;;  %v4100_v39 = vmul.f32 0.03125, %v14824_v55  ;;  %v4221_v17 = vadd.f32 %v14855_v2, %v4193_v13 }
 0xd46   :  { %v5748_v35 = vmul.f32 0.03125, %v5692_v34  ;;  %10178 = vrsqrt.f32 %v5769_v32  ;;  %v10169_v4 = vpop.eup %10168  ;;  %v4167_v60 = vmul.f32 %v10167_v19, %v14496_v53  ;;  %v14879_v18 = vmul.f32 0.5, %v5898_v3 }
 0xd47   :  { %v5846_v58 = vmul.f32 %v14834_v26, %v5816_v8  ;;  %v5897_v32 = vadd.f32 %v5873_v1, %v4218_v29  ;;  %v4166_v53 = vmul.f32 %v10169_v4, %v14484_v42  ;;  %v4220_v29 = vadd.f32 %v14855_v2, %v4192_v16 }
 0xd48   :  { %v5772_v62 = vadd.f32 1e-05, %v5748_v35  ;;  %v10171_v15 = vpop.eup %10170  ;;  %17310 = vst [vmem:[#allocation56_spill] sm:$0xff] %v14879_v18  ;;  %v4195_v3 = vmul.f32 %v14841_v0, %v4167_v60  ;;  %v4124_v4 = vadd.f32 1e-05, %v4100_v39 }
 0xd49   :  { %v5689_v56 = vpop.xlane.xlu1 %5688  ;;  %v5815_v37 = vmul.f32 %v10171_v15, %v14661_v11  ;;  %v14877_v10 = vmul.f32 0.5, %v5897_v32  ;;  %v5876_v44 = vadd.f32 %v14848_v48, %v5846_v58  ;;  %v4101_v11 = vmul.f32 0.03125, %v14826_v51 }
 0xd4a   :  { %v5747_v54 = vmul.f32 0.03125, %v5689_v56  ;;  %10180 = vrsqrt.f32 %v5772_v62 }
 0xd4b   :  { %17309 = vst [vmem:[#allocation27_spill] sm:$0xff] %v14877_v10  ;;  %10182 = vrsqrt.f32 %v4122_v30  ;;  %v5845_v57 = vmul.f32 %v14834_v26, %v5815_v37  ;;  %9510 = vmatprep.mubr.msk.f32.mxu1 %vm282_vm0, %v14877_v10  ;;  %9554 = vmatprep.mubr.msk.f32.mxu0 %vm282_vm0, %v14877_v10  ;;  %v9828_v55 = vpack.c.bf16 %v14879_v18, %v14877_v10  ;;  %v14899_v30 = vpop.xlane.xlu0 %4064  ;;  %v4125_v32 = vadd.f32 1e-05, %v4101_v11 }
 0xd4c   :  { %v5771_v34 = vadd.f32 1e-05, %v5747_v54  ;;  %v10173_v19 = vpop.eup %10172  ;;  %10184 = vrsqrt.f32 %v4123_v9  ;;  %v5900_v8 = vadd.f32 %v5876_v44, %v4221_v17  ;;  %9511 = vmatmul.mubr.msk.f32.vlgmr.msra.gmra.mrb[44].mxu1 %vm282_vm0, %v14879_v18  ;;  %9555 = vmatmul.mubr.msk.f32.vlgmr.msra.gmra.mrb[60].mxu0 %vm282_vm0, %v14879_v18  ;;  %v4102_v37 = vmul.f32 0.03125, %v14837_v46 }
 0xd4d   :  { %v5698_v13 = vpop.xlane.xlu1 %5697  ;;  %v10175_v42 = vpop.eup %10174  ;;  %v5818_v35 = vmul.f32 %v10173_v19, %v14673_v38  ;;  %v5875_v1 = vadd.f32 %v14848_v48, %v5845_v57  ;;  %9829 = vmatprep.subr.bf16.mxu1 %v9828_v55  ;;  %v4194_v38 = vmul.f32 %v14841_v0, %v4166_v53  ;;  %v4103_v53 = vmul.f32 0.03125, %v14857_v25 }
 0xd4e   :  { %v5750_v51 = vmul.f32 0.03125, %v5698_v13  ;;  %10186 = vrsqrt.f32 %v5771_v34  ;;  %v10177_v58 = vpop.eup %10176  ;;  %9831 = vmatpush3.bf16.msra.mxu1 %v9828_v55  ;;  %v4168_v16 = vmul.f32 %v10175_v42, %v14507_v21  ;;  %v14905_v39 = vmul.f32 0.5, %v5900_v8 }
 0xd4f   :  { %v5848_v62 = vmul.f32 %v14834_v26, %v5818_v35  ;;  %v5899_v9 = vadd.f32 %v5875_v1, %v4220_v29  ;;  %v4223_v57 = vadd.f32 %v14855_v2, %v4195_v3  ;;  %v4169_v21 = vmul.f32 %v10177_v58, %v14518_v63  ;;  %v14921_v55 = vpop.xlane.xlu0 %4067 }
 0xd50   :  { %v5774_v15 = vadd.f32 1e-05, %v5750_v51  ;;  %v10179_v56 = vpop.eup %10178  ;;  %17311 = vst [vmem:[#allocation53_spill] sm:$0xff] %v14905_v39  ;;  %v4126_v25 = vadd.f32 1e-05, %v4102_v37  ;;  %v4222_v13 = vadd.f32 %v14855_v2, %v4194_v38  ;;  %v4196_v38 = vmul.f32 %v14841_v0, %v4168_v16 }
 0xd51   :  { %v5695_v60 = vpop.xlane.xlu1 %5694  ;;  %v5817_v54 = vmul.f32 %v10179_v56, %v14685_v45  ;;  %v14908_v44 = vmul.f32 0.5, %v5899_v9  ;;  %v5878_v34 = vadd.f32 %v14848_v48, %v5848_v62  ;;  %v4127_v3 = vadd.f32 1e-05, %v4103_v53 }
 0xd52   :  { %10188 = vrsqrt.f32 %v5774_v15  ;;  %v5749_v17 = vmul.f32 0.03125, %v5695_v60 }
 0xd53   :  { %17312 = vst [vmem:[#allocation36_spill] sm:$0xff] %v14908_v44  ;;  %10190 = vrsqrt.f32 %v4124_v4  ;;  %v5847_v46 = vmul.f32 %v14834_v26, %v5817_v54  ;;  %9513 = vmatprep.mubr.msk.f32.mxu1 %vm282_vm0, %v14908_v44  ;;  %9557 = vmatprep.mubr.msk.f32.mxu0 %vm282_vm0, %v14908_v44  ;;  %v9832_v45 = vpack.c.bf16 %v14905_v39, %v14908_v44  ;;  %v4071_v56 = vpop.xlane.xlu0 %4070 }
 0xd54   :  { %v5773_v19 = vadd.f32 1e-05, %v5749_v17  ;;  %v10181_v11 = vpop.eup %10180  ;;  %10192 = vrsqrt.f32 %v4125_v32  ;;  %9514 = vmatmul.mubr.msk.f32.gmra.mrb[46].mxu1 %vm282_vm0, %v14905_v39  ;;  %9558 = vmatmul.mubr.msk.f32.gmra.mrb[62].mxu0 %vm282_vm0, %v14905_v39  ;;  %v5902_v8 = vadd.f32 %v5878_v34, %v4223_v57  ;;  %v4197_v4 = vmul.f32 %v14841_v0, %v4169_v21 }
 0xd55   :  { %v5704_v63 = vpop.xlane.xlu1 %5703  ;;  %v10183_v42 = vpop.eup %10182  ;;  %v5820_v35 = vmul.f32 %v10181_v11, %v14697_v28  ;;  %9833 = vmatprep.subr.bf16.mxu1 %v9832_v45  ;;  %v5877_v29 = vadd.f32 %v14848_v48, %v5847_v46 }
 0xd56   :  { %10194 = vrsqrt.f32 %v5773_v19  ;;  %v5752_v51 = vmul.f32 0.03125, %v5704_v63  ;;  %v10185_v1 = vpop.eup %10184  ;;  %9835 = vmatpush3.bf16.msra.mxu1 %v9832_v45  ;;  %v14933_v32 = vmul.f32 0.5, %v5902_v8  ;;  %v4170_v17 = vmul.f32 %v10183_v42, %v14529_v52 }
 0xd57   :  { %v5850_v58 = vmul.f32 %v14834_v26, %v5820_v35  ;;  %v5901_v15 = vadd.f32 %v5877_v29, %v4222_v13  ;;  %10196 = vrsqrt.f32 %v4126_v25  ;;  %v4171_v53 = vmul.f32 %v10185_v1, %v14544_v50  ;;  %v14959_v42 = vpop.xlane.xlu0 %4073 }
 0xd58   :  { %v5776_v62 = vadd.f32 1e-05, %v5752_v51  ;;  %v10187_v9 = vpop.eup %10186  ;;  %17313 = vst [vmem:[#allocation34_spill] sm:$0xff] %v14933_v32  ;;  %v4225_v52 = vadd.f32 %v14855_v2, %v4197_v4  ;;  %v4104_v50 = vmul.f32 0.03125, %v14872_v36  ;;  %v4105_v19 = vmul.f32 0.03125, %v14899_v30 }
 0xd59   :  { %v5701_v28 = vpop.xlane.xlu1 %5700  ;;  %v5819_v37 = vmul.f32 %v10187_v9, %v14709_v31  ;;  %v14936_v54 = vmul.f32 0.5, %v5901_v15  ;;  %v5880_v57 = vadd.f32 %v14848_v48, %v5850_v58  ;;  %v4224_v25 = vadd.f32 %v14855_v2, %v4196_v38 }
 0xd5a   :  { %10198 = vrsqrt.f32 %v5776_v62  ;;  %v5751_v60 = vmul.f32 0.03125, %v5701_v28  ;;  %v4199_v30 = vmul.f32 %v14841_v0, %v4171_v53  ;;  %v4198_v51 = vmul.f32 %v14841_v0, %v4170_v17 }
 0xd5b   :  { %17314 = vst [vmem:[#allocation31_spill] sm:$0xff] %v14936_v54  ;;  %10200 = vrsqrt.f32 %v4127_v3  ;;  %v5849_v16 = vmul.f32 %v14834_v26, %v5819_v37  ;;  %9516 = vmatprep.mubr.msk.f32.mxu1 %vm282_vm0, %v14936_v54  ;;  %9560 = vmatprep.mubr.msk.f32.mxu0 %vm282_vm0, %v14936_v54  ;;  %v9836_v31 = vpack.c.bf16 %v14933_v32, %v14936_v54  ;;  %v4128_v4 = vadd.f32 1e-05, %v4104_v50 }
 0xd5c   :  { %v10189_v34 = vpop.eup %10188  ;;  %v5775_v21 = vadd.f32 1e-05, %v5751_v60  ;;  %9517 = vmatmul.mubr.msk.f32.gmra.mrb[48].mxu1 %vm282_vm0, %v14933_v32  ;;  %9561 = vmatmul.mubr.msk.f32.gmra.mrb[64].mxu0 %vm282_vm0, %v14933_v32  ;;  %v5904_v8 = vadd.f32 %v5880_v57, %v4225_v52  ;;  %v4129_v58 = vadd.f32 1e-05, %v4105_v19  ;;  %v4227_v57 = vadd.f32 %v14855_v2, %v4199_v30 }
 0xd5d   :  { %v10191_v46 = vpop.eup %10190  ;;  %v5822_v45 = vmul.f32 %v10189_v34, %v14721_v20  ;;  %v5710_v11 = vpop.xlane.xlu1 %5709  ;;  %9837 = vmatprep.subr.bf16.mxu1 %v9836_v31  ;;  %v5879_v13 = vadd.f32 %v14848_v48, %v5849_v16 }
 0xd5e   :  { %10202 = vrsqrt.f32 %v5775_v21  ;;  %v5754_v63 = vmul.f32 0.03125, %v5710_v11  ;;  %v10193_v36 = vpop.eup %10192  ;;  %9839 = vmatpush3.bf16.msra.mxu1 %v9836_v31  ;;  %v4172_v29 = vmul.f32 %v10191_v46, %v14555_v41  ;;  %v14968_v37 = vmul.f32 0.5, %v5904_v8 }
 0xd5f   :  { %v5852_v20 = vmul.f32 %v14834_v26, %v5822_v45  ;;  %v5903_v3 = vadd.f32 %v5879_v13, %v4224_v25  ;;  %v4173_v17 = vmul.f32 %v10193_v36, %v14566_v47  ;;  %v4106_v41 = vmul.f32 0.03125, %v14921_v55  ;;  %v4077_v55 = vpop.xlane.xlu0 %4076 }
 0xd60   :  { %v10195_v35 = vpop.eup %10194  ;;  %v5778_v1 = vadd.f32 1e-05, %v5754_v63  ;;  %17316 = vst [vmem:[#allocation35_spill] sm:$0xff] %v14968_v37  ;;  %v4226_v47 = vadd.f32 %v14855_v2, %v4198_v51  ;;  %v4200_v63 = vmul.f32 %v14841_v0, %v4172_v29 }
 0xd61   :  { %v5821_v62 = vmul.f32 %v10195_v35, %v14730_v5  ;;  %v5707_v15 = vpop.xlane.xlu1 %5706  ;;  %v5882_v9 = vadd.f32 %v14848_v48, %v5852_v20  ;;  %v14966_v28 = vmul.f32 0.5, %v5903_v3  ;;  %v10197_v60 = vpop.eup %10196  ;;  %v4107_v5 = vmul.f32 0.03125, %v4071_v56 }
 0xd62   :  { %10204 = vrsqrt.f32 %v5778_v1  ;;  %v5753_v38 = vmul.f32 0.03125, %v5707_v15  ;;  %v4201_v45 = vmul.f32 %v14841_v0, %v4173_v17  ;;  %v4130_v13 = vadd.f32 1e-05, %v4106_v41 }
 0xd63   :  { %17315 = vst [vmem:[#allocation59_spill] sm:$0xff] %v14966_v28  ;;  %v5851_v53 = vmul.f32 %v14834_v26, %v5821_v62  ;;  %9519 = vmatprep.mubr.msk.f32.mxu1 %vm282_vm0, %v14966_v28  ;;  %9563 = vmatprep.mubr.msk.f32.mxu0 %vm282_vm0, %v14966_v28  ;;  %v9840_v21 = vpack.c.bf16 %v14968_v37, %v14966_v28  ;;  %10206 = vrsqrt.f32 %v4129_v58  ;;  %v4131_v8 = vadd.f32 1e-05, %v4107_v5  ;;  %v14998_v62 = vpop.xlane.xlu0 %4079 }
 0xd64   :  { %v10199_v34 = vpop.eup %10198  ;;  %v5777_v16 = vadd.f32 1e-05, %v5753_v38  ;;  %9520 = vmatmul.mubr.msk.f32.gmra.mrb[50].mxu1 %vm282_vm0, %v14968_v37  ;;  %9564 = vmatmul.mubr.msk.f32.gmra.mrb[66].mxu0 %vm282_vm0, %v14968_v37  ;;  %v5906_v50 = vadd.f32 %v5882_v9, %v4227_v57  ;;  %v4174_v3 = vmul.f32 %v10197_v60, %v14577_v6  ;;  %v4229_v15 = vadd.f32 %v14855_v2, %v4201_v45 }
 0xd65   :  { %v10201_v31 = vpop.eup %10200  ;;  %v5824_v52 = vmul.f32 %v10199_v34, %v14736_v14  ;;  %v5716_v56 = vpop.xlane.xlu1 %5715  ;;  %v5881_v46 = vadd.f32 %v14848_v48, %v5851_v53  ;;  %9841 = vmatprep.subr.bf16.mxu1 %v9840_v21  ;;  %v4228_v38 = vadd.f32 %v14855_v2, %v4200_v63 }
 0xd66   :  { %10208 = vrsqrt.f32 %v5777_v16  ;;  %v5756_v19 = vmul.f32 0.03125, %v5716_v56  ;;  %9843 = vmatpush3.bf16.msra.mxu1 %v9840_v21  ;;  %v14993_v51 = vmul.f32 0.5, %v5906_v50  ;;  %v4108_v16 = vmul.f32 0.03125, %v14959_v42 }
 0xd67   :  { %10210 = vrsqrt.f32 %v4128_v4  ;;  %v5854_v11 = vmul.f32 %v14834_v26, %v5824_v52  ;;  %v5905_v14 = vadd.f32 %v5881_v46, %v4226_v47  ;;  %v4175_v4 = vmul.f32 %v10201_v31, %v14588_v27  ;;  %v4083_v46 = vpop.xlane.xlu0 %4082 }
 0xd68   :  { %v10203_v25 = vpop.eup %10202  ;;  %v5780_v36 = vadd.f32 1e-05, %v5756_v19  ;;  %17318 = vst [vmem:[#allocation75_spill] sm:$0xff] %v14993_v51  ;;  %v4109_v27 = vmul.f32 0.03125, %v4077_v55  ;;  %v4202_v55 = vmul.f32 %v14841_v0, %v4174_v3  ;;  %v4132_v63 = vadd.f32 1e-05, %v4108_v16 }
 0xd69   :  { %v5823_v30 = vmul.f32 %v10203_v25, %v14742_v24  ;;  %v5713_v20 = vpop.xlane.xlu1 %5712  ;;  %v14991_v35 = vmul.f32 0.5, %v5905_v14  ;;  %v5884_v1 = vadd.f32 %v14848_v48, %v5854_v11  ;;  %v4203_v5 = vmul.f32 %v14841_v0, %v4175_v4 }
 0xd6a   :  { %10212 = vrsqrt.f32 %v5780_v36  ;;  %v5755_v58 = vmul.f32 0.03125, %v5713_v20 }
 0xd6b   :  { %17317 = vst [vmem:[#allocation62_spill] sm:$0xff] %v14991_v35  ;;  %v5853_v29 = vmul.f32 %v14834_v26, %v5823_v30  ;;  %9522 = vmatprep.mubr.msk.f32.mxu1 %vm282_vm0, %v14991_v35  ;;  %9566 = vmatprep.mubr.msk.f32.mxu0 %vm282_vm0, %v14991_v35  ;;  %v9844_v24 = vpack.c.bf16 %v14993_v51, %v14991_v35  ;;  %10214 = vrsqrt.f32 %v4130_v13 }
 0xd6c   :  { %v10205_v6 = vpop.eup %10204  ;;  %v5779_v9 = vadd.f32 1e-05, %v5755_v58  ;;  %9523 = vmatmul.mubr.msk.f32.gmra.mrb[52].mxu1 %vm282_vm0, %v14993_v51  ;;  %9567 = vmatmul.mubr.msk.f32.gmra.mrb[68].mxu0 %vm282_vm0, %v14993_v51  ;;  %10216 = vrsqrt.f32 %v4131_v8  ;;  %v5908_v53 = vadd.f32 %v5884_v1, %v4229_v15  ;;  %v4231_v8 = vadd.f32 %v14855_v2, %v4203_v5 }
 0xd6d   :  { %v5826_v60 = vmul.f32 %v10205_v6, %v14748_v40  ;;  %9845 = vmatprep.subr.bf16.mxu1 %v9844_v24  ;;  %v5722_v17 = vpop.xlane.xlu1 %5721  ;;  %v5883_v41 = vadd.f32 %v14848_v48, %v5853_v29  ;;  %v10207_v34 = vpop.eup %10206  ;;  %v4133_v40 = vadd.f32 1e-05, %v4109_v27  ;;  %v4230_v1 = vadd.f32 %v14855_v2, %v4202_v55 }
 0xd6e   :  { %10218 = vrsqrt.f32 %v5779_v9  ;;  %v5758_v57 = vmul.f32 0.03125, %v5722_v17  ;;  %9847 = vmatpush3.bf16.msra.mxu1 %v9844_v24  ;;  %v15022_v11 = vmul.f32 0.5, %v5908_v53  ;;  %v4177_v42 = vmul.f32 %v10207_v34, %v14612_v22  ;;  %v4086_v9 = vpop.xlane.xlu0 %4085 }
 0xd6f   :  { %v5856_v21 = vmul.f32 %v14834_v26, %v5826_v60  ;;  %v5907_v47 = vadd.f32 %v5883_v41, %v4228_v38  ;;  %v4111_v22 = vmul.f32 0.03125, %v4083_v46  ;;  %v4110_v27 = vmul.f32 0.03125, %v14998_v62 }
 0xd70   :  { %v10209_v31 = vpop.eup %10208  ;;  %v5782_v52 = vadd.f32 1e-05, %v5758_v57  ;;  %17320 = vst [vmem:[#allocation57_spill] sm:$0xff] %v15022_v11 }
 0xd71   :  { %v10211_v56 = vpop.eup %10210  ;;  %v5825_v50 = vmul.f32 %v10209_v31, %v14754_v49  ;;  %v5719_v19 = vpop.xlane.xlu1 %5718  ;;  %v15020_v45 = vmul.f32 0.5, %v5907_v47  ;;  %v5886_v14 = vadd.f32 %v14848_v48, %v5856_v21  ;;  %v4135_v41 = vadd.f32 1e-05, %v4111_v22 }
 0xd72   :  { %10220 = vrsqrt.f32 %v5782_v52  ;;  %v5757_v25 = vmul.f32 0.03125, %v5719_v19  ;;  %v4176_v30 = vmul.f32 %v10211_v56, %v14600_v23  ;;  %v4205_v23 = vmul.f32 %v14841_v0, %v4177_v42  ;;  %v4089_v19 = vpop.xlane.xlu0 %4088 }
 0xd73   :  { %17319 = vst [vmem:[#allocation73_spill] sm:$0xff] %v15020_v45  ;;  %v5855_v13 = vmul.f32 %v14834_v26, %v5825_v50  ;;  %9525 = vmatprep.mubr.msk.f32.mxu1 %vm282_vm0, %v15020_v45  ;;  %9569 = vmatprep.mubr.msk.f32.mxu0 %vm282_vm0, %v15020_v45  ;;  %v9848_v49 = vpack.c.bf16 %v15022_v11, %v15020_v45  ;;  %10222 = vrsqrt.f32 %v4133_v40  ;;  %v4134_v31 = vadd.f32 1e-05, %v4110_v27 }
 0xd74   :  { %v10213_v36 = vpop.eup %10212  ;;  %v5781_v20 = vadd.f32 1e-05, %v5757_v25  ;;  %9526 = vmatmul.mubr.msk.f32.gmra.mrb[54].mxu1 %vm282_vm0, %v15022_v11  ;;  %9570 = vmatmul.mubr.msk.f32.gmra.mrb[70].mxu0 %vm282_vm0, %v15022_v11  ;;  %v5910_v29 = vadd.f32 %v5886_v14, %v4231_v8  ;;  %v4204_v17 = vmul.f32 %v14841_v0, %v4176_v30  ;;  %v4233_v40 = vadd.f32 %v14855_v2, %v4205_v23 }
 0xd75   :  { %v5828_v3 = vmul.f32 %v10213_v36, %v14760_v12  ;;  %9849 = vmatprep.subr.bf16.mxu1 %v9848_v49  ;;  %v5728_v4 = vpop.xlane.xlu1 %5727  ;;  %v5885_v58 = vadd.f32 %v14848_v48, %v5855_v13  ;;  %v10215_v24 = vpop.eup %10214 }
 0xd76   :  { %10224 = vrsqrt.f32 %v5781_v20  ;;  %v5760_v15 = vmul.f32 0.03125, %v5728_v4  ;;  %9851 = vmatpush3.bf16.msra.mxu1 %v9848_v49  ;;  %v10217_v6 = vpop.eup %10216  ;;  %v15049_v16 = vmul.f32 0.5, %v5910_v29  ;;  %v4178_v56 = vmul.f32 %v10215_v24, %v14623_v59 }
 0xd77   :  { %10226 = vrsqrt.f32 %v4132_v63  ;;  %v5858_v38 = vmul.f32 %v14834_v26, %v5828_v3  ;;  %v5909_v60 = vadd.f32 %v5885_v58, %v4230_v1  ;;  %v4179_v62 = vmul.f32 %v10217_v6, %v14643_v61 }
 0xd78   :  { %v10219_v12 = vpop.eup %10218  ;;  %v5784_v53 = vadd.f32 1e-05, %v5760_v15  ;;  %17322 = vst [vmem:[#allocation76_spill] sm:$0xff] %v15049_v16  ;;  %v4112_v61 = vmul.f32 0.03125, %v4086_v9  ;;  %v4232_v50 = vadd.f32 %v14855_v2, %v4204_v17  ;;  %v4206_v22 = vmul.f32 %v14841_v0, %v4178_v56  ;;  %v17325_v15 = vld [vmem:[#allocation40_spill] sm:$0xff] }
 0xd79   :  { %v5827_v57 = vmul.f32 %v10219_v12, %v14766_v7  ;;  %v5725_v34 = vpop.xlane.xlu1 %5724  ;;  %v15047_v5 = vmul.f32 0.5, %v5909_v60  ;;  %v5888_v21 = vadd.f32 %v14848_v48, %v5858_v38  ;;  %v4207_v59 = vmul.f32 %v14841_v0, %v4179_v62  ;;  %v17326_v12 = vld [vmem:[#allocation38_spill] sm:$0xff] }
 0xd7a   :  { %10228 = vrsqrt.f32 %v5784_v53  ;;  %v5759_v47 = vmul.f32 0.03125, %v5725_v34  ;;  %v4136_v20 = vadd.f32 1e-05, %v4112_v61  ;;  %v17327_v34 = vld [vmem:[#allocation54_spill] sm:$0xff]  ;;  %v4234_v62 = vadd.f32 %v14855_v2, %v4206_v22 }
 0xd7b   :  { %17321 = vst [vmem:[#allocation39_spill] sm:$0xff] %v15047_v5  ;;  %v5857_v55 = vmul.f32 %v14834_v26, %v5827_v57  ;;  %9528 = vmatprep.mubr.msk.f32.mxu1 %vm282_vm0, %v15047_v5  ;;  %9572 = vmatprep.mubr.msk.f32.mxu0 %vm282_vm0, %v15047_v5  ;;  %v9852_v7 = vpack.c.bf16 %v15049_v16, %v15047_v5  ;;  %10230 = vrsqrt.f32 %v4135_v41 }
 0xd7c   :  { %v10221_v52 = vpop.eup %10220  ;;  %v5783_v46 = vadd.f32 1e-05, %v5759_v47  ;;  %9529 = vmatmul.mubr.msk.f32.gmra.mrb[56].mxu1 %vm282_vm0, %v15049_v16  ;;  %9573 = vmatmul.mubr.msk.f32.gmra.mrb[72].mxu0 %vm282_vm0, %v15049_v16  ;;  %v5912_v63 = vadd.f32 %v5888_v21, %v4233_v40  ;;  %v4235_v9 = vadd.f32 %v14855_v2, %v4207_v59 }
 0xd7d   :  { %v5830_v14 = vmul.f32 %v10221_v52, %v14772_v33  ;;  %9853 = vmatprep.subr.bf16.mxu0 %v9852_v7  ;;  %v5734_v42 = vpop.xlane.xlu1 %5733  ;;  %v5887_v25 = vadd.f32 %v14848_v48, %v5857_v55  ;;  %v10223_v49 = vpop.eup %10222  ;;  %v4113_v33 = vmul.f32 0.03125, %v4089_v19 }
 0xd7e   :  { %10232 = vrsqrt.f32 %v5783_v46  ;;  %v5762_v13 = vmul.f32 0.03125, %v5734_v42  ;;  %9855 = vmatpush3.bf16.msra.mxu0 %v9852_v7  ;;  %v15075_v24 = vmul.f32 0.5, %v5912_v63  ;;  %v4181_v6 = vmul.f32 %v10223_v49, %v17325_v15 }
 0xd7f   :  { %10234 = vrsqrt.f32 %v4134_v31  ;;  %v5860_v8 = vmul.f32 %v14834_v26, %v5830_v14  ;;  %v5911_v36 = vadd.f32 %v5887_v25, %v4232_v50  ;;  %v4137_v41 = vadd.f32 1e-05, %v4113_v33  ;;  %v17329_v14 = vld [vmem:[#allocation51_spill] sm:$0xff] }
 0xd80   :  { %v10225_v30 = vpop.eup %10224  ;;  %v5786_v1 = vadd.f32 1e-05, %v5762_v13  ;;  %17324 = vst [vmem:[#allocation33_spill] sm:$0xff] %v15075_v24  ;;  %v4209_v31 = vmul.f32 %v14841_v0, %v4181_v6  ;;  %v17331_v13 = vld [vmem:[#allocation70_spill] sm:$0xff] }
 0xd81   :  { %v10227_v3 = vpop.eup %10226  ;;  %v5829_v4 = vmul.f32 %v10225_v30, %v14778_v43  ;;  %v5731_v58 = vpop.xlane.xlu1 %5730  ;;  %v15073_v29 = vmul.f32 0.5, %v5911_v36  ;;  %v5890_v23 = vadd.f32 %v14848_v48, %v5860_v8 }
 0xd82   :  { %10236 = vrsqrt.f32 %v5786_v1  ;;  %v5761_v27 = vmul.f32 0.03125, %v5731_v58  ;;  %v4180_v17 = vmul.f32 %v10227_v3, %v17326_v12  ;;  %v4237_v36 = vadd.f32 %v14855_v2, %v4209_v31  ;;  %v17332_v1 = vld [vmem:[#allocation68_spill] sm:$0xff]  ;;  %v17333_v58 = vld [vmem:[#allocation46_spill] sm:$0xff] }
 0xd83   :  { %17323 = vst [vmem:[#allocation41_spill] sm:$0xff] %v15073_v29  ;;  %v5859_v38 = vmul.f32 %v14834_v26, %v5829_v4  ;;  %9531 = vmatprep.mubr.msk.f32.mxu1 %vm282_vm0, %v15073_v29  ;;  %9575 = vmatprep.mubr.msk.f32.mxu0 %vm282_vm0, %v15073_v29  ;;  %v9856_v43 = vpack.c.bf16 %v15075_v24, %v15073_v29  ;;  %10238 = vrsqrt.f32 %v4136_v20 }
 0xd84   :  { %v10229_v60 = vpop.eup %10228  ;;  %v5785_v53 = vadd.f32 1e-05, %v5761_v27  ;;  %9532 = vmatmul.mubr.msk.f32.gmra.mrb[58].mxu1 %vm282_vm0, %v15075_v24  ;;  %9576 = vmatmul.mubr.msk.f32.gmra.mrb[74].mxu0 %vm282_vm0, %v15075_v24  ;;  %v5914_v57 = vadd.f32 %v5890_v23, %v4235_v9  ;;  %v4208_v46 = vmul.f32 %v14841_v0, %v4180_v17 }
 0xd85   :  { %v5832_v21 = vmul.f32 %v10229_v60, %v17327_v34  ;;  %9857 = vmatprep.subr.bf16.mxu0 %v9856_v43  ;;  %v5889_v47 = vadd.f32 %v14848_v48, %v5859_v38  ;;  %v10231_v7 = vpop.eup %10230 }
 0xd86   :  { %10240 = vrsqrt.f32 %v5785_v53  ;;  %9859 = vmatpush3.bf16.msra.mxu0 %v9856_v43  ;;  %v5737_v55 = vpop.xlane.xlu1 %5736  ;;  %v15098_v50 = vmul.f32 0.5, %v5914_v57  ;;  %v4183_v49 = vmul.f32 %v10231_v7, %v17331_v13  ;;  %v4236_v4 = vadd.f32 %v14855_v2, %v4208_v46 }
 0xd87   :  { %v5862_v40 = vmul.f32 %v14834_v26, %v5832_v21  ;;  %v5763_v52 = vmul.f32 0.03125, %v5737_v55  ;;  %v5913_v56 = vadd.f32 %v5889_v47, %v4234_v62  ;;  %10242 = vrsqrt.f32 %v4137_v41  ;;  %v17334_v41 = vld [vmem:[#allocation50_spill] sm:$0xff]  ;;  %v17337_v47 = vld [vmem:[#allocation52_spill] sm:$0xff] }
 0xd88   :  { %v10233_v61 = vpop.eup %10232  ;;  %17328 = vst [vmem:[#allocation43_spill] sm:$0xff] %v15098_v50  ;;  %v4211_v38 = vmul.f32 %v14841_v0, %v4183_v49 }
 0xd89   :  { %v10235_v19 = vpop.eup %10234  ;;  %v5831_v42 = vmul.f32 %v10233_v61, %v17329_v14  ;;  %v5787_v25 = vadd.f32 1e-05, %v5763_v52  ;;  %v15101_v63 = vmul.f32 0.5, %v5913_v56  ;;  %v5892_v59 = vadd.f32 %v14848_v48, %v5862_v40  ;;  %v17338_v14 = vld [vmem:[#allocation60_spill] sm:$0xff] }
 0xd8a   :  { %v5740_v8 = vpop.xlane.xlu1 %5739  ;;  %v4182_v3 = vmul.f32 %v10235_v19, %v17332_v1  ;;  %v4239_v40 = vadd.f32 %v14855_v2, %v4211_v38 }
 0xd8b   :  { %17330 = vst [vmem:[#allocation55_spill] sm:$0xff] %v15101_v63  ;;  %v5861_v30 = vmul.f32 %v14834_v26, %v5831_v42  ;;  %10244 = vrsqrt.f32 %v5787_v25  ;;  %v5764_v22 = vmul.f32 0.03125, %v5740_v8  ;;  %9534 = vmatprep.mubr.msk.f32.mxu1 %vm282_vm0, %v15101_v63  ;;  %9578 = vmatprep.mubr.msk.f32.mxu0 %vm282_vm0, %v15101_v63  ;;  %v9860_v20 = vpack.c.bf16 %v15098_v50, %v15101_v63  ;;  %v17339_v25 = vld [vmem:[#allocation71_spill] sm:$0xff] }
 0xd8c   :  { %v10237_v33 = vpop.eup %10236  ;;  %9535 = vmatmul.mubr.msk.f32.gmra.mrb[60].mxu1 %vm282_vm0, %v15098_v50  ;;  %9579 = vmatmul.mubr.msk.f32.gmra.mrb[76].mxu0 %vm282_vm0, %v15098_v50  ;;  %v5916_v27 = vadd.f32 %v5892_v59, %v4237_v36  ;;  %v4210_v17 = vmul.f32 %v14841_v0, %v4182_v3 }
 0xd8d   :  { %v5834_v23 = vmul.f32 %v10237_v33, %v17333_v58  ;;  %v5788_v15 = vadd.f32 1e-05, %v5764_v22  ;;  %9861 = vmatprep.subr.bf16.mxu0 %v9860_v20  ;;  %v5891_v6 = vadd.f32 %v14848_v48, %v5861_v30  ;;  %v10239_v9 = vpop.eup %10238 }
 0xd8e   :  { %9863 = vmatpush3.bf16.msra.mxu0 %v9860_v20  ;;  %v15127_v34 = vmul.f32 0.5, %v5916_v27  ;;  %v4184_v31 = vmul.f32 %v10239_v9, %v17337_v47  ;;  %v4238_v56 = vadd.f32 %v14855_v2, %v4210_v17  ;;  %v17342_v20 = vld [vmem:[#allocation44_spill] sm:$0xff]  ;;  %v17345_v9 = vld [vmem:[#allocation49_spill] sm:$0xff]  ;;  %v17346_v47 = vld [vmem:[#allocation66_spill] sm:$0xff] }
 0xd8f   :  { %v5864_v43 = vmul.f32 %v14834_v26, %v5834_v23  ;;  %10246 = vrsqrt.f32 %v5788_v15  ;;  %v5915_v60 = vadd.f32 %v5891_v6, %v4236_v4 }
 0xd90   :  { %v10241_v12 = vpop.eup %10240  ;;  %17336 = vst [vmem:[#allocation77_spill] sm:$0xff] %v15127_v34  ;;  %v4212_v19 = vmul.f32 %v14841_v0, %v4184_v31 }
 0xd91   :  { %v5833_v53 = vmul.f32 %v10241_v12, %v17334_v41  ;;  %v15125_v57 = vmul.f32 0.5, %v5915_v60  ;;  %v5894_v21 = vadd.f32 %v14848_v48, %v5864_v43  ;;  %v10243_v62 = vpop.eup %10242 }
 0xd92   :  { %v4185_v42 = vmul.f32 %v10243_v62, %v17338_v14  ;;  %v4240_v1 = vadd.f32 %v14855_v2, %v4212_v19 }
 0xd93   :  { %17335 = vst [vmem:[#allocation72_spill] sm:$0xff] %v15125_v57  ;;  %v5863_v55 = vmul.f32 %v14834_v26, %v5833_v53  ;;  %9537 = vmatprep.mubr.msk.f32.mxu1 %vm282_vm0, %v15125_v57  ;;  %9581 = vmatprep.mubr.msk.f32.mxu0 %vm282_vm0, %v15125_v57  ;;  %v9864_v7 = vpack.c.bf16 %v15127_v34, %v15125_v57 }
 0xd94   :  { %9538 = vmatmul.mubr.msk.f32.gmra.mrb[62].mxu1 %vm282_vm0, %v15127_v34  ;;  %9582 = vmatmul.mubr.msk.f32.gmra.mrb[78].mxu0 %vm282_vm0, %v15127_v34  ;;  %v5918_v46 = vadd.f32 %v5894_v21, %v4239_v40  ;;  %v4213_v22 = vmul.f32 %v14841_v0, %v4185_v42 }
 0xd95   :  { %v10245_v52 = vpop.eup %10244  ;;  %9865 = vmatprep.subr.bf16.mxu0 %v9864_v7  ;;  %v5893_v61 = vadd.f32 %v14848_v48, %v5863_v55  ;;  %v17347_v55 = vld [vmem:[#allocation48_spill] sm:$0xff] }
 0xd96   :  { %v5835_v59 = vmul.f32 %v10245_v52, %v17339_v25  ;;  %9867 = vmatpush3.bf16.msra.mxu0 %v9864_v7  ;;  %v15151_v30 = vmul.f32 0.5, %v5918_v46  ;;  %v4241_v15 = vadd.f32 %v14855_v2, %v4213_v22 }
 0xd97   :  { %v5917_v13 = vadd.f32 %v5893_v61, %v4238_v56 }
 0xd98   :  { %v5865_v49 = vmul.f32 %v14834_v26, %v5835_v59  ;;  %17341 = vst [vmem:[#allocation78_spill] sm:$0xff] %v15151_v30 }
 0xd99   :  { %v10247_v8 = vpop.eup %10246  ;;  %v15149_v36 = vmul.f32 0.5, %v5917_v13 }
 0xd9a   :  { %v5836_v33 = vmul.f32 %v10247_v8, %v17342_v20  ;;  %v5895_v3 = vadd.f32 %v14848_v48, %v5865_v49 }
 0xd9b   :  { %17340 = vst [vmem:[#allocation74_spill] sm:$0xff] %v15149_v36  ;;  %9540 = vmatprep.mubr.msk.f32.mxu1 %vm282_vm0, %v15149_v36  ;;  %9584 = vmatprep.mubr.msk.f32.mxu0 %vm282_vm0, %v15149_v36  ;;  %v9868_v4 = vpack.c.bf16 %v15151_v30, %v15149_v36 }
 0xd9c   :  { %v5866_v58 = vmul.f32 %v14834_v26, %v5836_v33  ;;  %9541 = vmatmul.mubr.msk.f32.gmra.mrb[64].mxu1 %vm282_vm0, %v15151_v30  ;;  %9585 = vmatmul.mubr.msk.f32.gmra.mrb[80].mxu0 %vm282_vm0, %v15151_v30  ;;  %v5919_v0 = vadd.f32 %v5895_v3, %v4240_v1 }
 0xd9d   :  { %9869 = vmatprep.subr.bf16.mxu0 %v9868_v4 }
 0xd9e   :  { %9871 = vmatpush3.bf16.msra.mxu0 %v9868_v4  ;;  %v15168_v23 = vmul.f32 0.5, %v5919_v0  ;;  %v5896_v6 = vadd.f32 %v14848_v48, %v5866_v58  ;;  %v10459_v48 = vld [vmem:[%s16657_s8] sm:$0x3] }
 0xd9f   :  { %v15188_v38 = vrot.slane %v10459_v48, %v17345_v9 }
 0xda0   :  { %17343 = vst [vmem:[#allocation79_spill] sm:$0xff] %v15168_v23  ;;  %9543 = vmatprep.mubr.msk.f32.mxu1 %vm282_vm0, %v15168_v23  ;;  %9587 = vmatprep.mubr.msk.f32.mxu0 %vm282_vm0, %v15168_v23  ;;  %v5920_v26 = vadd.f32 %v5896_v6, %v4241_v15 }
 0xda2   :  { %v15176_v27 = vmul.f32 0.5, %v5920_v26 }
 0xda4   :  { %17344 = vst [vmem:[#allocation82_spill] sm:$0xff] %v15176_v27  ;;  %9544 = vmatmul.mubr.msk.f32.gmra.mrb[66].mxu1 %vm282_vm0, %v15176_v27  ;;  %9588 = vmatmul.mubr.msk.f32.gmra.mrb[82].mxu0 %vm282_vm0, %v15176_v27  ;;  %v9872_v2 = vpack.c.bf16 %v15176_v27, %v15168_v23 }
 0xda6   :  { %9873 = vmatprep.subr.bf16.mxu0 %v9872_v2 }
 0xda7   :  { %9875 = vmatpush3.bf16.msra.mxu0 %v9872_v2 }
 0xe1f   :  { %v9512_v43 = vpop.f32.mrb[44].mxu1  ;;  %v15190_v60 = vpop.f32.mrb[60].mxu0 }
 0xe20   :  { %v6093_v12 = vadd.f32 %v9512_v43, %v15188_v38  ;;  %v6087_v17 = vpop.f32.mrb[45].mxu1  ;;  %v15193_v41 = vpop.f32.mrb[61].mxu0  ;;  %v7025_v53 = vsel %vm4427_vm1, %v15190_v60, -inf }
 0xe21   :  { %v15198_v21 = vadd.f32 %v6087_v17, %v15188_v38  ;;  %7026 = vmax.xlane.f32.xlu1 %v7025_v53  ;;  %v7022_v62 = vsel %vm4427_vm1, %v15193_v41, -inf }
 0xe22   :  { %v6230_v31 = vmul.f32 %v6093_v12, %v17346_v47  ;;  %7023 = vmax.xlane.f32.xlu0 %v7022_v62  ;;  %v6208_v59 = vmul.f32 %v6093_v12, %v17347_v55 }
 0xe23   :  { %v6207_v7 = vmul.f32 %v15198_v21, %v17347_v55 }
 0xe25   :  { %v15205_v40 = vadd.f32 %v6230_v31, %v6207_v7 }
 0xe27   :  { %v9515_v52 = vpop.f32.mrb[46].mxu1  ;;  %v15207_v56 = vpop.f32.mrb[62].mxu0 }
 0xe28   :  { %v6103_v61 = vadd.f32 %v9515_v52, %v15188_v38  ;;  %v6097_v46 = vpop.f32.mrb[47].mxu1  ;;  %v15210_v19 = vpop.f32.mrb[63].mxu0  ;;  %v7031_v14 = vsel %vm4427_vm1, %v15207_v56, -inf }
 0xe29   :  { %v6098_v42 = vadd.f32 %v6097_v46, %v15188_v38  ;;  %7032 = vmax.xlane.f32.xlu0 %v7031_v14  ;;  %v7028_v8 = vsel %vm4427_vm1, %v15210_v19, -inf }
 0xe2a   :  { %v6232_v25 = vmul.f32 %v6103_v61, %v17346_v47  ;;  %v6210_v26 = vmul.f32 %v6103_v61, %v17347_v55 }
 0xe2b   :  { %v6209_v13 = vmul.f32 %v6098_v42, %v17347_v55  ;;  %v6231_v49 = vmul.f32 %v6098_v42, %v17346_v47 }
 0xe2d   :  { %v15221_v22 = vadd.f32 %v6231_v49, %v6208_v59  ;;  %v15223_v20 = vadd.f32 %v6232_v25, %v6209_v13  ;;  %7029 = vmax.xlane.f32.xlu0 %v7028_v8 }
 0xe2f   :  { %v9518_v33 = vpop.f32.mrb[48].mxu1  ;;  %v15225_v1 = vpop.f32.mrb[64].mxu0 }
 0xe30   :  { %v6113_v3 = vadd.f32 %v9518_v33, %v15188_v38  ;;  %v6107_v4 = vpop.f32.mrb[49].mxu1  ;;  %v15228_v58 = vpop.f32.mrb[65].mxu0  ;;  %v7037_v0 = vsel %vm4427_vm1, %v15225_v1, -inf }
 0xe31   :  { %v6108_v15 = vadd.f32 %v6107_v4, %v15188_v38  ;;  %7038 = vmax.xlane.f32.xlu0 %v7037_v0  ;;  %v7034_v43 = vsel %vm4427_vm1, %v15228_v58, -inf }
 0xe32   :  { %v6234_v6 = vmul.f32 %v6113_v3, %v17346_v47  ;;  %v6212_v42 = vmul.f32 %v6113_v3, %v17347_v55 }
 0xe33   :  { %v6211_v2 = vmul.f32 %v6108_v15, %v17347_v55  ;;  %v6233_v48 = vmul.f32 %v6108_v15, %v17346_v47 }
 0xe35   :  { %v15239_v12 = vadd.f32 %v6233_v48, %v6210_v26  ;;  %v15241_v17 = vadd.f32 %v6234_v6, %v6211_v2  ;;  %7035 = vmax.xlane.f32.xlu0 %v7034_v43 }
 0xe37   :  { %v9521_v53 = vpop.f32.mrb[50].mxu1  ;;  %v15243_v62 = vpop.f32.mrb[66].mxu0 }
 0xe38   :  { %v6123_v31 = vadd.f32 %v9521_v53, %v15188_v38  ;;  %v6117_v7 = vpop.f32.mrb[51].mxu1  ;;  %v15246_v52 = vpop.f32.mrb[67].mxu0  ;;  %v7043_v61 = vsel %vm4427_vm1, %v15243_v62, -inf }
 0xe39   :  { %v6118_v46 = vadd.f32 %v6117_v7, %v15188_v38  ;;  %7044 = vmax.xlane.f32.xlu0 %v7043_v61  ;;  %v7040_v13 = vsel %vm4427_vm1, %v15246_v52, -inf }
 0xe3a   :  { %v6236_v14 = vmul.f32 %v6123_v31, %v17346_v47  ;;  %v6214_v48 = vmul.f32 %v6123_v31, %v17347_v55 }
 0xe3b   :  { %v6213_v25 = vmul.f32 %v6118_v46, %v17347_v55  ;;  %v6235_v59 = vmul.f32 %v6118_v46, %v17346_v47 }
 0xe3d   :  { %v15257_v49 = vadd.f32 %v6235_v59, %v6212_v42  ;;  %v15259_v8 = vadd.f32 %v6236_v14, %v6213_v25  ;;  %7041 = vmax.xlane.f32.xlu0 %v7040_v13 }
 0xe3f   :  { %v9524_v33 = vpop.f32.mrb[52].mxu1  ;;  %v15261_v4 = vpop.f32.mrb[68].mxu0 }
 0xe40   :  { %v6133_v0 = vadd.f32 %v9524_v33, %v15188_v38  ;;  %v6127_v15 = vpop.f32.mrb[53].mxu1  ;;  %v15264_v6 = vpop.f32.mrb[69].mxu0  ;;  %v7049_v3 = vsel %vm4427_vm1, %v15261_v4, -inf }
 0xe41   :  { %v6128_v26 = vadd.f32 %v6127_v15, %v15188_v38  ;;  %7050 = vmax.xlane.f32.xlu0 %v7049_v3  ;;  %v7046_v46 = vsel %vm4427_vm1, %v15264_v6, -inf }
 0xe42   :  { %v6238_v2 = vmul.f32 %v6133_v0, %v17346_v47  ;;  %v6216_v3 = vmul.f32 %v6133_v0, %v17347_v55 }
 0xe43   :  { %v6215_v43 = vmul.f32 %v6128_v26, %v17347_v55  ;;  %v6237_v53 = vmul.f32 %v6128_v26, %v17346_v47 }
 0xe45   :  { %v15273_v7 = vadd.f32 %v6237_v53, %v6214_v48  ;;  %v15275_v61 = vadd.f32 %v6238_v2, %v6215_v43  ;;  %7047 = vmax.xlane.f32.xlu0 %v7046_v46 }
 0xe47   :  { %v9527_v14 = vpop.f32.mrb[54].mxu1  ;;  %v15279_v42 = vpop.f32.mrb[70].mxu0 }
 0xe48   :  { %v6143_v25 = vadd.f32 %v9527_v14, %v15188_v38  ;;  %v6137_v59 = vpop.f32.mrb[55].mxu1  ;;  %v15282_v13 = vpop.f32.mrb[71].mxu0  ;;  %v7055_v31 = vsel %vm4427_vm1, %v15279_v42, -inf }
 0xe49   :  { %v6138_v33 = vadd.f32 %v6137_v59, %v15188_v38  ;;  %7056 = vmax.xlane.f32.xlu0 %v7055_v31  ;;  %v7052_v53 = vsel %vm4427_vm1, %v15282_v13, -inf }
 0xe4a   :  { %v6240_v15 = vmul.f32 %v6143_v25, %v17346_v47 }
 0xe4b   :  { %v6217_v26 = vmul.f32 %v6138_v33, %v17347_v55  ;;  %v6239_v2 = vmul.f32 %v6138_v33, %v17346_v47 }
 0xe4d   :  { %v15291_v48 = vadd.f32 %v6239_v2, %v6216_v3  ;;  %v15293_v43 = vadd.f32 %v6240_v15, %v6217_v26  ;;  %7053 = vmax.xlane.f32.xlu0 %v7052_v53 }
 0xe4f   :  { %v9530_v46 = vpop.f32.mrb[56].mxu1  ;;  %v15297_v14 = vpop.f32.mrb[72].mxu0 }
 0xe50   :  { %v6153_v25 = vadd.f32 %v9530_v46, %v15188_v38  ;;  %v6147_v59 = vpop.f32.mrb[57].mxu1  ;;  %v15300_v31 = vpop.f32.mrb[73].mxu0  ;;  %v7061_v0 = vsel %vm4427_vm1, %v15297_v14, -inf }
 0xe51   :  { %v15305_v33 = vadd.f32 %v6147_v59, %v15188_v38  ;;  %7062 = vmax.xlane.f32.xlu1 %v7061_v0  ;;  %v7058_v26 = vsel %vm4427_vm1, %v15300_v31, -inf }
 0xe52   :  { %v6242_v15 = vmul.f32 %v6153_v25, %v17346_v47 }
 0xe53   :  { %v6218_v3 = vmul.f32 %v15305_v33, %v17347_v55 }
 0xe55   :  { %v15312_v2 = vadd.f32 %v6242_v15, %v6218_v3  ;;  %7059 = vmax.xlane.f32.xlu1 %v7058_v26  ;;  %v6219_v15 = vmul.f32 %v6153_v25, %v17347_v55 }
 0xe57   :  { %v9533_v53 = vpop.f32.mrb[58].mxu1  ;;  %v15314_v46 = vpop.f32.mrb[74].mxu0 }
 0xe58   :  { %v6163_v9 = vadd.f32 %v9533_v53, %v15188_v38  ;;  %v6157_v27 = vpop.f32.mrb[59].mxu1  ;;  %v15317_v59 = vpop.f32.mrb[75].mxu0  ;;  %v7067_v0 = vsel %vm4427_vm1, %v15314_v46, -inf }
 0xe59   :  { %v6158_v11 = vadd.f32 %v6157_v27, %v15188_v38  ;;  %7068 = vmax.xlane.f32.xlu1 %v7067_v0  ;;  %v7064_v53 = vsel %vm4427_vm1, %v15317_v59, -inf }
 0xe5a   :  { %v6244_v23 = vmul.f32 %v6163_v9, %v17346_v47 }
 0xe5b   :  { %v6220_v3 = vmul.f32 %v6158_v11, %v17347_v55  ;;  %v6243_v26 = vmul.f32 %v6158_v11, %v17346_v47 }
 0xe5d   :  { %v15328_v45 = vadd.f32 %v6243_v26, %v6219_v15  ;;  %v15330_v30 = vadd.f32 %v6244_v23, %v6220_v3  ;;  %7065 = vmax.xlane.f32.xlu1 %v7064_v53  ;;  %v6221_v23 = vmul.f32 %v6163_v9, %v17347_v55 }
 0xe5f   :  { %v9536_v51 = vpop.f32.mrb[60].mxu1  ;;  %v15332_v36 = vpop.f32.mrb[76].mxu0 }
 0xe60   :  { %v6173_v27 = vadd.f32 %v9536_v51, %v15188_v38  ;;  %v6167_v0 = vpop.f32.mrb[61].mxu1  ;;  %v15335_v35 = vpop.f32.mrb[77].mxu0  ;;  %v7073_v25 = vsel %vm4427_vm1, %v15332_v36, -inf }
 0xe61   :  { %v6168_v11 = vadd.f32 %v6167_v0, %v15188_v38  ;;  %7074 = vmax.xlane.f32.xlu1 %v7073_v25  ;;  %v7070_v51 = vsel %vm4427_vm1, %v15335_v35, -inf }
 0xe62   :  { %v6246_v15 = vmul.f32 %v6173_v27, %v17346_v47 }
 0xe63   :  { %v6222_v3 = vmul.f32 %v6168_v11, %v17347_v55  ;;  %v6245_v26 = vmul.f32 %v6168_v11, %v17346_v47 }
 0xe65   :  { %v15346_v53 = vadd.f32 %v6245_v26, %v6221_v23  ;;  %v15348_v34 = vadd.f32 %v6246_v15, %v6222_v3  ;;  %7071 = vmax.xlane.f32.xlu1 %v7070_v51  ;;  %v6223_v15 = vmul.f32 %v6173_v27, %v17347_v55 }
 0xe67   :  { %v9539_v37 = vpop.f32.mrb[62].mxu1  ;;  %v15350_v57 = vpop.f32.mrb[78].mxu0 }
 0xe68   :  { %v6183_v0 = vadd.f32 %v9539_v37, %v15188_v38  ;;  %v6177_v25 = vpop.f32.mrb[63].mxu1  ;;  %v15353_v28 = vpop.f32.mrb[79].mxu0  ;;  %v7079_v9 = vsel %vm4427_vm1, %v15350_v57, -inf }
 0xe69   :  { %v6178_v11 = vadd.f32 %v6177_v25, %v15188_v38  ;;  %7080 = vmax.xlane.f32.xlu1 %v7079_v9  ;;  %v7076_v37 = vsel %vm4427_vm1, %v15353_v28, -inf }
 0xe6a   :  { %v6248_v23 = vmul.f32 %v6183_v0, %v17346_v47 }
 0xe6b   :  { %v6224_v3 = vmul.f32 %v6178_v11, %v17347_v55  ;;  %v6247_v26 = vmul.f32 %v6178_v11, %v17346_v47 }
 0xe6d   :  { %v15364_v51 = vadd.f32 %v6247_v26, %v6223_v15  ;;  %v15366_v50 = vadd.f32 %v6248_v23, %v6224_v3  ;;  %7077 = vmax.xlane.f32.xlu1 %v7076_v37  ;;  %v6225_v23 = vmul.f32 %v6183_v0, %v17347_v55 }
 0xe6f   :  { %17348 = vst [vmem:[#allocation84_spill] sm:$0xff] %v15364_v51  ;;  %17349 = vst [vmem:[#allocation86_spill] sm:$0xff] %v15366_v50  ;;  %v9542_v32 = vpop.f32.mrb[64].mxu1  ;;  %v15368_v63 = vpop.f32.mrb[80].mxu0 }
 0xe70   :  { %v6193_v25 = vadd.f32 %v9542_v32, %v15188_v38  ;;  %v6187_v9 = vpop.f32.mrb[65].mxu1  ;;  %v15371_v54 = vpop.f32.mrb[81].mxu0  ;;  %v7085_v37 = vsel %vm4427_vm1, %v15368_v63, -inf }
 0xe71   :  { %v6188_v27 = vadd.f32 %v6187_v9, %v15188_v38  ;;  %v7082_v11 = vsel %vm4427_vm1, %v15371_v54, -inf }
 0xe72   :  { %v6250_v24 = vmul.f32 %v6193_v25, %v17346_v47  ;;  %7083 = vmax.xlane.f32.xlu1 %v7082_v11 }
 0xe73   :  { %v6226_v15 = vmul.f32 %v6188_v27, %v17347_v55  ;;  %v6249_v3 = vmul.f32 %v6188_v27, %v17346_v47 }
 0xe75   :  { %v15380_v26 = vadd.f32 %v6249_v3, %v6225_v23  ;;  %v15382_v32 = vadd.f32 %v6250_v24, %v6226_v15  ;;  %v6227_v15 = vmul.f32 %v6193_v25, %v17347_v55 }
 0xe76   :  { %7086 = vmax.xlane.f32.xlu1 %v7085_v37 }
 0xe77   :  { %17350 = vst [vmem:[#allocation37_spill] sm:$0xff] %v15380_v26  ;;  %17351 = vst [vmem:[#allocation80_spill] sm:$0xff] %v15382_v32  ;;  %v9545_v9 = vpop.f32.mrb[66].mxu1  ;;  %v15386_v39 = vpop.f32.mrb[82].mxu0 }
 0xe78   :  { %v6203_v29 = vadd.f32 %v9545_v9, %v15188_v38  ;;  %v6197_v11 = vpop.f32.mrb[67].mxu1  ;;  %v15389_v16 = vpop.f32.mrb[83].mxu0  ;;  %v7091_v0 = vsel %vm4427_vm1, %v15386_v39, -inf }
 0xe79   :  { %v6198_v27 = vadd.f32 %v6197_v11, %v15188_v38  ;;  %v7088_v24 = vsel %vm4427_vm1, %v15389_v16, -inf }
 0xe7a   :  { %v6252_v23 = vmul.f32 %v6203_v29, %v17346_v47  ;;  %7092 = vmax.xlane.f32.xlu1 %v7091_v0  ;;  %7089 = vmax.xlane.f32.xlu0 %v7088_v24 }
 0xe7b   :  { %v6228_v3 = vmul.f32 %v6198_v27, %v17347_v55  ;;  %v6251_v37 = vmul.f32 %v6198_v27, %v17346_v47 }
 0xe7d   :  { %v15400_v9 = vadd.f32 %v6251_v37, %v6227_v15  ;;  %v15402_v44 = vadd.f32 %v6252_v23, %v6228_v3 }
 0xe7f   :  { %17352 = vst [vmem:[#allocation81_spill] sm:$0xff] %v15400_v9  ;;  %17353 = vst [vmem:[#allocation29_spill] sm:$0xff] %v15402_v44 }
 0xeae   :  { %v7027_v5 = vpop.xlane.xlu1 %7026 }
 0xeaf   :  { %v7095_v11 = vsub.f32 %v15190_v60, %v7027_v5  ;;  %v7024_v18 = vpop.xlane.xlu0 %7023 }
 0xeb0   :  { %v7094_v10 = vsub.f32 %v15193_v41, %v7024_v18 }
 0xeb1   :  { %v7120_v32 = vmul.f32 1.442695, %v7095_v11 }
 0xeb2   :  { %v7118_v29 = vmul.f32 1.442695, %v7094_v10 }
 0xeb3   :  { %10248 = vpow2.f32 %v7120_v32 }
 0xeb4   :  { %10250 = vpow2.f32 %v7118_v29 }
 0xeb6   :  { %v7033_v0 = vpop.xlane.xlu0 %7032 }
 0xeb7   :  { %v7097_v25 = vsub.f32 %v15207_v56, %v7033_v0 }
 0xeb9   :  { %v7124_v24 = vmul.f32 1.442695, %v7097_v25 }
 0xeba   :  { %v7030_v26 = vpop.xlane.xlu0 %7029 }
 0xebb   :  { %10252 = vpow2.f32 %v7124_v24  ;;  %v7096_v27 = vsub.f32 %v15210_v19, %v7030_v26 }
 0xebd   :  { %v7122_v23 = vmul.f32 1.442695, %v7096_v27  ;;  %v15408_v15 = vpop.eup %10248 }
 0xebe   :  { %v7039_v3 = vpop.xlane.xlu0 %7038  ;;  %v15410_v5 = vpop.eup %10250  ;;  %v7169_v10 = vsel %vm4427_vm1, %v15408_v15, 0.0 }
 0xebf   :  { %10254 = vpow2.f32 %v7122_v23  ;;  %v7099_v18 = vsub.f32 %v15225_v1, %v7039_v3  ;;  %7170 = vadd.xlane.f32.xlu1 %v7169_v10  ;;  %v7166_v60 = vsel %vm4427_vm1, %v15410_v5, 0.0 }
 0xec0   :  { %7167 = vadd.xlane.f32.xlu0 %v7166_v60 }
 0xec1   :  { %v7128_v41 = vmul.f32 1.442695, %v7099_v18 }
 0xec2   :  { %v7036_v56 = vpop.xlane.xlu0 %7035 }
 0xec3   :  { %10256 = vpow2.f32 %v7128_v41  ;;  %v7098_v19 = vsub.f32 %v15228_v58, %v7036_v56 }
 0xec5   :  { %v15418_v26 = vpop.eup %10252  ;;  %v7126_v32 = vmul.f32 1.442695, %v7098_v19 }
 0xec6   :  { %v7045_v37 = vpop.xlane.xlu0 %7044  ;;  %v7175_v1 = vsel %vm4427_vm1, %v15418_v26, 0.0 }
 0xec7   :  { %10258 = vpow2.f32 %v7126_v32  ;;  %v7101_v11 = vsub.f32 %v15243_v62, %v7045_v37  ;;  %7176 = vadd.xlane.f32.xlu0 %v7175_v1 }
 0xec9   :  { %v15423_v29 = vpop.eup %10254  ;;  %v7132_v0 = vmul.f32 1.442695, %v7101_v11 }
 0xeca   :  { %v7042_v25 = vpop.xlane.xlu0 %7041  ;;  %v7172_v24 = vsel %vm4427_vm1, %v15423_v29, 0.0 }
 0xecb   :  { %10260 = vpow2.f32 %v7132_v0  ;;  %v7100_v58 = vsub.f32 %v15246_v52, %v7042_v25  ;;  %7173 = vadd.xlane.f32.xlu0 %v7172_v24 }
 0xecd   :  { %v15428_v27 = vpop.eup %10256  ;;  %v7130_v23 = vmul.f32 1.442695, %v7100_v58 }
 0xece   :  { %v7051_v3 = vpop.xlane.xlu0 %7050  ;;  %v7181_v18 = vsel %vm4427_vm1, %v15428_v27, 0.0 }
 0xecf   :  { %10262 = vpow2.f32 %v7130_v23  ;;  %v7103_v62 = vsub.f32 %v15261_v4, %v7051_v3  ;;  %7182 = vadd.xlane.f32.xlu0 %v7181_v18 }
 0xed1   :  { %v15433_v10 = vpop.eup %10258  ;;  %v7136_v60 = vmul.f32 1.442695, %v7103_v62 }
 0xed2   :  { %v7048_v41 = vpop.xlane.xlu0 %7047  ;;  %v7178_v56 = vsel %vm4427_vm1, %v15433_v10, 0.0 }
 0xed3   :  { %10264 = vpow2.f32 %v7136_v60  ;;  %v7102_v52 = vsub.f32 %v15264_v6, %v7048_v41  ;;  %7179 = vadd.xlane.f32.xlu0 %v7178_v56 }
 0xed5   :  { %v15438_v19 = vpop.eup %10260  ;;  %v7134_v32 = vmul.f32 1.442695, %v7102_v52 }
 0xed6   :  { %v7057_v37 = vpop.xlane.xlu0 %7056  ;;  %v7187_v1 = vsel %vm4427_vm1, %v15438_v19, 0.0 }
 0xed7   :  { %10266 = vpow2.f32 %v7134_v32  ;;  %v7105_v4 = vsub.f32 %v15279_v42, %v7057_v37  ;;  %7188 = vadd.xlane.f32.xlu0 %v7187_v1 }
 0xed9   :  { %v15443_v11 = vpop.eup %10262  ;;  %v7140_v0 = vmul.f32 1.442695, %v7105_v4 }
 0xeda   :  { %v7054_v25 = vpop.xlane.xlu0 %7053  ;;  %v7184_v24 = vsel %vm4427_vm1, %v15443_v11, 0.0 }
 0xedb   :  { %10268 = vpow2.f32 %v7140_v0  ;;  %v7104_v6 = vsub.f32 %v15282_v13, %v7054_v25  ;;  %7185 = vadd.xlane.f32.xlu0 %v7184_v24 }
 0xedd   :  { %v15448_v58 = vpop.eup %10264  ;;  %v7138_v23 = vmul.f32 1.442695, %v7104_v6 }
 0xede   :  { %v7063_v3 = vpop.xlane.xlu1 %7062  ;;  %v7193_v42 = vsel %vm4427_vm1, %v15448_v58, 0.0 }
 0xedf   :  { %v7107_v18 = vsub.f32 %v15297_v14, %v7063_v3  ;;  %10270 = vpow2.f32 %v7138_v23  ;;  %7194 = vadd.xlane.f32.xlu0 %v7193_v42 }
 0xee1   :  { %v7144_v62 = vmul.f32 1.442695, %v7107_v18  ;;  %v15453_v60 = vpop.eup %10266 }
 0xee2   :  { %v7060_v41 = vpop.xlane.xlu1 %7059  ;;  %v7190_v13 = vsel %vm4427_vm1, %v15453_v60, 0.0 }
 0xee3   :  { %10272 = vpow2.f32 %v7144_v62  ;;  %v7106_v56 = vsub.f32 %v15300_v31, %v7060_v41  ;;  %7191 = vadd.xlane.f32.xlu0 %v7190_v13 }
 0xee5   :  { %v7142_v52 = vmul.f32 1.442695, %v7106_v56  ;;  %v15458_v32 = vpop.eup %10268 }
 0xee6   :  { %v7069_v14 = vpop.xlane.xlu1 %7068  ;;  %v7199_v1 = vsel %vm4427_vm1, %v15458_v32, 0.0 }
 0xee7   :  { %10274 = vpow2.f32 %v7142_v52  ;;  %v7109_v37 = vsub.f32 %v15314_v46, %v7069_v14  ;;  %7200 = vadd.xlane.f32.xlu0 %v7199_v1 }
 0xee9   :  { %v7148_v4 = vmul.f32 1.442695, %v7109_v37  ;;  %v15463_v0 = vpop.eup %10270 }
 0xeea   :  { %v7066_v25 = vpop.xlane.xlu1 %7065  ;;  %v7196_v24 = vsel %vm4427_vm1, %v15463_v0, 0.0 }
 0xeeb   :  { %10276 = vpow2.f32 %v7148_v4  ;;  %v7108_v31 = vsub.f32 %v15317_v59, %v7066_v25  ;;  %7197 = vadd.xlane.f32.xlu0 %v7196_v24 }
 0xeed   :  { %v15468_v6 = vpop.eup %10272  ;;  %v7146_v23 = vmul.f32 1.442695, %v7108_v31 }
 0xeee   :  { %v7075_v3 = vpop.xlane.xlu1 %7074  ;;  %v7205_v46 = vsel %vm4427_vm1, %v15468_v6, 0.0 }
 0xeef   :  { %10278 = vpow2.f32 %v7146_v23  ;;  %v7111_v18 = vsub.f32 %v15332_v36, %v7075_v3  ;;  %7206 = vadd.xlane.f32.xlu1 %v7205_v46 }
 0xef1   :  { %v15473_v42 = vpop.eup %10274  ;;  %v7152_v62 = vmul.f32 1.442695, %v7111_v18 }
 0xef2   :  { %v7072_v41 = vpop.xlane.xlu1 %7071  ;;  %v7202_v59 = vsel %vm4427_vm1, %v15473_v42, 0.0 }
 0xef3   :  { %10280 = vpow2.f32 %v7152_v62  ;;  %v7110_v56 = vsub.f32 %v15335_v35, %v7072_v41  ;;  %7203 = vadd.xlane.f32.xlu1 %v7202_v59 }
 0xef5   :  { %v15478_v13 = vpop.eup %10276  ;;  %v7150_v52 = vmul.f32 1.442695, %v7110_v56 }
 0xef6   :  { %v7081_v14 = vpop.xlane.xlu1 %7080  ;;  %v7211_v37 = vsel %vm4427_vm1, %v15478_v13, 0.0 }
 0xef7   :  { %10282 = vpow2.f32 %v7150_v52  ;;  %v7113_v36 = vsub.f32 %v15350_v57, %v7081_v14  ;;  %7212 = vadd.xlane.f32.xlu1 %v7211_v37 }
 0xef9   :  { %v15483_v1 = vpop.eup %10278  ;;  %v7156_v4 = vmul.f32 1.442695, %v7113_v36 }
 0xefa   :  { %v7078_v25 = vpop.xlane.xlu1 %7077  ;;  %v7208_v31 = vsel %vm4427_vm1, %v15483_v1, 0.0 }
 0xefb   :  { %10284 = vpow2.f32 %v7156_v4  ;;  %v7112_v35 = vsub.f32 %v15353_v28, %v7078_v25  ;;  %7209 = vadd.xlane.f32.xlu1 %v7208_v31 }
 0xefd   :  { %v15488_v24 = vpop.eup %10280  ;;  %v7154_v23 = vmul.f32 1.442695, %v7112_v35 }
 0xefe   :  { %v7217_v3 = vsel %vm4427_vm1, %v15488_v24, 0.0 }
 0xeff   :  { %10286 = vpow2.f32 %v7154_v23  ;;  %7218 = vadd.xlane.f32.xlu1 %v7217_v3  ;;  %v7084_v57 = vpop.xlane.xlu1 %7083 }
 0xf00   :  { %v7114_v18 = vsub.f32 %v15371_v54, %v7084_v57 }
 0xf01   :  { %v15492_v46 = vpop.eup %10282 }
 0xf02   :  { %v7214_v62 = vsel %vm4427_vm1, %v15492_v46, 0.0  ;;  %v7158_v56 = vmul.f32 1.442695, %v7114_v18 }
 0xf03   :  { %7215 = vadd.xlane.f32.xlu1 %v7214_v62  ;;  %v7087_v41 = vpop.xlane.xlu1 %7086 }
 0xf04   :  { %v7115_v28 = vsub.f32 %v15368_v63, %v7087_v41 }
 0xf05   :  { %v15498_v59 = vpop.eup %10284 }
 0xf06   :  { %v7160_v52 = vmul.f32 1.442695, %v7115_v28  ;;  %v7223_v14 = vsel %vm4427_vm1, %v15498_v59, 0.0 }
 0xf07   :  { %v7090_v37 = vpop.xlane.xlu0 %7089  ;;  %7224 = vadd.xlane.f32.xlu1 %v7223_v14  ;;  %v7093_v36 = vpop.xlane.xlu1 %7092 }
 0xf08   :  { %10288 = vpow2.f32 %v7160_v52  ;;  %v7116_v54 = vsub.f32 %v15389_v16, %v7090_v37  ;;  %v7117_v4 = vsub.f32 %v15386_v39, %v7093_v36 }
 0xf09   :  { %v15504_v25 = vpop.eup %10286  ;;  %10290 = vpow2.f32 %v7158_v56 }
 0xf0a   :  { %v7162_v31 = vmul.f32 1.442695, %v7116_v54  ;;  %v7164_v63 = vmul.f32 1.442695, %v7117_v4  ;;  %v7220_v35 = vsel %vm4427_vm1, %v15504_v25, 0.0 }
 0xf0b   :  { %7221 = vadd.xlane.f32.xlu1 %v7220_v35 }
 0xf0c   :  { %10292 = vpow2.f32 %v7162_v31 }
 0xf0d   :  { %10294 = vpow2.f32 %v7164_v63 }
 0xf12   :  { %v15508_v23 = vpop.eup %10288 }
 0xf13   :  { %v7229_v3 = vsel %vm4427_vm1, %v15508_v23, 0.0  ;;  %v15512_v57 = vpop.eup %10290 }
 0xf14   :  { %7230 = vadd.xlane.f32.xlu1 %v7229_v3  ;;  %v7226_v18 = vsel %vm4427_vm1, %v15512_v57, 0.0 }
 0xf16   :  { %v15514_v39 = vpop.eup %10292 }
 0xf17   :  { %v7232_v16 = vsel %vm4427_vm1, %v15514_v39, 0.0  ;;  %v15520_v62 = vpop.eup %10294 }
 0xf18   :  { %7233 = vadd.xlane.f32.xlu0 %v7232_v16  ;;  %7227 = vadd.xlane.f32.xlu1 %v7226_v18  ;;  %v7235_v41 = vsel %vm4427_vm1, %v15520_v62, 0.0 }
 0xf1c   :  { %7236 = vadd.xlane.f32.xlu1 %v7235_v41 }
 0xf4c   :  { %v7171_v28 = vpop.xlane.xlu1 %7170 }
 0xf4d   :  { %10296 = vrcp.f32 %v7171_v28  ;;  %v7168_v56 = vpop.xlane.xlu0 %7167 }
 0xf4e   :  { %10298 = vrcp.f32 %v7168_v56 }
 0xf54   :  { %v7177_v52 = vpop.xlane.xlu0 %7176 }
 0xf55   :  { %10300 = vrcp.f32 %v7177_v52 }
 0xf57   :  { %v10297_v14 = vpop.eup %10296 }
 0xf58   :  { %v7174_v37 = vpop.xlane.xlu0 %7173  ;;  %v10299_v36 = vpop.eup %10298  ;;  %v7263_v54 = vmul.f32 %v10297_v14, %v7171_v28 }
 0xf59   :  { %10302 = vrcp.f32 %v7174_v37  ;;  %v7262_v4 = vmul.f32 %v10299_v36, %v7168_v56 }
 0xf5a   :  { %v7287_v31 = vsub.f32 2.0, %v7263_v54 }
 0xf5b   :  { %v7286_v63 = vsub.f32 2.0, %v7262_v4 }
 0xf5c   :  { %v7183_v35 = vpop.xlane.xlu0 %7182  ;;  %v7311_v18 = vmul.f32 %v10297_v14, %v7287_v31 }
 0xf5d   :  { %10304 = vrcp.f32 %v7183_v35  ;;  %v7310_v3 = vmul.f32 %v10299_v36, %v7286_v63 }
 0xf5e   :  { %v15529_v28 = vmul.f32 %v15408_v15, %v7311_v18 }
 0xf5f   :  { %v10301_v16 = vpop.eup %10300  ;;  %v15525_v41 = vmul.f32 %v15410_v5, %v7310_v3 }
 0xf60   :  { %v7180_v44 = vpop.xlane.xlu0 %7179  ;;  %v7265_v9 = vmul.f32 %v10301_v16, %v7177_v52 }
 0xf61   :  { %17354 = vst [vmem:[#allocation83_spill] sm:$0xff] %v15525_v41  ;;  %10306 = vrcp.f32 %v7180_v44  ;;  %7358 = vxpose.xlu0.b32.start [1/12] (short) (narrow) %v15525_v41, 16 }
 0xf62   :  { %v7289_v4 = vsub.f32 2.0, %v7265_v9 }
 0xf63   :  { %v10303_v50 = vpop.eup %10302 }
 0xf64   :  { %v7264_v56 = vmul.f32 %v10303_v50, %v7174_v37  ;;  %v7189_v54 = vpop.xlane.xlu0 %7188  ;;  %v7313_v31 = vmul.f32 %v10301_v16, %v7289_v4 }
 0xf65   :  { %10308 = vrcp.f32 %v7189_v54  ;;  %7359 = vxpose.xlu0.b32.cont [2/12] (short) (narrow) %v15529_v28, 16 }
 0xf66   :  { %v7288_v51 = vsub.f32 2.0, %v7264_v56  ;;  %v15537_v9 = vmul.f32 %v15418_v26, %v7313_v31 }
 0xf67   :  { %v10305_v14 = vpop.eup %10304 }
 0xf68   :  { %v7312_v36 = vmul.f32 %v10303_v50, %v7288_v51  ;;  %v7186_v5 = vpop.xlane.xlu0 %7185  ;;  %v7267_v63 = vmul.f32 %v10305_v14, %v7183_v35 }
 0xf69   :  { %10310 = vrcp.f32 %v7186_v5 }
 0xf6a   :  { %v15533_v52 = vmul.f32 %v15423_v29, %v7312_v36  ;;  %v7291_v37 = vsub.f32 2.0, %v7267_v63 }
 0xf6b   :  { %v10307_v3 = vpop.eup %10306 }
 0xf6c   :  { %v7266_v41 = vmul.f32 %v10307_v3, %v7180_v44  ;;  %v7195_v15 = vpop.xlane.xlu0 %7194  ;;  %7360 = vxpose.xlu0.b32.cont [3/12] (short) (narrow) %v15533_v52, 16  ;;  %v7315_v29 = vmul.f32 %v10305_v14, %v7291_v37 }
 0xf6d   :  { %10312 = vrcp.f32 %v7195_v15 }
 0xf6e   :  { %v7290_v18 = vsub.f32 2.0, %v7266_v41  ;;  %v15545_v26 = vmul.f32 %v15428_v27, %v7315_v29 }
 0xf6f   :  { %v10309_v56 = vpop.eup %10308 }
 0xf70   :  { %v7314_v50 = vmul.f32 %v10307_v3, %v7290_v18  ;;  %v7192_v51 = vpop.xlane.xlu0 %7191  ;;  %7361 = vxpose.xlu0.b32.cont [4/12] (short) (narrow) %v15537_v9, 16  ;;  %v7269_v44 = vmul.f32 %v10309_v56, %v7189_v54 }
 0xf71   :  { %10314 = vrcp.f32 %v7192_v51 }
 0xf72   :  { %v15541_v35 = vmul.f32 %v15433_v10, %v7314_v50  ;;  %v7293_v41 = vsub.f32 2.0, %v7269_v44 }
 0xf73   :  { %v10311_v16 = vpop.eup %10310 }
 0xf74   :  { %v7268_v4 = vmul.f32 %v10311_v16, %v7186_v5  ;;  %v7201_v36 = vpop.xlane.xlu0 %7200  ;;  %7362 = vxpose.xlu0.b32.cont [5/12] (short) (narrow) %v15541_v35, 16  ;;  %v7317_v10 = vmul.f32 %v10309_v56, %v7293_v41 }
 0xf75   :  { %10316 = vrcp.f32 %v7201_v36 }
 0xf76   :  { %v7292_v31 = vsub.f32 2.0, %v7268_v4  ;;  %v15553_v27 = vmul.f32 %v15438_v19, %v7317_v10 }
 0xf77   :  { %v10313_v63 = vpop.eup %10312 }
 0xf78   :  { %v7316_v3 = vmul.f32 %v10311_v16, %v7292_v31  ;;  %v7198_v18 = vpop.xlane.xlu0 %7197  ;;  %7363 = vxpose.xlu0.b32.cont [6/12] (short) (narrow) %v15545_v26, 16  ;;  %v7271_v14 = vmul.f32 %v10313_v63, %v7195_v15 }
 0xf79   :  { %10318 = vrcp.f32 %v7198_v18 }
 0xf7a   :  { %v15549_v54 = vmul.f32 %v15443_v11, %v7316_v3  ;;  %v7295_v29 = vsub.f32 2.0, %v7271_v14 }
 0xf7b   :  { %v10315_v5 = vpop.eup %10314 }
 0xf7c   :  { %v7207_v37 = vpop.xlane.xlu1 %7206  ;;  %v7270_v50 = vmul.f32 %v10315_v5, %v7192_v51  ;;  %7364 = vxpose.xlu0.b32.cont [7/12] (short) (narrow) %v15549_v54, 16  ;;  %v7319_v11 = vmul.f32 %v10313_v63, %v7295_v29 }
 0xf7d   :  { %10320 = vrcp.f32 %v7207_v37 }
 0xf7e   :  { %v7294_v44 = vsub.f32 2.0, %v7270_v50  ;;  %v15561_v10 = vmul.f32 %v15448_v58, %v7319_v11 }
 0xf7f   :  { %v10317_v16 = vpop.eup %10316 }
 0xf80   :  { %v7204_v4 = vpop.xlane.xlu1 %7203  ;;  %v7318_v31 = vmul.f32 %v10315_v5, %v7294_v44  ;;  %7365 = vxpose.xlu0.b32.cont [8/12] (short) (narrow) %v15553_v27, 16  ;;  %v7273_v56 = vmul.f32 %v10317_v16, %v7201_v36 }
 0xf81   :  { %10322 = vrcp.f32 %v7204_v4 }
 0xf82   :  { %v15557_v15 = vmul.f32 %v15453_v60, %v7318_v31  ;;  %v7297_v14 = vsub.f32 2.0, %v7273_v56 }
 0xf83   :  { %v10319_v51 = vpop.eup %10318 }
 0xf84   :  { %v7213_v41 = vpop.xlane.xlu1 %7212  ;;  %v7272_v3 = vmul.f32 %v10319_v51, %v7198_v18  ;;  %7366 = vxpose.xlu0.b32.cont [9/12] (short) (narrow) %v15557_v15, 16  ;;  %v7321_v36 = vmul.f32 %v10317_v16, %v7297_v14 }
 0xf85   :  { %10324 = vrcp.f32 %v7213_v41 }
 0xf86   :  { %v7296_v5 = vsub.f32 2.0, %v7272_v3  ;;  %v15569_v3 = vmul.f32 %v15458_v32, %v7321_v36 }
 0xf87   :  { %v10321_v19 = vpop.eup %10320 }
 0xf88   :  { %v7210_v50 = vpop.xlane.xlu1 %7209  ;;  %v7320_v44 = vmul.f32 %v10319_v51, %v7296_v5  ;;  %7367 = vxpose.xlu0.b32.cont [10/12] (short) (narrow) %v15561_v10, 16  ;;  %v7275_v60 = vmul.f32 %v10321_v19, %v7207_v37 }
 0xf89   :  { %10326 = vrcp.f32 %v7210_v50 }
 0xf8a   :  { %v15565_v29 = vmul.f32 %v15463_v0, %v7320_v44  ;;  %v7299_v58 = vsub.f32 2.0, %v7275_v60 }
 0xf8b   :  { %v10323_v63 = vpop.eup %10322 }
 0xf8c   :  { %v7274_v18 = vmul.f32 %v10323_v63, %v7204_v4  ;;  %v7219_v31 = vpop.xlane.xlu1 %7218  ;;  %7368 = vxpose.xlu0.b32.cont [11/12] (short) (narrow) %v15565_v29, 16  ;;  %v7323_v37 = vmul.f32 %v10321_v19, %v7299_v58 }
 0xf8d   :  { %10328 = vrcp.f32 %v7219_v31 }
 0xf8e   :  { %v7298_v11 = vsub.f32 2.0, %v7274_v18  ;;  %v15577_v60 = vmul.f32 %v15468_v6, %v7323_v37 }
 0xf8f   :  { %v10325_v56 = vpop.eup %10324 }
 0xf90   :  { %v7322_v51 = vmul.f32 %v10323_v63, %v7298_v11  ;;  %v7216_v5 = vpop.xlane.xlu1 %7215  ;;  %7369 = vxpose.xlu0.b32.end [12/12] (short) (narrow) %v15569_v3, 16  ;;  %v7277_v16 = vmul.f32 %v10325_v56, %v7213_v41 }
 0xf91   :  { %10330 = vrcp.f32 %v7216_v5 }
 0xf92   :  { %v15573_v0 = vmul.f32 %v15473_v42, %v7322_v51  ;;  %v7301_v32 = vsub.f32 2.0, %v7277_v16 }
 0xf93   :  { %v10327_v4 = vpop.eup %10326 }
 0xf94   :  { %v7276_v14 = vmul.f32 %v10327_v4, %v7210_v50  ;;  %7390 = vxpose.xlu1.b32.start [1/12] (short) (narrow) %v15573_v0, 16  ;;  %v7225_v44 = vpop.xlane.xlu1 %7224  ;;  %v7325_v42 = vmul.f32 %v10325_v56, %v7301_v32 }
 0xf95   :  { %10332 = vrcp.f32 %v7225_v44 }
 0xf96   :  { %v7300_v63 = vsub.f32 2.0, %v7276_v14  ;;  %v15585_v6 = vmul.f32 %v15478_v13, %v7325_v42 }
 0xf97   :  { %v10329_v36 = vpop.eup %10328 }
 0xf98   :  { %v7324_v18 = vmul.f32 %v10327_v4, %v7300_v63  ;;  %7391 = vxpose.xlu1.b32.cont [2/12] (short) (narrow) %v15577_v60, 16  ;;  %v7222_v19 = vpop.xlane.xlu1 %7221  ;;  %v7279_v50 = vmul.f32 %v10329_v36, %v7219_v31 }
 0xf99   :  { %10334 = vrcp.f32 %v7222_v19 }
 0xf9a   :  { %v15581_v41 = vmul.f32 %v15483_v1, %v7324_v18  ;;  %v7303_v51 = vsub.f32 2.0, %v7279_v50 }
 0xf9b   :  { %v10331_v58 = vpop.eup %10330 }
 0xf9c   :  { %v7278_v11 = vmul.f32 %v10331_v58, %v7216_v5  ;;  %7392 = vxpose.xlu1.b32.cont [3/12] (short) (narrow) %v15581_v41, 16  ;;  %v7327_v63 = vmul.f32 %v10329_v36, %v7303_v51 }
 0xf9e   :  { %v7302_v37 = vsub.f32 2.0, %v7278_v11  ;;  %v15593_v18 = vmul.f32 %v15488_v24, %v7327_v63  ;;  %v6229_v63 = vmul.f32 %v15198_v21, %v17346_v47 }
 0xf9f   :  { %v10333_v16 = vpop.eup %10332 }
 0xfa0   :  { %v7326_v4 = vmul.f32 %v10331_v58, %v7302_v37  ;;  %7393 = vxpose.xlu1.b32.cont [4/12] (short) (narrow) %v15585_v6, 16  ;;  %v7281_v1 = vmul.f32 %v10333_v16, %v7225_v44 }
 0xfa1   :  { %v7231_v14 = vpop.xlane.xlu1 %7230 }
 0xfa2   :  { %v15589_v56 = vmul.f32 %v15492_v46, %v7326_v4  ;;  %10336 = vrcp.f32 %v7231_v14  ;;  %v7305_v42 = vsub.f32 2.0, %v7281_v1 }
 0xfa3   :  { %v10335_v31 = vpop.eup %10334 }
 0xfa4   :  { %v7280_v5 = vmul.f32 %v10335_v31, %v7222_v19  ;;  %7394 = vxpose.xlu1.b32.cont [5/12] (short) (narrow) %v15589_v56, 16  ;;  %v7329_v36 = vmul.f32 %v10333_v16, %v7305_v42 }
 0xfa5   :  { %v7234_v32 = vpop.xlane.xlu0 %7233  ;;  %v7228_v13 = vpop.xlane.xlu1 %7227 }
 0xfa6   :  { %v7304_v50 = vsub.f32 2.0, %v7280_v5  ;;  %10338 = vrcp.f32 %v7234_v32  ;;  %v15601_v11 = vmul.f32 %v15498_v59, %v7329_v36  ;;  %v6206_v5 = vmul.f32 %v15188_v38, %v17347_v55 }
 0xfa7   :  { %10340 = vrcp.f32 %v7228_v13 }
 0xfa8   :  { %v7328_v58 = vmul.f32 %v10335_v31, %v7304_v50  ;;  %7395 = vxpose.xlu1.b32.cont [6/12] (short) (narrow) %v15593_v18, 16  ;;  %v6253_v50 = vadd.f32 %v6229_v63, %v6206_v5 }
 0xfa9   :  { %v7237_v46 = vpop.xlane.xlu1 %7236 }
 0xfaa   :  { %v15597_v44 = vmul.f32 %v15504_v25, %v7328_v58  ;;  %10342 = vrcp.f32 %v7237_v46 }
 0xfac   :  { %7396 = vxpose.xlu1.b32.cont [7/12] (short) (narrow) %v15597_v44, 16  ;;  %v10337_v19 = vpop.eup %10336 }
 0xfad   :  { %v7283_v51 = vmul.f32 %v10337_v19, %v7231_v14 }
 0xfaf   :  { %v7307_v16 = vsub.f32 2.0, %v7283_v51  ;;  %v17358_v51 = vld [vmem:[#allocation80_spill] sm:$0xff] }
 0xfb0   :  { %v10339_v24 = vpop.eup %10338  ;;  %7397 = vxpose.xlu1.b32.cont [8/12] (short) (narrow) %v15601_v11, 16 }
 0xfb1   :  { %v10341_v37 = vpop.eup %10340  ;;  %v7284_v1 = vmul.f32 %v10339_v24, %v7234_v32  ;;  %v7331_v59 = vmul.f32 %v10337_v19, %v7307_v16  ;;  %v15652_v19 = vld [vmem:[#allocation13] sm:$0xff] }
 0xfb2   :  { %v7282_v4 = vmul.f32 %v10341_v37, %v7228_v13 }
 0xfb3   :  { %v7308_v58 = vsub.f32 2.0, %v7284_v1  ;;  %v15614_v21 = vmul.f32 %v15508_v23, %v7331_v59  ;;  %v6241_v23 = vmul.f32 %v15305_v33, %v17346_v47  ;;  %v17355_v47 = vld [vmem:[#allocation84_spill] sm:$0xff]  ;;  %v17356_v33 = vld [vmem:[#allocation86_spill] sm:$0xff] }
 0xfb4   :  { %v7306_v25 = vsub.f32 2.0, %v7282_v4  ;;  %v10343_v31 = vpop.eup %10342  ;;  %v17360_v4 = vld [vmem:[#allocation29_spill] sm:$0xff] }
 0xfb5   :  { %v7285_v36 = vmul.f32 %v10343_v31, %v7237_v46  ;;  %v7332_v32 = vmul.f32 %v10339_v24, %v7308_v58  ;;  %v17357_v24 = vld [vmem:[#allocation37_spill] sm:$0xff] }
 0xfb6   :  { %v7330_v42 = vmul.f32 %v10341_v37, %v7306_v25  ;;  %v17359_v37 = vld [vmem:[#allocation81_spill] sm:$0xff] }
 0xfb7   :  { %v7309_v13 = vsub.f32 2.0, %v7285_v36  ;;  %v15620_v38 = vmul.f32 %v15514_v39, %v7332_v32 }
 0xfb8   :  { %v15609_v14 = vmul.f32 %v15512_v57, %v7330_v42  ;;  %v17361_v42 = vld [vmem:[#allocation27_spill] sm:$0xff] }
 0xfb9   :  { %6301 = vrot.lane.b32.xlu0 %v6253_v50, %s10745_s20  ;;  %v7333_v55 = vmul.f32 %v10343_v31, %v7309_v13 }
 0xfba   :  { %7398 = vxpose.xlu1.b32.cont [9/12] (short) (narrow) %v15609_v14, 16 }
 0xfbb   :  { %v15626_v57 = vmul.f32 %v15520_v62, %v7333_v55  ;;  %v6265_v62 = vadd.f32 %v6241_v23, %v6206_v5 }
 0xfbd   :  { %6305 = vrot.lane.b32.xlu0 %v15221_v22, %s10745_s20 }
 0xfbe   :  { %7399 = vxpose.xlu1.b32.cont [10/12] (short) (narrow) %v15614_v21, 16 }
 0xfc1   :  { %6307 = vrot.lane.b32.xlu0 %v15223_v20, %s10745_s20 }
 0xfc2   :  { %7400 = vxpose.xlu1.b32.cont [11/12] (short) (narrow) %v15620_v38, 16 }
 0xfc5   :  { %6309 = vrot.lane.b32.xlu0 %v15239_v12, %s10745_s20 }
 0xfc6   :  { %7401 = vxpose.xlu1.b32.end [12/12] (short) (narrow) %v15626_v57, 16 }
 0xfc9   :  { %6311 = vrot.lane.b32.xlu0 %v15241_v17, %s10745_s20 }
 0xfcd   :  { %6313 = vrot.lane.b32.xlu0 %v15257_v49, %s10745_s20 }
 0xfd1   :  { %6315 = vrot.lane.b32.xlu0 %v15259_v8, %s10745_s20 }
 0xfd5   :  { %6317 = vrot.lane.b32.xlu0 %v15273_v7, %s10745_s20 }
 0xfd9   :  { %6319 = vrot.lane.b32.xlu0 %v15275_v61, %s10745_s20 }
 0xfdd   :  { %6321 = vrot.lane.b32.xlu0 %v15291_v48, %s10745_s20 }
 0xfe1   :  { %6323 = vrot.lane.b32.xlu0 %v15293_v43, %s10745_s20 }
 0xfe4   :  { %6303 = vrot.lane.b32.xlu1 %v15205_v40, %s10745_s20  ;;  %v7374_v39 = vpop.trf.xlu0 }
 0xfe5   :  { %9614 = vmatprep.mubr.msk.f32.mxu1 %vm4828_vm2, %v7374_v39 }
 0xfe8   :  { %6325 = vrot.lane.b32.xlu1 %v6265_v62, %s10745_s20  ;;  %v7375_v46 = vpop.trf.xlu0 }
 0xfe9   :  { %9615 = vmatmul.mubr.msk.f32.vlgmr.msra.gmra.mrb[68].mxu1 %vm4828_vm2, %v7375_v46 }
 0xfea   :  { %9648 = vmatprep.mubr.msk.f32.mxu1 %vm4427_vm1, %v15652_v19 }
 0xfec   :  { %6327 = vrot.lane.b32.xlu1 %v15312_v2, %s10745_s20 }
 0xff0   :  { %6329 = vrot.lane.b32.xlu1 %v15328_v45, %s10745_s20 }
 0xff4   :  { %6331 = vrot.lane.b32.xlu1 %v15330_v30, %s10745_s20 }
 0xff8   :  { %6333 = vrot.lane.b32.xlu1 %v15346_v53, %s10745_s20 }
 0xffc   :  { %6335 = vrot.lane.b32.xlu1 %v15348_v34, %s10745_s20 }
0x1000   :  { %6337 = vrot.lane.b32.xlu1 %v17355_v47, %s10745_s20 }
0x1004   :  { %6339 = vrot.lane.b32.xlu1 %v17356_v33, %s10745_s20 }
0x1008   :  { %6341 = vrot.lane.b32.xlu1 %v17357_v24, %s10745_s20 }
0x100c   :  { %6343 = vrot.lane.b32.xlu1 %v17358_v51, %s10745_s20 }
0x1010   :  { %6345 = vrot.lane.b32.xlu1 %v17359_v37, %s10745_s20 }
0x1014   :  { %6347 = vrot.lane.b32.xlu1 %v17360_v4, %s10745_s20 }
0x101a   :  { %v7406_v63 = vpop.trf.xlu1 }
0x101b   :  { %9641 = vmatprep.mubr.msk.f32.mxu0 %vm4828_vm2, %v7406_v63 }
0x101e   :  { %v7407_v16 = vpop.trf.xlu1 }
0x101f   :  { %9642 = vmatmul.mubr.msk.f32.vlgmr.msra.gmra.mrb[84].mxu0 %vm4828_vm2, %v7407_v16 }
0x1020   :  { %9684 = vmatprep.mubr.msk.f32.mxu0 %vm4427_vm1, %v15573_v0 }
0x102b   :  { %v6302_v1 = vpop.permute.xlu0 %6301 }
0x102c   :  { %v6373_v25 = vmul.f32 %v6302_v1, %v6253_v50  ;;  %v17363_v1 = vld [vmem:[#allocation56_spill] sm:$0xff] }
0x102e   :  { %v6397_v31 = vmax.f32 %v6373_v25, 0.0 }
0x102f   :  { %v6306_v36 = vpop.permute.xlu0 %6305 }
0x1030   :  { %v6421_v5 = vadd.f32 %v6397_v31, %v6253_v50  ;;  %v6375_v13 = vmul.f32 %v6306_v36, %v15221_v22 }
0x1032   :  { %v15683_v59 = vadd.f32 %v6421_v5, %v17361_v42  ;;  %v6399_v0 = vmax.f32 %v6375_v13, 0.0 }
0x1033   :  { %v6308_v46 = vpop.permute.xlu0 %6307 }
0x1034   :  { %17362 = vst [vmem:[#allocation85_spill] sm:$0xff] %v15683_v59  ;;  %v6469_v58 = vsel %vm282_vm0, %v15683_v59, 0.0  ;;  %v6376_v31 = vmul.f32 %v6308_v46, %v15223_v20 }
0x1035   :  { %6470 = vadd.xlane.f32.xlu0 %v6469_v58  ;;  %v6423_v58 = vadd.f32 %v6399_v0, %v15221_v22 }
0x1056   :  { %v6304_v32 = vpop.permute.xlu1 %6303 }
0x1057   :  { %v6374_v55 = vmul.f32 %v6304_v32, %v15205_v40 }
0x1059   :  { %v6398_v23 = vmax.f32 %v6374_v55, 0.0  ;;  %v17364_v55 = vld [vmem:[#allocation39_spill] sm:$0xff] }
0x105a   :  { %v6326_v39 = vpop.permute.xlu1 %6325 }
0x105b   :  { %v6422_v63 = vadd.f32 %v6398_v23, %v15205_v40  ;;  %v6385_v50 = vmul.f32 %v6326_v39, %v6265_v62  ;;  %v6400_v23 = vmax.f32 %v6376_v31, 0.0 }
0x105d   :  { %v6409_v16 = vmax.f32 %v6385_v50, 0.0  ;;  %v15691_v25 = vadd.f32 %v6422_v63, %v17363_v1  ;;  %v6310_v63 = vpop.permute.xlu0 %6309 }
0x105e   :  { %v6328_v5 = vpop.permute.xlu1 %6327  ;;  %v6377_v31 = vmul.f32 %v6310_v63, %v15239_v12 }
0x105f   :  { %v6433_v59 = vadd.f32 %v6409_v16, %v6265_v62  ;;  %v6386_v36 = vmul.f32 %v6328_v5, %v15312_v2  ;;  %v6472_v32 = vsel %vm282_vm0, %v15691_v25, 0.0  ;;  %v17366_v62 = vld [vmem:[#allocation36_spill] sm:$0xff] }
0x1060   :  { %6473 = vadd.xlane.f32.xlu1 %v6472_v32  ;;  %v15706_v0 = vadd.f32 %v6423_v58, %v17366_v62  ;;  %v17368_v5 = vld [vmem:[#allocation76_spill] sm:$0xff] }
0x1061   :  { %v6410_v13 = vmax.f32 %v6386_v36, 0.0  ;;  %v15699_v40 = vadd.f32 %v6433_v59, %v17364_v55  ;;  %v6424_v59 = vadd.f32 %v6400_v23, %v15223_v20  ;;  %v6401_v20 = vmax.f32 %v6377_v31, 0.0  ;;  %v6312_v63 = vpop.permute.xlu0 %6311 }
0x1062   :  { %v6330_v39 = vpop.permute.xlu1 %6329  ;;  %17367 = vst [vmem:[#allocation88_spill] sm:$0xff] %v15706_v0 }
0x1063   :  { %17365 = vst [vmem:[#allocation87_spill] sm:$0xff] %v15699_v40  ;;  %v6434_v50 = vadd.f32 %v6410_v13, %v15312_v2  ;;  %v6387_v46 = vmul.f32 %v6330_v39, %v15328_v45  ;;  %v6505_v22 = vsel %vm282_vm0, %v15699_v40, 0.0  ;;  %v6475_v39 = vsel %vm282_vm0, %v15706_v0, 0.0 }
0x1064   :  { %6506 = vadd.xlane.f32.xlu0 %v6505_v22 }
0x1065   :  { %v6411_v16 = vmax.f32 %v6387_v46, 0.0  ;;  %v15709_v36 = vadd.f32 %v6434_v50, %v17368_v5  ;;  %v17369_v50 = vld [vmem:[#allocation41_spill] sm:$0xff] }
0x1066   :  { %v6332_v32 = vpop.permute.xlu1 %6331 }
0x1067   :  { %v6435_v2 = vadd.f32 %v6411_v16, %v15328_v45  ;;  %v6388_v13 = vmul.f32 %v6332_v32, %v15330_v30  ;;  %v6508_v58 = vsel %vm282_vm0, %v15709_v36, 0.0  ;;  %v17371_v32 = vld [vmem:[#allocation53_spill] sm:$0xff] }
0x1068   :  { %6476 = vadd.xlane.f32.xlu0 %v6475_v39  ;;  %6509 = vadd.xlane.f32.xlu1 %v6508_v58  ;;  %v15727_v0 = vadd.f32 %v6424_v59, %v17371_v32  ;;  %v6378_v39 = vmul.f32 %v6312_v63, %v15241_v17  ;;  %v17373_v58 = vld [vmem:[#allocation33_spill] sm:$0xff] }
0x1069   :  { %v6412_v46 = vmax.f32 %v6388_v13, 0.0  ;;  %v15720_v22 = vadd.f32 %v6435_v2, %v17369_v50  ;;  %v6425_v13 = vadd.f32 %v6401_v20, %v15239_v12 }
0x106a   :  { %v6334_v23 = vpop.permute.xlu1 %6333  ;;  %17372 = vst [vmem:[#allocation90_spill] sm:$0xff] %v15727_v0  ;;  %v6478_v31 = vsel %vm282_vm0, %v15727_v0, 0.0 }
0x106b   :  { %17370 = vst [vmem:[#allocation89_spill] sm:$0xff] %v15720_v22  ;;  %v6436_v40 = vadd.f32 %v6412_v46, %v15330_v30  ;;  %v6389_v45 = vmul.f32 %v6334_v23, %v15346_v53  ;;  %v6511_v16 = vsel %vm282_vm0, %v15720_v22, 0.0  ;;  %v6402_v46 = vmax.f32 %v6378_v39, 0.0  ;;  %v6314_v23 = vpop.permute.xlu0 %6313 }
0x106c   :  { %6512 = vadd.xlane.f32.xlu0 %v6511_v16  ;;  %v17375_v16 = vld [vmem:[#allocation31_spill] sm:$0xff]  ;;  %v6379_v20 = vmul.f32 %v6314_v23, %v15257_v49 }
0x106d   :  { %v6413_v2 = vmax.f32 %v6389_v45, 0.0  ;;  %v15734_v50 = vadd.f32 %v6436_v40, %v17373_v58  ;;  %v15741_v12 = vadd.f32 %v6425_v13, %v17375_v16  ;;  %v6426_v40 = vadd.f32 %v6402_v46, %v15241_v17 }
0x106e   :  { %v6336_v30 = vpop.permute.xlu1 %6335 }
0x106f   :  { %17374 = vst [vmem:[#allocation91_spill] sm:$0xff] %v15734_v50  ;;  %v6437_v22 = vadd.f32 %v6413_v2, %v15346_v53  ;;  %v6390_v59 = vmul.f32 %v6336_v30, %v15348_v34  ;;  %v6514_v63 = vsel %vm282_vm0, %v15734_v50, 0.0  ;;  %17376 = vst [vmem:[#allocation92_spill] sm:$0xff] %v15741_v12  ;;  %v6481_v39 = vsel %vm282_vm0, %v15741_v12, 0.0  ;;  %v6316_v30 = vpop.permute.xlu0 %6315 }
0x1070   :  { %6479 = vadd.xlane.f32.xlu0 %v6478_v31  ;;  %v17377_v31 = vld [vmem:[#allocation55_spill] sm:$0xff]  ;;  %v6403_v2 = vmax.f32 %v6379_v20, 0.0  ;;  %v6380_v46 = vmul.f32 %v6316_v30, %v15259_v8 }
0x1071   :  { %v6414_v45 = vmax.f32 %v6390_v59, 0.0  ;;  %v15748_v0 = vadd.f32 %v6437_v22, %v17377_v31 }
0x1072   :  { %v6338_v53 = vpop.permute.xlu1 %6337  ;;  %v6427_v22 = vadd.f32 %v6403_v2, %v15257_v49 }
0x1073   :  { %17378 = vst [vmem:[#allocation93_spill] sm:$0xff] %v15748_v0  ;;  %v6438_v50 = vadd.f32 %v6414_v45, %v15348_v34  ;;  %v6391_v13 = vmul.f32 %v6338_v53, %v17355_v47  ;;  %v6517_v23 = vsel %vm282_vm0, %v15748_v0, 0.0  ;;  %v6404_v45 = vmax.f32 %v6380_v46, 0.0  ;;  %v6318_v53 = vpop.permute.xlu0 %6317 }
0x1074   :  { %6515 = vadd.xlane.f32.xlu0 %v6514_v63  ;;  %v17379_v63 = vld [vmem:[#allocation34_spill] sm:$0xff]  ;;  %v6381_v2 = vmul.f32 %v6318_v53, %v15273_v7 }
0x1075   :  { %v15755_v17 = vadd.f32 %v6426_v40, %v17379_v63  ;;  %v6415_v59 = vmax.f32 %v6391_v13, 0.0 }
0x1076   :  { %v6340_v34 = vpop.permute.xlu1 %6339 }
0x1077   :  { %17380 = vst [vmem:[#allocation45_spill] sm:$0xff] %v15755_v17  ;;  %v6484_v20 = vsel %vm282_vm0, %v15755_v17, 0.0  ;;  %v6439_v0 = vadd.f32 %v6415_v59, %v17355_v47  ;;  %v6392_v40 = vmul.f32 %v6340_v34, %v17356_v33  ;;  %v6405_v59 = vmax.f32 %v6381_v2, 0.0  ;;  %v6320_v34 = vpop.permute.xlu0 %6319 }
0x1078   :  { %6482 = vadd.xlane.f32.xlu0 %v6481_v39  ;;  %v17381_v39 = vld [vmem:[#allocation43_spill] sm:$0xff] }
0x1079   :  { %v15762_v12 = vadd.f32 %v6438_v50, %v17381_v39  ;;  %v6428_v50 = vadd.f32 %v6404_v45, %v15259_v8  ;;  %v6416_v13 = vmax.f32 %v6392_v40, 0.0  ;;  %v6382_v45 = vmul.f32 %v6320_v34, %v15275_v61 }
0x107a   :  { %v6342_v47 = vpop.permute.xlu1 %6341 }
0x107b   :  { %17382 = vst [vmem:[#allocation28_spill] sm:$0xff] %v15762_v12  ;;  %v6520_v30 = vsel %vm282_vm0, %v15762_v12, 0.0  ;;  %v6440_v12 = vadd.f32 %v6416_v13, %v17356_v33  ;;  %v6406_v13 = vmax.f32 %v6382_v45, 0.0 }
0x107c   :  { %6518 = vadd.xlane.f32.xlu0 %v6517_v23  ;;  %v17383_v23 = vld [vmem:[#allocation59_spill] sm:$0xff] }
0x107d   :  { %v15769_v49 = vadd.f32 %v6427_v22, %v17383_v23  ;;  %v6393_v22 = vmul.f32 %v6342_v47, %v17357_v24  ;;  %v6322_v47 = vpop.permute.xlu0 %6321 }
0x107e   :  { %v6344_v33 = vpop.permute.xlu1 %6343 }
0x107f   :  { %17384 = vst [vmem:[#allocation32_spill] sm:$0xff] %v15769_v49  ;;  %v6487_v46 = vsel %vm282_vm0, %v15769_v49, 0.0  ;;  %v6417_v40 = vmax.f32 %v6393_v22, 0.0 }
0x1080   :  { %6485 = vadd.xlane.f32.xlu0 %v6484_v20  ;;  %v17385_v20 = vld [vmem:[#allocation72_spill] sm:$0xff] }
0x1081   :  { %v15776_v17 = vadd.f32 %v6439_v0, %v17385_v20  ;;  %v6429_v0 = vadd.f32 %v6405_v59, %v15273_v7  ;;  %v6383_v59 = vmul.f32 %v6322_v47, %v15291_v48  ;;  %v17394_v47 = vld [vmem:[#allocation75_spill] sm:$0xff] }
0x1083   :  { %17386 = vst [vmem:[#allocation30_spill] sm:$0xff] %v15776_v17  ;;  %v6523_v53 = vsel %vm282_vm0, %v15776_v17, 0.0  ;;  %v6441_v17 = vadd.f32 %v6417_v40, %v17357_v24  ;;  %v6346_v24 = vpop.permute.xlu1 %6345  ;;  %v6407_v40 = vmax.f32 %v6383_v59, 0.0 }
0x1084   :  { %6521 = vadd.xlane.f32.xlu0 %v6520_v30  ;;  %v17387_v30 = vld [vmem:[#allocation35_spill] sm:$0xff] }
0x1085   :  { %v15783_v8 = vadd.f32 %v6428_v50, %v17387_v30  ;;  %v6394_v50 = vmul.f32 %v6344_v33, %v17358_v51 }
0x1087   :  { %17388 = vst [vmem:[#allocation58_spill] sm:$0xff] %v15783_v8  ;;  %v6490_v2 = vsel %vm282_vm0, %v15783_v8, 0.0  ;;  %v6418_v22 = vmax.f32 %v6394_v50, 0.0 }
0x1088   :  { %6488 = vadd.xlane.f32.xlu0 %v6487_v46  ;;  %v17389_v46 = vld [vmem:[#allocation77_spill] sm:$0xff] }
0x1089   :  { %v15790_v49 = vadd.f32 %v6440_v12, %v17389_v46  ;;  %v6430_v12 = vadd.f32 %v6406_v13, %v15275_v61  ;;  %v6442_v33 = vadd.f32 %v6418_v22, %v17358_v51  ;;  %v6324_v61 = vpop.permute.xlu0 %6323  ;;  %v6431_v13 = vadd.f32 %v6407_v40, %v15291_v48 }
0x108b   :  { %17390 = vst [vmem:[#allocation61_spill] sm:$0xff] %v15790_v49  ;;  %v6526_v34 = vsel %vm282_vm0, %v15790_v49, 0.0  ;;  %v15811_v49 = vadd.f32 %v6430_v12, %v17394_v47 }
0x108c   :  { %6524 = vadd.xlane.f32.xlu0 %v6523_v53  ;;  %v17391_v53 = vld [vmem:[#allocation62_spill] sm:$0xff] }
0x108d   :  { %v15797_v7 = vadd.f32 %v6429_v0, %v17391_v53  ;;  %v6395_v0 = vmul.f32 %v6346_v24, %v17359_v37  ;;  %v6496_v59 = vsel %vm282_vm0, %v15811_v49, 0.0 }
0x108f   :  { %v6493_v45 = vsel %vm282_vm0, %v15797_v7, 0.0  ;;  %v6419_v50 = vmax.f32 %v6395_v0, 0.0  ;;  %v17399_v0 = vld [vmem:[#allocation79_spill] sm:$0xff] }
0x1090   :  { %6491 = vadd.xlane.f32.xlu0 %v6490_v2  ;;  %v17392_v2 = vld [vmem:[#allocation74_spill] sm:$0xff] }
0x1091   :  { %v15804_v8 = vadd.f32 %v6441_v17, %v17392_v2  ;;  %v6384_v17 = vmul.f32 %v6324_v61, %v15293_v43  ;;  %v6443_v24 = vadd.f32 %v6419_v50, %v17359_v37  ;;  %v17401_v37 = vld [vmem:[#allocation57_spill] sm:$0xff] }
0x1093   :  { %17393 = vst [vmem:[#allocation64_spill] sm:$0xff] %v15804_v8  ;;  %v6408_v22 = vmax.f32 %v6384_v17, 0.0  ;;  %v15830_v61 = vadd.f32 %v6443_v24, %v17399_v0 }
0x1094   :  { %6527 = vadd.xlane.f32.xlu0 %v6526_v34  ;;  %v6529_v34 = vsel %vm282_vm0, %v15804_v8, 0.0  ;;  %v17397_v8 = vld [vmem:[#allocation73_spill] sm:$0xff] }
0x1095   :  { %v6432_v48 = vadd.f32 %v6408_v22, %v15293_v43  ;;  %17400 = vst [vmem:[#allocation42_spill] sm:$0xff] %v15830_v61  ;;  %v10461_v22 = vld [vmem:[#allocation13 + $0x8] sm:$0xff] }
0x1097   :  { %v15835_v17 = vadd.f32 %v6432_v48, %v17401_v37 }
0x1098   :  { %6494 = vadd.xlane.f32.xlu0 %v6493_v45  ;;  %v17395_v45 = vld [vmem:[#allocation78_spill] sm:$0xff] }
0x1099   :  { %v15818_v51 = vadd.f32 %v6442_v33, %v17395_v45  ;;  %v6535_v33 = vsel %vm282_vm0, %v15830_v61, 0.0  ;;  %17402 = vst [vmem:[#allocation67_spill] sm:$0xff] %v15835_v17 }
0x109b   :  { %17396 = vst [vmem:[#allocation63_spill] sm:$0xff] %v15818_v51  ;;  %v6532_v12 = vsel %vm282_vm0, %v15818_v51, 0.0 }
0x109c   :  { %6530 = vadd.xlane.f32.xlu0 %v6529_v34  ;;  %v15824_v34 = vadd.f32 %v6431_v13, %v17397_v8  ;;  %v6502_v13 = vsel %vm282_vm0, %v15835_v17, 0.0 }
0x109e   :  { %17398 = vst [vmem:[#allocation65_spill] sm:$0xff] %v15824_v34  ;;  %v6499_v40 = vsel %vm282_vm0, %v15824_v34, 0.0 }
0x10a0   :  { %6497 = vadd.xlane.f32.xlu0 %v6496_v59 }
0x10a4   :  { %6533 = vadd.xlane.f32.xlu0 %v6532_v12 }
0x10a8   :  { %6500 = vadd.xlane.f32.xlu0 %v6499_v40  ;;  %v17403_v40 = vld [vmem:[#allocation83_spill] sm:$0xff] }
0x10ac   :  { %6536 = vadd.xlane.f32.xlu0 %v6535_v33 }
0x10b0   :  { %6503 = vadd.xlane.f32.xlu0 %v6502_v13 }
0x10bc   :  { %v9616_v50 = vpop.f32.mrb[68].mxu1 }
0x10bd   :  { %v7494_v43 = vpop.f32.mrb[69].mxu1 }
0x10be   :  { %v9876_v59 = vpack.c.bf16 %v9616_v50, %v7494_v43 }
0x10c0   :  { %9877 = vmatprep.subr.bf16.mxu1 %v9876_v59 }
0x10c1   :  { %9879 = vmatpush3.bf16.msra.mxu1 %v9876_v59 }
0x10c4   :  { %9649 = vmatmul.mubr.msk.f32.vlgmr.msra.gmra.mrb[70].mxu1 %vm4427_vm1, %v10461_v22 }
0x10c5   :  { %9655 = vmatprep.mubr.msk.f32.mxu1 %vm4427_vm1, %v15652_v19 }
0x10f2   :  { %v9643_v24 = vpop.f32.mrb[84].mxu0 }
0x10f3   :  { %v7575_v12 = vpop.f32.mrb[85].mxu0 }
0x10f4   :  { %v9880_v48 = vpack.c.bf16 %v9643_v24, %v7575_v12 }
0x10f6   :  { %9881 = vmatprep.subr.bf16.mxu1 %v9880_v48 }
0x10f7   :  { %9883 = vmatpush3.bf16.msra.mxu1 %v9880_v48 }
0x10fa   :  { %9656 = vmatmul.mubr.msk.f32.vlgmr.msra.gmra.mrb[72].mxu1 %vm4427_vm1, %v10461_v22 }
0x10fb   :  { %9662 = vmatprep.mubr.msk.f32.mxu1 %vm4427_vm1, %v17403_v40 }
0x1197   :  { %v9650_v33 = vpop.f32.mrb[70].mxu1 }
0x1198   :  { %v7735_v13 = vmax.f32 %v9650_v33, 0.0  ;;  %v7650_v17 = vpop.f32.mrb[71].mxu1 }
0x1199   :  { %v7734_v59 = vmax.f32 %v7650_v17, 0.0 }
0x119a   :  { %v7739_v61 = vadd.f32 %v9616_v50, %v7735_v13  ;;  %v6471_v13 = vpop.xlane.xlu0 %6470 }
0x119b   :  { %v7738_v34 = vadd.f32 %v7734_v59, %v7494_v43 }
0x119d   :  { %v9884_v51 = vpack.c.bf16 %v7739_v61, %v7738_v34 }
0x119f   :  { %9885 = vmatprep.subr.bf16.mxu1 %v9884_v51 }
0x11a0   :  { %9887 = vmatpush3.bf16.msra.mxu1 %v9884_v51 }
0x11a3   :  { %9663 = vmatmul.mubr.msk.f32.vlgmr.msra.gmra.mrb[74].mxu1 %vm4427_vm1, %v15529_v28 }
0x11a4   :  { %9665 = vmatprep.mubr.msk.f32.mxu1 %vm4427_vm1, %v15533_v52 }
0x11a7   :  { %9666 = vmatmul.mubr.msk.f32.gmra.mrb[76].mxu1 %vm4427_vm1, %v15537_v9 }
0x11a8   :  { %9668 = vmatprep.mubr.msk.f32.mxu1 %vm4427_vm1, %v15541_v35 }
0x11ab   :  { %9669 = vmatmul.mubr.msk.f32.gmra.mrb[78].mxu1 %vm4427_vm1, %v15545_v26 }
0x11ac   :  { %9671 = vmatprep.mubr.msk.f32.mxu1 %vm4427_vm1, %v15549_v54 }
0x11af   :  { %9672 = vmatmul.mubr.msk.f32.gmra.mrb[80].mxu1 %vm4427_vm1, %v15553_v27 }
0x11b0   :  { %9674 = vmatprep.mubr.msk.f32.mxu1 %vm4427_vm1, %v15557_v15 }
0x11b3   :  { %9675 = vmatmul.mubr.msk.f32.gmra.mrb[82].mxu1 %vm4427_vm1, %v15561_v10 }
0x11b4   :  { %9677 = vmatprep.mubr.msk.f32.mxu1 %vm4427_vm1, %v15565_v29 }
0x11b7   :  { %9678 = vmatmul.mubr.msk.f32.gmra.mrb[84].mxu1 %vm4427_vm1, %v15569_v3 }
0x11cd   :  { %v9657_v28 = vpop.f32.mrb[72].mxu1 }
0x11ce   :  { %v7737_v52 = vmax.f32 %v9657_v28, 0.0  ;;  %v7725_v9 = vpop.f32.mrb[73].mxu1 }
0x11cf   :  { %v7736_v35 = vmax.f32 %v7725_v9, 0.0 }
0x11d0   :  { %v7741_v26 = vadd.f32 %v9643_v24, %v7737_v52  ;;  %v6507_v52 = vpop.xlane.xlu0 %6506 }
0x11d1   :  { %v7740_v54 = vadd.f32 %v7736_v35, %v7575_v12 }
0x11d3   :  { %v9888_v19 = vpack.c.bf16 %v7741_v26, %v7740_v54 }
0x11d4   :  { %v6477_v26 = vpop.xlane.xlu0 %6476 }
0x11d5   :  { %9889 = vmatprep.subr.bf16.mxu0 %v9888_v19 }
0x11d6   :  { %9891 = vmatpush3.bf16.msra.mxu0 %v9888_v19 }
0x11d9   :  { %9685 = vmatmul.mubr.msk.f32.vlgmr.msra.gmra.mrb[86].mxu0 %vm4427_vm1, %v15577_v60 }
0x11da   :  { %9687 = vmatprep.mubr.msk.f32.mxu0 %vm4427_vm1, %v15581_v41 }
0x11dd   :  { %9688 = vmatmul.mubr.msk.f32.gmra.mrb[88].mxu0 %vm4427_vm1, %v15585_v6 }
0x11de   :  { %9690 = vmatprep.mubr.msk.f32.mxu0 %vm4427_vm1, %v15589_v56 }
0x11e1   :  { %9691 = vmatmul.mubr.msk.f32.gmra.mrb[90].mxu0 %vm4427_vm1, %v15593_v18 }
0x11e2   :  { %9693 = vmatprep.mubr.msk.f32.mxu0 %vm4427_vm1, %v15597_v44 }
0x11e5   :  { %9694 = vmatmul.mubr.msk.f32.gmra.mrb[92].mxu0 %vm4427_vm1, %v15601_v11 }
0x11e6   :  { %9696 = vmatprep.mubr.msk.f32.mxu0 %vm4427_vm1, %v15609_v14 }
0x11e9   :  { %9697 = vmatmul.mubr.msk.f32.gmra.mrb[94].mxu0 %vm4427_vm1, %v15614_v21 }
0x11ea   :  { %9699 = vmatprep.mubr.msk.f32.mxu0 %vm4427_vm1, %v15620_v38 }
0x11ed   :  { %9700 = vmatmul.mubr.msk.f32.gmra.mrb[96].mxu0 %vm4427_vm1, %v15626_v57 }
0x1276   :  { %v9664_v27 = vpop.f32.mrb[74].mxu1 }
0x1277   :  { %v8065_v15 = vmax.f32 %v9664_v27, 0.0  ;;  %v7844_v10 = vpop.f32.mrb[75].mxu1 }
0x1278   :  { %v8064_v29 = vmax.f32 %v7844_v10, 0.0  ;;  %v6513_v10 = vpop.xlane.xlu0 %6512 }
0x1279   :  { %v15890_v3 = vadd.f32 %v8065_v15, %v17363_v1 }
0x127a   :  { %v9667_v60 = vpop.f32.mrb[76].mxu1  ;;  %v15893_v41 = vadd.f32 %v8064_v29, %v17361_v42 }
0x127b   :  { %v8067_v6 = vmax.f32 %v9667_v60, 0.0  ;;  %v7854_v56 = vpop.f32.mrb[77].mxu1  ;;  %v8115_v18 = vsel %vm282_vm0, %v15890_v3, 0.0  ;;  %v6348_v60 = vpop.permute.xlu1 %6347 }
0x127c   :  { %v8066_v44 = vmax.f32 %v7854_v56, 0.0  ;;  %8116 = vadd.xlane.f32.xlu0 %v8115_v18  ;;  %v8112_v1 = vsel %vm282_vm0, %v15893_v41, 0.0 }
0x127d   :  { %v15898_v11 = vadd.f32 %v8067_v6, %v17371_v32  ;;  %v6480_v6 = vpop.xlane.xlu0 %6479 }
0x127e   :  { %v9670_v14 = vpop.f32.mrb[78].mxu1  ;;  %v15901_v21 = vadd.f32 %v8066_v44, %v17366_v62 }
0x127f   :  { %v8069_v38 = vmax.f32 %v9670_v14, 0.0  ;;  %v7864_v57 = vpop.f32.mrb[79].mxu1  ;;  %v8121_v42 = vsel %vm282_vm0, %v15898_v11, 0.0  ;;  %v6474_v18 = vpop.xlane.xlu1 %6473 }
0x1280   :  { %8122 = vadd.xlane.f32.xlu1 %v8121_v42  ;;  %8113 = vadd.xlane.f32.xlu0 %v8112_v1  ;;  %v8068_v32 = vmax.f32 %v7864_v57, 0.0  ;;  %v8118_v62 = vsel %vm282_vm0, %v15901_v21, 0.0  ;;  %v6542_v44 = vmul.f32 0.03125, %v6474_v18 }
0x1281   :  { %v15908_v34 = vadd.f32 %v8069_v38, %v17379_v63  ;;  %v15950_v14 = vpop.xlane.xlu0 %6515 }
0x1282   :  { %v9673_v51 = vpop.f32.mrb[80].mxu1  ;;  %v15913_v50 = vadd.f32 %v8068_v32, %v17375_v16  ;;  %v15953_v42 = vsub.f32 %v15691_v25, %v6542_v44 }
0x1283   :  { %v7874_v61 = vpop.f32.mrb[81].mxu1  ;;  %v8071_v43 = vmax.f32 %v9673_v51, 0.0  ;;  %v8127_v24 = vsel %vm282_vm0, %v15908_v34, 0.0  ;;  %v6510_v57 = vpop.xlane.xlu1 %6509 }
0x1284   :  { %8119 = vadd.xlane.f32.xlu1 %v8118_v62  ;;  %v8070_v48 = vmax.f32 %v7874_v61, 0.0  ;;  %v8124_v33 = vsel %vm282_vm0, %v15913_v50, 0.0  ;;  %v6554_v1 = vmul.f32 0.03125, %v6510_v57  ;;  %v6541_v62 = vmul.f32 0.03125, %v6471_v13 }
0x1285   :  { %v15918_v63 = vadd.f32 %v8071_v43, %v17387_v30  ;;  %v15956_v43 = vpop.xlane.xlu0 %6482 }
0x1286   :  { %v9676_v17 = vpop.f32.mrb[82].mxu1  ;;  %v15923_v16 = vadd.f32 %v8070_v48, %v17383_v23  ;;  %v15965_v48 = vsub.f32 %v15709_v36, %v6554_v1 }
0x1287   :  { %v7884_v22 = vpop.f32.mrb[83].mxu1  ;;  %v8073_v59 = vmax.f32 %v9676_v17, 0.0  ;;  %v8133_v28 = vsel %vm282_vm0, %v15918_v63, 0.0 }
0x1288   :  { %8128 = vadd.xlane.f32.xlu1 %v8127_v24  ;;  %v8072_v30 = vmax.f32 %v7884_v22, 0.0  ;;  %v8130_v35 = vsel %vm282_vm0, %v15923_v16, 0.0 }
0x1289   :  { %v15928_v9 = vadd.f32 %v8073_v59, %v17394_v47  ;;  %v6553_v59 = vmul.f32 0.03125, %v6507_v52  ;;  %v6543_v52 = vmul.f32 0.03125, %v6477_v26  ;;  %v6555_v26 = vmul.f32 0.03125, %v6513_v10 }
0x128a   :  { %v9679_v12 = vpop.f32.mrb[84].mxu1  ;;  %v15933_v54 = vadd.f32 %v8072_v30, %v17391_v53  ;;  %v6519_v30 = vpop.xlane.xlu0 %6518  ;;  %v6544_v10 = vmul.f32 0.03125, %v6480_v6 }
0x128b   :  { %v7894_v40 = vpop.f32.mrb[85].mxu1  ;;  %v8075_v23 = vmax.f32 %v9679_v12, 0.0  ;;  %v8139_v19 = vsel %vm282_vm0, %v15928_v9, 0.0 }
0x128c   :  { %8125 = vadd.xlane.f32.xlu1 %v8124_v33  ;;  %v8074_v15 = vmax.f32 %v7894_v40, 0.0  ;;  %v8136_v47 = vsel %vm282_vm0, %v15933_v54, 0.0  ;;  %v17404_v33 = vld [vmem:[#allocation85_spill] sm:$0xff] }
0x128d   :  { %v15938_v27 = vadd.f32 %v8075_v23, %v17401_v37  ;;  %v6396_v37 = vmul.f32 %v6348_v60, %v17360_v4  ;;  %v15972_v13 = vsub.f32 %v17404_v33, %v6541_v62 }
0x128e   :  { %v15943_v29 = vadd.f32 %v8074_v15, %v17397_v8  ;;  %v6602_v15 = vmul.f32 %v15965_v48, %v15965_v48 }
0x128f   :  { %v8145_v53 = vsel %vm282_vm0, %v15938_v27, 0.0  ;;  %v6420_v38 = vmax.f32 %v6396_v37, 0.0 }
0x1290   :  { %8134 = vadd.xlane.f32.xlu1 %v8133_v28  ;;  %v8142_v56 = vsel %vm282_vm0, %v15943_v29, 0.0  ;;  %v6652_v57 = vsel %vm282_vm0, %v6602_v15, 0.0 }
0x1291   :  { %v6444_v61 = vadd.f32 %v6420_v38, %v17360_v4  ;;  %v6590_v4 = vmul.f32 %v15953_v42, %v15953_v42 }
0x1294   :  { %8131 = vadd.xlane.f32.xlu1 %v8130_v35 }
0x1298   :  { %8140 = vadd.xlane.f32.xlu1 %v8139_v19  ;;  %v6616_v19 = vsel %vm282_vm0, %v6590_v4, 0.0  ;;  %v17409_v4 = vld [vmem:[#allocation89_spill] sm:$0xff] }
0x1299   :  { %v16005_v33 = vsub.f32 %v17409_v4, %v6555_v26  ;;  %v17411_v26 = vld [vmem:[#allocation91_spill] sm:$0xff]  ;;  %v17412_v4 = vld [vmem:[#allocation92_spill] sm:$0xff] }
0x129c   :  { %8137 = vadd.xlane.f32.xlu1 %v8136_v47  ;;  %v17406_v47 = vld [vmem:[#allocation87_spill] sm:$0xff] }
0x12a0   :  { %8146 = vadd.xlane.f32.xlu1 %v8145_v53  ;;  %v15983_v53 = vsub.f32 %v17406_v47, %v6553_v59 }
0x12a4   :  { %8143 = vadd.xlane.f32.xlu1 %v8142_v56  ;;  %v6589_v56 = vmul.f32 %v15972_v13, %v15972_v13 }
0x12ac   :  { %v9686_v8 = vpop.f32.mrb[86].mxu0 }
0x12ad   :  { %v8077_v51 = vmax.f32 %v9686_v8, 0.0  ;;  %v8005_v32 = vpop.f32.mrb[87].mxu0  ;;  %v17407_v8 = vld [vmem:[#allocation88_spill] sm:$0xff] }
0x12ae   :  { %v8076_v17 = vmax.f32 %v8005_v32, 0.0  ;;  %v15994_v1 = vsub.f32 %v17407_v8, %v6543_v52  ;;  %v6601_v32 = vmul.f32 %v15983_v53, %v15983_v53 }
0x12af   :  { %v15959_v22 = vadd.f32 %v8077_v51, %v17368_v5  ;;  %v17405_v5 = vld [vmem:[#allocation82_spill] sm:$0xff]  ;;  %v6613_v51 = vsel %vm282_vm0, %v6589_v56, 0.0  ;;  %v6556_v56 = vmul.f32 0.03125, %v15950_v14 }
0x12b0   :  { %v15962_v24 = vadd.f32 %v8076_v17, %v17364_v55  ;;  %v9689_v12 = vpop.f32.mrb[88].mxu0  ;;  %v15977_v28 = vadd.f32 %v6444_v61, %v17405_v5  ;;  %v6486_v61 = vpop.xlane.xlu0 %6485  ;;  %v17408_v17 = vld [vmem:[#allocation41_spill] sm:$0xff]  ;;  %v6649_v59 = vsel %vm282_vm0, %v6601_v32, 0.0  ;;  %v6545_v32 = vmul.f32 0.03125, %v15956_v43 }
0x12b1   :  { %v8015_v25 = vpop.f32.mrb[89].mxu0  ;;  %v8151_v40 = vsel %vm282_vm0, %v15959_v22, 0.0  ;;  %v8079_v35 = vmax.f32 %v9689_v12, 0.0 }
0x12b2   :  { %8152 = vadd.xlane.f32.xlu1 %v8151_v40  ;;  %v8148_v55 = vsel %vm282_vm0, %v15962_v24, 0.0  ;;  %v6538_v60 = vsel %vm282_vm0, %v15977_v28, 0.0  ;;  %v8078_v44 = vmax.f32 %v8015_v25, 0.0 }
0x12b3   :  { %8149 = vadd.xlane.f32.xlu0 %v8148_v55  ;;  %v15990_v18 = vadd.f32 %v8079_v35, %v17373_v58  ;;  %v6591_v55 = vmul.f32 %v15994_v1, %v15994_v1 }
0x12b4   :  { %v9692_v36 = vpop.f32.mrb[90].mxu0  ;;  %v16000_v58 = vadd.f32 %v8078_v44, %v17408_v17 }
0x12b5   :  { %v8025_v23 = vpop.f32.mrb[91].mxu0  ;;  %v8081_v12 = vmax.f32 %v9692_v36, 0.0  ;;  %v8157_v40 = vsel %vm282_vm0, %v15990_v18, 0.0  ;;  %v6619_v44 = vsel %vm282_vm0, %v6591_v55, 0.0 }
0x12b6   :  { %6617 = vadd.xlane.f32.xlu1 %v6616_v19  ;;  %v6522_v19 = vpop.xlane.xlu0 %6521  ;;  %v8080_v36 = vmax.f32 %v8025_v23, 0.0  ;;  %v8154_v52 = vsel %vm282_vm0, %v16000_v58, 0.0 }
0x12b7   :  { %6539 = vadd.xlane.f32.xlu0 %v6538_v60  ;;  %v16011_v15 = vadd.f32 %v8081_v12, %v17381_v39  ;;  %v17410_v60 = vld [vmem:[#allocation90_spill] sm:$0xff] }
0x12b8   :  { %v9695_v37 = vpop.f32.mrb[92].mxu0  ;;  %v16018_v6 = vsub.f32 %v17410_v60, %v6544_v10  ;;  %v16025_v39 = vadd.f32 %v8080_v36, %v17377_v31  ;;  %v16042_v10 = vsub.f32 %v17412_v4, %v6545_v32  ;;  %v17413_v60 = vld [vmem:[#allocation93_spill] sm:$0xff]  ;;  %v6558_v32 = vmul.f32 0.03125, %v6522_v19 }
0x12b9   :  { %v8035_v38 = vpop.f32.mrb[93].mxu0  ;;  %v8083_v23 = vmax.f32 %v9695_v37, 0.0  ;;  %v8163_v8 = vsel %vm282_vm0, %v16011_v15, 0.0 }
0x12ba   :  { %6653 = vadd.xlane.f32.xlu1 %v6652_v57  ;;  %v6603_v57 = vmul.f32 %v16005_v33, %v16005_v33  ;;  %v6592_v17 = vmul.f32 %v16018_v6, %v16018_v6  ;;  %v6489_v12 = vpop.xlane.xlu0 %6488  ;;  %v8082_v37 = vmax.f32 %v8035_v38, 0.0 }
0x12bb   :  { %6614 = vadd.xlane.f32.xlu0 %v6613_v51  ;;  %v16030_v51 = vsub.f32 %v17411_v26, %v6556_v56  ;;  %v16037_v31 = vadd.f32 %v8083_v23, %v17389_v46 }
0x12bc   :  { %v9698_v62 = vpop.f32.mrb[94].mxu0  ;;  %v6655_v14 = vsel %vm282_vm0, %v6603_v57, 0.0  ;;  %v6622_v43 = vsel %vm282_vm0, %v6592_v17, 0.0  ;;  %v6593_v57 = vmul.f32 %v16042_v10, %v16042_v10 }
0x12bd   :  { %v8045_v25 = vpop.f32.mrb[95].mxu0  ;;  %v6604_v55 = vmul.f32 %v16030_v51, %v16030_v51  ;;  %v8085_v46 = vmax.f32 %v9698_v62, 0.0  ;;  %v8169_v38 = vsel %vm282_vm0, %v16037_v31, 0.0 }
0x12be   :  { %8158 = vadd.xlane.f32.xlu1 %v8157_v40  ;;  %v8160_v40 = vsel %vm282_vm0, %v16025_v39, 0.0  ;;  %v6525_v36 = vpop.xlane.xlu0 %6524 }
0x12bf   :  { %6650 = vadd.xlane.f32.xlu0 %v6649_v59  ;;  %v6557_v59 = vmul.f32 0.03125, %v6519_v30  ;;  %v6658_v30 = vsel %vm282_vm0, %v6604_v55, 0.0  ;;  %v16059_v23 = vadd.f32 %v8085_v46, %v17395_v45 }
0x12c0   :  { %v9701_v35 = vpop.f32.mrb[96].mxu0 }
0x12c1   :  { %v16013_v47 = vpop.f32.mrb[97].mxu0  ;;  %v16053_v56 = vsub.f32 %v17413_v60, %v6557_v59  ;;  %v8087_v45 = vmax.f32 %v9701_v35, 0.0  ;;  %v6547_v59 = vmul.f32 0.03125, %v6489_v12  ;;  %v6559_v12 = vmul.f32 0.03125, %v6525_v36 }
0x12c2   :  { %8155 = vadd.xlane.f32.xlu1 %v8154_v52  ;;  %v16048_v52 = vadd.f32 %v8082_v37, %v17385_v20  ;;  %v8084_v20 = vmax.f32 %v8045_v25, 0.0  ;;  %v6492_v17 = vpop.xlane.xlu0 %6491  ;;  %v8175_v25 = vsel %vm282_vm0, %v16059_v23, 0.0 }
0x12c3   :  { %6620 = vadd.xlane.f32.xlu0 %v6619_v44  ;;  %v6546_v44 = vmul.f32 0.03125, %v6486_v61  ;;  %v6625_v61 = vsel %vm282_vm0, %v6593_v57, 0.0  ;;  %v16081_v46 = vadd.f32 %v8087_v45, %v17405_v5 }
0x12c4   :  { %v8166_v62 = vsel %vm282_vm0, %v16048_v52, 0.0  ;;  %v16070_v37 = vadd.f32 %v8084_v20, %v17392_v2  ;;  %v8086_v2 = vmax.f32 %v16013_v47, 0.0  ;;  %v17417_v47 = vld [vmem:[#allocation30_spill] sm:$0xff] }
0x12c5   :  { %v8181_v5 = vsel %vm282_vm0, %v16081_v46, 0.0  ;;  %v16098_v20 = vsub.f32 %v17417_v47, %v6559_v12 }
0x12c6   :  { %8164 = vadd.xlane.f32.xlu1 %v8163_v8  ;;  %v17414_v8 = vld [vmem:[#allocation45_spill] sm:$0xff]  ;;  %v6528_v55 = vpop.xlane.xlu0 %6527  ;;  %v8172_v35 = vsel %vm282_vm0, %v16070_v37, 0.0  ;;  %v16093_v57 = vadd.f32 %v8086_v2, %v17399_v0  ;;  %v17419_v0 = vld [vmem:[#allocation58_spill] sm:$0xff] }
0x12c7   :  { %6656 = vadd.xlane.f32.xlu0 %v6655_v14  ;;  %v16064_v26 = vsub.f32 %v17414_v8, %v6546_v44  ;;  %v6605_v14 = vmul.f32 %v16053_v56, %v16053_v56  ;;  %17418 = vst [vmem:[#allocation69_spill] sm:$0xff] %v16098_v20  ;;  %v6560_v45 = vmul.f32 0.03125, %v6528_v55 }
0x12c9   :  { %v6661_v19 = vsel %vm282_vm0, %v6605_v14, 0.0 }
0x12ca   :  { %8161 = vadd.xlane.f32.xlu1 %v8160_v40  ;;  %v17415_v40 = vld [vmem:[#allocation28_spill] sm:$0xff] }
0x12cb   :  { %6623 = vadd.xlane.f32.xlu0 %v6622_v43  ;;  %v16075_v4 = vsub.f32 %v17415_v40, %v6558_v32  ;;  %v6594_v43 = vmul.f32 %v16064_v26, %v16064_v26  ;;  %v6495_v32 = vpop.xlane.xlu0 %6494 }
0x12cd   :  { %v6628_v44 = vsel %vm282_vm0, %v6594_v43, 0.0  ;;  %v6549_v43 = vmul.f32 0.03125, %v6495_v32 }
0x12ce   :  { %8170 = vadd.xlane.f32.xlu1 %v8169_v38  ;;  %v17416_v38 = vld [vmem:[#allocation32_spill] sm:$0xff] }
0x12cf   :  { %6659 = vadd.xlane.f32.xlu0 %v6658_v30  ;;  %v16087_v60 = vsub.f32 %v17416_v38, %v6547_v59  ;;  %v6606_v30 = vmul.f32 %v16075_v4, %v16075_v4  ;;  %v6531_v40 = vpop.xlane.xlu0 %6530  ;;  %v17420_v59 = vld [vmem:[#allocation61_spill] sm:$0xff]  ;;  %v16118_v55 = vsub.f32 %v15797_v7, %v6549_v43 }
0x12d0   :  { %v6561_v38 = vmul.f32 0.03125, %v6531_v40 }
0x12d1   :  { %v6664_v36 = vsel %vm282_vm0, %v6606_v30, 0.0  ;;  %v6595_v8 = vmul.f32 %v16087_v60, %v16087_v60 }
0x12d2   :  { %8167 = vadd.xlane.f32.xlu1 %v8166_v62  ;;  %v6548_v62 = vmul.f32 0.03125, %v6492_v17  ;;  %v6607_v17 = vmul.f32 %v16098_v20, %v16098_v20 }
0x12d3   :  { %6626 = vadd.xlane.f32.xlu0 %v6625_v61  ;;  %v8178_v61 = vsel %vm282_vm0, %v16093_v57, 0.0  ;;  %v6498_v30 = vpop.xlane.xlu0 %6497 }
0x12d4   :  { %v16106_v14 = vsub.f32 %v17419_v0, %v6548_v62  ;;  %v6667_v2 = vsel %vm282_vm0, %v6607_v17, 0.0  ;;  %v6550_v62 = vmul.f32 0.03125, %v6498_v30 }
0x12d6   :  { %8176 = vadd.xlane.f32.xlu1 %v8175_v25  ;;  %v6631_v25 = vsel %vm282_vm0, %v6595_v8, 0.0  ;;  %v6597_v8 = vmul.f32 %v16118_v55, %v16118_v55  ;;  %v16130_v7 = vsub.f32 %v15811_v49, %v6550_v62 }
0x12d7   :  { %6662 = vadd.xlane.f32.xlu0 %v6661_v19  ;;  %v16112_v19 = vsub.f32 %v17420_v59, %v6560_v45  ;;  %v16135_v0 = vpop.xlane.xlu0 %6533 }
0x12d8   :  { %v6637_v32 = vsel %vm282_vm0, %v6597_v8, 0.0 }
0x12d9   :  { %17421 = vst [vmem:[#allocation47_spill] sm:$0xff] %v16112_v19 }
0x12da   :  { %8173 = vadd.xlane.f32.xlu1 %v8172_v35  ;;  %v6596_v35 = vmul.f32 %v16106_v14, %v16106_v14 }
0x12db   :  { %6629 = vadd.xlane.f32.xlu0 %v6628_v44  ;;  %v6608_v44 = vmul.f32 %v16112_v19, %v16112_v19  ;;  %v16140_v17 = vpop.xlane.xlu0 %6500 }
0x12dc   :  { %v6634_v12 = vsel %vm282_vm0, %v6596_v35, 0.0 }
0x12de   :  { %8182 = vadd.xlane.f32.xlu1 %v8181_v5  ;;  %v17422_v5 = vld [vmem:[#allocation64_spill] sm:$0xff] }
0x12df   :  { %6665 = vadd.xlane.f32.xlu0 %v6664_v36  ;;  %v16124_v47 = vsub.f32 %v17422_v5, %v6561_v38  ;;  %v6670_v36 = vsel %vm282_vm0, %v6608_v44, 0.0  ;;  %v16143_v49 = vpop.xlane.xlu0 %6536 }
0x12e1   :  { %17423 = vst [vmem:[#allocation40_spill] sm:$0xff] %v16124_v47 }
0x12e2   :  { %8179 = vadd.xlane.f32.xlu1 %v8178_v61  ;;  %v6609_v61 = vmul.f32 %v16124_v47, %v16124_v47 }
0x12e3   :  { %6632 = vadd.xlane.f32.xlu0 %v6631_v25  ;;  %v6598_v25 = vmul.f32 %v16130_v7, %v16130_v7  ;;  %v16145_v59 = vpop.xlane.xlu0 %6503 }
0x12e4   :  { %v6673_v45 = vsel %vm282_vm0, %v6609_v61, 0.0 }
0x12e5   :  { %v6640_v40 = vsel %vm282_vm0, %v6598_v25, 0.0 }
0x12e7   :  { %6668 = vadd.xlane.f32.xlu0 %v6667_v2 }
0x12eb   :  { %6635 = vadd.xlane.f32.xlu0 %v6634_v12 }
0x12ef   :  { %6671 = vadd.xlane.f32.xlu0 %v6670_v36 }
0x12f3   :  { %6638 = vadd.xlane.f32.xlu0 %v6637_v32 }
0x12f7   :  { %6674 = vadd.xlane.f32.xlu0 %v6673_v45 }
0x12fb   :  { %6641 = vadd.xlane.f32.xlu0 %v6640_v40 }
0x1309   :  { %v8117_v43 = vpop.xlane.xlu0 %8116 }
0x130a   :  { %v8185_v2 = vmul.f32 0.03125, %v8117_v43 }
0x130c   :  { %v16148_v35 = vsub.f32 %v15890_v3, %v8185_v2 }
0x130d   :  { %v8114_v38 = vpop.xlane.xlu0 %8113  ;;  %v8123_v12 = vpop.xlane.xlu1 %8122 }
0x130e   :  { %v8184_v44 = vmul.f32 0.03125, %v8114_v38  ;;  %v8187_v30 = vmul.f32 0.03125, %v8123_v12  ;;  %v8233_v5 = vmul.f32 %v16148_v35, %v16148_v35 }
0x1310   :  { %v16153_v62 = vsub.f32 %v15893_v41, %v8184_v44  ;;  %v16156_v36 = vsub.f32 %v15898_v11, %v8187_v30  ;;  %v8259_v8 = vsel %vm282_vm0, %v8233_v5, 0.0 }
0x1311   :  { %8260 = vadd.xlane.f32.xlu1 %v8259_v8  ;;  %v8120_v32 = vpop.xlane.xlu1 %8119 }
0x1312   :  { %v8186_v61 = vmul.f32 0.03125, %v8120_v32  ;;  %v8232_v3 = vmul.f32 %v16153_v62, %v16153_v62  ;;  %v8235_v45 = vmul.f32 %v16156_v36, %v16156_v36 }
0x1314   :  { %v16164_v25 = vsub.f32 %v15901_v21, %v8186_v61  ;;  %v8256_v41 = vsel %vm282_vm0, %v8232_v3, 0.0  ;;  %v8265_v40 = vsel %vm282_vm0, %v8235_v45, 0.0 }
0x1315   :  { %8257 = vadd.xlane.f32.xlu0 %v8256_v41  ;;  %8266 = vadd.xlane.f32.xlu1 %v8265_v40  ;;  %v8129_v11 = vpop.xlane.xlu1 %8128 }
0x1316   :  { %v8189_v43 = vmul.f32 0.03125, %v8129_v11  ;;  %v8234_v2 = vmul.f32 %v16164_v25, %v16164_v25 }
0x1318   :  { %v16171_v38 = vsub.f32 %v15908_v34, %v8189_v43  ;;  %v8262_v12 = vsel %vm282_vm0, %v8234_v2, 0.0 }
0x1319   :  { %8263 = vadd.xlane.f32.xlu1 %v8262_v12  ;;  %v8126_v44 = vpop.xlane.xlu1 %8125 }
0x131a   :  { %v8188_v21 = vmul.f32 0.03125, %v8126_v44  ;;  %v8237_v30 = vmul.f32 %v16171_v38, %v16171_v38 }
0x131c   :  { %v16177_v5 = vsub.f32 %v15913_v50, %v8188_v21  ;;  %v8271_v8 = vsel %vm282_vm0, %v8237_v30, 0.0 }
0x131d   :  { %8272 = vadd.xlane.f32.xlu1 %v8271_v8  ;;  %v8135_v32 = vpop.xlane.xlu1 %8134 }
0x131e   :  { %v8191_v61 = vmul.f32 0.03125, %v8135_v32  ;;  %v8236_v34 = vmul.f32 %v16177_v5, %v16177_v5 }
0x1320   :  { %v16183_v3 = vsub.f32 %v15918_v63, %v8191_v61  ;;  %v8268_v45 = vsel %vm282_vm0, %v8236_v34, 0.0 }
0x1321   :  { %8269 = vadd.xlane.f32.xlu1 %v8268_v45  ;;  %v8132_v41 = vpop.xlane.xlu1 %8131 }
0x1322   :  { %v8190_v40 = vmul.f32 0.03125, %v8132_v41  ;;  %v8239_v50 = vmul.f32 %v16183_v3, %v16183_v3 }
0x1324   :  { %v16189_v11 = vsub.f32 %v15923_v16, %v8190_v40  ;;  %v8277_v43 = vsel %vm282_vm0, %v8239_v50, 0.0  ;;  %v6562_v50 = vmul.f32 0.03125, %v16135_v0 }
0x1325   :  { %8278 = vadd.xlane.f32.xlu1 %v8277_v43  ;;  %v8141_v2 = vpop.xlane.xlu1 %8140 }
0x1326   :  { %v8193_v12 = vmul.f32 0.03125, %v8141_v2  ;;  %v8238_v63 = vmul.f32 %v16189_v11, %v16189_v11 }
0x1328   :  { %v16195_v44 = vsub.f32 %v15928_v9, %v8193_v12  ;;  %v8274_v21 = vsel %vm282_vm0, %v8238_v63, 0.0 }
0x1329   :  { %8275 = vadd.xlane.f32.xlu1 %v8274_v21  ;;  %v8138_v30 = vpop.xlane.xlu1 %8137 }
0x132a   :  { %17424 = vst [vmem:[#allocation38_spill] sm:$0xff] %v16195_v44  ;;  %v8192_v8 = vmul.f32 0.03125, %v8138_v30  ;;  %v8241_v16 = vmul.f32 %v16195_v44, %v16195_v44 }
0x132c   :  { %v16201_v32 = vsub.f32 %v15933_v54, %v8192_v8  ;;  %v8283_v61 = vsel %vm282_vm0, %v8241_v16, 0.0  ;;  %v17426_v8 = vld [vmem:[#allocation63_spill] sm:$0xff] }
0x132d   :  { %8284 = vadd.xlane.f32.xlu1 %v8283_v61  ;;  %v8147_v45 = vpop.xlane.xlu1 %8146  ;;  %v16215_v16 = vsub.f32 %v17426_v8, %v6562_v50  ;;  %v6551_v61 = vmul.f32 0.03125, %v16140_v17  ;;  %v6563_v50 = vmul.f32 0.03125, %v16143_v49  ;;  %v17432_v8 = vld [vmem:[#allocation42_spill] sm:$0xff]  ;;  %v6552_v49 = vmul.f32 0.03125, %v16145_v59 }
0x132e   :  { %v8240_v34 = vmul.f32 %v16201_v32, %v16201_v32  ;;  %v8195_v54 = vmul.f32 0.03125, %v8147_v45 }
0x132f   :  { %17427 = vst [vmem:[#allocation51_spill] sm:$0xff] %v16215_v16 }
0x1330   :  { %v8280_v9 = vsel %vm282_vm0, %v8240_v34, 0.0 }
0x1331   :  { %8281 = vadd.xlane.f32.xlu1 %v8280_v9  ;;  %v8144_v41 = vpop.xlane.xlu1 %8143 }
0x1332   :  { %v8194_v40 = vmul.f32 0.03125, %v8144_v41 }
0x1334   :  { %v16209_v21 = vsub.f32 %v15943_v29, %v8194_v40  ;;  %v17430_v40 = vld [vmem:[#allocation65_spill] sm:$0xff] }
0x1336   :  { %17425 = vst [vmem:[#allocation54_spill] sm:$0xff] %v16209_v21  ;;  %v8242_v17 = vmul.f32 %v16209_v21, %v16209_v21 }
0x133f   :  { %v8153_v43 = vpop.xlane.xlu1 %8152 }
0x1340   :  { %v8197_v2 = vmul.f32 0.03125, %v8153_v43  ;;  %v8150_v12 = vpop.xlane.xlu0 %8149 }
0x1341   :  { %v8196_v63 = vmul.f32 0.03125, %v8150_v12  ;;  %v6610_v12 = vmul.f32 %v16215_v16, %v16215_v16 }
0x1342   :  { %v16212_v30 = vsub.f32 %v15959_v22, %v8197_v2  ;;  %v16228_v22 = vsub.f32 %v15938_v27, %v8195_v54 }
0x1343   :  { %v16219_v34 = vsub.f32 %v15962_v24, %v8196_v63  ;;  %v16221_v0 = vpop.xlane.xlu1 %6617  ;;  %v16234_v24 = vsub.f32 %v17430_v40, %v6551_v61  ;;  %v8286_v63 = vsel %vm282_vm0, %v8242_v17, 0.0  ;;  %v16248_v61 = vsub.f32 %v17432_v8, %v6563_v50  ;;  %v17435_v50 = vld [vmem:[#allocation67_spill] sm:$0xff] }
0x1344   :  { %v6540_v9 = vpop.xlane.xlu0 %6539  ;;  %v8245_v45 = vmul.f32 %v16212_v30, %v16212_v30  ;;  %17429 = vst [vmem:[#allocation68_spill] sm:$0xff] %v16228_v22  ;;  %v8243_v54 = vmul.f32 %v16228_v22, %v16228_v22  ;;  %v16261_v8 = vsub.f32 %v17435_v50, %v6552_v49 }
0x1345   :  { %17428 = vst [vmem:[#allocation70_spill] sm:$0xff] %v16219_v34  ;;  %v8244_v29 = vmul.f32 %v16219_v34, %v16219_v34  ;;  %17431 = vst [vmem:[#allocation46_spill] sm:$0xff] %v16234_v24  ;;  %v6564_v59 = vmul.f32 0.03125, %v6540_v9  ;;  %v6611_v47 = vmul.f32 %v16248_v61, %v16248_v61 }
0x1346   :  { %v8295_v41 = vsel %vm282_vm0, %v8245_v45, 0.0  ;;  %17433 = vst [vmem:[#allocation50_spill] sm:$0xff] %v16248_v61  ;;  %v8289_v16 = vsel %vm282_vm0, %v8243_v54, 0.0  ;;  %17436 = vst [vmem:[#allocation60_spill] sm:$0xff] %v16261_v8 }
0x1347   :  { %8296 = vadd.xlane.f32.xlu1 %v8295_v41  ;;  %v16237_v43 = vpop.xlane.xlu1 %6653  ;;  %v8292_v2 = vsel %vm282_vm0, %v8244_v29, 0.0  ;;  %v6676_v29 = vsel %vm282_vm0, %v6610_v12, 0.0  ;;  %v6599_v41 = vmul.f32 %v16234_v24, %v16234_v24 }
0x1348   :  { %8293 = vadd.xlane.f32.xlu0 %v8292_v2  ;;  %v16242_v27 = vpop.xlane.xlu0 %6614 }
0x1349   :  { %v6643_v12 = vsel %vm282_vm0, %v6599_v41, 0.0  ;;  %v6679_v41 = vsel %vm282_vm0, %v6611_v47, 0.0 }
0x134b   :  { %8287 = vadd.xlane.f32.xlu1 %v8286_v63  ;;  %v8159_v45 = vpop.xlane.xlu1 %8158 }
0x134c   :  { %v8199_v40 = vmul.f32 0.03125, %v8159_v45  ;;  %6677 = vadd.xlane.f32.xlu0 %v6676_v29  ;;  %v16254_v2 = vpop.xlane.xlu0 %6650 }
0x134e   :  { %v16257_v17 = vsub.f32 %v15990_v18, %v8199_v40  ;;  %v6600_v40 = vmul.f32 %v16261_v8, %v16261_v8 }
0x134f   :  { %8290 = vadd.xlane.f32.xlu1 %v8289_v16  ;;  %v8156_v63 = vpop.xlane.xlu1 %8155  ;;  %v16275_v16 = vsub.f32 %v15977_v28, %v6564_v59 }
0x1350   :  { %17434 = vst [vmem:[#allocation52_spill] sm:$0xff] %v16257_v17  ;;  %v8198_v45 = vmul.f32 0.03125, %v8156_v63  ;;  %6644 = vadd.xlane.f32.xlu0 %v6643_v12  ;;  %v16266_v29 = vpop.xlane.xlu0 %6620  ;;  %v8247_v18 = vmul.f32 %v16257_v17, %v16257_v17 }
0x1351   :  { %17438 = vst [vmem:[#allocation44_spill] sm:$0xff] %v16275_v16  ;;  %v6612_v47 = vmul.f32 %v16275_v16, %v16275_v16 }
0x1352   :  { %v16271_v54 = vsub.f32 %v16000_v58, %v8198_v45  ;;  %v8301_v49 = vsel %vm282_vm0, %v8247_v18, 0.0  ;;  %v6646_v45 = vsel %vm282_vm0, %v6600_v40, 0.0 }
0x1353   :  { %8302 = vadd.xlane.f32.xlu1 %v8301_v49  ;;  %v8165_v9 = vpop.xlane.xlu1 %8164 }
0x1354   :  { %17437 = vst [vmem:[#allocation71_spill] sm:$0xff] %v16271_v54  ;;  %v8201_v50 = vmul.f32 0.03125, %v8165_v9  ;;  %6680 = vadd.xlane.f32.xlu0 %v6679_v41  ;;  %v16280_v63 = vpop.xlane.xlu0 %6656  ;;  %v8246_v58 = vmul.f32 %v16271_v54, %v16271_v54  ;;  %v240_v54 = vld [vmem:[#allocation16 + $0x18] sm:$0xff] }
0x1356   :  { %v16285_v12 = vsub.f32 %v16011_v15, %v8201_v50  ;;  %v8298_v28 = vsel %vm282_vm0, %v8246_v58, 0.0  ;;  %v6682_v58 = vsel %vm282_vm0, %v6612_v47, 0.0 }
0x1357   :  { %8299 = vadd.xlane.f32.xlu1 %v8298_v28  ;;  %v8162_v59 = vpop.xlane.xlu1 %8161 }
0x1358   :  { %17439 = vst [vmem:[#allocation66_spill] sm:$0xff] %v16285_v12  ;;  %v8200_v18 = vmul.f32 0.03125, %v8162_v59  ;;  %6647 = vadd.xlane.f32.xlu0 %v6646_v45  ;;  %v16291_v49 = vpop.xlane.xlu0 %6623  ;;  %v8249_v9 = vmul.f32 %v16285_v12, %v16285_v12 }
0x135a   :  { %v16296_v41 = vsub.f32 %v16025_v39, %v8200_v18  ;;  %v8307_v15 = vsel %vm282_vm0, %v8249_v9, 0.0 }
0x135b   :  { %8308 = vadd.xlane.f32.xlu1 %v8307_v15  ;;  %v8171_v50 = vpop.xlane.xlu1 %8170 }
0x135c   :  { %17440 = vst [vmem:[#allocation48_spill] sm:$0xff] %v16296_v41  ;;  %v8203_v40 = vmul.f32 0.03125, %v8171_v50  ;;  %6683 = vadd.xlane.f32.xlu0 %v6682_v58  ;;  %v8248_v28 = vmul.f32 %v16296_v41, %v16296_v41  ;;  %v16302_v59 = vpop.xlane.xlu0 %6659 }
0x135d   :  { %v6700_v34 = vmul.f32 0.03125, %v16302_v59 }
0x135e   :  { %v16305_v45 = vsub.f32 %v16037_v31, %v8203_v40  ;;  %v8304_v16 = vsel %vm282_vm0, %v8248_v28, 0.0 }
0x135f   :  { %8305 = vadd.xlane.f32.xlu1 %v8304_v16  ;;  %v8168_v39 = vpop.xlane.xlu1 %8167 }
0x1360   :  { %17441 = vst [vmem:[#allocation84_spill] sm:$0xff] %v16305_v45  ;;  %v8202_v18 = vmul.f32 0.03125, %v8168_v39  ;;  %v8251_v9 = vmul.f32 %v16305_v45, %v16305_v45  ;;  %v16314_v50 = vpop.xlane.xlu0 %6626 }
0x1362   :  { %v16311_v47 = vsub.f32 %v16048_v52, %v8202_v18  ;;  %v8313_v15 = vsel %vm282_vm0, %v8251_v9, 0.0 }
0x1363   :  { %8314 = vadd.xlane.f32.xlu1 %v8313_v15  ;;  %v8177_v58 = vpop.xlane.xlu1 %8176 }
0x1364   :  { %17442 = vst [vmem:[#allocation86_spill] sm:$0xff] %v16311_v47  ;;  %v8205_v61 = vmul.f32 0.03125, %v8177_v58  ;;  %v8250_v31 = vmul.f32 %v16311_v47, %v16311_v47  ;;  %v16324_v18 = vpop.xlane.xlu0 %6662  ;;  %v238_v47 = vld [vmem:[#allocation16 + $0x8] sm:$0xff] }
0x1365   :  { %v6701_v59 = vmul.f32 0.03125, %v16324_v18 }
0x1366   :  { %v16319_v16 = vsub.f32 %v16059_v23, %v8205_v61  ;;  %v8310_v40 = vsel %vm282_vm0, %v8250_v31, 0.0 }
0x1367   :  { %8311 = vadd.xlane.f32.xlu1 %v8310_v40  ;;  %v8174_v28 = vpop.xlane.xlu1 %8173 }
0x1368   :  { %17443 = vst [vmem:[#allocation37_spill] sm:$0xff] %v16319_v16  ;;  %v8204_v39 = vmul.f32 0.03125, %v8174_v28  ;;  %v8253_v52 = vmul.f32 %v16319_v16, %v16319_v16  ;;  %v16333_v40 = vpop.xlane.xlu0 %6629 }
0x136a   :  { %v16327_v9 = vsub.f32 %v16070_v37, %v8204_v39  ;;  %v8319_v15 = vsel %vm282_vm0, %v8253_v52, 0.0 }
0x136b   :  { %8320 = vadd.xlane.f32.xlu1 %v8319_v15  ;;  %v8183_v58 = vpop.xlane.xlu1 %8182 }
0x136c   :  { %17444 = vst [vmem:[#allocation80_spill] sm:$0xff] %v16327_v9  ;;  %v8252_v23 = vmul.f32 %v16327_v9, %v16327_v9  ;;  %v8207_v61 = vmul.f32 0.03125, %v8183_v58  ;;  %v16343_v52 = vpop.xlane.xlu0 %6665 }
0x136e   :  { %v8316_v31 = vsel %vm282_vm0, %v8252_v23, 0.0  ;;  %v16336_v19 = vsub.f32 %v16081_v46, %v8207_v61 }
0x136f   :  { %8317 = vadd.xlane.f32.xlu1 %v8316_v31  ;;  %v8180_v28 = vpop.xlane.xlu1 %8179 }
0x1370   :  { %v8206_v16 = vmul.f32 0.03125, %v8180_v28  ;;  %17445 = vst [vmem:[#allocation81_spill] sm:$0xff] %v16336_v19  ;;  %v8255_v58 = vmul.f32 %v16336_v19, %v16336_v19  ;;  %v16349_v31 = vpop.xlane.xlu0 %6632  ;;  %v6686_v28 = vmul.f32 0.03125, %v16221_v0  ;;  %v234_v19 = vld [vmem:[%s16664_s15 + $0x10] sm:$0xff]  ;;  %v235_v0 = vld [vmem:[%s16664_s15 + $0x18] sm:$0xff] }
0x1371   :  { %v9896_v45 = vpack.c.bf16 %v235_v0, %v234_v19 }
0x1372   :  { %v16339_v37 = vsub.f32 %v16093_v57, %v8206_v16  ;;  %v8325_v23 = vsel %vm282_vm0, %v8255_v58, 0.0  ;;  %v232_v58 = vld [vmem:[%s16664_s15] sm:$0xff] }
0x1374   :  { %17446 = vst [vmem:[#allocation29_spill] sm:$0xff] %v16339_v37  ;;  %v8254_v39 = vmul.f32 %v16339_v37, %v16339_v37  ;;  %v16351_v46 = vpop.xlane.xlu0 %6668  ;;  %v6710_v37 = vadd.f32 1e-05, %v6686_v28  ;;  %v237_v28 = vld [vmem:[#allocation16] sm:$0xff] }
0x1375   :  { %v9900_v20 = vpack.c.bf16 %v238_v47, %v237_v28 }
0x1376   :  { %v8322_v15 = vsel %vm282_vm0, %v8254_v39, 0.0  ;;  %10344 = vrsqrt.f32 %v6710_v37 }
0x1377   :  { %8323 = vadd.xlane.f32.xlu1 %v8322_v15  ;;  %v6685_v15 = vmul.f32 0.03125, %v16242_v27  ;;  %9901 = vmatprep.subr.bf16.mxu0 %v9900_v20 }
0x1378   :  { %v16353_v57 = vpop.xlane.xlu0 %6635  ;;  %9903 = vmatpush3.bf16.msra.mxu0 %v9900_v20  ;;  %v10462_v20 = vld [vmem:[%s16658_s9] sm:$0x3] }
0x1379   :  { %v6709_v27 = vadd.f32 1e-05, %v6685_v15 }
0x137b   :  { %8326 = vadd.xlane.f32.xlu1 %v8325_v23  ;;  %v233_v23 = vld [vmem:[%s16664_s15 + $0x8] sm:$0xff]  ;;  %10346 = vrsqrt.f32 %v6709_v27 }
0x137c   :  { %v16355_v16 = vpop.xlane.xlu0 %6671  ;;  %v9892_v9 = vpack.c.bf16 %v233_v23, %v232_v58  ;;  %v239_v23 = vld [vmem:[#allocation16 + $0x10] sm:$0xff] }
0x137d   :  { %v9904_v17 = vpack.c.bf16 %v240_v54, %v239_v23 }
0x137e   :  { %9893 = vmatprep.subr.bf16.mxu1 %v9892_v9 }
0x137f   :  { %9895 = vmatpush3.bf16.msra.mxu1 %v9892_v9  ;;  %9905 = vmatprep.subr.bf16.mxu0 %v9904_v17 }
0x1380   :  { %v16357_v61 = vpop.xlane.xlu0 %6638  ;;  %9897 = vmatprep.subr.bf16.mxu1 %v9896_v45  ;;  %9907 = vmatpush3.bf16.msra.mxu0 %v9904_v17  ;;  %v10345_v15 = vpop.eup %10344 }
0x1381   :  { %v6758_v9 = vmul.f32 %v10345_v15, %v15953_v42  ;;  %v16397_v42 = vld [vmem:[%s16662_s13] ss:$0 sm:$0xff] }
0x1383   :  { %9899 = vmatpush3.bf16.msra.mxu1 %v9896_v45 }
0x1384   :  { %v16360_v39 = vpop.xlane.xlu0 %6674 }
0x1385   :  { %17447 = vst [vmem:[#allocation27_spill] sm:$0xff] %v16360_v39  ;;  %v10347_v54 = vpop.eup %10346 }
0x1386   :  { %v6757_v27 = vmul.f32 %v10347_v54, %v15972_v13 }
0x1388   :  { %v16375_v41 = vpop.xlane.xlu0 %6641 }
0x139e   :  { %v8261_v12 = vpop.xlane.xlu1 %8260 }
0x139f   :  { %v8329_v8 = vmul.f32 0.03125, %v8261_v12  ;;  %v17448_v12 = vld [vmem:[#allocation49_spill] sm:$0xff] }
0x13a1   :  { %v8353_v58 = vadd.f32 1e-05, %v8329_v8  ;;  %v16381_v8 = vrot.slane %v10462_v20, %v17448_v12  ;;  %v6697_v20 = vmul.f32 0.03125, %v16254_v2 }
0x13a2   :  { %v8258_v22 = vpop.xlane.xlu0 %8257  ;;  %v8267_v39 = vpop.xlane.xlu1 %8266 }
0x13a3   :  { %10348 = vrsqrt.f32 %v8353_v58  ;;  %v8328_v37 = vmul.f32 0.03125, %v8258_v22  ;;  %v10463_v22 = vld [vmem:[%s16659_s10] sm:$0x3]  ;;  %v6786_v45 = vmul.f32 %v16381_v8, %v6758_v9  ;;  %v6785_v13 = vmul.f32 %v16381_v8, %v6757_v27 }
0x13a4   :  { %v16388_v17 = vrot.slane %v10463_v22, %v17448_v12  ;;  %v6687_v12 = vmul.f32 0.03125, %v16266_v29  ;;  %v6721_v29 = vadd.f32 1e-05, %v6697_v20  ;;  %v6724_v20 = vadd.f32 1e-05, %v6700_v34 }
0x13a5   :  { %v8352_v19 = vadd.f32 1e-05, %v8328_v37  ;;  %v6698_v37 = vmul.f32 0.03125, %v16237_v43 }
0x13a6   :  { %v8264_v47 = vpop.xlane.xlu1 %8263  ;;  %v6814_v9 = vadd.f32 %v16388_v17, %v6786_v45  ;;  %v6813_v27 = vadd.f32 %v16388_v17, %v6785_v13  ;;  %v6711_v44 = vadd.f32 1e-05, %v6687_v12 }
0x13a7   :  { %10350 = vrsqrt.f32 %v8352_v19  ;;  %v6722_v22 = vadd.f32 1e-05, %v6698_v37  ;;  %v8330_v45 = vmul.f32 0.03125, %v8264_v47 }
0x13a9   :  { %10352 = vrsqrt.f32 %v6722_v22 }
0x13aa   :  { %v8273_v0 = vpop.xlane.xlu1 %8272  ;;  %10354 = vrsqrt.f32 %v6721_v29  ;;  %v6691_v29 = vmul.f32 0.03125, %v16349_v31 }
0x13ab   :  { %10356 = vrsqrt.f32 %v6711_v44  ;;  %v8333_v44 = vmul.f32 0.03125, %v8273_v0 }
0x13ad   :  { %v10349_v28 = vpop.eup %10348 }
0x13ae   :  { %v8401_v58 = vmul.f32 %v10349_v28, %v16148_v35  ;;  %v8270_v23 = vpop.xlane.xlu1 %8269  ;;  %v16404_v35 = vld [vmem:[#allocation14] ss:$0 sm:$0xff]  ;;  %v6699_v28 = vmul.f32 0.03125, %v16280_v63  ;;  %v6689_v63 = vmul.f32 0.03125, %v16314_v50 }
0x13b0   :  { %v8425_v19 = vmul.f32 %v16397_v42, %v8401_v58  ;;  %v6688_v58 = vmul.f32 0.03125, %v16291_v49  ;;  %v6713_v12 = vadd.f32 1e-05, %v6689_v63 }
0x13b1   :  { %v10351_v15 = vpop.eup %10350 }
0x13b2   :  { %v8449_v43 = vadd.f32 %v16404_v35, %v8425_v19  ;;  %v8400_v54 = vmul.f32 %v10351_v15, %v16153_v62  ;;  %v16411_v21 = vpop.xlane.xlu1 %8278  ;;  %v6723_v62 = vadd.f32 1e-05, %v6699_v28  ;;  %v6712_v37 = vadd.f32 1e-05, %v6688_v58 }
0x13b3   :  { %v6690_v28 = vmul.f32 0.03125, %v16333_v40  ;;  %v10353_v40 = vpop.eup %10352 }
0x13b4   :  { %v8473_v24 = vadd.f32 %v8449_v43, %v6814_v9  ;;  %v8424_v2 = vmul.f32 %v16397_v42, %v8400_v54  ;;  %v8331_v9 = vmul.f32 0.03125, %v8267_v39  ;;  %v8354_v43 = vadd.f32 1e-05, %v8330_v45 }
0x13b5   :  { %v8332_v54 = vmul.f32 0.03125, %v8270_v23  ;;  %10358 = vrsqrt.f32 %v6723_v62  ;;  %v6725_v23 = vadd.f32 1e-05, %v6701_v59  ;;  %v6714_v58 = vadd.f32 1e-05, %v6690_v28 }
0x13b6   :  { %v8448_v19 = vadd.f32 %v16404_v35, %v8424_v2  ;;  %v8497_v49 = vmul.f32 0.5, %v8473_v24  ;;  %v8276_v13 = vpop.xlane.xlu1 %8275  ;;  %10360 = vrsqrt.f32 %v6712_v37  ;;  %v8355_v39 = vadd.f32 1e-05, %v8331_v9 }
0x13b7   :  { %10362 = vrsqrt.f32 %v8354_v43  ;;  %v8356_v34 = vadd.f32 1e-05, %v8332_v54  ;;  %v6702_v2 = vmul.f32 0.03125, %v16343_v52  ;;  %v6692_v45 = vmul.f32 0.03125, %v16353_v57 }
0x13b8   :  { %v8472_v15 = vadd.f32 %v8448_v19, %v6813_v27  ;;  %v8521_v50 = vsel %vm282_vm0, %v8497_v49, 0.0  ;;  %10364 = vrsqrt.f32 %v6724_v20  ;;  %v8357_v27 = vadd.f32 1e-05, %v8333_v44  ;;  %v10355_v19 = vpop.eup %10354 }
0x13b9   :  { %10366 = vrsqrt.f32 %v6713_v12  ;;  %v8334_v62 = vmul.f32 0.03125, %v8276_v13  ;;  %v10357_v63 = vpop.eup %10356  ;;  %v6726_v0 = vadd.f32 1e-05, %v6702_v2  ;;  %v6693_v37 = vmul.f32 0.03125, %v16357_v61 }
0x13ba   :  { %v8496_v47 = vmul.f32 0.5, %v8472_v15  ;;  %v8285_v18 = vpop.xlane.xlu1 %8284  ;;  %10368 = vrsqrt.f32 %v8355_v39  ;;  %v6770_v52 = vmul.f32 %v10353_v40, %v15965_v48  ;;  %v6715_v15 = vadd.f32 1e-05, %v6691_v29 }
0x13bb   :  { %10370 = vrsqrt.f32 %v8356_v34  ;;  %v6716_v31 = vadd.f32 1e-05, %v6692_v45  ;;  %v6694_v57 = vmul.f32 0.03125, %v16375_v41  ;;  %v6717_v13 = vadd.f32 1e-05, %v6693_v37 }
0x13bc   :  { %v8520_v24 = vsel %vm282_vm0, %v8496_v47, 0.0  ;;  %10372 = vrsqrt.f32 %v6725_v23  ;;  %v8358_v47 = vadd.f32 1e-05, %v8334_v62  ;;  %v8335_v12 = vmul.f32 0.03125, %v16411_v21 }
0x13bd   :  { %v16421_v22 = vadd.f32 %v8521_v50, %v8520_v24  ;;  %10374 = vrsqrt.f32 %v6714_v58  ;;  %v6798_v61 = vmul.f32 %v16381_v8, %v6770_v52  ;;  %v6769_v28 = vmul.f32 %v10355_v19, %v15983_v53 }
0x13be   :  { %10376 = vrsqrt.f32 %v8357_v27  ;;  %v8282_v43 = vpop.xlane.xlu1 %8281  ;;  %v6759_v50 = vmul.f32 %v10357_v63, %v15994_v1  ;;  %v6718_v34 = vadd.f32 1e-05, %v6694_v57  ;;  %v8359_v53 = vadd.f32 1e-05, %v8335_v12 }
0x13bf   :  { %v10359_v49 = vpop.eup %10358  ;;  %10378 = vrsqrt.f32 %v6726_v0  ;;  %v8336_v48 = vmul.f32 0.03125, %v8282_v43  ;;  %v16439_v1 = vadd.f32 %v16388_v17, %v6798_v61  ;;  %v8337_v62 = vmul.f32 0.03125, %v8285_v18 }
0x13c0   :  { %v10361_v9 = vpop.eup %10360  ;;  %10380 = vrsqrt.f32 %v6715_v15  ;;  %v6771_v24 = vmul.f32 %v10359_v49, %v16005_v33  ;;  %v6797_v33 = vmul.f32 %v16381_v8, %v6769_v28 }
0x13c1   :  { %v10363_v20 = vpop.eup %10362  ;;  %10382 = vrsqrt.f32 %v6716_v31  ;;  %v6760_v44 = vmul.f32 %v10361_v9, %v16018_v6  ;;  %v8360_v29 = vadd.f32 1e-05, %v8336_v48  ;;  %v6787_v6 = vmul.f32 %v16381_v8, %v6759_v50 }
0x13c2   :  { %v10365_v54 = vpop.eup %10364  ;;  %v8402_v41 = vmul.f32 %v10363_v20, %v16164_v25  ;;  %10384 = vrsqrt.f32 %v8358_v47  ;;  %v6703_v25 = vmul.f32 0.03125, %v16351_v46  ;;  %v6799_v45 = vmul.f32 %v16381_v8, %v6771_v24 }
0x13c3   :  { %v10367_v59 = vpop.eup %10366  ;;  %v6772_v23 = vmul.f32 %v10365_v54, %v16030_v51  ;;  %10386 = vrsqrt.f32 %v6717_v13  ;;  %v6788_v27 = vmul.f32 %v16381_v8, %v6760_v44  ;;  %v16453_v49 = vadd.f32 %v16388_v17, %v6797_v33 }
0x13c4   :  { %v10369_v39 = vpop.eup %10368  ;;  %v6761_v58 = vmul.f32 %v10367_v59, %v16042_v10  ;;  %v8426_v10 = vmul.f32 %v16397_v42, %v8402_v41  ;;  %10388 = vrsqrt.f32 %v6718_v34  ;;  %v6727_v52 = vadd.f32 1e-05, %v6703_v25 }
0x13c5   :  { %v10371_v21 = vpop.eup %10370  ;;  %v8403_v51 = vmul.f32 %v10369_v39, %v16156_v36  ;;  %v6800_v0 = vmul.f32 %v16381_v8, %v6772_v23  ;;  %10390 = vrsqrt.f32 %v8359_v53  ;;  %v6815_v9 = vadd.f32 %v16388_v17, %v6787_v6 }
0x13c6   :  { %v10373_v2 = vpop.eup %10372  ;;  %v8404_v19 = vmul.f32 %v10371_v21, %v16177_v5  ;;  %v6789_v46 = vmul.f32 %v16381_v8, %v6761_v58  ;;  %10392 = vrsqrt.f32 %v8360_v29  ;;  %v16458_v5 = vadd.f32 %v16388_v17, %v6799_v45 }
0x13c7   :  { %v10375_v40 = vpop.eup %10374  ;;  %v6773_v37 = vmul.f32 %v10373_v2, %v16053_v56  ;;  %v8427_v18 = vmul.f32 %v16397_v42, %v8403_v51  ;;  %v8450_v31 = vadd.f32 %v16404_v35, %v8426_v10  ;;  %v6816_v56 = vadd.f32 %v16388_v17, %v6788_v27 }
0x13c8   :  { %v10377_v63 = vpop.eup %10376  ;;  %v6762_v36 = vmul.f32 %v10375_v40, %v16064_v26  ;;  %v8428_v57 = vmul.f32 %v16397_v42, %v8404_v19  ;;  %v8361_v26 = vadd.f32 1e-05, %v8337_v62  ;;  %v16466_v13 = vadd.f32 %v16388_v17, %v6800_v0 }
0x13c9   :  { %v10379_v15 = vpop.eup %10378  ;;  %v8405_v20 = vmul.f32 %v10377_v63, %v16171_v38  ;;  %v6817_v12 = vadd.f32 %v16388_v17, %v6789_v46  ;;  %v6801_v59 = vmul.f32 %v16381_v8, %v6773_v37  ;;  %10394 = vrsqrt.f32 %v6727_v52 }
0x13ca   :  { %v10381_v43 = vpop.eup %10380  ;;  %v6790_v50 = vmul.f32 %v16381_v8, %v6762_v36  ;;  %v6774_v24 = vmul.f32 %v10379_v15, %v16075_v4  ;;  %v8451_v44 = vadd.f32 %v16404_v35, %v8427_v18  ;;  %v8474_v34 = vadd.f32 %v8450_v31, %v6815_v9 }
0x13cb   :  { %v10383_v54 = vpop.eup %10382  ;;  %v6763_v39 = vmul.f32 %v10381_v43, %v16087_v60  ;;  %v8429_v23 = vmul.f32 %v16397_v42, %v8405_v20  ;;  %v8452_v58 = vadd.f32 %v16404_v35, %v8428_v57  ;;  %10396 = vrsqrt.f32 %v8361_v26 }
0x13cc   :  { %v10385_v48 = vpop.eup %10384  ;;  %v6764_v33 = vmul.f32 %v10383_v54, %v16106_v14  ;;  %v16481_v40 = vadd.f32 %v16388_v17, %v6801_v59  ;;  %v6704_v6 = vmul.f32 0.03125, %v16355_v16  ;;  %v6818_v10 = vadd.f32 %v16388_v17, %v6790_v50 }
0x13cd   :  { %v10387_v41 = vpop.eup %10386  ;;  %v8406_v4 = vmul.f32 %v10385_v48, %v16189_v11  ;;  %v8475_v27 = vadd.f32 %v8451_v44, %v6816_v56  ;;  %v8498_v14 = vmul.f32 0.5, %v8474_v34  ;;  %v16487_v62 = vmul.f32 %v16381_v8, %v6774_v24 }
0x13ce   :  { %v10389_v60 = vpop.eup %10388  ;;  %v6765_v45 = vmul.f32 %v10387_v41, %v16118_v55  ;;  %v6791_v63 = vmul.f32 %v16381_v8, %v6763_v39  ;;  %v8453_v0 = vadd.f32 %v16404_v35, %v8429_v23  ;;  %v8476_v46 = vadd.f32 %v8452_v58, %v6817_v12 }
0x13cf   :  { %v10391_v51 = vpop.eup %10390  ;;  %v6792_v16 = vmul.f32 %v16381_v8, %v6764_v33  ;;  %v8430_v55 = vmul.f32 %v16397_v42, %v8406_v4  ;;  %v16493_v15 = vadd.f32 1e-05, %v6704_v6  ;;  %v6766_v18 = vmul.f32 %v10389_v60, %v16130_v7  ;;  %v17449_v60 = vld [vmem:[#allocation70_spill] sm:$0xff] }
0x13d0   :  { %v10393_v11 = vpop.eup %10392  ;;  %v6793_v9 = vmul.f32 %v16381_v8, %v6765_v45  ;;  %v8499_v43 = vmul.f32 0.5, %v8475_v27  ;;  %v8523_v56 = vsel %vm282_vm0, %v8498_v14, 0.0  ;;  %v8407_v20 = vmul.f32 %v10391_v51, %v16183_v3  ;;  %v17450_v51 = vld [vmem:[#allocation38_spill] sm:$0xff] }
0x13d1   :  { %v8408_v57 = vmul.f32 %v10393_v11, %v16201_v32  ;;  %v8500_v54 = vmul.f32 0.5, %v8476_v46  ;;  %v6820_v48 = vadd.f32 %v16388_v17, %v6792_v16  ;;  %v8454_v7 = vadd.f32 %v16404_v35, %v8430_v55 }
0x13d2   :  { %v6821_v3 = vadd.f32 %v16388_v17, %v6793_v9  ;;  %v6794_v32 = vmul.f32 %v16381_v8, %v6766_v18  ;;  %v8524_v41 = vadd.f32 %v8523_v56, %v16421_v22  ;;  %v8525_v44 = vsel %vm282_vm0, %v8499_v43, 0.0 }
0x13d3   :  { %v16500_v26 = vpop.eup %10394  ;;  %v8431_v34 = vmul.f32 %v16397_v42, %v8407_v20  ;;  %v17451_v20 = vld [vmem:[#allocation54_spill] sm:$0xff] }
0x13d4   :  { %v8297_v47 = vpop.xlane.xlu1 %8296 }
0x13d5   :  { %v8341_v61 = vmul.f32 0.03125, %v8297_v47  ;;  %v8294_v28 = vpop.xlane.xlu0 %8293  ;;  %v8477_v47 = vadd.f32 %v8453_v0, %v6818_v10 }
0x13d6   :  { %v8340_v38 = vmul.f32 0.03125, %v8294_v28  ;;  %v6819_v28 = vadd.f32 %v16388_v17, %v6791_v63  ;;  %v8455_v63 = vadd.f32 %v16404_v35, %v8431_v34 }
0x13d7   :  { %v8365_v21 = vadd.f32 1e-05, %v8341_v61 }
0x13d8   :  { %v8364_v53 = vadd.f32 1e-05, %v8340_v38  ;;  %v8288_v2 = vpop.xlane.xlu1 %8287  ;;  %v10397_v38 = vpop.eup %10396 }
0x13d9   :  { %10398 = vrsqrt.f32 %v8365_v21  ;;  %v8338_v25 = vmul.f32 0.03125, %v8288_v2  ;;  %v16478_v29 = vpop.xlane.xlu0 %6677  ;;  %v8432_v21 = vmul.f32 %v16397_v42, %v8408_v57  ;;  %v8527_v2 = vsel %vm282_vm0, %v8500_v54, 0.0 }
0x13da   :  { %10400 = vrsqrt.f32 %v8364_v53  ;;  %v8501_v53 = vmul.f32 0.5, %v8477_v47  ;;  %v8409_v10 = vmul.f32 %v10397_v38, %v17450_v51  ;;  %v8479_v47 = vadd.f32 %v8455_v63, %v6820_v48 }
0x13db   :  { %v8362_v19 = vadd.f32 1e-05, %v8338_v25  ;;  %v8478_v25 = vadd.f32 %v8454_v7, %v6819_v28  ;;  %v8456_v0 = vadd.f32 %v16404_v35, %v8432_v21  ;;  %v16530_v28 = vadd.f32 %v16388_v17, %v16487_v62 }
0x13dc   :  { %v8291_v37 = vpop.xlane.xlu1 %8290  ;;  %v8433_v43 = vmul.f32 %v16397_v42, %v8409_v10  ;;  %v6822_v7 = vadd.f32 %v16388_v17, %v6794_v32  ;;  %v17455_v10 = vld [vmem:[#allocation68_spill] sm:$0xff] }
0x13dd   :  { %10402 = vrsqrt.f32 %v8362_v19  ;;  %v8339_v36 = vmul.f32 0.03125, %v8291_v37  ;;  %v6645_v52 = vpop.xlane.xlu0 %6644  ;;  %v8526_v19 = vadd.f32 %v8525_v44, %v8524_v41  ;;  %v8502_v9 = vmul.f32 0.5, %v8478_v25 }
0x13de   :  { %v6695_v31 = vmul.f32 0.03125, %v6645_v52  ;;  %v8529_v52 = vsel %vm282_vm0, %v8501_v53, 0.0  ;;  %v8503_v53 = vmul.f32 0.5, %v8479_v47 }
0x13df   :  { %v8363_v12 = vadd.f32 1e-05, %v8339_v36  ;;  %v8528_v36 = vadd.f32 %v8527_v2, %v8526_v19  ;;  %v8531_v48 = vsel %vm282_vm0, %v8502_v9, 0.0  ;;  %v17456_v9 = vld [vmem:[#allocation71_spill] sm:$0xff] }
0x13e0   :  { %v6719_v59 = vadd.f32 1e-05, %v6695_v31  ;;  %v8303_v61 = vpop.xlane.xlu1 %8302 }
0x13e1   :  { %v8343_v50 = vmul.f32 0.03125, %v8303_v61  ;;  %v16505_v24 = vpop.xlane.xlu0 %6680  ;;  %v8530_v41 = vadd.f32 %v8529_v52, %v8528_v36 }
0x13e2   :  { %10404 = vrsqrt.f32 %v6719_v59  ;;  %v8480_v59 = vadd.f32 %v8456_v0, %v6821_v3 }
0x13e3   :  { %v10399_v39 = vpop.eup %10398  ;;  %v8367_v23 = vadd.f32 1e-05, %v8343_v50  ;;  %10406 = vrsqrt.f32 %v8363_v12 }
0x13e4   :  { %v10401_v58 = vpop.eup %10400  ;;  %v8413_v33 = vmul.f32 %v10399_v39, %v16212_v30  ;;  %v8300_v4 = vpop.xlane.xlu1 %8299  ;;  %v8504_v2 = vmul.f32 0.5, %v8480_v59 }
0x13e5   :  { %v8412_v22 = vmul.f32 %v10401_v58, %v17449_v60  ;;  %10408 = vrsqrt.f32 %v8367_v23  ;;  %v8342_v6 = vmul.f32 0.03125, %v8300_v4  ;;  %v6648_v45 = vpop.xlane.xlu0 %6647  ;;  %v17453_v4 = vld [vmem:[#allocation52_spill] sm:$0xff] }
0x13e6   :  { %v8437_v27 = vmul.f32 %v16397_v42, %v8413_v33  ;;  %v6696_v14 = vmul.f32 0.03125, %v6648_v45  ;;  %v17454_v45 = vld [vmem:[#allocation27_spill] sm:$0xff] }
0x13e7   :  { %v10403_v11 = vpop.eup %10402  ;;  %v8436_v30 = vmul.f32 %v16397_v42, %v8412_v22  ;;  %v8366_v46 = vadd.f32 1e-05, %v8342_v6  ;;  %v8532_v6 = vadd.f32 %v8531_v48, %v8530_v41  ;;  %v6705_v51 = vmul.f32 0.03125, %v17454_v45 }
0x13e8   :  { %v8461_v37 = vadd.f32 %v16404_v35, %v8437_v27  ;;  %v6720_v16 = vadd.f32 1e-05, %v6696_v14  ;;  %v8309_v55 = vpop.xlane.xlu1 %8308  ;;  %v8410_v57 = vmul.f32 %v10403_v11, %v17451_v20  ;;  %v17457_v20 = vld [vmem:[#allocation60_spill] sm:$0xff] }
0x13e9   :  { %v8460_v18 = vadd.f32 %v16404_v35, %v8436_v30  ;;  %10410 = vrsqrt.f32 %v8366_v46  ;;  %v8345_v31 = vmul.f32 0.03125, %v8309_v55  ;;  %v6706_v46 = vmul.f32 0.03125, %v16478_v29 }
0x13ea   :  { %v8485_v56 = vadd.f32 %v8461_v37, %v16439_v1  ;;  %10412 = vrsqrt.f32 %v6720_v16  ;;  %v17452_v1 = vld [vmem:[#allocation46_spill] sm:$0xff]  ;;  %v8434_v21 = vmul.f32 %v16397_v42, %v8410_v57  ;;  %v8533_v16 = vsel %vm282_vm0, %v8503_v53, 0.0 }
0x13eb   :  { %v8484_v54 = vadd.f32 %v8460_v18, %v16453_v49  ;;  %v8369_v12 = vadd.f32 1e-05, %v8345_v31  ;;  %v8457_v49 = vadd.f32 %v16404_v35, %v8433_v43  ;;  %v8535_v55 = vsel %vm282_vm0, %v8504_v2, 0.0 }
0x13ec   :  { %v10405_v61 = vpop.eup %10404  ;;  %v8509_v50 = vmul.f32 0.5, %v8485_v56  ;;  %v8306_v38 = vpop.xlane.xlu1 %8305  ;;  %v8458_v63 = vadd.f32 %v16404_v35, %v8434_v21  ;;  %v8534_v56 = vadd.f32 %v8533_v16, %v8532_v6  ;;  %v17460_v16 = vld [vmem:[#allocation69_spill] sm:$0xff] }
0x13ed   :  { %v8508_v39 = vmul.f32 0.5, %v8484_v54  ;;  %v6767_v44 = vmul.f32 %v10405_v61, %v17452_v1  ;;  %10414 = vrsqrt.f32 %v8369_v12  ;;  %v10407_v34 = vpop.eup %10406  ;;  %v8344_v62 = vmul.f32 0.03125, %v8306_v38  ;;  %v17458_v1 = vld [vmem:[#allocation66_spill] sm:$0xff] }
0x13ee   :  { %v8544_v3 = vsel %vm282_vm0, %v8509_v50, 0.0  ;;  %v8411_v27 = vmul.f32 %v10407_v34, %v17455_v10  ;;  %v8481_v0 = vadd.f32 %v8457_v49, %v6822_v7  ;;  %v6729_v54 = vadd.f32 1e-05, %v6705_v51  ;;  %v17459_v51 = vld [vmem:[#allocation48_spill] sm:$0xff] }
0x13ef   :  { %v10409_v23 = vpop.eup %10408  ;;  %v8543_v32 = vsel %vm282_vm0, %v8508_v39, 0.0  ;;  %v6795_v58 = vmul.f32 %v16381_v8, %v6767_v44  ;;  %v8368_v60 = vadd.f32 1e-05, %v8344_v62  ;;  %v8536_v61 = vadd.f32 %v8535_v55, %v8534_v56 }
0x13f0   :  { %v16540_v33 = vadd.f32 %v8544_v3, %v8543_v32  ;;  %v8415_v25 = vmul.f32 %v10409_v23, %v17453_v4  ;;  %v8315_v22 = vpop.xlane.xlu1 %8314  ;;  %v8435_v29 = vmul.f32 %v16397_v42, %v8411_v27  ;;  %v8505_v59 = vmul.f32 0.5, %v8481_v0 }
0x13f1   :  { %v8347_v14 = vmul.f32 0.03125, %v8315_v22  ;;  %v6823_v19 = vadd.f32 %v16388_v17, %v6795_v58  ;;  %10416 = vrsqrt.f32 %v8368_v60  ;;  %v6730_v50 = vadd.f32 1e-05, %v6706_v46 }
0x13f2   :  { %v8439_v11 = vmul.f32 %v16397_v42, %v8415_v25  ;;  %10418 = vrsqrt.f32 %v16493_v15  ;;  %v8459_v21 = vadd.f32 %v16404_v35, %v8435_v29  ;;  %v6707_v62 = vmul.f32 0.03125, %v16505_v24 }
0x13f3   :  { %v10411_v30 = vpop.eup %10410  ;;  %v8371_v37 = vadd.f32 1e-05, %v8347_v14  ;;  %v8482_v43 = vadd.f32 %v8458_v63, %v6823_v19  ;;  %v8537_v2 = vsel %vm282_vm0, %v8505_v59, 0.0  ;;  %v6775_v55 = vmul.f32 %v16500_v26, %v17460_v16 }
0x13f4   :  { %v10413_v36 = vpop.eup %10412  ;;  %v8463_v52 = vadd.f32 %v16404_v35, %v8439_v11  ;;  %v8414_v18 = vmul.f32 %v10411_v30, %v17456_v9  ;;  %v8312_v31 = vpop.xlane.xlu1 %8311  ;;  %v8538_v10 = vadd.f32 %v8537_v2, %v8536_v61  ;;  %v6731_v27 = vadd.f32 1e-05, %v6707_v62 }
0x13f5   :  { %v6768_v57 = vmul.f32 %v10413_v36, %v17457_v20  ;;  %v8346_v47 = vmul.f32 0.03125, %v8312_v31  ;;  %10420 = vrsqrt.f32 %v8371_v37  ;;  %v8506_v34 = vmul.f32 0.5, %v8482_v43 }
0x13f6   :  { %v8438_v12 = vmul.f32 %v16397_v42, %v8414_v18  ;;  %v8487_v39 = vadd.f32 %v8463_v52, %v16466_v13  ;;  %v6684_v13 = vpop.xlane.xlu0 %6683  ;;  %v6803_v29 = vmul.f32 %v16381_v8, %v6775_v55 }
0x13f7   :  { %v10415_v7 = vpop.eup %10414  ;;  %v8370_v38 = vadd.f32 1e-05, %v8346_v47  ;;  %v6796_v41 = vmul.f32 %v16381_v8, %v6768_v57  ;;  %v8539_v45 = vsel %vm282_vm0, %v8506_v34, 0.0  ;;  %v6708_v19 = vmul.f32 0.03125, %v6684_v13 }
0x13f8   :  { %v8462_v15 = vadd.f32 %v16404_v35, %v8438_v12  ;;  %v8417_v44 = vmul.f32 %v10415_v7, %v17458_v1  ;;  %v8321_v48 = vpop.xlane.xlu1 %8320  ;;  %v8511_v25 = vmul.f32 0.5, %v8487_v39  ;;  %v8540_v37 = vadd.f32 %v8539_v45, %v8538_v10  ;;  %v17462_v12 = vld [vmem:[#allocation86_spill] sm:$0xff]  ;;  %v17463_v39 = vld [vmem:[#allocation47_spill] sm:$0xff] }
0x13f9   :  { %10422 = vrsqrt.f32 %v8370_v38  ;;  %v8349_v49 = vmul.f32 0.03125, %v8321_v48  ;;  %v6824_v3 = vadd.f32 %v16388_v17, %v6796_v41  ;;  %v6732_v56 = vadd.f32 1e-05, %v6708_v19 }
0x13fa   :  { %10424 = vrsqrt.f32 %v6729_v54  ;;  %v8486_v23 = vadd.f32 %v8462_v15, %v16458_v5  ;;  %v8441_v32 = vmul.f32 %v16397_v42, %v8417_v44  ;;  %v8548_v36 = vsel %vm282_vm0, %v8511_v25, 0.0  ;;  %v17464_v44 = vld [vmem:[#allocation40_spill] sm:$0xff]  ;;  %v17465_v25 = vld [vmem:[#allocation37_spill] sm:$0xff] }
0x13fb   :  { %10426 = vrsqrt.f32 %v6730_v50  ;;  %v8373_v58 = vadd.f32 1e-05, %v8349_v49  ;;  %v8483_v53 = vadd.f32 %v8459_v21, %v6824_v3  ;;  %v10417_v4 = vpop.eup %10416  ;;  %v6831_v3 = vadd.f32 %v16388_v17, %v6803_v29 }
0x13fc   :  { %v8510_v60 = vmul.f32 0.5, %v8486_v23  ;;  %v8465_v22 = vadd.f32 %v16404_v35, %v8441_v32  ;;  %v8318_v6 = vpop.xlane.xlu1 %8317  ;;  %v8416_v24 = vmul.f32 %v10417_v4, %v17459_v51  ;;  %v10419_v63 = vpop.eup %10418 }
0x13fd   :  { %10428 = vrsqrt.f32 %v8373_v58  ;;  %v8348_v5 = vmul.f32 0.03125, %v8318_v6  ;;  %v8507_v11 = vmul.f32 0.5, %v8483_v53  ;;  %v6776_v15 = vmul.f32 %v10419_v63, %v17463_v39 }
0x13fe   :  { %v8546_v14 = vsel %vm282_vm0, %v8510_v60, 0.0  ;;  %v8440_v30 = vmul.f32 %v16397_v42, %v8416_v24  ;;  %v8489_v52 = vadd.f32 %v8465_v22, %v16530_v28  ;;  %v17461_v28 = vld [vmem:[#allocation84_spill] sm:$0xff]  ;;  %v17466_v24 = vld [vmem:[#allocation51_spill] sm:$0xff] }
0x13ff   :  { %v8547_v0 = vadd.f32 %v8546_v14, %v16540_v33  ;;  %v8372_v46 = vadd.f32 1e-05, %v8348_v5  ;;  %9710 = vmatprep.mubr.msk.f32.mxu1 %vm282_vm0, %v8507_v11  ;;  %v8541_v9 = vsel %vm282_vm0, %v8507_v11, 0.0  ;;  %v10421_v18 = vpop.eup %10420  ;;  %v6804_v53 = vmul.f32 %v16381_v8, %v6776_v15  ;;  %v17467_v14 = vld [vmem:[#allocation80_spill] sm:$0xff]  ;;  %v17471_v15 = vld [vmem:[#allocation81_spill] sm:$0xff] }
0x1400   :  { %v8464_v43 = vadd.f32 %v16404_v35, %v8440_v30  ;;  %v8542_v33 = vadd.f32 %v8541_v9, %v8540_v37  ;;  %v8419_v54 = vmul.f32 %v10421_v18, %v17461_v28  ;;  %v8513_v50 = vmul.f32 0.5, %v8489_v52  ;;  %v17470_v28 = vld [vmem:[#allocation29_spill] sm:$0xff] }
0x1401   :  { %v8549_v31 = vadd.f32 %v8548_v36, %v8547_v0  ;;  %10430 = vrsqrt.f32 %v8372_v46  ;;  %v6832_v11 = vadd.f32 %v16388_v17, %v6804_v53  ;;  %v17468_v46 = vld [vmem:[#allocation50_spill] sm:$0xff] }
0x1402   :  { %10432 = vrsqrt.f32 %v6731_v27  ;;  %v8488_v57 = vadd.f32 %v8464_v43, %v16481_v40  ;;  %v8566_v26 = vmul.f32 0.083333336, %v8542_v33  ;;  %v8443_v62 = vmul.f32 %v16397_v42, %v8419_v54 }
0x1403   :  { %v10423_v20 = vpop.eup %10422  ;;  %10434 = vrsqrt.f32 %v6732_v56  ;;  %v8552_v13 = vsel %vm282_vm0, %v8513_v50, 0.0 }
0x1404   :  { %v10425_v47 = vpop.eup %10424  ;;  %v8418_v59 = vmul.f32 %v10423_v20, %v17462_v12  ;;  %v8324_v61 = vpop.xlane.xlu1 %8323  ;;  %v8512_v38 = vmul.f32 0.5, %v8488_v57  ;;  %9721 = vmatprep.mubr.msk.f32.mxu0 %vm282_vm0, %v8566_v26  ;;  %v8467_v10 = vadd.f32 %v16404_v35, %v8443_v62  ;;  %v17469_v20 = vld [vmem:[#allocation44_spill] sm:$0xff] }
0x1405   :  { %v10427_v7 = vpop.eup %10426  ;;  %v8350_v41 = vmul.f32 0.03125, %v8324_v61  ;;  %v6777_v48 = vmul.f32 %v10425_v47, %v17464_v44 }
0x1406   :  { %v8442_v40 = vmul.f32 %v16397_v42, %v8418_v59  ;;  %v8550_v34 = vsel %vm282_vm0, %v8512_v38, 0.0  ;;  %v6778_v5 = vmul.f32 %v10427_v7, %v17466_v24  ;;  %v8491_v9 = vadd.f32 %v8467_v10, %v6832_v11 }
0x1407   :  { %v10429_v1 = vpop.eup %10428  ;;  %v8374_v49 = vadd.f32 1e-05, %v8350_v41  ;;  %v8551_v21 = vadd.f32 %v8550_v34, %v8549_v31  ;;  %v6805_v6 = vmul.f32 %v16381_v8, %v6777_v48 }
0x1408   :  { %v8466_v23 = vadd.f32 %v16404_v35, %v8442_v40  ;;  %v8327_v32 = vpop.xlane.xlu1 %8326  ;;  %v8421_v60 = vmul.f32 %v10429_v1, %v17465_v25  ;;  %v6806_v52 = vmul.f32 %v16381_v8, %v6778_v5  ;;  %v8515_v47 = vmul.f32 0.5, %v8491_v9  ;;  %v8972_v5 = vld [vmem:[%s17472_s14] ss:$0 sm:$0xff] }
0x1409   :  { %10436 = vrsqrt.f32 %v8374_v49  ;;  %v8351_v58 = vmul.f32 0.03125, %v8327_v32  ;;  %v8553_v2 = vadd.f32 %v8552_v13, %v8551_v21  ;;  %v6833_v36 = vadd.f32 %v16388_v17, %v6805_v6 }
0x140a   :  { %v8490_v4 = vadd.f32 %v8466_v23, %v6831_v3  ;;  %v8445_v0 = vmul.f32 %v16397_v42, %v8421_v60  ;;  %v6834_v26 = vadd.f32 %v16388_v17, %v6806_v52  ;;  %v8556_v38 = vsel %vm282_vm0, %v8515_v47, 0.0  ;;  %v8975_v60 = vld [vmem:[#allocation17] ss:$0 sm:$0xff] }
0x140b   :  { %v10431_v22 = vpop.eup %10430  ;;  %v8375_v45 = vadd.f32 1e-05, %v8351_v58 }
0x140c   :  { %v10433_v51 = vpop.eup %10432  ;;  %v8514_v27 = vmul.f32 0.5, %v8490_v4  ;;  %v8420_v19 = vmul.f32 %v10431_v22, %v17467_v14  ;;  %v8469_v31 = vadd.f32 %v16404_v35, %v8445_v0 }
0x140d   :  { %10438 = vrsqrt.f32 %v8375_v45  ;;  %v6779_v37 = vmul.f32 %v10433_v51, %v17468_v46  ;;  %v10435_v55 = vpop.eup %10434 }
0x140e   :  { %v8554_v63 = vsel %vm282_vm0, %v8514_v27, 0.0  ;;  %v8444_v30 = vmul.f32 %v16397_v42, %v8420_v19  ;;  %v6780_v57 = vmul.f32 %v10435_v55, %v17469_v20  ;;  %v8493_v12 = vadd.f32 %v8469_v31, %v6834_v26 }
0x140f   :  { %v8555_v16 = vadd.f32 %v8554_v63, %v8553_v2  ;;  %v6807_v56 = vmul.f32 %v16381_v8, %v6779_v37 }
0x1410   :  { %v8468_v18 = vadd.f32 %v16404_v35, %v8444_v30  ;;  %v6808_v50 = vmul.f32 %v16381_v8, %v6780_v57  ;;  %v8517_v44 = vmul.f32 0.5, %v8493_v12 }
0x1411   :  { %v6835_v7 = vadd.f32 %v16388_v17, %v6807_v56  ;;  %v8557_v1 = vadd.f32 %v8556_v38, %v8555_v16 }
0x1412   :  { %v8492_v43 = vadd.f32 %v8468_v18, %v6833_v36  ;;  %v6836_v3 = vadd.f32 %v16388_v17, %v6808_v50  ;;  %v8560_v8 = vsel %vm282_vm0, %v8517_v44, 0.0 }
0x1413   :  { %v10437_v33 = vpop.eup %10436 }
0x1414   :  { %v8516_v29 = vmul.f32 0.5, %v8492_v43  ;;  %v8422_v54 = vmul.f32 %v10437_v33, %v17470_v28 }
0x1416   :  { %v8446_v59 = vmul.f32 %v16397_v42, %v8422_v54  ;;  %v8558_v41 = vsel %vm282_vm0, %v8516_v29, 0.0 }
0x1417   :  { %v10439_v61 = vpop.eup %10438  ;;  %v8559_v49 = vadd.f32 %v8558_v41, %v8557_v1 }
0x1418   :  { %v8470_v39 = vadd.f32 %v16404_v35, %v8446_v59  ;;  %v8423_v40 = vmul.f32 %v10439_v61, %v17471_v15 }
0x1419   :  { %v8561_v13 = vadd.f32 %v8560_v8, %v8559_v49 }
0x141a   :  { %v8494_v48 = vadd.f32 %v8470_v39, %v6835_v7  ;;  %v8447_v34 = vmul.f32 %v16397_v42, %v8423_v40 }
0x141c   :  { %v8518_v21 = vmul.f32 0.5, %v8494_v48  ;;  %v8471_v62 = vadd.f32 %v16404_v35, %v8447_v34 }
0x141e   :  { %v8495_v23 = vadd.f32 %v8471_v62, %v6836_v3  ;;  %v8562_v32 = vsel %vm282_vm0, %v8518_v21, 0.0 }
0x141f   :  { %v8563_v53 = vadd.f32 %v8562_v32, %v8561_v13 }
0x1420   :  { %v8519_v58 = vmul.f32 0.5, %v8495_v23 }
0x1422   :  { %9711 = vmatmul.mubr.msk.f32.vlgmr.msra.gmra.mrb[86].mxu1 %vm282_vm0, %v8519_v58  ;;  %v8564_v2 = vsel %vm282_vm0, %v8519_v58, 0.0 }
0x1423   :  { %v8565_v4 = vadd.f32 %v8564_v2, %v8563_v53 }
0x1425   :  { %v8567_v42 = vmul.f32 0.083333336, %v8565_v4 }
0x1427   :  { %9722 = vmatmul.mubr.msk.f32.vlgmr.msra.gmra.mrb[98].mxu0 %vm282_vm0, %v8567_v42 }
0x14f5   :  { %v9712_v17 = vpop.f32.mrb[86].mxu1 }
0x14f6   :  { %v8646_v25 = vpop.f32.mrb[87].mxu1  ;;  %v8652_v10 = vadd.f32 %v9712_v17, %v8972_v5 }
0x14f7   :  { %v8647_v27 = vadd.f32 %v8972_v5, %v8646_v25 }
0x14f8   :  { %v8656_v14 = vmax.f32 %v8652_v10, 0.0 }
0x14f9   :  { %v8655_v19 = vmax.f32 %v8647_v27, 0.0 }
0x14fa   :  { %v9723_v35 = vpop.f32.mrb[98].mxu0 }
0x14fb   :  { %v8741_v22 = vadd.f32 %v9723_v35, %v8975_v60  ;;  %v8735_v6 = vpop.f32.mrb[99].mxu0 }
0x14fc   :  { %v8736_v45 = vadd.f32 %v8975_v60, %v8735_v6 }
0x14fd   :  { %v8745_v51 = vmax.f32 %v8741_v22, 0.0 }
0x14fe   :  { %v8744_v24 = vmax.f32 %v8736_v45, 0.0 }
0x14ff   :  { %8750 = vrot.lane.b32.xlu1 %v8745_v51, %s10738_s29 }
0x1500   :  { %8748 = vrot.lane.b32.xlu0 %v8744_v24, %s10738_s29  ;;  %s10686_s29 = scalar_lea.vmem %s8765_s6, 256 }
0x1501   :  { %p10687_p10 = scmp.ne.s32.totalorder %s8765_s6, %s10686_s29  ;;  %p10692_p12 = scmp.lt.s32.totalorder %s10686_s29, %s10686_s29 }
0x1503   :  { %p10693_p13 = por %p10692_p12, %p10691_p11 }
0x1505   :  { %p10694_p0 = pnand %p10693_p13, %p10687_p10 }
0x1571   :  { %v8751_v11 = vpop.permute.xlu1 %8750 }
0x1572   :  { %v8755_v63 = vsel %vm282_vm0, %v8656_v14, %v8751_v11  ;;  %v8749_v0 = vpop.permute.xlu0 %8748 }
0x1573   :  { %v8754_v30 = vsel %vm282_vm0, %v8655_v19, %v8749_v0  ;;  %8758 = vst.msk [vmem:[#allocation19 + $0x8] sm:$0xff] %vm8756_vm3, %v8755_v63 }
0x1574   :  { %8757 = vst.msk [vmem:[#allocation19] sm:$0xff] %vm8756_vm3, %v8754_v30 }
0x1575   :  { %10697 = shalt.err (!%p10694_p0)
}
0x1576   :  { %s17473_s4 = sld [smem:[#allocation99_spill]] }
0x157c   :  { %s10698_s30 = scalar_lea.hbm %s17473_s4, 256 }
0x157d   :  { %p10699_p1 = scmp.ne.s32.totalorder %s17473_s4, %s10698_s30  ;;  %p10702_p2 = scmp.lt.u32.totalorder %s10698_s30, %s17473_s4 }
0x157f   :  { %p10704_p3 = pnand %p10702_p2, %p10699_p1 }
0x1581   :  { %10707 = shalt.err (!%p10704_p3)
}
0x1582   :  { %8770 = dma.vmem_to_hbm [thread:$0]  %s8765_s6, 256, %s17473_s4, [#allocation4], %s10723_s26, %s10723_s26, %s10724_s27  }
0x1583   :  { %10720 = dma.done.wait [#allocation4], 256  }
0x1584   :  { %10721 = vsyncadd [#allocation4], 4294967040 }
0x1585   :  { %8774 = vsyncpa [#allocation3], 1 }
0x1586   :  { %8775 = vsyncpa [#allocation6], 1 }
0x1587   :  { %8776 = vsyncpa [#allocation9], 1 }
0x1588   :  { %8777 = vsyncpa [#allocation12], 1 }
0x1589   :  { %8778 = vsyncpa [#allocation15], 1 }
0x158a   :  { %8779 = vsyncpa [#allocation18], 1 }
0x158b   :  { %8780 = vsyncpa [#allocation4], 1 }

</bundles_post_ra>
